<compile_context>
chip_gen: v6e
topology: v6e:2x2x1
jax: 0.10.0
libtpu: 0.0.40
codegen_flags: <defaults>
</compile_context>

<pallas_src>
import functools
import math

import jax
import jax.numpy as jnp
from jax import lax
from jax.experimental import pallas as pl
from jax.experimental.pallas import tpu as pltpu

VMEM_LIMIT = 64 * 1024 * 1024   # scoped-VMEM cap; actual per-kernel use ~10-20 MB
TL_PREF = 512                   # sequence-row tile for linear layers
TN_PREF = 1024                  # output-feature tile
TK_PREF = 1024                  # reduction tile
ATTN_TQ = 256                   # query tile / kv chunk for flash attention


# ------------------------------- tiling utils -------------------------------

def _round_up(x, m):
    return (x + m - 1) // m * m


def _pick(n, pref, align):
    """(tile, padded_extent) for a dim of size n.  tile divides padded_extent and
    the resulting blocks satisfy the TPU (8,128) constraint (or are full-dim)."""
    if n < pref:
        if n <= align:
            return n, n
        t = _round_up(n, align)
        return t, t
    cands = (pref, pref // 2, pref // 4)
    for t in cands:                      # prefer zero padding
        if n % t == 0:
            return t, n
    for t in cands:                      # else allow <= 25% padding
        p = _round_up(n, t)
        if p - n <= n // 4:
            return t, p
    return pref, _round_up(n, pref)


# ----------------------------- Pallas: linear -------------------------------

def _gelu_f32(x):
    return 0.5 * x * (1.0 + jnp.tanh(0.7978845608028654 * (x + 0.044715 * x * x * x)))


def _linear_kernel(x_ref, w_ref, b_ref, o_ref, acc_ref, *, activation):
    @pl.when(pl.program_id(3) == 0)
    def _():
        acc_ref[...] = jnp.zeros_like(acc_ref)

    acc_ref[...] += jnp.dot(x_ref[0], w_ref[...], preferred_element_type=jnp.float32)

    @pl.when(pl.program_id(3) == pl.num_programs(3) - 1)
    def _():
        y = acc_ref[...] + b_ref[...]
        if activation == "gelu":
            y = _gelu_f32(y)
        o_ref[0] = y.astype(o_ref.dtype)


def _linear_res_kernel(x_ref, w_ref, b_ref, g_ref, r_ref, o_ref, acc_ref, *, activation):
    @pl.when(pl.program_id(3) == 0)
    def _():
        acc_ref[...] = jnp.zeros_like(acc_ref)

    acc_ref[...] += jnp.dot(x_ref[0], w_ref[...], preferred_element_type=jnp.float32)

    @pl.when(pl.program_id(3) == pl.num_programs(3) - 1)
    def _():
        y = acc_ref[...] + b_ref[...]
        if activation == "gelu":
            y = _gelu_f32(y)
        o_ref[0] = (r_ref[0].astype(jnp.float32) + g_ref[0] * y).astype(o_ref.dtype)


def linear(x, p, n_out, activation=None, res=None, gate=None):
    """y = x @ w + b with optional fused tanh-GELU and/or fused gated residual
    (o = res + gate * y).  x: (B, L, K) -> (B, L, n_out) bf16.
    p['w'] is pre-transposed (Kp, Np) bf16 and pre-padded at init; p['b'] (1, Np) f32."""
    B, L, K = x.shape
    Kp, Np = p["w"].shape
    tk, _ = _pick(K, TK_PREF, 128)
    tn, _ = _pick(n_out, TN_PREF, 128)
    tl, Lp = _pick(L, TL_PREF, 8)

    x = x.astype(jnp.bfloat16)
    if (Lp, Kp) != (L, K):
        x = jnp.pad(x, ((0, 0), (0, Lp - L), (0, Kp - K)))

    grid = (B, Lp // tl, Np // tn, Kp // tk)
    in_specs = [
        pl.BlockSpec((1, tl, tk), lambda b, l, j, k: (b, l, k)),
        pl.BlockSpec((tk, tn), lambda b, l, j, k: (k, j)),
        pl.BlockSpec((1, tn), lambda b, l, j, k: (0, j)),
    ]
    operands = [x, p["w"], p["b"]]
    if res is None:
        kernel = functools.partial(_linear_kernel, activation=activation)
    else:
        r = res.astype(jnp.bfloat16)
        if (Lp, Np) != (L, n_out):
            r = jnp.pad(r, ((0, 0), (0, Lp - L), (0, Np - n_out)))
        g = gate.reshape(B, 1, n_out).astype(jnp.float32)
        if Np != n_out:
            g = jnp.pad(g, ((0, 0), (0, 0), (0, Np - n_out)))
        in_specs += [
            pl.BlockSpec((1, 1, tn), lambda b, l, j, k: (b, 0, j)),
            pl.BlockSpec((1, tl, tn), lambda b, l, j, k: (b, l, j)),
        ]
        operands += [g, r]
        kernel = functools.partial(_linear_res_kernel, activation=activation)

    out = pl.pallas_call(
        kernel,
        grid=grid,
        in_specs=in_specs,
        out_specs=pl.BlockSpec((1, tl, tn), lambda b, l, j, k: (b, l, j)),
        out_shape=jax.ShapeDtypeStruct((B, Lp, Np), jnp.bfloat16),
        scratch_shapes=[pltpu.VMEM((tl, tn), jnp.float32)],
        compiler_params=pltpu.CompilerParams(
            dimension_semantics=("parallel", "parallel", "parallel", "arbitrary"),
            vmem_limit_bytes=VMEM_LIMIT),
    )(*operands)
    if (Lp, Np) != (L, n_out):
        out = out[:, :L, :n_out]
    return out


def small_linear(x, p):
    """Tiny (M = batch) conditioning matmuls: plain XLA; pallas launch overhead
    dominates at this size. bf16 weights, f32 accumulation."""
    return jnp.dot(x.astype(jnp.bfloat16), p["w"],
                   preferred_element_type=jnp.float32) + p["b"]


# --------------------------- Pallas: flash attention -------------------------

def _attn_kernel(q_ref, k_ref, v_ref, o_ref, m_sc, l_sc, acc_sc, *,
                 nh, tki, l_valid, lp):
    d = q_ref.shape[3]
    nkv = lp // tki
    need_mask = lp != l_valid
    for hi in range(nh):                       # static unroll over grouped heads
        m_sc[...] = jnp.full_like(m_sc, -jnp.inf)
        l_sc[...] = jnp.zeros_like(l_sc)
        acc_sc[...] = jnp.zeros_like(acc_sc)

        def body(i, carry, hi=hi):
            off = pl.multiple_of(i * tki, tki)
            q = q_ref[0, hi]                              # (tq, d) bf16
            kk = k_ref[0, hi, pl.ds(off, tki), :]         # (tki, d) bf16 (resident)
            vv = v_ref[0, hi, pl.ds(off, tki), :]
            s = lax.dot_general(q, kk, (((1,), (1,)), ((), ())),
                                preferred_element_type=jnp.float32)   # (tq, tki)
            if need_mask:
                col = off + lax.broadcasted_iota(jnp.int32, s.shape, 1)
                s = jnp.where(col < l_valid, s, -1e30)
            m_prev = m_sc[...]
            m_new = jnp.maximum(m_prev, jnp.max(s, axis=-1, keepdims=True))
            alpha = jnp.exp(m_prev - m_new)
            p = jnp.exp(s - m_new)
            l_sc[...] = alpha * l_sc[...] + jnp.sum(p, axis=-1, keepdims=True)
            acc_sc[...] = alpha * acc_sc[...] + jnp.dot(
                p.astype(vv.dtype), vv, preferred_element_type=jnp.float32)
            m_sc[...] = m_new
            return carry

        lax.fori_loop(0, nkv, body, 0)
        o_ref[0, :, hi * d:(hi + 1) * d] = (
            acc_sc[...] * pl.reciprocal(l_sc[...], approx=True)).astype(o_ref.dtype)


def attention(q, k, v):
    """q, k, v: (B, H, L, D) (softmax scale already folded into q upstream).
    Returns (B, L, H*D) bf16 written directly in the merged-stream layout."""
    B, H, L, D = q.shape
    q = q.astype(jnp.bfloat16)
    k = k.astype(jnp.bfloat16)
    v = v.astype(jnp.bfloat16)
    if L > ATTN_TQ:
        tq = tki = ATTN_TQ
        Lp = _round_up(L, ATTN_TQ)
    else:
        tq = tki = _round_up(L, 8)
        Lp = tq
    nh = 2 if H % 2 == 0 else 1
    if Lp != L:
        pad = ((0, 0), (0, 0), (0, Lp - L), (0, 0))
        q, k, v = (jnp.pad(t, pad) for t in (q, k, v))

    kernel = functools.partial(_attn_kernel, nh=nh, tki=tki, l_valid=L, lp=Lp)
    out = pl.pallas_call(
        kernel,
        grid=(B, H // nh, Lp // tq),
        in_specs=[
            pl.BlockSpec((1, nh, tq, D), lambda b, hg, qi: (b, hg, qi, 0)),
            # K/V block index ignores qi -> fetched once per (b, head-group),
            # kept resident in VMEM across all query tiles.
            pl.BlockSpec((1, nh, Lp, D), lambda b, hg, qi: (b, hg, 0, 0)),
            pl.BlockSpec((1, nh, Lp, D), lambda b, hg, qi: (b, hg, 0, 0)),
        ],
        out_specs=pl.BlockSpec((1, tq, nh * D), lambda b, hg, qi: (b, qi, hg)),
        out_shape=jax.ShapeDtypeStruct((B, Lp, H * D), jnp.bfloat16),
        scratch_shapes=[
            pltpu.VMEM((tq, 1), jnp.float32),    # running max
            pltpu.VMEM((tq, 1), jnp.float32),    # running denom
            pltpu.VMEM((tq, D), jnp.float32),    # output accumulator
        ],
        compiler_params=pltpu.CompilerParams(
            dimension_semantics=("parallel", "parallel", "parallel"),
            vmem_limit_bytes=VMEM_LIMIT),
    )(q, k, v)
    if Lp != L:
        out = out[:, :L]
    return out


# ----------------------- Pallas: LayerNorm + modulation ----------------------

def _ln_mod_kernel(x_ref, sc_ref, sh_ref, o_ref):
    x = x_ref[0].astype(jnp.float32)          # (tl, H)
    mean = jnp.mean(x, axis=-1, keepdims=True)
    var = jnp.mean(jnp.square(x - mean), axis=-1, keepdims=True)
    xn = (x - mean) * lax.rsqrt(var + 1e-6)
    o_ref[0] = ((1.0 + sc_ref[0]) * xn + sh_ref[0]).astype(o_ref.dtype)


def layernorm_modulate(x, scale, shift):
    """LayerNorm(eps=1e-6, no affine) over last dim then (1+scale)*xn + shift.
    x: (B, L, H); scale/shift: (B, H). Tiled over (batch, seq); bf16 output."""
    B, L, H = x.shape
    tl, Lp = _pick(L, 256, 8)
    if Lp != L:
        x = jnp.pad(x, ((0, 0), (0, Lp - L), (0, 0)))
    sc = scale.reshape(B, 1, H).astype(jnp.float32)
    sh = shift.reshape(B, 1, H).astype(jnp.float32)
    out = pl.pallas_call(
        _ln_mod_kernel,
        grid=(B, Lp // tl),
        in_specs=[
            pl.BlockSpec((1, tl, H), lambda b, l: (b, l, 0)),
            pl.BlockSpec((1, 1, H), lambda b, l: (b, 0, 0)),
            pl.BlockSpec((1, 1, H), lambda b, l: (b, 0, 0)),
        ],
        out_specs=pl.BlockSpec((1, tl, H), lambda b, l: (b, l, 0)),
        out_shape=jax.ShapeDtypeStruct((B, Lp, H), jnp.bfloat16),
        compiler_params=pltpu.CompilerParams(
            dimension_semantics=("parallel", "parallel"),
            vmem_limit_bytes=VMEM_LIMIT),
    )(x, sc, sh)
    if Lp != L:
        out = out[:, :L]
    return out


# ------------------------------ plain-JAX glue ------------------------------

def silu(x):
    return x * jax.nn.sigmoid(x)


def rms_norm(x, scale):
    x = x.astype(jnp.float32)
    rrms = lax.rsqrt(jnp.mean(jnp.square(x), axis=-1, keepdims=True) + 1e-6)
    return (x * rrms) * scale


def timestep_embedding(t, dim, max_period=10000, time_factor=1000.0):
    t = time_factor * t
    half = dim // 2
    freqs = jnp.exp(-math.log(max_period) * jnp.arange(half, dtype=jnp.float32) / half)
    args = t[:, None].astype(jnp.float32) * freqs[None]
    return jnp.concatenate([jnp.cos(args), jnp.sin(args)], axis=-1)


def rope(pos, dim, theta):
    # pos: (B, N) -> (B, N, dim//2, 2, 2)
    scale = jnp.arange(0, dim, 2, dtype=jnp.float32) / dim
    omega = 1.0 / (theta ** scale)
    out = pos[..., None].astype(jnp.float32) * omega[None, None, :]
    out = jnp.stack([jnp.cos(out), -jnp.sin(out), jnp.sin(out), jnp.cos(out)], axis=-1)
    return out.reshape(*out.shape[:-1], 2, 2)


def embed_nd(ids, axes_dim, theta):
    n_axes = ids.shape[-1]
    emb = jnp.concatenate(
        [rope(ids[..., i], axes_dim[i], theta) for i in range(n_axes)], axis=-3)
    return emb[:, None]


def apply_rope(xq, xk, freqs_cis):
    B, H, L, D = xq.shape
    xq_ = xq.astype(jnp.float32).reshape(B, H, L, D // 2, 1, 2)
    xk_ = xk.astype(jnp.float32).reshape(B, H, L, D // 2, 1, 2)
    xq_out = freqs_cis[..., 0] * xq_[..., 0] + freqs_cis[..., 1] * xq_[..., 1]
    xk_out = freqs_cis[..., 0] * xk_[..., 0] + freqs_cis[..., 1] * xk_[..., 1]
    return (xq_out.reshape(B, H, L, D).astype(jnp.bfloat16),
            xk_out.reshape(B, H, L, D).astype(jnp.bfloat16))


def split_qkv(qkv, num_heads):
    # "B L (K H D) -> K B H L D"
    # TODO(synk): this HBM transpose could be avoided by indexing the (B,L,3,H,D)
    #             view directly from the attention kernel's BlockSpecs.
    B, L, threeHD = qkv.shape
    D = threeHD // (3 * num_heads)
    qkv = qkv.reshape(B, L, 3, num_heads, D).transpose(2, 0, 3, 1, 4)
    return qkv[0], qkv[1], qkv[2]


# ------------------------------- parameters --------------------------------

class _KeyGen:
    def __init__(self, key):
        self.key = key

    def __call__(self):
        self.key, sub = jax.random.split(self.key)
        return sub


def _init_lin(key, in_dim, out_dim):
    """Pallas-linear weights: pre-transposed (K, N), bf16, padded ONCE at init
    to the tile grid so no per-call weight pad/cast traffic is generated."""
    tk, kp = _pick(in_dim, TK_PREF, 128)
    tn, np_ = _pick(out_dim, TN_PREF, 128)
    w = (jax.random.normal(key, (in_dim, out_dim), jnp.float32) * 0.02).astype(jnp.bfloat16)
    b = jnp.zeros((out_dim,), jnp.float32)
    if (kp, np_) != (in_dim, out_dim):
        w = jnp.pad(w, ((0, kp - in_dim), (0, np_ - out_dim)))
    if np_ != out_dim:
        b = jnp.pad(b, (0, np_ - out_dim))
    return {"w": w, "b": b.reshape(1, np_)}


def _init_small(key, in_dim, out_dim):
    w = (jax.random.normal(key, (in_dim, out_dim), jnp.float32) * 0.02).astype(jnp.bfloat16)
    return {"w": w, "b": jnp.zeros((out_dim,), jnp.float32)}


def init_flux_params(key, cfg):
    kg = _KeyGen(key)
    H = cfg["hidden_size"]
    heads = cfg["num_heads"]
    D = H // heads
    mlp = int(H * cfg["mlp_ratio"])
    p = {}
    p["img_in"] = _init_lin(kg(), cfg["in_channels"], H)
    p["txt_in"] = _init_lin(kg(), cfg["context_in_dim"], H)
    p["time_in"] = {"in": _init_small(kg(), 256, H), "out": _init_small(kg(), H, H)}
    p["vector_in"] = {"in": _init_small(kg(), cfg["vec_in_dim"], H), "out": _init_small(kg(), H, H)}
    if cfg["guidance_embed"]:
        p["guidance_in"] = {"in": _init_small(kg(), 256, H), "out": _init_small(kg(), H, H)}
    p["double_blocks"] = []
    for _ in range(cfg["depth"]):
        blk = {}
        for s in ("img", "txt"):
            blk[f"{s}_mod"] = _init_small(kg(), H, 6 * H)
            blk[f"{s}_qkv"] = _init_lin(kg(), H, 3 * H)   # qkv_bias handled (bias init 0)
            blk[f"{s}_q_scale"] = jnp.ones((D,), jnp.float32)
            blk[f"{s}_k_scale"] = jnp.ones((D,), jnp.float32)
            blk[f"{s}_proj"] = _init_lin(kg(), H, H)
            blk[f"{s}_mlp1"] = _init_lin(kg(), H, mlp)
            blk[f"{s}_mlp2"] = _init_lin(kg(), mlp, H)
        p["double_blocks"].append(blk)
    p["single_blocks"] = []
    for _ in range(cfg["depth_single_blocks"]):
        p["single_blocks"].append({
            "mod": _init_small(kg(), H, 3 * H),
            # linear1 split along its output features (exactly equivalent) so
            # GELU can be fused into the mlp-branch matmul epilogue.
            "lin1_attn": _init_lin(kg(), H, 3 * H),
            "lin1_mlp": _init_lin(kg(), H, mlp),
            "lin2": _init_lin(kg(), H + mlp, H),
            "q_scale": jnp.ones((D,), jnp.float32),
            "k_scale": jnp.ones((D,), jnp.float32),
        })
    p["final"] = {
        "ada": _init_small(kg(), H, 2 * H),
        "lin": _init_lin(kg(), H, cfg["out_channels"]),   # patch_size = 1
    }
    return p


# ------------------------------ model modules -------------------------------

def mlp_embedder(p, x):
    h = silu(small_linear(x, p["in"]))
    return small_linear(h, p["out"])


def double_block(blk, img, txt, vec, pe, num_heads, H, mlp):
    Lt = txt.shape[1]
    D = H // num_heads
    sm_scale = 1.0 / math.sqrt(D)

    sv = silu(vec)
    img_mod = small_linear(sv, blk["img_mod"])
    i_shift1, i_scale1, i_gate1, i_shift2, i_scale2, i_gate2 = jnp.split(img_mod, 6, axis=-1)
    txt_mod = small_linear(sv, blk["txt_mod"])
    t_shift1, t_scale1, t_gate1, t_shift2, t_scale2, t_gate2 = jnp.split(txt_mod, 6, axis=-1)

    img_modulated = layernorm_modulate(img, i_scale1, i_shift1)
    img_qkv = linear(img_modulated, blk["img_qkv"], 3 * H)
    img_q, img_k, img_v = split_qkv(img_qkv, num_heads)
    img_q = rms_norm(img_q, blk["img_q_scale"] * sm_scale)   # fold 1/sqrt(D) here
    img_k = rms_norm(img_k, blk["img_k_scale"])

    txt_modulated = layernorm_modulate(txt, t_scale1, t_shift1)
    txt_qkv = linear(txt_modulated, blk["txt_qkv"], 3 * H)
    txt_q, txt_k, txt_v = split_qkv(txt_qkv, num_heads)
    txt_q = rms_norm(txt_q, blk["txt_q_scale"] * sm_scale)
    txt_k = rms_norm(txt_k, blk["txt_k_scale"])

    q = jnp.concatenate([txt_q, img_q], axis=2)
    k = jnp.concatenate([txt_k, img_k], axis=2)
    v = jnp.concatenate([txt_v, img_v], axis=2)
    q, k = apply_rope(q, k, pe)
    attn = attention(q, k, v)                   # (B, Lt+Li, H) — already B L (H D)
    txt_attn, img_attn = attn[:, :Lt], attn[:, Lt:]

    # proj / mlp2 with fused gated-residual epilogue; mlp1 with fused GELU.
    img = linear(img_attn, blk["img_proj"], H, res=img, gate=i_gate1)
    img_h = linear(layernorm_modulate(img, i_scale2, i_shift2),
                   blk["img_mlp1"], mlp, activation="gelu")
    img = linear(img_h, blk["img_mlp2"], H, res=img, gate=i_gate2)

    txt = linear(txt_attn, blk["txt_proj"], H, res=txt, gate=t_gate1)
    txt_h = linear(layernorm_modulate(txt, t_scale2, t_shift2),
                   blk["txt_mlp1"], mlp, activation="gelu")
    txt = linear(txt_h, blk["txt_mlp2"], H, res=txt, gate=t_gate2)
    return img, txt


def single_block(blk, x, vec, pe, num_heads, H, mlp):
    D = H // num_heads
    sm_scale = 1.0 / math.sqrt(D)
    mod = small_linear(silu(vec), blk["mod"])
    shift, scale, gate = jnp.split(mod, 3, axis=-1)

    x_mod = layernorm_modulate(x, scale, shift)
    qkv = linear(x_mod, blk["lin1_attn"], 3 * H)
    mlp_act = linear(x_mod, blk["lin1_mlp"], mlp, activation="gelu")

    q, k, v = split_qkv(qkv, num_heads)
    q = rms_norm(q, blk["q_scale"] * sm_scale)
    k = rms_norm(k, blk["k_scale"])
    q, k = apply_rope(q, k, pe)
    attn = attention(q, k, v)                   # (B, L, H)

    # TODO(synk): the concat could be avoided by splitting lin2's K axis.
    out_in = jnp.concatenate([attn, mlp_act], axis=2)
    return linear(out_in, blk["lin2"], H, res=x, gate=gate)


def last_layer(p, x, vec, out_channels):
    mod = small_linear(silu(vec), p["ada"])
    shift, scale = jnp.split(mod, 2, axis=-1)
    x = layernorm_modulate(x, scale, shift)
    return linear(x, p["lin"], out_channels)


def flux_forward(params, img, img_ids, txt, txt_ids, timesteps, y, guidance=None, *, cfg):
    if img.ndim != 3 or txt.ndim != 3:
        raise ValueError("Input img and txt tensors must have 3 dimensions.")
    H = cfg["hidden_size"]
    mlp = int(H * cfg["mlp_ratio"])

    img = linear(img, params["img_in"], H)
    vec = mlp_embedder(params["time_in"], timestep_embedding(timesteps, 256))
    if cfg["guidance_embed"]:
        if guidance is None:
            raise ValueError("Didn't get guidance strength for guidance distilled model.")
        vec = vec + mlp_embedder(params["guidance_in"], timestep_embedding(guidance, 256))
    vec = vec + mlp_embedder(params["vector_in"], y)
    txt = linear(txt, params["txt_in"], H)

    ids = jnp.concatenate([txt_ids, img_ids], axis=1)
    pe = embed_nd(ids, cfg["axes_dim"], cfg["theta"])

    # TODO(synk): cache_dic / current / Delta-DiT caching bookkeeping omitted.
    for blk in params["double_blocks"]:
        img, txt = double_block(blk, img, txt, vec, pe, cfg["num_heads"], H, mlp)

    x = jnp.concatenate([txt, img], axis=1)
    for blk in params["single_blocks"]:
        x = single_block(blk, x, vec, pe, cfg["num_heads"], H, mlp)

    x = x[:, txt.shape[1]:, :]
    x = last_layer(params["final"], x, vec, cfg["out_channels"])
    return x.astype(jnp.float32)


# ----------------------------------- main -----------------------------------

if __name__ == "__main__":
    cfg = dict(
        in_channels=16, out_channels=16, vec_in_dim=32, context_in_dim=24,
        hidden_size=256, mlp_ratio=4.0, num_heads=2, depth=2,
        depth_single_blocks=2, axes_dim=[32, 48, 48], theta=10000,
        qkv_bias=True, guidance_embed=True,
    )
    assert cfg["hidden_size"] % cfg["num_heads"] == 0
    assert sum(cfg["axes_dim"]) == cfg["hidden_size"] // cfg["num_heads"]

    key = jax.random.PRNGKey(0)
    kp, ki = jax.random.split(key)
    params = init_flux_params(kp, cfg)

    B, Li, Lt = 2, 16, 8
    ks = jax.random.split(ki, 4)
    img = jax.random.normal(ks[0], (B, Li, cfg["in_channels"]), jnp.float32)
    txt = jax.random.normal(ks[1], (B, Lt, cfg["context_in_dim"]), jnp.float32)
    y = jax.random.normal(ks[2], (B, cfg["vec_in_dim"]), jnp.float32)
    timesteps = jnp.linspace(0.1, 0.9, B).astype(jnp.float32)
    guidance = jnp.full((B,), 4.0, jnp.float32)

    pos = jnp.arange(Li, dtype=jnp.float32)
    img_ids = jnp.stack([jnp.zeros_like(pos), pos // 4, pos % 4], axis=-1)
    img_ids = jnp.broadcast_to(img_ids[None], (B, Li, 3))
    txt_ids = jnp.zeros((B, Lt, 3), jnp.float32)

    fwd = jax.jit(functools.partial(flux_forward, cfg=cfg))
    out = fwd(params, img, img_ids, txt, txt_ids, timesteps, y, guidance)
    out = jax.block_until_ready(out)
    assert out.shape == (B, Li, cfg["out_channels"]), out.shape
    assert bool(jnp.all(jnp.isfinite(out)))
    print("KERNEL_OK")
</pallas_src>

<mosaic_0001>
module attributes {stable_mosaic.version = 11 : i64} {
  func.func @_linear_kernel(%arg0: i32, %arg1: i32, %arg2: i32, %arg3: i32, %arg4: memref<1x16x256xbf16, #tpu.memory_space<vmem>>, %arg5: memref<256x768xbf16, #tpu.memory_space<vmem>>, %arg6: memref<1x768xf32, #tpu.memory_space<vmem>>, %arg7: memref<1x16x768xbf16, #tpu.memory_space<vmem>>, %arg8: memref<16x768xf32, #tpu.memory_space<vmem>>) attributes {dimension_semantics = [#tpu.dimension_semantics<parallel>, #tpu.dimension_semantics<parallel>, #tpu.dimension_semantics<parallel>, #tpu.dimension_semantics<arbitrary>], iteration_bounds = array<i64: 2, 1, 1, 1>, scalar_prefetch = 0 : i64, scratch_operands = 1 : i64, tpu.core_type = #tpu.core_type<tc>, window_params = [{transform_indices = @transform_0, window_bounds = array<i64: 1, 16, 256>}, {transform_indices = @transform_1, window_bounds = array<i64: 256, 768>}, {transform_indices = @transform_2, window_bounds = array<i64: 1, 768>}, {transform_indices = @transform_3, window_bounds = array<i64: 1, 16, 768>}]} {
    %c0_i32 = arith.constant 0 : i32
    %0 = arith.cmpi eq, %arg3, %c0_i32 : i32
    %1 = arith.extui %0 : i1 to i32
    %c0_i32_0 = arith.constant 0 : i32
    %2 = arith.cmpi ne, %1, %c0_i32_0 : i32
    scf.if %2 {
      %cst_11 = arith.constant 0.000000e+00 : f32
      %13 = vector.broadcast %cst_11 : f32 to vector<16x768xf32>
      %c0_12 = arith.constant 0 : index
      %c0_13 = arith.constant 0 : index
      %14 = vector.load %arg8[%c0_12, %c0_13] : memref<16x768xf32, #tpu.memory_space<vmem>>, vector<16x768xf32>
      tpu.vector_store %arg8[%c0_12, %c0_13], %13 {strides = array<i32>} : memref<16x768xf32, #tpu.memory_space<vmem>>, vector<16x768xf32>,
    } else {
    }
    %c0 = arith.constant 0 : index
    %c0_1 = arith.constant 0 : index
    %3 = vector.load %arg8[%c0, %c0_1] : memref<16x768xf32, #tpu.memory_space<vmem>>, vector<16x768xf32>
    %c0_2 = arith.constant 0 : index
    %c0_3 = arith.constant 0 : index
    %c0_4 = arith.constant 0 : index
    %4 = vector.load %arg4[%c0_2, %c0_3, %c0_4] : memref<1x16x256xbf16, #tpu.memory_space<vmem>>, vector<1x16x256xbf16>
    %5 = vector.shape_cast %4 : vector<1x16x256xbf16> to vector<16x256xbf16>
    %c0_5 = arith.constant 0 : index
    %c0_6 = arith.constant 0 : index
    %6 = vector.load %arg5[%c0_5, %c0_6] : memref<256x768xbf16, #tpu.memory_space<vmem>>, vector<256x768xbf16>
    %cst = arith.constant dense<0.000000e+00> : vector<16x768xf32>
    %7 = tpu.matmul %5, %6, %cst {dimension_numbers = #tpu.dot_dimension_numbers<[1], [0], [0], [1], [0, 0, 1, 1], [], []>} : vector<16x256xbf16>, vector<256x768xbf16>, vector<16x768xf32> -> vector<16x768xf32>
    %8 = arith.addf %3, %7 : vector<16x768xf32>
    %c0_7 = arith.constant 0 : index
    %c0_8 = arith.constant 0 : index
    %9 = vector.load %arg8[%c0_7, %c0_8] : memref<16x768xf32, #tpu.memory_space<vmem>>, vector<16x768xf32>
    tpu.vector_store %arg8[%c0_7, %c0_8], %8 {strides = array<i32>} : memref<16x768xf32, #tpu.memory_space<vmem>>, vector<16x768xf32>,
    %c0_i32_9 = arith.constant 0 : i32
    %10 = arith.cmpi eq, %arg3, %c0_i32_9 : i32
    %11 = arith.extui %10 : i1 to i32
    %c0_i32_10 = arith.constant 0 : i32
    %12 = arith.cmpi ne, %11, %c0_i32_10 : i32
    scf.if %12 {
      %c0_11 = arith.constant 0 : index
      %c0_12 = arith.constant 0 : index
      %13 = vector.load %arg8[%c0_11, %c0_12] : memref<16x768xf32, #tpu.memory_space<vmem>>, vector<16x768xf32>
      %c0_13 = arith.constant 0 : index
      %c0_14 = arith.constant 0 : index
      %14 = vector.load %arg6[%c0_13, %c0_14] : memref<1x768xf32, #tpu.memory_space<vmem>>, vector<1x768xf32>
      %15 = vector.broadcast %14 : vector<1x768xf32> to vector<16x768xf32>
      %16 = arith.addf %13, %15 : vector<16x768xf32>
      %17 = arith.truncf %16 : vector<16x768xf32> to vector<16x768xbf16>
      %c0_15 = arith.constant 0 : index
      %c0_16 = arith.constant 0 : index
      %c0_17 = arith.constant 0 : index
      %18 = vector.load %arg7[%c0_15, %c0_16, %c0_17] : memref<1x16x768xbf16, #tpu.memory_space<vmem>>, vector<1x16x768xbf16>
      %19 = vector.shape_cast %18 : vector<1x16x768xbf16> to vector<16x768xbf16>
      %20 = vector.shape_cast %17 : vector<16x768xbf16> to vector<1x16x768xbf16>
      tpu.vector_store %arg7[%c0_15, %c0_16, %c0_17], %20 {strides = array<i32>} : memref<1x16x768xbf16, #tpu.memory_space<vmem>>, vector<1x16x768xbf16>,
    } else {
    }
    return
  }
  func.func @transform_0(%arg0: i32, %arg1: i32, %arg2: i32, %arg3: i32) -> (i32, i32, i32) {
    %c0_i32 = arith.constant 0 : i32
    return %arg0, %arg1, %arg3 : i32, i32, i32
  }
  func.func @transform_1(%arg0: i32, %arg1: i32, %arg2: i32, %arg3: i32) -> (i32, i32) {
    %c0_i32 = arith.constant 0 : i32
    return %arg3, %arg2 : i32, i32
  }
  func.func @transform_2(%arg0: i32, %arg1: i32, %arg2: i32, %arg3: i32) -> (i32, i32) {
    %c0_i32 = arith.constant 0 : i32
    %c0_i32_0 = arith.constant 0 : i32
    return %c0_i32, %arg2 : i32, i32
  }
  func.func @transform_3(%arg0: i32, %arg1: i32, %arg2: i32, %arg3: i32) -> (i32, i32, i32) {
    %c0_i32 = arith.constant 0 : i32
    return %arg0, %arg1, %arg2 : i32, i32, i32
  }
}

module attributes {stable_mosaic.version = 11 : i64} {
  func.func @_linear_kernel(%arg0: i32, %arg1: i32, %arg2: i32, %arg3: i32, %arg4: memref<1x16x16xbf16, #tpu.memory_space<vmem>>, %arg5: memref<16x256xbf16, #tpu.memory_space<vmem>>, %arg6: memref<1x256xf32, #tpu.memory_space<vmem>>, %arg7: memref<1x16x256xbf16, #tpu.memory_space<vmem>>, %arg8: memref<16x256xf32, #tpu.memory_space<vmem>>) attributes {dimension_semantics = [#tpu.dimension_semantics<parallel>, #tpu.dimension_semantics<parallel>, #tpu.dimension_semantics<parallel>, #tpu.dimension_semantics<arbitrary>], iteration_bounds = array<i64: 2, 1, 1, 1>, scalar_prefetch = 0 : i64, scratch_operands = 1 : i64, tpu.core_type = #tpu.core_type<tc>, window_params = [{transform_indices = @transform_0, window_bounds = array<i64: 1, 16, 16>}, {transform_indices = @transform_1, window_bounds = array<i64: 16, 256>}, {transform_indices = @transform_2, window_bounds = array<i64: 1, 256>}, {transform_indices = @transform_3, window_bounds = array<i64: 1, 16, 256>}]} {
    %c0_i32 = arith.constant 0 : i32
    %0 = arith.cmpi eq, %arg3, %c0_i32 : i32
    %1 = arith.extui %0 : i1 to i32
    %c0_i32_0 = arith.constant 0 : i32
    %2 = arith.cmpi ne, %1, %c0_i32_0 : i32
    scf.if %2 {
      %cst_11 = arith.constant 0.000000e+00 : f32
      %13 = vector.broadcast %cst_11 : f32 to vector<16x256xf32>
      %c0_12 = arith.constant 0 : index
      %c0_13 = arith.constant 0 : index
      %14 = vector.load %arg8[%c0_12, %c0_13] : memref<16x256xf32, #tpu.memory_space<vmem>>, vector<16x256xf32>
      tpu.vector_store %arg8[%c0_12, %c0_13], %13 {strides = array<i32>} : memref<16x256xf32, #tpu.memory_space<vmem>>, vector<16x256xf32>,
    } else {
    }
    %c0 = arith.constant 0 : index
    %c0_1 = arith.constant 0 : index
    %3 = vector.load %arg8[%c0, %c0_1] : memref<16x256xf32, #tpu.memory_space<vmem>>, vector<16x256xf32>
    %c0_2 = arith.constant 0 : index
    %c0_3 = arith.constant 0 : index
    %c0_4 = arith.constant 0 : index
    %4 = vector.load %arg4[%c0_2, %c0_3, %c0_4] : memref<1x16x16xbf16, #tpu.memory_space<vmem>>, vector<1x16x16xbf16>
    %5 = vector.shape_cast %4 : vector<1x16x16xbf16> to vector<16x16xbf16>
    %c0_5 = arith.constant 0 : index
    %c0_6 = arith.constant 0 : index
    %6 = vector.load %arg5[%c0_5, %c0_6] : memref<16x256xbf16, #tpu.memory_space<vmem>>, vector<16x256xbf16>
    %cst = arith.constant dense<0.000000e+00> : vector<16x256xf32>
    %7 = tpu.matmul %5, %6, %cst {dimension_numbers = #tpu.dot_dimension_numbers<[1], [0], [0], [1], [0, 0, 1, 1], [], []>} : vector<16x16xbf16>, vector<16x256xbf16>, vector<16x256xf32> -> vector<16x256xf32>
    %8 = arith.addf %3, %7 : vector<16x256xf32>
    %c0_7 = arith.constant 0 : index
    %c0_8 = arith.constant 0 : index
    %9 = vector.load %arg8[%c0_7, %c0_8] : memref<16x256xf32, #tpu.memory_space<vmem>>, vector<16x256xf32>
    tpu.vector_store %arg8[%c0_7, %c0_8], %8 {strides = array<i32>} : memref<16x256xf32, #tpu.memory_space<vmem>>, vector<16x256xf32>,
    %c0_i32_9 = arith.constant 0 : i32
    %10 = arith.cmpi eq, %arg3, %c0_i32_9 : i32
    %11 = arith.extui %10 : i1 to i32
    %c0_i32_10 = arith.constant 0 : i32
    %12 = arith.cmpi ne, %11, %c0_i32_10 : i32
    scf.if %12 {
      %c0_11 = arith.constant 0 : index
      %c0_12 = arith.constant 0 : index
      %13 = vector.load %arg8[%c0_11, %c0_12] : memref<16x256xf32, #tpu.memory_space<vmem>>, vector<16x256xf32>
      %c0_13 = arith.constant 0 : index
      %c0_14 = arith.constant 0 : index
      %14 = vector.load %arg6[%c0_13, %c0_14] : memref<1x256xf32, #tpu.memory_space<vmem>>, vector<1x256xf32>
      %15 = vector.broadcast %14 : vector<1x256xf32> to vector<16x256xf32>
      %16 = arith.addf %13, %15 : vector<16x256xf32>
      %17 = arith.truncf %16 : vector<16x256xf32> to vector<16x256xbf16>
      %c0_15 = arith.constant 0 : index
      %c0_16 = arith.constant 0 : index
      %c0_17 = arith.constant 0 : index
      %18 = vector.load %arg7[%c0_15, %c0_16, %c0_17] : memref<1x16x256xbf16, #tpu.memory_space<vmem>>, vector<1x16x256xbf16>
      %19 = vector.shape_cast %18 : vector<1x16x256xbf16> to vector<16x256xbf16>
      %20 = vector.shape_cast %17 : vector<16x256xbf16> to vector<1x16x256xbf16>
      tpu.vector_store %arg7[%c0_15, %c0_16, %c0_17], %20 {strides = array<i32>} : memref<1x16x256xbf16, #tpu.memory_space<vmem>>, vector<1x16x256xbf16>,
    } else {
    }
    return
  }
  func.func @transform_0(%arg0: i32, %arg1: i32, %arg2: i32, %arg3: i32) -> (i32, i32, i32) {
    %c0_i32 = arith.constant 0 : i32
    return %arg0, %arg1, %arg3 : i32, i32, i32
  }
  func.func @transform_1(%arg0: i32, %arg1: i32, %arg2: i32, %arg3: i32) -> (i32, i32) {
    %c0_i32 = arith.constant 0 : i32
    return %arg3, %arg2 : i32, i32
  }
  func.func @transform_2(%arg0: i32, %arg1: i32, %arg2: i32, %arg3: i32) -> (i32, i32) {
    %c0_i32 = arith.constant 0 : i32
    %c0_i32_0 = arith.constant 0 : i32
    return %c0_i32, %arg2 : i32, i32
  }
  func.func @transform_3(%arg0: i32, %arg1: i32, %arg2: i32, %arg3: i32) -> (i32, i32, i32) {
    %c0_i32 = arith.constant 0 : i32
    return %arg0, %arg1, %arg2 : i32, i32, i32
  }
}

module attributes {stable_mosaic.version = 11 : i64} {
  func.func @_ln_mod_kernel(%arg0: i32, %arg1: i32, %arg2: memref<1x16x256xbf16, #tpu.memory_space<vmem>>, %arg3: memref<1x1x256xf32, #tpu.memory_space<vmem>>, %arg4: memref<1x1x256xf32, #tpu.memory_space<vmem>>, %arg5: memref<1x16x256xbf16, #tpu.memory_space<vmem>>) attributes {dimension_semantics = [#tpu.dimension_semantics<parallel>, #tpu.dimension_semantics<parallel>], iteration_bounds = array<i64: 2, 1>, scalar_prefetch = 0 : i64, scratch_operands = 0 : i64, tpu.core_type = #tpu.core_type<tc>, window_params = [{transform_indices = @transform_0, window_bounds = array<i64: 1, 16, 256>}, {transform_indices = @transform_1, window_bounds = array<i64: 1, 1, 256>}, {transform_indices = @transform_2, window_bounds = array<i64: 1, 1, 256>}, {transform_indices = @transform_3, window_bounds = array<i64: 1, 16, 256>}]} {
    %c0 = arith.constant 0 : index
    %c0_0 = arith.constant 0 : index
    %c0_1 = arith.constant 0 : index
    %0 = vector.load %arg2[%c0, %c0_0, %c0_1] : memref<1x16x256xbf16, #tpu.memory_space<vmem>>, vector<1x16x256xbf16>
    %1 = vector.shape_cast %0 : vector<1x16x256xbf16> to vector<16x256xbf16>
    %2 = arith.extf %1 : vector<16x256xbf16> to vector<16x256xf32>
    %cst = arith.constant dense<0.000000e+00> : vector<16xf32>
    %3 = vector.multi_reduction <add>, %2, %cst [1] : vector<16x256xf32> to vector<16xf32>
    %4 = vector.shape_cast %3 : vector<16xf32> to vector<16x1xf32>
    %cst_2 = arith.constant 2.560000e+02 : f32
    %5 = vector.broadcast %cst_2 : f32 to vector<16x1xf32>
    %6 = arith.divf %4, %5 : vector<16x1xf32>
    %7 = vector.broadcast %6 : vector<16x1xf32> to vector<16x256xf32>
    %8 = arith.subf %2, %7 : vector<16x256xf32>
    %9 = arith.mulf %8, %8 : vector<16x256xf32>
    %cst_3 = arith.constant dense<0.000000e+00> : vector<16xf32>
    %10 = vector.multi_reduction <add>, %9, %cst_3 [1] : vector<16x256xf32> to vector<16xf32>
    %11 = vector.shape_cast %10 : vector<16xf32> to vector<16x1xf32>
    %cst_4 = arith.constant 2.560000e+02 : f32
    %12 = vector.broadcast %cst_4 : f32 to vector<16x1xf32>
    %13 = arith.divf %11, %12 : vector<16x1xf32>
    %14 = vector.broadcast %6 : vector<16x1xf32> to vector<16x256xf32>
    %15 = arith.subf %2, %14 : vector<16x256xf32>
    %cst_5 = arith.constant 9.99999997E-7 : f32
    %16 = vector.broadcast %cst_5 : f32 to vector<16x1xf32>
    %17 = arith.addf %13, %16 : vector<16x1xf32>
    %18 = math.rsqrt %17 : vector<16x1xf32>
    %19 = vector.broadcast %18 : vector<16x1xf32> to vector<16x256xf32>
    %20 = arith.mulf %15, %19 : vector<16x256xf32>
    %c0_6 = arith.constant 0 : index
    %c0_7 = arith.constant 0 : index
    %c0_8 = arith.constant 0 : index
    %21 = vector.load %arg3[%c0_6, %c0_7, %c0_8] : memref<1x1x256xf32, #tpu.memory_space<vmem>>, vector<1x1x256xf32>
    %22 = vector.shape_cast %21 : vector<1x1x256xf32> to vector<1x256xf32>
    %cst_9 = arith.constant 1.000000e+00 : f32
    %23 = vector.broadcast %cst_9 : f32 to vector<1x256xf32>
    %24 = arith.addf %23, %22 : vector<1x256xf32>
    %25 = vector.broadcast %24 : vector<1x256xf32> to vector<16x256xf32>
    %26 = arith.mulf %25, %20 : vector<16x256xf32>
    %c0_10 = arith.constant 0 : index
    %c0_11 = arith.constant 0 : index
    %c0_12 = arith.constant 0 : index
    %27 = vector.load %arg4[%c0_10, %c0_11, %c0_12] : memref<1x1x256xf32, #tpu.memory_space<vmem>>, vector<1x1x256xf32>
    %28 = vector.shape_cast %27 : vector<1x1x256xf32> to vector<1x256xf32>
    %29 = vector.broadcast %28 : vector<1x256xf32> to vector<16x256xf32>
    %30 = arith.addf %26, %29 : vector<16x256xf32>
    %31 = arith.truncf %30 : vector<16x256xf32> to vector<16x256xbf16>
    %c0_13 = arith.constant 0 : index
    %c0_14 = arith.constant 0 : index
    %c0_15 = arith.constant 0 : index
    %32 = vector.load %arg5[%c0_13, %c0_14, %c0_15] : memref<1x16x256xbf16, #tpu.memory_space<vmem>>, vector<1x16x256xbf16>
    %33 = vector.shape_cast %32 : vector<1x16x256xbf16> to vector<16x256xbf16>
    %34 = vector.shape_cast %31 : vector<16x256xbf16> to vector<1x16x256xbf16>
    tpu.vector_store %arg5[%c0_13, %c0_14, %c0_15], %34 {strides = array<i32>} : memref<1x16x256xbf16, #tpu.memory_space<vmem>>, vector<1x16x256xbf16>,
    return
  }
  func.func @transform_0(%arg0: i32, %arg1: i32) -> (i32, i32, i32) {
    %c0_i32 = arith.constant 0 : i32
    %c0_i32_0 = arith.constant 0 : i32
    return %arg0, %arg1, %c0_i32 : i32, i32, i32
  }
  func.func @transform_1(%arg0: i32, %arg1: i32) -> (i32, i32, i32) {
    %c0_i32 = arith.constant 0 : i32
    %c0_i32_0 = arith.constant 0 : i32
    %c0_i32_1 = arith.constant 0 : i32
    return %arg0, %c0_i32, %c0_i32_0 : i32, i32, i32
  }
  func.func @transform_2(%arg0: i32, %arg1: i32) -> (i32, i32, i32) {
    %c0_i32 = arith.constant 0 : i32
    %c0_i32_0 = arith.constant 0 : i32
    %c0_i32_1 = arith.constant 0 : i32
    return %arg0, %c0_i32, %c0_i32_0 : i32, i32, i32
  }
  func.func @transform_3(%arg0: i32, %arg1: i32) -> (i32, i32, i32) {
    %c0_i32 = arith.constant 0 : i32
    %c0_i32_0 = arith.constant 0 : i32
    return %arg0, %arg1, %c0_i32 : i32, i32, i32
  }
}

module attributes {stable_mosaic.version = 11 : i64} {
  func.func @_ln_mod_kernel(%arg0: i32, %arg1: i32, %arg2: memref<1x8x256xbf16, #tpu.memory_space<vmem>>, %arg3: memref<1x1x256xf32, #tpu.memory_space<vmem>>, %arg4: memref<1x1x256xf32, #tpu.memory_space<vmem>>, %arg5: memref<1x8x256xbf16, #tpu.memory_space<vmem>>) attributes {dimension_semantics = [#tpu.dimension_semantics<parallel>, #tpu.dimension_semantics<parallel>], iteration_bounds = array<i64: 2, 1>, scalar_prefetch = 0 : i64, scratch_operands = 0 : i64, tpu.core_type = #tpu.core_type<tc>, window_params = [{transform_indices = @transform_0, window_bounds = array<i64: 1, 8, 256>}, {transform_indices = @transform_1, window_bounds = array<i64: 1, 1, 256>}, {transform_indices = @transform_2, window_bounds = array<i64: 1, 1, 256>}, {transform_indices = @transform_3, window_bounds = array<i64: 1, 8, 256>}]} {
    %c0 = arith.constant 0 : index
    %c0_0 = arith.constant 0 : index
    %c0_1 = arith.constant 0 : index
    %0 = vector.load %arg2[%c0, %c0_0, %c0_1] : memref<1x8x256xbf16, #tpu.memory_space<vmem>>, vector<1x8x256xbf16>
    %1 = vector.shape_cast %0 : vector<1x8x256xbf16> to vector<8x256xbf16>
    %2 = arith.extf %1 : vector<8x256xbf16> to vector<8x256xf32>
    %cst = arith.constant dense<0.000000e+00> : vector<8xf32>
    %3 = vector.multi_reduction <add>, %2, %cst [1] : vector<8x256xf32> to vector<8xf32>
    %4 = vector.shape_cast %3 : vector<8xf32> to vector<8x1xf32>
    %cst_2 = arith.constant 2.560000e+02 : f32
    %5 = vector.broadcast %cst_2 : f32 to vector<8x1xf32>
    %6 = arith.divf %4, %5 : vector<8x1xf32>
    %7 = vector.broadcast %6 : vector<8x1xf32> to vector<8x256xf32>
    %8 = arith.subf %2, %7 : vector<8x256xf32>
    %9 = arith.mulf %8, %8 : vector<8x256xf32>
    %cst_3 = arith.constant dense<0.000000e+00> : vector<8xf32>
    %10 = vector.multi_reduction <add>, %9, %cst_3 [1] : vector<8x256xf32> to vector<8xf32>
    %11 = vector.shape_cast %10 : vector<8xf32> to vector<8x1xf32>
    %cst_4 = arith.constant 2.560000e+02 : f32
    %12 = vector.broadcast %cst_4 : f32 to vector<8x1xf32>
    %13 = arith.divf %11, %12 : vector<8x1xf32>
    %14 = vector.broadcast %6 : vector<8x1xf32> to vector<8x256xf32>
    %15 = arith.subf %2, %14 : vector<8x256xf32>
    %cst_5 = arith.constant 9.99999997E-7 : f32
    %16 = vector.broadcast %cst_5 : f32 to vector<8x1xf32>
    %17 = arith.addf %13, %16 : vector<8x1xf32>
    %18 = math.rsqrt %17 : vector<8x1xf32>
    %19 = vector.broadcast %18 : vector<8x1xf32> to vector<8x256xf32>
    %20 = arith.mulf %15, %19 : vector<8x256xf32>
    %c0_6 = arith.constant 0 : index
    %c0_7 = arith.constant 0 : index
    %c0_8 = arith.constant 0 : index
    %21 = vector.load %arg3[%c0_6, %c0_7, %c0_8] : memref<1x1x256xf32, #tpu.memory_space<vmem>>, vector<1x1x256xf32>
    %22 = vector.shape_cast %21 : vector<1x1x256xf32> to vector<1x256xf32>
    %cst_9 = arith.constant 1.000000e+00 : f32
    %23 = vector.broadcast %cst_9 : f32 to vector<1x256xf32>
    %24 = arith.addf %23, %22 : vector<1x256xf32>
    %25 = vector.broadcast %24 : vector<1x256xf32> to vector<8x256xf32>
    %26 = arith.mulf %25, %20 : vector<8x256xf32>
    %c0_10 = arith.constant 0 : index
    %c0_11 = arith.constant 0 : index
    %c0_12 = arith.constant 0 : index
    %27 = vector.load %arg4[%c0_10, %c0_11, %c0_12] : memref<1x1x256xf32, #tpu.memory_space<vmem>>, vector<1x1x256xf32>
    %28 = vector.shape_cast %27 : vector<1x1x256xf32> to vector<1x256xf32>
    %29 = vector.broadcast %28 : vector<1x256xf32> to vector<8x256xf32>
    %30 = arith.addf %26, %29 : vector<8x256xf32>
    %31 = arith.truncf %30 : vector<8x256xf32> to vector<8x256xbf16>
    %c0_13 = arith.constant 0 : index
    %c0_14 = arith.constant 0 : index
    %c0_15 = arith.constant 0 : index
    %32 = vector.load %arg5[%c0_13, %c0_14, %c0_15] : memref<1x8x256xbf16, #tpu.memory_space<vmem>>, vector<1x8x256xbf16>
    %33 = vector.shape_cast %32 : vector<1x8x256xbf16> to vector<8x256xbf16>
    %34 = vector.shape_cast %31 : vector<8x256xbf16> to vector<1x8x256xbf16>
    tpu.vector_store %arg5[%c0_13, %c0_14, %c0_15], %34 {strides = array<i32>} : memref<1x8x256xbf16, #tpu.memory_space<vmem>>, vector<1x8x256xbf16>,
    return
  }
  func.func @transform_0(%arg0: i32, %arg1: i32) -> (i32, i32, i32) {
    %c0_i32 = arith.constant 0 : i32
    %c0_i32_0 = arith.constant 0 : i32
    return %arg0, %arg1, %c0_i32 : i32, i32, i32
  }
  func.func @transform_1(%arg0: i32, %arg1: i32) -> (i32, i32, i32) {
    %c0_i32 = arith.constant 0 : i32
    %c0_i32_0 = arith.constant 0 : i32
    %c0_i32_1 = arith.constant 0 : i32
    return %arg0, %c0_i32, %c0_i32_0 : i32, i32, i32
  }
  func.func @transform_2(%arg0: i32, %arg1: i32) -> (i32, i32, i32) {
    %c0_i32 = arith.constant 0 : i32
    %c0_i32_0 = arith.constant 0 : i32
    %c0_i32_1 = arith.constant 0 : i32
    return %arg0, %c0_i32, %c0_i32_0 : i32, i32, i32
  }
  func.func @transform_3(%arg0: i32, %arg1: i32) -> (i32, i32, i32) {
    %c0_i32 = arith.constant 0 : i32
    %c0_i32_0 = arith.constant 0 : i32
    return %arg0, %arg1, %c0_i32 : i32, i32, i32
  }
}

module attributes {stable_mosaic.version = 11 : i64} {
  func.func @_linear_kernel(%arg0: i32, %arg1: i32, %arg2: i32, %arg3: i32, %arg4: memref<1x8x24xbf16, #tpu.memory_space<vmem>>, %arg5: memref<24x256xbf16, #tpu.memory_space<vmem>>, %arg6: memref<1x256xf32, #tpu.memory_space<vmem>>, %arg7: memref<1x8x256xbf16, #tpu.memory_space<vmem>>, %arg8: memref<8x256xf32, #tpu.memory_space<vmem>>) attributes {dimension_semantics = [#tpu.dimension_semantics<parallel>, #tpu.dimension_semantics<parallel>, #tpu.dimension_semantics<parallel>, #tpu.dimension_semantics<arbitrary>], iteration_bounds = array<i64: 2, 1, 1, 1>, scalar_prefetch = 0 : i64, scratch_operands = 1 : i64, tpu.core_type = #tpu.core_type<tc>, window_params = [{transform_indices = @transform_0, window_bounds = array<i64: 1, 8, 24>}, {transform_indices = @transform_1, window_bounds = array<i64: 24, 256>}, {transform_indices = @transform_2, window_bounds = array<i64: 1, 256>}, {transform_indices = @transform_3, window_bounds = array<i64: 1, 8, 256>}]} {
    %c0_i32 = arith.constant 0 : i32
    %0 = arith.cmpi eq, %arg3, %c0_i32 : i32
    %1 = arith.extui %0 : i1 to i32
    %c0_i32_0 = arith.constant 0 : i32
    %2 = arith.cmpi ne, %1, %c0_i32_0 : i32
    scf.if %2 {
      %cst_11 = arith.constant 0.000000e+00 : f32
      %13 = vector.broadcast %cst_11 : f32 to vector<8x256xf32>
      %c0_12 = arith.constant 0 : index
      %c0_13 = arith.constant 0 : index
      %14 = vector.load %arg8[%c0_12, %c0_13] : memref<8x256xf32, #tpu.memory_space<vmem>>, vector<8x256xf32>
      tpu.vector_store %arg8[%c0_12, %c0_13], %13 {strides = array<i32>} : memref<8x256xf32, #tpu.memory_space<vmem>>, vector<8x256xf32>,
    } else {
    }
    %c0 = arith.constant 0 : index
    %c0_1 = arith.constant 0 : index
    %3 = vector.load %arg8[%c0, %c0_1] : memref<8x256xf32, #tpu.memory_space<vmem>>, vector<8x256xf32>
    %c0_2 = arith.constant 0 : index
    %c0_3 = arith.constant 0 : index
    %c0_4 = arith.constant 0 : index
    %4 = vector.load %arg4[%c0_2, %c0_3, %c0_4] : memref<1x8x24xbf16, #tpu.memory_space<vmem>>, vector<1x8x24xbf16>
    %5 = vector.shape_cast %4 : vector<1x8x24xbf16> to vector<8x24xbf16>
    %c0_5 = arith.constant 0 : index
    %c0_6 = arith.constant 0 : index
    %6 = vector.load %arg5[%c0_5, %c0_6] : memref<24x256xbf16, #tpu.memory_space<vmem>>, vector<24x256xbf16>
    %cst = arith.constant dense<0.000000e+00> : vector<8x256xf32>
    %7 = tpu.matmul %5, %6, %cst {dimension_numbers = #tpu.dot_dimension_numbers<[1], [0], [0], [1], [0, 0, 1, 1], [], []>} : vector<8x24xbf16>, vector<24x256xbf16>, vector<8x256xf32> -> vector<8x256xf32>
    %8 = arith.addf %3, %7 : vector<8x256xf32>
    %c0_7 = arith.constant 0 : index
    %c0_8 = arith.constant 0 : index
    %9 = vector.load %arg8[%c0_7, %c0_8] : memref<8x256xf32, #tpu.memory_space<vmem>>, vector<8x256xf32>
    tpu.vector_store %arg8[%c0_7, %c0_8], %8 {strides = array<i32>} : memref<8x256xf32, #tpu.memory_space<vmem>>, vector<8x256xf32>,
    %c0_i32_9 = arith.constant 0 : i32
    %10 = arith.cmpi eq, %arg3, %c0_i32_9 : i32
    %11 = arith.extui %10 : i1 to i32
    %c0_i32_10 = arith.constant 0 : i32
    %12 = arith.cmpi ne, %11, %c0_i32_10 : i32
    scf.if %12 {
      %c0_11 = arith.constant 0 : index
      %c0_12 = arith.constant 0 : index
      %13 = vector.load %arg8[%c0_11, %c0_12] : memref<8x256xf32, #tpu.memory_space<vmem>>, vector<8x256xf32>
      %c0_13 = arith.constant 0 : index
      %c0_14 = arith.constant 0 : index
      %14 = vector.load %arg6[%c0_13, %c0_14] : memref<1x256xf32, #tpu.memory_space<vmem>>, vector<1x256xf32>
      %15 = vector.broadcast %14 : vector<1x256xf32> to vector<8x256xf32>
      %16 = arith.addf %13, %15 : vector<8x256xf32>
      %17 = arith.truncf %16 : vector<8x256xf32> to vector<8x256xbf16>
      %c0_15 = arith.constant 0 : index
      %c0_16 = arith.constant 0 : index
      %c0_17 = arith.constant 0 : index
      %18 = vector.load %arg7[%c0_15, %c0_16, %c0_17] : memref<1x8x256xbf16, #tpu.memory_space<vmem>>, vector<1x8x256xbf16>
      %19 = vector.shape_cast %18 : vector<1x8x256xbf16> to vector<8x256xbf16>
      %20 = vector.shape_cast %17 : vector<8x256xbf16> to vector<1x8x256xbf16>
      tpu.vector_store %arg7[%c0_15, %c0_16, %c0_17], %20 {strides = array<i32>} : memref<1x8x256xbf16, #tpu.memory_space<vmem>>, vector<1x8x256xbf16>,
    } else {
    }
    return
  }
  func.func @transform_0(%arg0: i32, %arg1: i32, %arg2: i32, %arg3: i32) -> (i32, i32, i32) {
    %c0_i32 = arith.constant 0 : i32
    return %arg0, %arg1, %arg3 : i32, i32, i32
  }
  func.func @transform_1(%arg0: i32, %arg1: i32, %arg2: i32, %arg3: i32) -> (i32, i32) {
    %c0_i32 = arith.constant 0 : i32
    return %arg3, %arg2 : i32, i32
  }
  func.func @transform_2(%arg0: i32, %arg1: i32, %arg2: i32, %arg3: i32) -> (i32, i32) {
    %c0_i32 = arith.constant 0 : i32
    %c0_i32_0 = arith.constant 0 : i32
    return %c0_i32, %arg2 : i32, i32
  }
  func.func @transform_3(%arg0: i32, %arg1: i32, %arg2: i32, %arg3: i32) -> (i32, i32, i32) {
    %c0_i32 = arith.constant 0 : i32
    return %arg0, %arg1, %arg2 : i32, i32, i32
  }
}

module attributes {stable_mosaic.version = 11 : i64} {
  func.func @_linear_kernel(%arg0: i32, %arg1: i32, %arg2: i32, %arg3: i32, %arg4: memref<1x8x256xbf16, #tpu.memory_space<vmem>>, %arg5: memref<256x768xbf16, #tpu.memory_space<vmem>>, %arg6: memref<1x768xf32, #tpu.memory_space<vmem>>, %arg7: memref<1x8x768xbf16, #tpu.memory_space<vmem>>, %arg8: memref<8x768xf32, #tpu.memory_space<vmem>>) attributes {dimension_semantics = [#tpu.dimension_semantics<parallel>, #tpu.dimension_semantics<parallel>, #tpu.dimension_semantics<parallel>, #tpu.dimension_semantics<arbitrary>], iteration_bounds = array<i64: 2, 1, 1, 1>, scalar_prefetch = 0 : i64, scratch_operands = 1 : i64, tpu.core_type = #tpu.core_type<tc>, window_params = [{transform_indices = @transform_0, window_bounds = array<i64: 1, 8, 256>}, {transform_indices = @transform_1, window_bounds = array<i64: 256, 768>}, {transform_indices = @transform_2, window_bounds = array<i64: 1, 768>}, {transform_indices = @transform_3, window_bounds = array<i64: 1, 8, 768>}]} {
    %c0_i32 = arith.constant 0 : i32
    %0 = arith.cmpi eq, %arg3, %c0_i32 : i32
    %1 = arith.extui %0 : i1 to i32
    %c0_i32_0 = arith.constant 0 : i32
    %2 = arith.cmpi ne, %1, %c0_i32_0 : i32
    scf.if %2 {
      %cst_11 = arith.constant 0.000000e+00 : f32
      %13 = vector.broadcast %cst_11 : f32 to vector<8x768xf32>
      %c0_12 = arith.constant 0 : index
      %c0_13 = arith.constant 0 : index
      %14 = vector.load %arg8[%c0_12, %c0_13] : memref<8x768xf32, #tpu.memory_space<vmem>>, vector<8x768xf32>
      tpu.vector_store %arg8[%c0_12, %c0_13], %13 {strides = array<i32>} : memref<8x768xf32, #tpu.memory_space<vmem>>, vector<8x768xf32>,
    } else {
    }
    %c0 = arith.constant 0 : index
    %c0_1 = arith.constant 0 : index
    %3 = vector.load %arg8[%c0, %c0_1] : memref<8x768xf32, #tpu.memory_space<vmem>>, vector<8x768xf32>
    %c0_2 = arith.constant 0 : index
    %c0_3 = arith.constant 0 : index
    %c0_4 = arith.constant 0 : index
    %4 = vector.load %arg4[%c0_2, %c0_3, %c0_4] : memref<1x8x256xbf16, #tpu.memory_space<vmem>>, vector<1x8x256xbf16>
    %5 = vector.shape_cast %4 : vector<1x8x256xbf16> to vector<8x256xbf16>
    %c0_5 = arith.constant 0 : index
    %c0_6 = arith.constant 0 : index
    %6 = vector.load %arg5[%c0_5, %c0_6] : memref<256x768xbf16, #tpu.memory_space<vmem>>, vector<256x768xbf16>
    %cst = arith.constant dense<0.000000e+00> : vector<8x768xf32>
    %7 = tpu.matmul %5, %6, %cst {dimension_numbers = #tpu.dot_dimension_numbers<[1], [0], [0], [1], [0, 0, 1, 1], [], []>} : vector<8x256xbf16>, vector<256x768xbf16>, vector<8x768xf32> -> vector<8x768xf32>
    %8 = arith.addf %3, %7 : vector<8x768xf32>
    %c0_7 = arith.constant 0 : index
    %c0_8 = arith.constant 0 : index
    %9 = vector.load %arg8[%c0_7, %c0_8] : memref<8x768xf32, #tpu.memory_space<vmem>>, vector<8x768xf32>
    tpu.vector_store %arg8[%c0_7, %c0_8], %8 {strides = array<i32>} : memref<8x768xf32, #tpu.memory_space<vmem>>, vector<8x768xf32>,
    %c0_i32_9 = arith.constant 0 : i32
    %10 = arith.cmpi eq, %arg3, %c0_i32_9 : i32
    %11 = arith.extui %10 : i1 to i32
    %c0_i32_10 = arith.constant 0 : i32
    %12 = arith.cmpi ne, %11, %c0_i32_10 : i32
    scf.if %12 {
      %c0_11 = arith.constant 0 : index
      %c0_12 = arith.constant 0 : index
      %13 = vector.load %arg8[%c0_11, %c0_12] : memref<8x768xf32, #tpu.memory_space<vmem>>, vector<8x768xf32>
      %c0_13 = arith.constant 0 : index
      %c0_14 = arith.constant 0 : index
      %14 = vector.load %arg6[%c0_13, %c0_14] : memref<1x768xf32, #tpu.memory_space<vmem>>, vector<1x768xf32>
      %15 = vector.broadcast %14 : vector<1x768xf32> to vector<8x768xf32>
      %16 = arith.addf %13, %15 : vector<8x768xf32>
      %17 = arith.truncf %16 : vector<8x768xf32> to vector<8x768xbf16>
      %c0_15 = arith.constant 0 : index
      %c0_16 = arith.constant 0 : index
      %c0_17 = arith.constant 0 : index
      %18 = vector.load %arg7[%c0_15, %c0_16, %c0_17] : memref<1x8x768xbf16, #tpu.memory_space<vmem>>, vector<1x8x768xbf16>
      %19 = vector.shape_cast %18 : vector<1x8x768xbf16> to vector<8x768xbf16>
      %20 = vector.shape_cast %17 : vector<8x768xbf16> to vector<1x8x768xbf16>
      tpu.vector_store %arg7[%c0_15, %c0_16, %c0_17], %20 {strides = array<i32>} : memref<1x8x768xbf16, #tpu.memory_space<vmem>>, vector<1x8x768xbf16>,
    } else {
    }
    return
  }
  func.func @transform_0(%arg0: i32, %arg1: i32, %arg2: i32, %arg3: i32) -> (i32, i32, i32) {
    %c0_i32 = arith.constant 0 : i32
    return %arg0, %arg1, %arg3 : i32, i32, i32
  }
  func.func @transform_1(%arg0: i32, %arg1: i32, %arg2: i32, %arg3: i32) -> (i32, i32) {
    %c0_i32 = arith.constant 0 : i32
    return %arg3, %arg2 : i32, i32
  }
  func.func @transform_2(%arg0: i32, %arg1: i32, %arg2: i32, %arg3: i32) -> (i32, i32) {
    %c0_i32 = arith.constant 0 : i32
    %c0_i32_0 = arith.constant 0 : i32
    return %c0_i32, %arg2 : i32, i32
  }
  func.func @transform_3(%arg0: i32, %arg1: i32, %arg2: i32, %arg3: i32) -> (i32, i32, i32) {
    %c0_i32 = arith.constant 0 : i32
    return %arg0, %arg1, %arg2 : i32, i32, i32
  }
}

module attributes {stable_mosaic.version = 11 : i64} {
  func.func @_attn_kernel(%arg0: i32, %arg1: i32, %arg2: i32, %arg3: memref<1x2x24x128xbf16, #tpu.memory_space<vmem>>, %arg4: memref<1x2x24x128xbf16, #tpu.memory_space<vmem>>, %arg5: memref<1x2x24x128xbf16, #tpu.memory_space<vmem>>, %arg6: memref<1x24x256xbf16, #tpu.memory_space<vmem>>, %arg7: memref<24x1xf32, #tpu.memory_space<vmem>>, %arg8: memref<24x1xf32, #tpu.memory_space<vmem>>, %arg9: memref<24x128xf32, #tpu.memory_space<vmem>>) attributes {dimension_semantics = [#tpu.dimension_semantics<parallel>, #tpu.dimension_semantics<parallel>, #tpu.dimension_semantics<parallel>], iteration_bounds = array<i64: 2, 1, 1>, scalar_prefetch = 0 : i64, scratch_operands = 3 : i64, tpu.core_type = #tpu.core_type<tc>, window_params = [{transform_indices = @transform_0, window_bounds = array<i64: 1, 2, 24, 128>}, {transform_indices = @transform_1, window_bounds = array<i64: 1, 2, 24, 128>}, {transform_indices = @transform_2, window_bounds = array<i64: 1, 2, 24, 128>}, {transform_indices = @transform_3, window_bounds = array<i64: 1, 24, 256>}]} {
    %cst = arith.constant 0xFF800000 : f32
    %0 = vector.broadcast %cst : f32 to vector<24x1xf32>
    %c0 = arith.constant 0 : index
    %c0_0 = arith.constant 0 : index
    %1 = vector.load %arg7[%c0, %c0_0] : memref<24x1xf32, #tpu.memory_space<vmem>>, vector<24x1xf32>
    tpu.vector_store %arg7[%c0, %c0_0], %0 {strides = array<i32>} : memref<24x1xf32, #tpu.memory_space<vmem>>, vector<24x1xf32>,
    %cst_1 = arith.constant 0.000000e+00 : f32
    %2 = vector.broadcast %cst_1 : f32 to vector<24x1xf32>
    %c0_2 = arith.constant 0 : index
    %c0_3 = arith.constant 0 : index
    %3 = vector.load %arg8[%c0_2, %c0_3] : memref<24x1xf32, #tpu.memory_space<vmem>>, vector<24x1xf32>
    tpu.vector_store %arg8[%c0_2, %c0_3], %2 {strides = array<i32>} : memref<24x1xf32, #tpu.memory_space<vmem>>, vector<24x1xf32>,
    %cst_4 = arith.constant 0.000000e+00 : f32
    %4 = vector.broadcast %cst_4 : f32 to vector<24x128xf32>
    %c0_5 = arith.constant 0 : index
    %c0_6 = arith.constant 0 : index
    %5 = vector.load %arg9[%c0_5, %c0_6] : memref<24x128xf32, #tpu.memory_space<vmem>>, vector<24x128xf32>
    tpu.vector_store %arg9[%c0_5, %c0_6], %4 {strides = array<i32>} : memref<24x128xf32, #tpu.memory_space<vmem>>, vector<24x128xf32>,
    %c0_i32 = arith.constant 0 : i32
    %c24_i32 = arith.constant 24 : i32
    %6 = arith.muli %c0_i32, %c24_i32 : i32
    %7 = tpu.assume_multiple %6, 24 : i32
    %c0_7 = arith.constant 0 : index
    %c0_8 = arith.constant 0 : index
    %c0_9 = arith.constant 0 : index
    %c0_10 = arith.constant 0 : index
    %8 = vector.load %arg3[%c0_7, %c0_8, %c0_9, %c0_10] : memref<1x2x24x128xbf16, #tpu.memory_space<vmem>>, vector<1x1x24x128xbf16>
    %9 = vector.shape_cast %8 : vector<1x1x24x128xbf16> to vector<24x128xbf16>
    %c0_11 = arith.constant 0 : index
    %c0_12 = arith.constant 0 : index
    %10 = arith.index_cast %7 : i32 to index
    %c0_13 = arith.constant 0 : index
    %11 = vector.load %arg4[%c0_11, %c0_12, %10, %c0_13] : memref<1x2x24x128xbf16, #tpu.memory_space<vmem>>, vector<1x1x24x128xbf16>
    %12 = vector.shape_cast %11 : vector<1x1x24x128xbf16> to vector<24x128xbf16>
    %c0_14 = arith.constant 0 : index
    %c0_15 = arith.constant 0 : index
    %13 = arith.index_cast %7 : i32 to index
    %c0_16 = arith.constant 0 : index
    %14 = vector.load %arg5[%c0_14, %c0_15, %13, %c0_16] : memref<1x2x24x128xbf16, #tpu.memory_space<vmem>>, vector<1x1x24x128xbf16>
    %15 = vector.shape_cast %14 : vector<1x1x24x128xbf16> to vector<24x128xbf16>
    %cst_17 = arith.constant dense<0.000000e+00> : vector<24x24xf32>
    %16 = tpu.matmul %9, %12, %cst_17 {dimension_numbers = #tpu.dot_dimension_numbers<[1], [1], [0], [0], [0, 0, 1, 0], [], []>} : vector<24x128xbf16>, vector<24x128xbf16>, vector<24x24xf32> -> vector<24x24xf32>
    %c0_18 = arith.constant 0 : index
    %c0_19 = arith.constant 0 : index
    %17 = vector.load %arg7[%c0_18, %c0_19] : memref<24x1xf32, #tpu.memory_space<vmem>>, vector<24x1xf32>
    %cst_20 = arith.constant dense<0xFF800000> : vector<24xf32>
    %18 = vector.multi_reduction <maximumf>, %16, %cst_20 [1] : vector<24x24xf32> to vector<24xf32>
    %19 = vector.shape_cast %18 : vector<24xf32> to vector<24x1xf32>
    %20 = arith.maximumf %17, %19 : vector<24x1xf32>
    %21 = arith.subf %17, %20 : vector<24x1xf32>
    %22 = math.exp %21 : vector<24x1xf32>
    %23 = vector.broadcast %20 : vector<24x1xf32> to vector<24x24xf32>
    %24 = arith.subf %16, %23 : vector<24x24xf32>
    %25 = math.exp %24 : vector<24x24xf32>
    %c0_21 = arith.constant 0 : index
    %c0_22 = arith.constant 0 : index
    %26 = vector.load %arg8[%c0_21, %c0_22] : memref<24x1xf32, #tpu.memory_space<vmem>>, vector<24x1xf32>
    %27 = arith.mulf %22, %26 : vector<24x1xf32>
    %cst_23 = arith.constant dense<0.000000e+00> : vector<24xf32>
    %28 = vector.multi_reduction <add>, %25, %cst_23 [1] : vector<24x24xf32> to vector<24xf32>
    %29 = vector.shape_cast %28 : vector<24xf32> to vector<24x1xf32>
    %30 = arith.addf %27, %29 : vector<24x1xf32>
    %c0_24 = arith.constant 0 : index
    %c0_25 = arith.constant 0 : index
    %31 = vector.load %arg8[%c0_24, %c0_25] : memref<24x1xf32, #tpu.memory_space<vmem>>, vector<24x1xf32>
    tpu.vector_store %arg8[%c0_24, %c0_25], %30 {strides = array<i32>} : memref<24x1xf32, #tpu.memory_space<vmem>>, vector<24x1xf32>,
    %c0_26 = arith.constant 0 : index
    %c0_27 = arith.constant 0 : index
    %32 = vector.load %arg9[%c0_26, %c0_27] : memref<24x128xf32, #tpu.memory_space<vmem>>, vector<24x128xf32>
    %33 = vector.broadcast %22 : vector<24x1xf32> to vector<24x128xf32>
    %34 = arith.mulf %33, %32 : vector<24x128xf32>
    %35 = arith.truncf %25 : vector<24x24xf32> to vector<24x24xbf16>
    %cst_28 = arith.constant dense<0.000000e+00> : vector<24x128xf32>
    %36 = tpu.matmul %35, %15, %cst_28 {dimension_numbers = #tpu.dot_dimension_numbers<[1], [0], [0], [1], [0, 0, 1, 1], [], []>} : vector<24x24xbf16>, vector<24x128xbf16>, vector<24x128xf32> -> vector<24x128xf32>
    %37 = arith.addf %34, %36 : vector<24x128xf32>
    %c0_29 = arith.constant 0 : index
    %c0_30 = arith.constant 0 : index
    %38 = vector.load %arg9[%c0_29, %c0_30] : memref<24x128xf32, #tpu.memory_space<vmem>>, vector<24x128xf32>
    tpu.vector_store %arg9[%c0_29, %c0_30], %37 {strides = array<i32>} : memref<24x128xf32, #tpu.memory_space<vmem>>, vector<24x128xf32>,
    %c0_31 = arith.constant 0 : index
    %c0_32 = arith.constant 0 : index
    %39 = vector.load %arg7[%c0_31, %c0_32] : memref<24x1xf32, #tpu.memory_space<vmem>>, vector<24x1xf32>
    tpu.vector_store %arg7[%c0_31, %c0_32], %20 {strides = array<i32>} : memref<24x1xf32, #tpu.memory_space<vmem>>, vector<24x1xf32>,
    %c1_i32 = arith.constant 1 : i32
    %c0_33 = arith.constant 0 : index
    %c0_34 = arith.constant 0 : index
    %40 = vector.load %arg9[%c0_33, %c0_34] : memref<24x128xf32, #tpu.memory_space<vmem>>, vector<24x128xf32>
    %c0_35 = arith.constant 0 : index
    %c0_36 = arith.constant 0 : index
    %41 = vector.load %arg8[%c0_35, %c0_36] : memref<24x1xf32, #tpu.memory_space<vmem>>, vector<24x1xf32>
    %42 = tpu.reciprocal %41 {approx = true} : vector<24x1xf32> -> vector<24x1xf32>
    %43 = vector.broadcast %42 : vector<24x1xf32> to vector<24x128xf32>
    %44 = arith.mulf %40, %43 : vector<24x128xf32>
    %45 = arith.truncf %44 : vector<24x128xf32> to vector<24x128xbf16>
    %c0_37 = arith.constant 0 : index
    %c0_38 = arith.constant 0 : index
    %c0_39 = arith.constant 0 : index
    %46 = vector.load %arg6[%c0_37, %c0_38, %c0_39] : memref<1x24x256xbf16, #tpu.memory_space<vmem>>, vector<1x24x128xbf16>
    %47 = vector.shape_cast %46 : vector<1x24x128xbf16> to vector<24x128xbf16>
    %48 = vector.shape_cast %45 : vector<24x128xbf16> to vector<1x24x128xbf16>
    tpu.vector_store %arg6[%c0_37, %c0_38, %c0_39], %48 {strides = array<i32>} : memref<1x24x256xbf16, #tpu.memory_space<vmem>>, vector<1x24x128xbf16>,
    %cst_40 = arith.constant 0xFF800000 : f32
    %49 = vector.broadcast %cst_40 : f32 to vector<24x1xf32>
    %c0_41 = arith.constant 0 : index
    %c0_42 = arith.constant 0 : index
    %50 = vector.load %arg7[%c0_41, %c0_42] : memref<24x1xf32, #tpu.memory_space<vmem>>, vector<24x1xf32>
    tpu.vector_store %arg7[%c0_41, %c0_42], %49 {strides = array<i32>} : memref<24x1xf32, #tpu.memory_space<vmem>>, vector<24x1xf32>,
    %cst_43 = arith.constant 0.000000e+00 : f32
    %51 = vector.broadcast %cst_43 : f32 to vector<24x1xf32>
    %c0_44 = arith.constant 0 : index
    %c0_45 = arith.constant 0 : index
    %52 = vector.load %arg8[%c0_44, %c0_45] : memref<24x1xf32, #tpu.memory_space<vmem>>, vector<24x1xf32>
    tpu.vector_store %arg8[%c0_44, %c0_45], %51 {strides = array<i32>} : memref<24x1xf32, #tpu.memory_space<vmem>>, vector<24x1xf32>,
    %cst_46 = arith.constant 0.000000e+00 : f32
    %53 = vector.broadcast %cst_46 : f32 to vector<24x128xf32>
    %c0_47 = arith.constant 0 : index
    %c0_48 = arith.constant 0 : index
    %54 = vector.load %arg9[%c0_47, %c0_48] : memref<24x128xf32, #tpu.memory_space<vmem>>, vector<24x128xf32>
    tpu.vector_store %arg9[%c0_47, %c0_48], %53 {strides = array<i32>} : memref<24x128xf32, #tpu.memory_space<vmem>>, vector<24x128xf32>,
    %c0_i32_49 = arith.constant 0 : i32
    %c24_i32_50 = arith.constant 24 : i32
    %55 = arith.muli %c0_i32_49, %c24_i32_50 : i32
    %56 = tpu.assume_multiple %55, 24 : i32
    %c0_51 = arith.constant 0 : index
    %c1 = arith.constant 1 : index
    %c0_52 = arith.constant 0 : index
    %c0_53 = arith.constant 0 : index
    %57 = vector.load %arg3[%c0_51, %c1, %c0_52, %c0_53] : memref<1x2x24x128xbf16, #tpu.memory_space<vmem>>, vector<1x1x24x128xbf16>
    %58 = vector.shape_cast %57 : vector<1x1x24x128xbf16> to vector<24x128xbf16>
    %c0_54 = arith.constant 0 : index
    %c1_55 = arith.constant 1 : index
    %59 = arith.index_cast %56 : i32 to index
    %c0_56 = arith.constant 0 : index
    %60 = vector.load %arg4[%c0_54, %c1_55, %59, %c0_56] : memref<1x2x24x128xbf16, #tpu.memory_space<vmem>>, vector<1x1x24x128xbf16>
    %61 = vector.shape_cast %60 : vector<1x1x24x128xbf16> to vector<24x128xbf16>
    %c0_57 = arith.constant 0 : index
    %c1_58 = arith.constant 1 : index
    %62 = arith.index_cast %56 : i32 to index
    %c0_59 = arith.constant 0 : index
    %63 = vector.load %arg5[%c0_57, %c1_58, %62, %c0_59] : memref<1x2x24x128xbf16, #tpu.memory_space<vmem>>, vector<1x1x24x128xbf16>
    %64 = vector.shape_cast %63 : vector<1x1x24x128xbf16> to vector<24x128xbf16>
    %cst_60 = arith.constant dense<0.000000e+00> : vector<24x24xf32>
    %65 = tpu.matmul %58, %61, %cst_60 {dimension_numbers = #tpu.dot_dimension_numbers<[1], [1], [0], [0], [0, 0, 1, 0], [], []>} : vector<24x128xbf16>, vector<24x128xbf16>, vector<24x24xf32> -> vector<24x24xf32>
    %c0_61 = arith.constant 0 : index
    %c0_62 = arith.constant 0 : index
    %66 = vector.load %arg7[%c0_61, %c0_62] : memref<24x1xf32, #tpu.memory_space<vmem>>, vector<24x1xf32>
    %cst_63 = arith.constant dense<0xFF800000> : vector<24xf32>
    %67 = vector.multi_reduction <maximumf>, %65, %cst_63 [1] : vector<24x24xf32> to vector<24xf32>
    %68 = vector.shape_cast %67 : vector<24xf32> to vector<24x1xf32>
    %69 = arith.maximumf %66, %68 : vector<24x1xf32>
    %70 = arith.subf %66, %69 : vector<24x1xf32>
    %71 = math.exp %70 : vector<24x1xf32>
    %72 = vector.broadcast %69 : vector<24x1xf32> to vector<24x24xf32>
    %73 = arith.subf %65, %72 : vector<24x24xf32>
    %74 = math.exp %73 : vector<24x24xf32>
    %c0_64 = arith.constant 0 : index
    %c0_65 = arith.constant 0 : index
    %75 = vector.load %arg8[%c0_64, %c0_65] : memref<24x1xf32, #tpu.memory_space<vmem>>, vector<24x1xf32>
    %76 = arith.mulf %71, %75 : vector<24x1xf32>
    %cst_66 = arith.constant dense<0.000000e+00> : vector<24xf32>
    %77 = vector.multi_reduction <add>, %74, %cst_66 [1] : vector<24x24xf32> to vector<24xf32>
    %78 = vector.shape_cast %77 : vector<24xf32> to vector<24x1xf32>
    %79 = arith.addf %76, %78 : vector<24x1xf32>
    %c0_67 = arith.constant 0 : index
    %c0_68 = arith.constant 0 : index
    %80 = vector.load %arg8[%c0_67, %c0_68] : memref<24x1xf32, #tpu.memory_space<vmem>>, vector<24x1xf32>
    tpu.vector_store %arg8[%c0_67, %c0_68], %79 {strides = array<i32>} : memref<24x1xf32, #tpu.memory_space<vmem>>, vector<24x1xf32>,
    %c0_69 = arith.constant 0 : index
    %c0_70 = arith.constant 0 : index
    %81 = vector.load %arg9[%c0_69, %c0_70] : memref<24x128xf32, #tpu.memory_space<vmem>>, vector<24x128xf32>
    %82 = vector.broadcast %71 : vector<24x1xf32> to vector<24x128xf32>
    %83 = arith.mulf %82, %81 : vector<24x128xf32>
    %84 = arith.truncf %74 : vector<24x24xf32> to vector<24x24xbf16>
    %cst_71 = arith.constant dense<0.000000e+00> : vector<24x128xf32>
    %85 = tpu.matmul %84, %64, %cst_71 {dimension_numbers = #tpu.dot_dimension_numbers<[1], [0], [0], [1], [0, 0, 1, 1], [], []>} : vector<24x24xbf16>, vector<24x128xbf16>, vector<24x128xf32> -> vector<24x128xf32>
    %86 = arith.addf %83, %85 : vector<24x128xf32>
    %c0_72 = arith.constant 0 : index
    %c0_73 = arith.constant 0 : index
    %87 = vector.load %arg9[%c0_72, %c0_73] : memref<24x128xf32, #tpu.memory_space<vmem>>, vector<24x128xf32>
    tpu.vector_store %arg9[%c0_72, %c0_73], %86 {strides = array<i32>} : memref<24x128xf32, #tpu.memory_space<vmem>>, vector<24x128xf32>,
    %c0_74 = arith.constant 0 : index
    %c0_75 = arith.constant 0 : index
    %88 = vector.load %arg7[%c0_74, %c0_75] : memref<24x1xf32, #tpu.memory_space<vmem>>, vector<24x1xf32>
    tpu.vector_store %arg7[%c0_74, %c0_75], %69 {strides = array<i32>} : memref<24x1xf32, #tpu.memory_space<vmem>>, vector<24x1xf32>,
    %c1_i32_76 = arith.constant 1 : i32
    %c0_77 = arith.constant 0 : index
    %c0_78 = arith.constant 0 : index
    %89 = vector.load %arg9[%c0_77, %c0_78] : memref<24x128xf32, #tpu.memory_space<vmem>>, vector<24x128xf32>
    %c0_79 = arith.constant 0 : index
    %c0_80 = arith.constant 0 : index
    %90 = vector.load %arg8[%c0_79, %c0_80] : memref<24x1xf32, #tpu.memory_space<vmem>>, vector<24x1xf32>
    %91 = tpu.reciprocal %90 {approx = true} : vector<24x1xf32> -> vector<24x1xf32>
    %92 = vector.broadcast %91 : vector<24x1xf32> to vector<24x128xf32>
    %93 = arith.mulf %89, %92 : vector<24x128xf32>
    %94 = arith.truncf %93 : vector<24x128xf32> to vector<24x128xbf16>
    %c0_81 = arith.constant 0 : index
    %c0_82 = arith.constant 0 : index
    %c128 = arith.constant 128 : index
    %95 = vector.load %arg6[%c0_81, %c0_82, %c128] : memref<1x24x256xbf16, #tpu.memory_space<vmem>>, vector<1x24x128xbf16>
    %96 = vector.shape_cast %95 : vector<1x24x128xbf16> to vector<24x128xbf16>
    %97 = vector.shape_cast %94 : vector<24x128xbf16> to vector<1x24x128xbf16>
    tpu.vector_store %arg6[%c0_81, %c0_82, %c128], %97 {strides = array<i32>} : memref<1x24x256xbf16, #tpu.memory_space<vmem>>, vector<1x24x128xbf16>,
    return
  }
  func.func @transform_0(%arg0: i32, %arg1: i32, %arg2: i32) -> (i32, i32, i32, i32) {
    %c0_i32 = arith.constant 0 : i32
    %c0_i32_0 = arith.constant 0 : i32
    return %arg0, %arg1, %arg2, %c0_i32 : i32, i32, i32, i32
  }
  func.func @transform_1(%arg0: i32, %arg1: i32, %arg2: i32) -> (i32, i32, i32, i32) {
    %c0_i32 = arith.constant 0 : i32
    %c0_i32_0 = arith.constant 0 : i32
    %c0_i32_1 = arith.constant 0 : i32
    return %arg0, %arg1, %c0_i32, %c0_i32_0 : i32, i32, i32, i32
  }
  func.func @transform_2(%arg0: i32, %arg1: i32, %arg2: i32) -> (i32, i32, i32, i32) {
    %c0_i32 = arith.constant 0 : i32
    %c0_i32_0 = arith.constant 0 : i32
    %c0_i32_1 = arith.constant 0 : i32
    return %arg0, %arg1, %c0_i32, %c0_i32_0 : i32, i32, i32, i32
  }
  func.func @transform_3(%arg0: i32, %arg1: i32, %arg2: i32) -> (i32, i32, i32) {
    %c0_i32 = arith.constant 0 : i32
    return %arg0, %arg2, %arg1 : i32, i32, i32
  }
}

module attributes {stable_mosaic.version = 11 : i64} {
  func.func @_linear_res_kernel(%arg0: i32, %arg1: i32, %arg2: i32, %arg3: i32, %arg4: memref<1x16x256xbf16, #tpu.memory_space<vmem>>, %arg5: memref<256x256xbf16, #tpu.memory_space<vmem>>, %arg6: memref<1x256xf32, #tpu.memory_space<vmem>>, %arg7: memref<1x1x256xf32, #tpu.memory_space<vmem>>, %arg8: memref<1x16x256xbf16, #tpu.memory_space<vmem>>, %arg9: memref<1x16x256xbf16, #tpu.memory_space<vmem>>, %arg10: memref<16x256xf32, #tpu.memory_space<vmem>>) attributes {dimension_semantics = [#tpu.dimension_semantics<parallel>, #tpu.dimension_semantics<parallel>, #tpu.dimension_semantics<parallel>, #tpu.dimension_semantics<arbitrary>], iteration_bounds = array<i64: 2, 1, 1, 1>, scalar_prefetch = 0 : i64, scratch_operands = 1 : i64, tpu.core_type = #tpu.core_type<tc>, window_params = [{transform_indices = @transform_0, window_bounds = array<i64: 1, 16, 256>}, {transform_indices = @transform_1, window_bounds = array<i64: 256, 256>}, {transform_indices = @transform_2, window_bounds = array<i64: 1, 256>}, {transform_indices = @transform_3, window_bounds = array<i64: 1, 1, 256>}, {transform_indices = @transform_4, window_bounds = array<i64: 1, 16, 256>}, {transform_indices = @transform_5, window_bounds = array<i64: 1, 16, 256>}]} {
    %c0_i32 = arith.constant 0 : i32
    %0 = arith.cmpi eq, %arg3, %c0_i32 : i32
    %1 = arith.extui %0 : i1 to i32
    %c0_i32_0 = arith.constant 0 : i32
    %2 = arith.cmpi ne, %1, %c0_i32_0 : i32
    scf.if %2 {
      %cst_11 = arith.constant 0.000000e+00 : f32
      %13 = vector.broadcast %cst_11 : f32 to vector<16x256xf32>
      %c0_12 = arith.constant 0 : index
      %c0_13 = arith.constant 0 : index
      %14 = vector.load %arg10[%c0_12, %c0_13] : memref<16x256xf32, #tpu.memory_space<vmem>>, vector<16x256xf32>
      tpu.vector_store %arg10[%c0_12, %c0_13], %13 {strides = array<i32>} : memref<16x256xf32, #tpu.memory_space<vmem>>, vector<16x256xf32>,
    } else {
    }
    %c0 = arith.constant 0 : index
    %c0_1 = arith.constant 0 : index
    %3 = vector.load %arg10[%c0, %c0_1] : memref<16x256xf32, #tpu.memory_space<vmem>>, vector<16x256xf32>
    %c0_2 = arith.constant 0 : index
    %c0_3 = arith.constant 0 : index
    %c0_4 = arith.constant 0 : index
    %4 = vector.load %arg4[%c0_2, %c0_3, %c0_4] : memref<1x16x256xbf16, #tpu.memory_space<vmem>>, vector<1x16x256xbf16>
    %5 = vector.shape_cast %4 : vector<1x16x256xbf16> to vector<16x256xbf16>
    %c0_5 = arith.constant 0 : index
    %c0_6 = arith.constant 0 : index
    %6 = vector.load %arg5[%c0_5, %c0_6] : memref<256x256xbf16, #tpu.memory_space<vmem>>, vector<256x256xbf16>
    %cst = arith.constant dense<0.000000e+00> : vector<16x256xf32>
    %7 = tpu.matmul %5, %6, %cst {dimension_numbers = #tpu.dot_dimension_numbers<[1], [0], [0], [1], [0, 0, 1, 1], [], []>} : vector<16x256xbf16>, vector<256x256xbf16>, vector<16x256xf32> -> vector<16x256xf32>
    %8 = arith.addf %3, %7 : vector<16x256xf32>
    %c0_7 = arith.constant 0 : index
    %c0_8 = arith.constant 0 : index
    %9 = vector.load %arg10[%c0_7, %c0_8] : memref<16x256xf32, #tpu.memory_space<vmem>>, vector<16x256xf32>
    tpu.vector_store %arg10[%c0_7, %c0_8], %8 {strides = array<i32>} : memref<16x256xf32, #tpu.memory_space<vmem>>, vector<16x256xf32>,
    %c0_i32_9 = arith.constant 0 : i32
    %10 = arith.cmpi eq, %arg3, %c0_i32_9 : i32
    %11 = arith.extui %10 : i1 to i32
    %c0_i32_10 = arith.constant 0 : i32
    %12 = arith.cmpi ne, %11, %c0_i32_10 : i32
    scf.if %12 {
      %c0_11 = arith.constant 0 : index
      %c0_12 = arith.constant 0 : index
      %13 = vector.load %arg10[%c0_11, %c0_12] : memref<16x256xf32, #tpu.memory_space<vmem>>, vector<16x256xf32>
      %c0_13 = arith.constant 0 : index
      %c0_14 = arith.constant 0 : index
      %14 = vector.load %arg6[%c0_13, %c0_14] : memref<1x256xf32, #tpu.memory_space<vmem>>, vector<1x256xf32>
      %15 = vector.broadcast %14 : vector<1x256xf32> to vector<16x256xf32>
      %16 = arith.addf %13, %15 : vector<16x256xf32>
      %c0_15 = arith.constant 0 : index
      %c0_16 = arith.constant 0 : index
      %c0_17 = arith.constant 0 : index
      %17 = vector.load %arg8[%c0_15, %c0_16, %c0_17] : memref<1x16x256xbf16, #tpu.memory_space<vmem>>, vector<1x16x256xbf16>
      %18 = vector.shape_cast %17 : vector<1x16x256xbf16> to vector<16x256xbf16>
      %19 = arith.extf %18 : vector<16x256xbf16> to vector<16x256xf32>
      %c0_18 = arith.constant 0 : index
      %c0_19 = arith.constant 0 : index
      %c0_20 = arith.constant 0 : index
      %20 = vector.load %arg7[%c0_18, %c0_19, %c0_20] : memref<1x1x256xf32, #tpu.memory_space<vmem>>, vector<1x1x256xf32>
      %21 = vector.shape_cast %20 : vector<1x1x256xf32> to vector<1x256xf32>
      %22 = vector.broadcast %21 : vector<1x256xf32> to vector<16x256xf32>
      %23 = arith.mulf %22, %16 : vector<16x256xf32>
      %24 = arith.addf %19, %23 : vector<16x256xf32>
      %25 = arith.truncf %24 : vector<16x256xf32> to vector<16x256xbf16>
      %c0_21 = arith.constant 0 : index
      %c0_22 = arith.constant 0 : index
      %c0_23 = arith.constant 0 : index
      %26 = vector.load %arg9[%c0_21, %c0_22, %c0_23] : memref<1x16x256xbf16, #tpu.memory_space<vmem>>, vector<1x16x256xbf16>
      %27 = vector.shape_cast %26 : vector<1x16x256xbf16> to vector<16x256xbf16>
      %28 = vector.shape_cast %25 : vector<16x256xbf16> to vector<1x16x256xbf16>
      tpu.vector_store %arg9[%c0_21, %c0_22, %c0_23], %28 {strides = array<i32>} : memref<1x16x256xbf16, #tpu.memory_space<vmem>>, vector<1x16x256xbf16>,
    } else {
    }
    return
  }
  func.func @transform_0(%arg0: i32, %arg1: i32, %arg2: i32, %arg3: i32) -> (i32, i32, i32) {
    %c0_i32 = arith.constant 0 : i32
    return %arg0, %arg1, %arg3 : i32, i32, i32
  }
  func.func @transform_1(%arg0: i32, %arg1: i32, %arg2: i32, %arg3: i32) -> (i32, i32) {
    %c0_i32 = arith.constant 0 : i32
    return %arg3, %arg2 : i32, i32
  }
  func.func @transform_2(%arg0: i32, %arg1: i32, %arg2: i32, %arg3: i32) -> (i32, i32) {
    %c0_i32 = arith.constant 0 : i32
    %c0_i32_0 = arith.constant 0 : i32
    return %c0_i32, %arg2 : i32, i32
  }
  func.func @transform_3(%arg0: i32, %arg1: i32, %arg2: i32, %arg3: i32) -> (i32, i32, i32) {
    %c0_i32 = arith.constant 0 : i32
    %c0_i32_0 = arith.constant 0 : i32
    return %arg0, %c0_i32, %arg2 : i32, i32, i32
  }
  func.func @transform_4(%arg0: i32, %arg1: i32, %arg2: i32, %arg3: i32) -> (i32, i32, i32) {
    %c0_i32 = arith.constant 0 : i32
    return %arg0, %arg1, %arg2 : i32, i32, i32
  }
  func.func @transform_5(%arg0: i32, %arg1: i32, %arg2: i32, %arg3: i32) -> (i32, i32, i32) {
    %c0_i32 = arith.constant 0 : i32
    return %arg0, %arg1, %arg2 : i32, i32, i32
  }
}

module attributes {stable_mosaic.version = 11 : i64} {
  func.func @_linear_kernel(%arg0: i32, %arg1: i32, %arg2: i32, %arg3: i32, %arg4: memref<1x16x256xbf16, #tpu.memory_space<vmem>>, %arg5: memref<256x1024xbf16, #tpu.memory_space<vmem>>, %arg6: memref<1x1024xf32, #tpu.memory_space<vmem>>, %arg7: memref<1x16x1024xbf16, #tpu.memory_space<vmem>>, %arg8: memref<16x1024xf32, #tpu.memory_space<vmem>>) attributes {dimension_semantics = [#tpu.dimension_semantics<parallel>, #tpu.dimension_semantics<parallel>, #tpu.dimension_semantics<parallel>, #tpu.dimension_semantics<arbitrary>], iteration_bounds = array<i64: 2, 1, 1, 1>, scalar_prefetch = 0 : i64, scratch_operands = 1 : i64, tpu.core_type = #tpu.core_type<tc>, window_params = [{transform_indices = @transform_0, window_bounds = array<i64: 1, 16, 256>}, {transform_indices = @transform_1, window_bounds = array<i64: 256, 1024>}, {transform_indices = @transform_2, window_bounds = array<i64: 1, 1024>}, {transform_indices = @transform_3, window_bounds = array<i64: 1, 16, 1024>}]} {
    %c0_i32 = arith.constant 0 : i32
    %0 = arith.cmpi eq, %arg3, %c0_i32 : i32
    %1 = arith.extui %0 : i1 to i32
    %c0_i32_0 = arith.constant 0 : i32
    %2 = arith.cmpi ne, %1, %c0_i32_0 : i32
    scf.if %2 {
      %cst_11 = arith.constant 0.000000e+00 : f32
      %13 = vector.broadcast %cst_11 : f32 to vector<16x1024xf32>
      %c0_12 = arith.constant 0 : index
      %c0_13 = arith.constant 0 : index
      %14 = vector.load %arg8[%c0_12, %c0_13] : memref<16x1024xf32, #tpu.memory_space<vmem>>, vector<16x1024xf32>
      tpu.vector_store %arg8[%c0_12, %c0_13], %13 {strides = array<i32>} : memref<16x1024xf32, #tpu.memory_space<vmem>>, vector<16x1024xf32>,
    } else {
    }
    %c0 = arith.constant 0 : index
    %c0_1 = arith.constant 0 : index
    %3 = vector.load %arg8[%c0, %c0_1] : memref<16x1024xf32, #tpu.memory_space<vmem>>, vector<16x1024xf32>
    %c0_2 = arith.constant 0 : index
    %c0_3 = arith.constant 0 : index
    %c0_4 = arith.constant 0 : index
    %4 = vector.load %arg4[%c0_2, %c0_3, %c0_4] : memref<1x16x256xbf16, #tpu.memory_space<vmem>>, vector<1x16x256xbf16>
    %5 = vector.shape_cast %4 : vector<1x16x256xbf16> to vector<16x256xbf16>
    %c0_5 = arith.constant 0 : index
    %c0_6 = arith.constant 0 : index
    %6 = vector.load %arg5[%c0_5, %c0_6] : memref<256x1024xbf16, #tpu.memory_space<vmem>>, vector<256x1024xbf16>
    %cst = arith.constant dense<0.000000e+00> : vector<16x1024xf32>
    %7 = tpu.matmul %5, %6, %cst {dimension_numbers = #tpu.dot_dimension_numbers<[1], [0], [0], [1], [0, 0, 1, 1], [], []>} : vector<16x256xbf16>, vector<256x1024xbf16>, vector<16x1024xf32> -> vector<16x1024xf32>
    %8 = arith.addf %3, %7 : vector<16x1024xf32>
    %c0_7 = arith.constant 0 : index
    %c0_8 = arith.constant 0 : index
    %9 = vector.load %arg8[%c0_7, %c0_8] : memref<16x1024xf32, #tpu.memory_space<vmem>>, vector<16x1024xf32>
    tpu.vector_store %arg8[%c0_7, %c0_8], %8 {strides = array<i32>} : memref<16x1024xf32, #tpu.memory_space<vmem>>, vector<16x1024xf32>,
    %c0_i32_9 = arith.constant 0 : i32
    %10 = arith.cmpi eq, %arg3, %c0_i32_9 : i32
    %11 = arith.extui %10 : i1 to i32
    %c0_i32_10 = arith.constant 0 : i32
    %12 = arith.cmpi ne, %11, %c0_i32_10 : i32
    scf.if %12 {
      %c0_11 = arith.constant 0 : index
      %c0_12 = arith.constant 0 : index
      %13 = vector.load %arg8[%c0_11, %c0_12] : memref<16x1024xf32, #tpu.memory_space<vmem>>, vector<16x1024xf32>
      %c0_13 = arith.constant 0 : index
      %c0_14 = arith.constant 0 : index
      %14 = vector.load %arg6[%c0_13, %c0_14] : memref<1x1024xf32, #tpu.memory_space<vmem>>, vector<1x1024xf32>
      %15 = vector.broadcast %14 : vector<1x1024xf32> to vector<16x1024xf32>
      %16 = arith.addf %13, %15 : vector<16x1024xf32>
      %cst_15 = arith.constant 5.000000e-01 : f32
      %17 = vector.broadcast %cst_15 : f32 to vector<16x1024xf32>
      %18 = arith.mulf %17, %16 : vector<16x1024xf32>
      %cst_16 = arith.constant 4.471500e-02 : f32
      %19 = vector.broadcast %cst_16 : f32 to vector<16x1024xf32>
      %20 = arith.mulf %19, %16 : vector<16x1024xf32>
      %21 = arith.mulf %20, %16 : vector<16x1024xf32>
      %22 = arith.mulf %21, %16 : vector<16x1024xf32>
      %23 = arith.addf %16, %22 : vector<16x1024xf32>
      %cst_17 = arith.constant 0.797884583 : f32
      %24 = vector.broadcast %cst_17 : f32 to vector<16x1024xf32>
      %25 = arith.mulf %24, %23 : vector<16x1024xf32>
      %26 = math.tanh %25 : vector<16x1024xf32>
      %cst_18 = arith.constant 1.000000e+00 : f32
      %27 = vector.broadcast %cst_18 : f32 to vector<16x1024xf32>
      %28 = arith.addf %27, %26 : vector<16x1024xf32>
      %29 = arith.mulf %18, %28 : vector<16x1024xf32>
      %30 = arith.truncf %29 : vector<16x1024xf32> to vector<16x1024xbf16>
      %c0_19 = arith.constant 0 : index
      %c0_20 = arith.constant 0 : index
      %c0_21 = arith.constant 0 : index
      %31 = vector.load %arg7[%c0_19, %c0_20, %c0_21] : memref<1x16x1024xbf16, #tpu.memory_space<vmem>>, vector<1x16x1024xbf16>
      %32 = vector.shape_cast %31 : vector<1x16x1024xbf16> to vector<16x1024xbf16>
      %33 = vector.shape_cast %30 : vector<16x1024xbf16> to vector<1x16x1024xbf16>
      tpu.vector_store %arg7[%c0_19, %c0_20, %c0_21], %33 {strides = array<i32>} : memref<1x16x1024xbf16, #tpu.memory_space<vmem>>, vector<1x16x1024xbf16>,
    } else {
    }
    return
  }
  func.func @transform_0(%arg0: i32, %arg1: i32, %arg2: i32, %arg3: i32) -> (i32, i32, i32) {
    %c0_i32 = arith.constant 0 : i32
    return %arg0, %arg1, %arg3 : i32, i32, i32
  }
  func.func @transform_1(%arg0: i32, %arg1: i32, %arg2: i32, %arg3: i32) -> (i32, i32) {
    %c0_i32 = arith.constant 0 : i32
    return %arg3, %arg2 : i32, i32
  }
  func.func @transform_2(%arg0: i32, %arg1: i32, %arg2: i32, %arg3: i32) -> (i32, i32) {
    %c0_i32 = arith.constant 0 : i32
    %c0_i32_0 = arith.constant 0 : i32
    return %c0_i32, %arg2 : i32, i32
  }
  func.func @transform_3(%arg0: i32, %arg1: i32, %arg2: i32, %arg3: i32) -> (i32, i32, i32) {
    %c0_i32 = arith.constant 0 : i32
    return %arg0, %arg1, %arg2 : i32, i32, i32
  }
}

module attributes {stable_mosaic.version = 11 : i64} {
  func.func @_linear_res_kernel(%arg0: i32, %arg1: i32, %arg2: i32, %arg3: i32, %arg4: memref<1x16x1024xbf16, #tpu.memory_space<vmem>>, %arg5: memref<1024x256xbf16, #tpu.memory_space<vmem>>, %arg6: memref<1x256xf32, #tpu.memory_space<vmem>>, %arg7: memref<1x1x256xf32, #tpu.memory_space<vmem>>, %arg8: memref<1x16x256xbf16, #tpu.memory_space<vmem>>, %arg9: memref<1x16x256xbf16, #tpu.memory_space<vmem>>, %arg10: memref<16x256xf32, #tpu.memory_space<vmem>>) attributes {dimension_semantics = [#tpu.dimension_semantics<parallel>, #tpu.dimension_semantics<parallel>, #tpu.dimension_semantics<parallel>, #tpu.dimension_semantics<arbitrary>], iteration_bounds = array<i64: 2, 1, 1, 1>, scalar_prefetch = 0 : i64, scratch_operands = 1 : i64, tpu.core_type = #tpu.core_type<tc>, window_params = [{transform_indices = @transform_0, window_bounds = array<i64: 1, 16, 1024>}, {transform_indices = @transform_1, window_bounds = array<i64: 1024, 256>}, {transform_indices = @transform_2, window_bounds = array<i64: 1, 256>}, {transform_indices = @transform_3, window_bounds = array<i64: 1, 1, 256>}, {transform_indices = @transform_4, window_bounds = array<i64: 1, 16, 256>}, {transform_indices = @transform_5, window_bounds = array<i64: 1, 16, 256>}]} {
    %c0_i32 = arith.constant 0 : i32
    %0 = arith.cmpi eq, %arg3, %c0_i32 : i32
    %1 = arith.extui %0 : i1 to i32
    %c0_i32_0 = arith.constant 0 : i32
    %2 = arith.cmpi ne, %1, %c0_i32_0 : i32
    scf.if %2 {
      %cst_11 = arith.constant 0.000000e+00 : f32
      %13 = vector.broadcast %cst_11 : f32 to vector<16x256xf32>
      %c0_12 = arith.constant 0 : index
      %c0_13 = arith.constant 0 : index
      %14 = vector.load %arg10[%c0_12, %c0_13] : memref<16x256xf32, #tpu.memory_space<vmem>>, vector<16x256xf32>
      tpu.vector_store %arg10[%c0_12, %c0_13], %13 {strides = array<i32>} : memref<16x256xf32, #tpu.memory_space<vmem>>, vector<16x256xf32>,
    } else {
    }
    %c0 = arith.constant 0 : index
    %c0_1 = arith.constant 0 : index
    %3 = vector.load %arg10[%c0, %c0_1] : memref<16x256xf32, #tpu.memory_space<vmem>>, vector<16x256xf32>
    %c0_2 = arith.constant 0 : index
    %c0_3 = arith.constant 0 : index
    %c0_4 = arith.constant 0 : index
    %4 = vector.load %arg4[%c0_2, %c0_3, %c0_4] : memref<1x16x1024xbf16, #tpu.memory_space<vmem>>, vector<1x16x1024xbf16>
    %5 = vector.shape_cast %4 : vector<1x16x1024xbf16> to vector<16x1024xbf16>
    %c0_5 = arith.constant 0 : index
    %c0_6 = arith.constant 0 : index
    %6 = vector.load %arg5[%c0_5, %c0_6] : memref<1024x256xbf16, #tpu.memory_space<vmem>>, vector<1024x256xbf16>
    %cst = arith.constant dense<0.000000e+00> : vector<16x256xf32>
    %7 = tpu.matmul %5, %6, %cst {dimension_numbers = #tpu.dot_dimension_numbers<[1], [0], [0], [1], [0, 0, 1, 1], [], []>} : vector<16x1024xbf16>, vector<1024x256xbf16>, vector<16x256xf32> -> vector<16x256xf32>
    %8 = arith.addf %3, %7 : vector<16x256xf32>
    %c0_7 = arith.constant 0 : index
    %c0_8 = arith.constant 0 : index
    %9 = vector.load %arg10[%c0_7, %c0_8] : memref<16x256xf32, #tpu.memory_space<vmem>>, vector<16x256xf32>
    tpu.vector_store %arg10[%c0_7, %c0_8], %8 {strides = array<i32>} : memref<16x256xf32, #tpu.memory_space<vmem>>, vector<16x256xf32>,
    %c0_i32_9 = arith.constant 0 : i32
    %10 = arith.cmpi eq, %arg3, %c0_i32_9 : i32
    %11 = arith.extui %10 : i1 to i32
    %c0_i32_10 = arith.constant 0 : i32
    %12 = arith.cmpi ne, %11, %c0_i32_10 : i32
    scf.if %12 {
      %c0_11 = arith.constant 0 : index
      %c0_12 = arith.constant 0 : index
      %13 = vector.load %arg10[%c0_11, %c0_12] : memref<16x256xf32, #tpu.memory_space<vmem>>, vector<16x256xf32>
      %c0_13 = arith.constant 0 : index
      %c0_14 = arith.constant 0 : index
      %14 = vector.load %arg6[%c0_13, %c0_14] : memref<1x256xf32, #tpu.memory_space<vmem>>, vector<1x256xf32>
      %15 = vector.broadcast %14 : vector<1x256xf32> to vector<16x256xf32>
      %16 = arith.addf %13, %15 : vector<16x256xf32>
      %c0_15 = arith.constant 0 : index
      %c0_16 = arith.constant 0 : index
      %c0_17 = arith.constant 0 : index
      %17 = vector.load %arg8[%c0_15, %c0_16, %c0_17] : memref<1x16x256xbf16, #tpu.memory_space<vmem>>, vector<1x16x256xbf16>
      %18 = vector.shape_cast %17 : vector<1x16x256xbf16> to vector<16x256xbf16>
      %19 = arith.extf %18 : vector<16x256xbf16> to vector<16x256xf32>
      %c0_18 = arith.constant 0 : index
      %c0_19 = arith.constant 0 : index
      %c0_20 = arith.constant 0 : index
      %20 = vector.load %arg7[%c0_18, %c0_19, %c0_20] : memref<1x1x256xf32, #tpu.memory_space<vmem>>, vector<1x1x256xf32>
      %21 = vector.shape_cast %20 : vector<1x1x256xf32> to vector<1x256xf32>
      %22 = vector.broadcast %21 : vector<1x256xf32> to vector<16x256xf32>
      %23 = arith.mulf %22, %16 : vector<16x256xf32>
      %24 = arith.addf %19, %23 : vector<16x256xf32>
      %25 = arith.truncf %24 : vector<16x256xf32> to vector<16x256xbf16>
      %c0_21 = arith.constant 0 : index
      %c0_22 = arith.constant 0 : index
      %c0_23 = arith.constant 0 : index
      %26 = vector.load %arg9[%c0_21, %c0_22, %c0_23] : memref<1x16x256xbf16, #tpu.memory_space<vmem>>, vector<1x16x256xbf16>
      %27 = vector.shape_cast %26 : vector<1x16x256xbf16> to vector<16x256xbf16>
      %28 = vector.shape_cast %25 : vector<16x256xbf16> to vector<1x16x256xbf16>
      tpu.vector_store %arg9[%c0_21, %c0_22, %c0_23], %28 {strides = array<i32>} : memref<1x16x256xbf16, #tpu.memory_space<vmem>>, vector<1x16x256xbf16>,
    } else {
    }
    return
  }
  func.func @transform_0(%arg0: i32, %arg1: i32, %arg2: i32, %arg3: i32) -> (i32, i32, i32) {
    %c0_i32 = arith.constant 0 : i32
    return %arg0, %arg1, %arg3 : i32, i32, i32
  }
  func.func @transform_1(%arg0: i32, %arg1: i32, %arg2: i32, %arg3: i32) -> (i32, i32) {
    %c0_i32 = arith.constant 0 : i32
    return %arg3, %arg2 : i32, i32
  }
  func.func @transform_2(%arg0: i32, %arg1: i32, %arg2: i32, %arg3: i32) -> (i32, i32) {
    %c0_i32 = arith.constant 0 : i32
    %c0_i32_0 = arith.constant 0 : i32
    return %c0_i32, %arg2 : i32, i32
  }
  func.func @transform_3(%arg0: i32, %arg1: i32, %arg2: i32, %arg3: i32) -> (i32, i32, i32) {
    %c0_i32 = arith.constant 0 : i32
    %c0_i32_0 = arith.constant 0 : i32
    return %arg0, %c0_i32, %arg2 : i32, i32, i32
  }
  func.func @transform_4(%arg0: i32, %arg1: i32, %arg2: i32, %arg3: i32) -> (i32, i32, i32) {
    %c0_i32 = arith.constant 0 : i32
    return %arg0, %arg1, %arg2 : i32, i32, i32
  }
  func.func @transform_5(%arg0: i32, %arg1: i32, %arg2: i32, %arg3: i32) -> (i32, i32, i32) {
    %c0_i32 = arith.constant 0 : i32
    return %arg0, %arg1, %arg2 : i32, i32, i32
  }
}

module attributes {stable_mosaic.version = 11 : i64} {
  func.func @_linear_res_kernel(%arg0: i32, %arg1: i32, %arg2: i32, %arg3: i32, %arg4: memref<1x8x256xbf16, #tpu.memory_space<vmem>>, %arg5: memref<256x256xbf16, #tpu.memory_space<vmem>>, %arg6: memref<1x256xf32, #tpu.memory_space<vmem>>, %arg7: memref<1x1x256xf32, #tpu.memory_space<vmem>>, %arg8: memref<1x8x256xbf16, #tpu.memory_space<vmem>>, %arg9: memref<1x8x256xbf16, #tpu.memory_space<vmem>>, %arg10: memref<8x256xf32, #tpu.memory_space<vmem>>) attributes {dimension_semantics = [#tpu.dimension_semantics<parallel>, #tpu.dimension_semantics<parallel>, #tpu.dimension_semantics<parallel>, #tpu.dimension_semantics<arbitrary>], iteration_bounds = array<i64: 2, 1, 1, 1>, scalar_prefetch = 0 : i64, scratch_operands = 1 : i64, tpu.core_type = #tpu.core_type<tc>, window_params = [{transform_indices = @transform_0, window_bounds = array<i64: 1, 8, 256>}, {transform_indices = @transform_1, window_bounds = array<i64: 256, 256>}, {transform_indices = @transform_2, window_bounds = array<i64: 1, 256>}, {transform_indices = @transform_3, window_bounds = array<i64: 1, 1, 256>}, {transform_indices = @transform_4, window_bounds = array<i64: 1, 8, 256>}, {transform_indices = @transform_5, window_bounds = array<i64: 1, 8, 256>}]} {
    %c0_i32 = arith.constant 0 : i32
    %0 = arith.cmpi eq, %arg3, %c0_i32 : i32
    %1 = arith.extui %0 : i1 to i32
    %c0_i32_0 = arith.constant 0 : i32
    %2 = arith.cmpi ne, %1, %c0_i32_0 : i32
    scf.if %2 {
      %cst_11 = arith.constant 0.000000e+00 : f32
      %13 = vector.broadcast %cst_11 : f32 to vector<8x256xf32>
      %c0_12 = arith.constant 0 : index
      %c0_13 = arith.constant 0 : index
      %14 = vector.load %arg10[%c0_12, %c0_13] : memref<8x256xf32, #tpu.memory_space<vmem>>, vector<8x256xf32>
      tpu.vector_store %arg10[%c0_12, %c0_13], %13 {strides = array<i32>} : memref<8x256xf32, #tpu.memory_space<vmem>>, vector<8x256xf32>,
    } else {
    }
    %c0 = arith.constant 0 : index
    %c0_1 = arith.constant 0 : index
    %3 = vector.load %arg10[%c0, %c0_1] : memref<8x256xf32, #tpu.memory_space<vmem>>, vector<8x256xf32>
    %c0_2 = arith.constant 0 : index
    %c0_3 = arith.constant 0 : index
    %c0_4 = arith.constant 0 : index
    %4 = vector.load %arg4[%c0_2, %c0_3, %c0_4] : memref<1x8x256xbf16, #tpu.memory_space<vmem>>, vector<1x8x256xbf16>
    %5 = vector.shape_cast %4 : vector<1x8x256xbf16> to vector<8x256xbf16>
    %c0_5 = arith.constant 0 : index
    %c0_6 = arith.constant 0 : index
    %6 = vector.load %arg5[%c0_5, %c0_6] : memref<256x256xbf16, #tpu.memory_space<vmem>>, vector<256x256xbf16>
    %cst = arith.constant dense<0.000000e+00> : vector<8x256xf32>
    %7 = tpu.matmul %5, %6, %cst {dimension_numbers = #tpu.dot_dimension_numbers<[1], [0], [0], [1], [0, 0, 1, 1], [], []>} : vector<8x256xbf16>, vector<256x256xbf16>, vector<8x256xf32> -> vector<8x256xf32>
    %8 = arith.addf %3, %7 : vector<8x256xf32>
    %c0_7 = arith.constant 0 : index
    %c0_8 = arith.constant 0 : index
    %9 = vector.load %arg10[%c0_7, %c0_8] : memref<8x256xf32, #tpu.memory_space<vmem>>, vector<8x256xf32>
    tpu.vector_store %arg10[%c0_7, %c0_8], %8 {strides = array<i32>} : memref<8x256xf32, #tpu.memory_space<vmem>>, vector<8x256xf32>,
    %c0_i32_9 = arith.constant 0 : i32
    %10 = arith.cmpi eq, %arg3, %c0_i32_9 : i32
    %11 = arith.extui %10 : i1 to i32
    %c0_i32_10 = arith.constant 0 : i32
    %12 = arith.cmpi ne, %11, %c0_i32_10 : i32
    scf.if %12 {
      %c0_11 = arith.constant 0 : index
      %c0_12 = arith.constant 0 : index
      %13 = vector.load %arg10[%c0_11, %c0_12] : memref<8x256xf32, #tpu.memory_space<vmem>>, vector<8x256xf32>
      %c0_13 = arith.constant 0 : index
      %c0_14 = arith.constant 0 : index
      %14 = vector.load %arg6[%c0_13, %c0_14] : memref<1x256xf32, #tpu.memory_space<vmem>>, vector<1x256xf32>
      %15 = vector.broadcast %14 : vector<1x256xf32> to vector<8x256xf32>
      %16 = arith.addf %13, %15 : vector<8x256xf32>
      %c0_15 = arith.constant 0 : index
      %c0_16 = arith.constant 0 : index
      %c0_17 = arith.constant 0 : index
      %17 = vector.load %arg8[%c0_15, %c0_16, %c0_17] : memref<1x8x256xbf16, #tpu.memory_space<vmem>>, vector<1x8x256xbf16>
      %18 = vector.shape_cast %17 : vector<1x8x256xbf16> to vector<8x256xbf16>
      %19 = arith.extf %18 : vector<8x256xbf16> to vector<8x256xf32>
      %c0_18 = arith.constant 0 : index
      %c0_19 = arith.constant 0 : index
      %c0_20 = arith.constant 0 : index
      %20 = vector.load %arg7[%c0_18, %c0_19, %c0_20] : memref<1x1x256xf32, #tpu.memory_space<vmem>>, vector<1x1x256xf32>
      %21 = vector.shape_cast %20 : vector<1x1x256xf32> to vector<1x256xf32>
      %22 = vector.broadcast %21 : vector<1x256xf32> to vector<8x256xf32>
      %23 = arith.mulf %22, %16 : vector<8x256xf32>
      %24 = arith.addf %19, %23 : vector<8x256xf32>
      %25 = arith.truncf %24 : vector<8x256xf32> to vector<8x256xbf16>
      %c0_21 = arith.constant 0 : index
      %c0_22 = arith.constant 0 : index
      %c0_23 = arith.constant 0 : index
      %26 = vector.load %arg9[%c0_21, %c0_22, %c0_23] : memref<1x8x256xbf16, #tpu.memory_space<vmem>>, vector<1x8x256xbf16>
      %27 = vector.shape_cast %26 : vector<1x8x256xbf16> to vector<8x256xbf16>
      %28 = vector.shape_cast %25 : vector<8x256xbf16> to vector<1x8x256xbf16>
      tpu.vector_store %arg9[%c0_21, %c0_22, %c0_23], %28 {strides = array<i32>} : memref<1x8x256xbf16, #tpu.memory_space<vmem>>, vector<1x8x256xbf16>,
    } else {
    }
    return
  }
  func.func @transform_0(%arg0: i32, %arg1: i32, %arg2: i32, %arg3: i32) -> (i32, i32, i32) {
    %c0_i32 = arith.constant 0 : i32
    return %arg0, %arg1, %arg3 : i32, i32, i32
  }
  func.func @transform_1(%arg0: i32, %arg1: i32, %arg2: i32, %arg3: i32) -> (i32, i32) {
    %c0_i32 = arith.constant 0 : i32
    return %arg3, %arg2 : i32, i32
  }
  func.func @transform_2(%arg0: i32, %arg1: i32, %arg2: i32, %arg3: i32) -> (i32, i32) {
    %c0_i32 = arith.constant 0 : i32
    %c0_i32_0 = arith.constant 0 : i32
    return %c0_i32, %arg2 : i32, i32
  }
  func.func @transform_3(%arg0: i32, %arg1: i32, %arg2: i32, %arg3: i32) -> (i32, i32, i32) {
    %c0_i32 = arith.constant 0 : i32
    %c0_i32_0 = arith.constant 0 : i32
    return %arg0, %c0_i32, %arg2 : i32, i32, i32
  }
  func.func @transform_4(%arg0: i32, %arg1: i32, %arg2: i32, %arg3: i32) -> (i32, i32, i32) {
    %c0_i32 = arith.constant 0 : i32
    return %arg0, %arg1, %arg2 : i32, i32, i32
  }
  func.func @transform_5(%arg0: i32, %arg1: i32, %arg2: i32, %arg3: i32) -> (i32, i32, i32) {
    %c0_i32 = arith.constant 0 : i32
    return %arg0, %arg1, %arg2 : i32, i32, i32
  }
}

module attributes {stable_mosaic.version = 11 : i64} {
  func.func @_linear_kernel(%arg0: i32, %arg1: i32, %arg2: i32, %arg3: i32, %arg4: memref<1x8x256xbf16, #tpu.memory_space<vmem>>, %arg5: memref<256x1024xbf16, #tpu.memory_space<vmem>>, %arg6: memref<1x1024xf32, #tpu.memory_space<vmem>>, %arg7: memref<1x8x1024xbf16, #tpu.memory_space<vmem>>, %arg8: memref<8x1024xf32, #tpu.memory_space<vmem>>) attributes {dimension_semantics = [#tpu.dimension_semantics<parallel>, #tpu.dimension_semantics<parallel>, #tpu.dimension_semantics<parallel>, #tpu.dimension_semantics<arbitrary>], iteration_bounds = array<i64: 2, 1, 1, 1>, scalar_prefetch = 0 : i64, scratch_operands = 1 : i64, tpu.core_type = #tpu.core_type<tc>, window_params = [{transform_indices = @transform_0, window_bounds = array<i64: 1, 8, 256>}, {transform_indices = @transform_1, window_bounds = array<i64: 256, 1024>}, {transform_indices = @transform_2, window_bounds = array<i64: 1, 1024>}, {transform_indices = @transform_3, window_bounds = array<i64: 1, 8, 1024>}]} {
    %c0_i32 = arith.constant 0 : i32
    %0 = arith.cmpi eq, %arg3, %c0_i32 : i32
    %1 = arith.extui %0 : i1 to i32
    %c0_i32_0 = arith.constant 0 : i32
    %2 = arith.cmpi ne, %1, %c0_i32_0 : i32
    scf.if %2 {
      %cst_11 = arith.constant 0.000000e+00 : f32
      %13 = vector.broadcast %cst_11 : f32 to vector<8x1024xf32>
      %c0_12 = arith.constant 0 : index
      %c0_13 = arith.constant 0 : index
      %14 = vector.load %arg8[%c0_12, %c0_13] : memref<8x1024xf32, #tpu.memory_space<vmem>>, vector<8x1024xf32>
      tpu.vector_store %arg8[%c0_12, %c0_13], %13 {strides = array<i32>} : memref<8x1024xf32, #tpu.memory_space<vmem>>, vector<8x1024xf32>,
    } else {
    }
    %c0 = arith.constant 0 : index
    %c0_1 = arith.constant 0 : index
    %3 = vector.load %arg8[%c0, %c0_1] : memref<8x1024xf32, #tpu.memory_space<vmem>>, vector<8x1024xf32>
    %c0_2 = arith.constant 0 : index
    %c0_3 = arith.constant 0 : index
    %c0_4 = arith.constant 0 : index
    %4 = vector.load %arg4[%c0_2, %c0_3, %c0_4] : memref<1x8x256xbf16, #tpu.memory_space<vmem>>, vector<1x8x256xbf16>
    %5 = vector.shape_cast %4 : vector<1x8x256xbf16> to vector<8x256xbf16>
    %c0_5 = arith.constant 0 : index
    %c0_6 = arith.constant 0 : index
    %6 = vector.load %arg5[%c0_5, %c0_6] : memref<256x1024xbf16, #tpu.memory_space<vmem>>, vector<256x1024xbf16>
    %cst = arith.constant dense<0.000000e+00> : vector<8x1024xf32>
    %7 = tpu.matmul %5, %6, %cst {dimension_numbers = #tpu.dot_dimension_numbers<[1], [0], [0], [1], [0, 0, 1, 1], [], []>} : vector<8x256xbf16>, vector<256x1024xbf16>, vector<8x1024xf32> -> vector<8x1024xf32>
    %8 = arith.addf %3, %7 : vector<8x1024xf32>
    %c0_7 = arith.constant 0 : index
    %c0_8 = arith.constant 0 : index
    %9 = vector.load %arg8[%c0_7, %c0_8] : memref<8x1024xf32, #tpu.memory_space<vmem>>, vector<8x1024xf32>
    tpu.vector_store %arg8[%c0_7, %c0_8], %8 {strides = array<i32>} : memref<8x1024xf32, #tpu.memory_space<vmem>>, vector<8x1024xf32>,
    %c0_i32_9 = arith.constant 0 : i32
    %10 = arith.cmpi eq, %arg3, %c0_i32_9 : i32
    %11 = arith.extui %10 : i1 to i32
    %c0_i32_10 = arith.constant 0 : i32
    %12 = arith.cmpi ne, %11, %c0_i32_10 : i32
    scf.if %12 {
      %c0_11 = arith.constant 0 : index
      %c0_12 = arith.constant 0 : index
      %13 = vector.load %arg8[%c0_11, %c0_12] : memref<8x1024xf32, #tpu.memory_space<vmem>>, vector<8x1024xf32>
      %c0_13 = arith.constant 0 : index
      %c0_14 = arith.constant 0 : index
      %14 = vector.load %arg6[%c0_13, %c0_14] : memref<1x1024xf32, #tpu.memory_space<vmem>>, vector<1x1024xf32>
      %15 = vector.broadcast %14 : vector<1x1024xf32> to vector<8x1024xf32>
      %16 = arith.addf %13, %15 : vector<8x1024xf32>
      %cst_15 = arith.constant 5.000000e-01 : f32
      %17 = vector.broadcast %cst_15 : f32 to vector<8x1024xf32>
      %18 = arith.mulf %17, %16 : vector<8x1024xf32>
      %cst_16 = arith.constant 4.471500e-02 : f32
      %19 = vector.broadcast %cst_16 : f32 to vector<8x1024xf32>
      %20 = arith.mulf %19, %16 : vector<8x1024xf32>
      %21 = arith.mulf %20, %16 : vector<8x1024xf32>
      %22 = arith.mulf %21, %16 : vector<8x1024xf32>
      %23 = arith.addf %16, %22 : vector<8x1024xf32>
      %cst_17 = arith.constant 0.797884583 : f32
      %24 = vector.broadcast %cst_17 : f32 to vector<8x1024xf32>
      %25 = arith.mulf %24, %23 : vector<8x1024xf32>
      %26 = math.tanh %25 : vector<8x1024xf32>
      %cst_18 = arith.constant 1.000000e+00 : f32
      %27 = vector.broadcast %cst_18 : f32 to vector<8x1024xf32>
      %28 = arith.addf %27, %26 : vector<8x1024xf32>
      %29 = arith.mulf %18, %28 : vector<8x1024xf32>
      %30 = arith.truncf %29 : vector<8x1024xf32> to vector<8x1024xbf16>
      %c0_19 = arith.constant 0 : index
      %c0_20 = arith.constant 0 : index
      %c0_21 = arith.constant 0 : index
      %31 = vector.load %arg7[%c0_19, %c0_20, %c0_21] : memref<1x8x1024xbf16, #tpu.memory_space<vmem>>, vector<1x8x1024xbf16>
      %32 = vector.shape_cast %31 : vector<1x8x1024xbf16> to vector<8x1024xbf16>
      %33 = vector.shape_cast %30 : vector<8x1024xbf16> to vector<1x8x1024xbf16>
      tpu.vector_store %arg7[%c0_19, %c0_20, %c0_21], %33 {strides = array<i32>} : memref<1x8x1024xbf16, #tpu.memory_space<vmem>>, vector<1x8x1024xbf16>,
    } else {
    }
    return
  }
  func.func @transform_0(%arg0: i32, %arg1: i32, %arg2: i32, %arg3: i32) -> (i32, i32, i32) {
    %c0_i32 = arith.constant 0 : i32
    return %arg0, %arg1, %arg3 : i32, i32, i32
  }
  func.func @transform_1(%arg0: i32, %arg1: i32, %arg2: i32, %arg3: i32) -> (i32, i32) {
    %c0_i32 = arith.constant 0 : i32
    return %arg3, %arg2 : i32, i32
  }
  func.func @transform_2(%arg0: i32, %arg1: i32, %arg2: i32, %arg3: i32) -> (i32, i32) {
    %c0_i32 = arith.constant 0 : i32
    %c0_i32_0 = arith.constant 0 : i32
    return %c0_i32, %arg2 : i32, i32
  }
  func.func @transform_3(%arg0: i32, %arg1: i32, %arg2: i32, %arg3: i32) -> (i32, i32, i32) {
    %c0_i32 = arith.constant 0 : i32
    return %arg0, %arg1, %arg2 : i32, i32, i32
  }
}

module attributes {stable_mosaic.version = 11 : i64} {
  func.func @_linear_res_kernel(%arg0: i32, %arg1: i32, %arg2: i32, %arg3: i32, %arg4: memref<1x8x1024xbf16, #tpu.memory_space<vmem>>, %arg5: memref<1024x256xbf16, #tpu.memory_space<vmem>>, %arg6: memref<1x256xf32, #tpu.memory_space<vmem>>, %arg7: memref<1x1x256xf32, #tpu.memory_space<vmem>>, %arg8: memref<1x8x256xbf16, #tpu.memory_space<vmem>>, %arg9: memref<1x8x256xbf16, #tpu.memory_space<vmem>>, %arg10: memref<8x256xf32, #tpu.memory_space<vmem>>) attributes {dimension_semantics = [#tpu.dimension_semantics<parallel>, #tpu.dimension_semantics<parallel>, #tpu.dimension_semantics<parallel>, #tpu.dimension_semantics<arbitrary>], iteration_bounds = array<i64: 2, 1, 1, 1>, scalar_prefetch = 0 : i64, scratch_operands = 1 : i64, tpu.core_type = #tpu.core_type<tc>, window_params = [{transform_indices = @transform_0, window_bounds = array<i64: 1, 8, 1024>}, {transform_indices = @transform_1, window_bounds = array<i64: 1024, 256>}, {transform_indices = @transform_2, window_bounds = array<i64: 1, 256>}, {transform_indices = @transform_3, window_bounds = array<i64: 1, 1, 256>}, {transform_indices = @transform_4, window_bounds = array<i64: 1, 8, 256>}, {transform_indices = @transform_5, window_bounds = array<i64: 1, 8, 256>}]} {
    %c0_i32 = arith.constant 0 : i32
    %0 = arith.cmpi eq, %arg3, %c0_i32 : i32
    %1 = arith.extui %0 : i1 to i32
    %c0_i32_0 = arith.constant 0 : i32
    %2 = arith.cmpi ne, %1, %c0_i32_0 : i32
    scf.if %2 {
      %cst_11 = arith.constant 0.000000e+00 : f32
      %13 = vector.broadcast %cst_11 : f32 to vector<8x256xf32>
      %c0_12 = arith.constant 0 : index
      %c0_13 = arith.constant 0 : index
      %14 = vector.load %arg10[%c0_12, %c0_13] : memref<8x256xf32, #tpu.memory_space<vmem>>, vector<8x256xf32>
      tpu.vector_store %arg10[%c0_12, %c0_13], %13 {strides = array<i32>} : memref<8x256xf32, #tpu.memory_space<vmem>>, vector<8x256xf32>,
    } else {
    }
    %c0 = arith.constant 0 : index
    %c0_1 = arith.constant 0 : index
    %3 = vector.load %arg10[%c0, %c0_1] : memref<8x256xf32, #tpu.memory_space<vmem>>, vector<8x256xf32>
    %c0_2 = arith.constant 0 : index
    %c0_3 = arith.constant 0 : index
    %c0_4 = arith.constant 0 : index
    %4 = vector.load %arg4[%c0_2, %c0_3, %c0_4] : memref<1x8x1024xbf16, #tpu.memory_space<vmem>>, vector<1x8x1024xbf16>
    %5 = vector.shape_cast %4 : vector<1x8x1024xbf16> to vector<8x1024xbf16>
    %c0_5 = arith.constant 0 : index
    %c0_6 = arith.constant 0 : index
    %6 = vector.load %arg5[%c0_5, %c0_6] : memref<1024x256xbf16, #tpu.memory_space<vmem>>, vector<1024x256xbf16>
    %cst = arith.constant dense<0.000000e+00> : vector<8x256xf32>
    %7 = tpu.matmul %5, %6, %cst {dimension_numbers = #tpu.dot_dimension_numbers<[1], [0], [0], [1], [0, 0, 1, 1], [], []>} : vector<8x1024xbf16>, vector<1024x256xbf16>, vector<8x256xf32> -> vector<8x256xf32>
    %8 = arith.addf %3, %7 : vector<8x256xf32>
    %c0_7 = arith.constant 0 : index
    %c0_8 = arith.constant 0 : index
    %9 = vector.load %arg10[%c0_7, %c0_8] : memref<8x256xf32, #tpu.memory_space<vmem>>, vector<8x256xf32>
    tpu.vector_store %arg10[%c0_7, %c0_8], %8 {strides = array<i32>} : memref<8x256xf32, #tpu.memory_space<vmem>>, vector<8x256xf32>,
    %c0_i32_9 = arith.constant 0 : i32
    %10 = arith.cmpi eq, %arg3, %c0_i32_9 : i32
    %11 = arith.extui %10 : i1 to i32
    %c0_i32_10 = arith.constant 0 : i32
    %12 = arith.cmpi ne, %11, %c0_i32_10 : i32
    scf.if %12 {
      %c0_11 = arith.constant 0 : index
      %c0_12 = arith.constant 0 : index
      %13 = vector.load %arg10[%c0_11, %c0_12] : memref<8x256xf32, #tpu.memory_space<vmem>>, vector<8x256xf32>
      %c0_13 = arith.constant 0 : index
      %c0_14 = arith.constant 0 : index
      %14 = vector.load %arg6[%c0_13, %c0_14] : memref<1x256xf32, #tpu.memory_space<vmem>>, vector<1x256xf32>
      %15 = vector.broadcast %14 : vector<1x256xf32> to vector<8x256xf32>
      %16 = arith.addf %13, %15 : vector<8x256xf32>
      %c0_15 = arith.constant 0 : index
      %c0_16 = arith.constant 0 : index
      %c0_17 = arith.constant 0 : index
      %17 = vector.load %arg8[%c0_15, %c0_16, %c0_17] : memref<1x8x256xbf16, #tpu.memory_space<vmem>>, vector<1x8x256xbf16>
      %18 = vector.shape_cast %17 : vector<1x8x256xbf16> to vector<8x256xbf16>
      %19 = arith.extf %18 : vector<8x256xbf16> to vector<8x256xf32>
      %c0_18 = arith.constant 0 : index
      %c0_19 = arith.constant 0 : index
      %c0_20 = arith.constant 0 : index
      %20 = vector.load %arg7[%c0_18, %c0_19, %c0_20] : memref<1x1x256xf32, #tpu.memory_space<vmem>>, vector<1x1x256xf32>
      %21 = vector.shape_cast %20 : vector<1x1x256xf32> to vector<1x256xf32>
      %22 = vector.broadcast %21 : vector<1x256xf32> to vector<8x256xf32>
      %23 = arith.mulf %22, %16 : vector<8x256xf32>
      %24 = arith.addf %19, %23 : vector<8x256xf32>
      %25 = arith.truncf %24 : vector<8x256xf32> to vector<8x256xbf16>
      %c0_21 = arith.constant 0 : index
      %c0_22 = arith.constant 0 : index
      %c0_23 = arith.constant 0 : index
      %26 = vector.load %arg9[%c0_21, %c0_22, %c0_23] : memref<1x8x256xbf16, #tpu.memory_space<vmem>>, vector<1x8x256xbf16>
      %27 = vector.shape_cast %26 : vector<1x8x256xbf16> to vector<8x256xbf16>
      %28 = vector.shape_cast %25 : vector<8x256xbf16> to vector<1x8x256xbf16>
      tpu.vector_store %arg9[%c0_21, %c0_22, %c0_23], %28 {strides = array<i32>} : memref<1x8x256xbf16, #tpu.memory_space<vmem>>, vector<1x8x256xbf16>,
    } else {
    }
    return
  }
  func.func @transform_0(%arg0: i32, %arg1: i32, %arg2: i32, %arg3: i32) -> (i32, i32, i32) {
    %c0_i32 = arith.constant 0 : i32
    return %arg0, %arg1, %arg3 : i32, i32, i32
  }
  func.func @transform_1(%arg0: i32, %arg1: i32, %arg2: i32, %arg3: i32) -> (i32, i32) {
    %c0_i32 = arith.constant 0 : i32
    return %arg3, %arg2 : i32, i32
  }
  func.func @transform_2(%arg0: i32, %arg1: i32, %arg2: i32, %arg3: i32) -> (i32, i32) {
    %c0_i32 = arith.constant 0 : i32
    %c0_i32_0 = arith.constant 0 : i32
    return %c0_i32, %arg2 : i32, i32
  }
  func.func @transform_3(%arg0: i32, %arg1: i32, %arg2: i32, %arg3: i32) -> (i32, i32, i32) {
    %c0_i32 = arith.constant 0 : i32
    %c0_i32_0 = arith.constant 0 : i32
    return %arg0, %c0_i32, %arg2 : i32, i32, i32
  }
  func.func @transform_4(%arg0: i32, %arg1: i32, %arg2: i32, %arg3: i32) -> (i32, i32, i32) {
    %c0_i32 = arith.constant 0 : i32
    return %arg0, %arg1, %arg2 : i32, i32, i32
  }
  func.func @transform_5(%arg0: i32, %arg1: i32, %arg2: i32, %arg3: i32) -> (i32, i32, i32) {
    %c0_i32 = arith.constant 0 : i32
    return %arg0, %arg1, %arg2 : i32, i32, i32
  }
}

module attributes {stable_mosaic.version = 11 : i64} {
  func.func @_ln_mod_kernel(%arg0: i32, %arg1: i32, %arg2: memref<1x24x256xbf16, #tpu.memory_space<vmem>>, %arg3: memref<1x1x256xf32, #tpu.memory_space<vmem>>, %arg4: memref<1x1x256xf32, #tpu.memory_space<vmem>>, %arg5: memref<1x24x256xbf16, #tpu.memory_space<vmem>>) attributes {dimension_semantics = [#tpu.dimension_semantics<parallel>, #tpu.dimension_semantics<parallel>], iteration_bounds = array<i64: 2, 1>, scalar_prefetch = 0 : i64, scratch_operands = 0 : i64, tpu.core_type = #tpu.core_type<tc>, window_params = [{transform_indices = @transform_0, window_bounds = array<i64: 1, 24, 256>}, {transform_indices = @transform_1, window_bounds = array<i64: 1, 1, 256>}, {transform_indices = @transform_2, window_bounds = array<i64: 1, 1, 256>}, {transform_indices = @transform_3, window_bounds = array<i64: 1, 24, 256>}]} {
    %c0 = arith.constant 0 : index
    %c0_0 = arith.constant 0 : index
    %c0_1 = arith.constant 0 : index
    %0 = vector.load %arg2[%c0, %c0_0, %c0_1] : memref<1x24x256xbf16, #tpu.memory_space<vmem>>, vector<1x24x256xbf16>
    %1 = vector.shape_cast %0 : vector<1x24x256xbf16> to vector<24x256xbf16>
    %2 = arith.extf %1 : vector<24x256xbf16> to vector<24x256xf32>
    %cst = arith.constant dense<0.000000e+00> : vector<24xf32>
    %3 = vector.multi_reduction <add>, %2, %cst [1] : vector<24x256xf32> to vector<24xf32>
    %4 = vector.shape_cast %3 : vector<24xf32> to vector<24x1xf32>
    %cst_2 = arith.constant 2.560000e+02 : f32
    %5 = vector.broadcast %cst_2 : f32 to vector<24x1xf32>
    %6 = arith.divf %4, %5 : vector<24x1xf32>
    %7 = vector.broadcast %6 : vector<24x1xf32> to vector<24x256xf32>
    %8 = arith.subf %2, %7 : vector<24x256xf32>
    %9 = arith.mulf %8, %8 : vector<24x256xf32>
    %cst_3 = arith.constant dense<0.000000e+00> : vector<24xf32>
    %10 = vector.multi_reduction <add>, %9, %cst_3 [1] : vector<24x256xf32> to vector<24xf32>
    %11 = vector.shape_cast %10 : vector<24xf32> to vector<24x1xf32>
    %cst_4 = arith.constant 2.560000e+02 : f32
    %12 = vector.broadcast %cst_4 : f32 to vector<24x1xf32>
    %13 = arith.divf %11, %12 : vector<24x1xf32>
    %14 = vector.broadcast %6 : vector<24x1xf32> to vector<24x256xf32>
    %15 = arith.subf %2, %14 : vector<24x256xf32>
    %cst_5 = arith.constant 9.99999997E-7 : f32
    %16 = vector.broadcast %cst_5 : f32 to vector<24x1xf32>
    %17 = arith.addf %13, %16 : vector<24x1xf32>
    %18 = math.rsqrt %17 : vector<24x1xf32>
    %19 = vector.broadcast %18 : vector<24x1xf32> to vector<24x256xf32>
    %20 = arith.mulf %15, %19 : vector<24x256xf32>
    %c0_6 = arith.constant 0 : index
    %c0_7 = arith.constant 0 : index
    %c0_8 = arith.constant 0 : index
    %21 = vector.load %arg3[%c0_6, %c0_7, %c0_8] : memref<1x1x256xf32, #tpu.memory_space<vmem>>, vector<1x1x256xf32>
    %22 = vector.shape_cast %21 : vector<1x1x256xf32> to vector<1x256xf32>
    %cst_9 = arith.constant 1.000000e+00 : f32
    %23 = vector.broadcast %cst_9 : f32 to vector<1x256xf32>
    %24 = arith.addf %23, %22 : vector<1x256xf32>
    %25 = vector.broadcast %24 : vector<1x256xf32> to vector<24x256xf32>
    %26 = arith.mulf %25, %20 : vector<24x256xf32>
    %c0_10 = arith.constant 0 : index
    %c0_11 = arith.constant 0 : index
    %c0_12 = arith.constant 0 : index
    %27 = vector.load %arg4[%c0_10, %c0_11, %c0_12] : memref<1x1x256xf32, #tpu.memory_space<vmem>>, vector<1x1x256xf32>
    %28 = vector.shape_cast %27 : vector<1x1x256xf32> to vector<1x256xf32>
    %29 = vector.broadcast %28 : vector<1x256xf32> to vector<24x256xf32>
    %30 = arith.addf %26, %29 : vector<24x256xf32>
    %31 = arith.truncf %30 : vector<24x256xf32> to vector<24x256xbf16>
    %c0_13 = arith.constant 0 : index
    %c0_14 = arith.constant 0 : index
    %c0_15 = arith.constant 0 : index
    %32 = vector.load %arg5[%c0_13, %c0_14, %c0_15] : memref<1x24x256xbf16, #tpu.memory_space<vmem>>, vector<1x24x256xbf16>
    %33 = vector.shape_cast %32 : vector<1x24x256xbf16> to vector<24x256xbf16>
    %34 = vector.shape_cast %31 : vector<24x256xbf16> to vector<1x24x256xbf16>
    tpu.vector_store %arg5[%c0_13, %c0_14, %c0_15], %34 {strides = array<i32>} : memref<1x24x256xbf16, #tpu.memory_space<vmem>>, vector<1x24x256xbf16>,
    return
  }
  func.func @transform_0(%arg0: i32, %arg1: i32) -> (i32, i32, i32) {
    %c0_i32 = arith.constant 0 : i32
    %c0_i32_0 = arith.constant 0 : i32
    return %arg0, %arg1, %c0_i32 : i32, i32, i32
  }
  func.func @transform_1(%arg0: i32, %arg1: i32) -> (i32, i32, i32) {
    %c0_i32 = arith.constant 0 : i32
    %c0_i32_0 = arith.constant 0 : i32
    %c0_i32_1 = arith.constant 0 : i32
    return %arg0, %c0_i32, %c0_i32_0 : i32, i32, i32
  }
  func.func @transform_2(%arg0: i32, %arg1: i32) -> (i32, i32, i32) {
    %c0_i32 = arith.constant 0 : i32
    %c0_i32_0 = arith.constant 0 : i32
    %c0_i32_1 = arith.constant 0 : i32
    return %arg0, %c0_i32, %c0_i32_0 : i32, i32, i32
  }
  func.func @transform_3(%arg0: i32, %arg1: i32) -> (i32, i32, i32) {
    %c0_i32 = arith.constant 0 : i32
    %c0_i32_0 = arith.constant 0 : i32
    return %arg0, %arg1, %c0_i32 : i32, i32, i32
  }
}

module attributes {stable_mosaic.version = 11 : i64} {
  func.func @_linear_kernel(%arg0: i32, %arg1: i32, %arg2: i32, %arg3: i32, %arg4: memref<1x24x256xbf16, #tpu.memory_space<vmem>>, %arg5: memref<256x768xbf16, #tpu.memory_space<vmem>>, %arg6: memref<1x768xf32, #tpu.memory_space<vmem>>, %arg7: memref<1x24x768xbf16, #tpu.memory_space<vmem>>, %arg8: memref<24x768xf32, #tpu.memory_space<vmem>>) attributes {dimension_semantics = [#tpu.dimension_semantics<parallel>, #tpu.dimension_semantics<parallel>, #tpu.dimension_semantics<parallel>, #tpu.dimension_semantics<arbitrary>], iteration_bounds = array<i64: 2, 1, 1, 1>, scalar_prefetch = 0 : i64, scratch_operands = 1 : i64, tpu.core_type = #tpu.core_type<tc>, window_params = [{transform_indices = @transform_0, window_bounds = array<i64: 1, 24, 256>}, {transform_indices = @transform_1, window_bounds = array<i64: 256, 768>}, {transform_indices = @transform_2, window_bounds = array<i64: 1, 768>}, {transform_indices = @transform_3, window_bounds = array<i64: 1, 24, 768>}]} {
    %c0_i32 = arith.constant 0 : i32
    %0 = arith.cmpi eq, %arg3, %c0_i32 : i32
    %1 = arith.extui %0 : i1 to i32
    %c0_i32_0 = arith.constant 0 : i32
    %2 = arith.cmpi ne, %1, %c0_i32_0 : i32
    scf.if %2 {
      %cst_11 = arith.constant 0.000000e+00 : f32
      %13 = vector.broadcast %cst_11 : f32 to vector<24x768xf32>
      %c0_12 = arith.constant 0 : index
      %c0_13 = arith.constant 0 : index
      %14 = vector.load %arg8[%c0_12, %c0_13] : memref<24x768xf32, #tpu.memory_space<vmem>>, vector<24x768xf32>
      tpu.vector_store %arg8[%c0_12, %c0_13], %13 {strides = array<i32>} : memref<24x768xf32, #tpu.memory_space<vmem>>, vector<24x768xf32>,
    } else {
    }
    %c0 = arith.constant 0 : index
    %c0_1 = arith.constant 0 : index
    %3 = vector.load %arg8[%c0, %c0_1] : memref<24x768xf32, #tpu.memory_space<vmem>>, vector<24x768xf32>
    %c0_2 = arith.constant 0 : index
    %c0_3 = arith.constant 0 : index
    %c0_4 = arith.constant 0 : index
    %4 = vector.load %arg4[%c0_2, %c0_3, %c0_4] : memref<1x24x256xbf16, #tpu.memory_space<vmem>>, vector<1x24x256xbf16>
    %5 = vector.shape_cast %4 : vector<1x24x256xbf16> to vector<24x256xbf16>
    %c0_5 = arith.constant 0 : index
    %c0_6 = arith.constant 0 : index
    %6 = vector.load %arg5[%c0_5, %c0_6] : memref<256x768xbf16, #tpu.memory_space<vmem>>, vector<256x768xbf16>
    %cst = arith.constant dense<0.000000e+00> : vector<24x768xf32>
    %7 = tpu.matmul %5, %6, %cst {dimension_numbers = #tpu.dot_dimension_numbers<[1], [0], [0], [1], [0, 0, 1, 1], [], []>} : vector<24x256xbf16>, vector<256x768xbf16>, vector<24x768xf32> -> vector<24x768xf32>
    %8 = arith.addf %3, %7 : vector<24x768xf32>
    %c0_7 = arith.constant 0 : index
    %c0_8 = arith.constant 0 : index
    %9 = vector.load %arg8[%c0_7, %c0_8] : memref<24x768xf32, #tpu.memory_space<vmem>>, vector<24x768xf32>
    tpu.vector_store %arg8[%c0_7, %c0_8], %8 {strides = array<i32>} : memref<24x768xf32, #tpu.memory_space<vmem>>, vector<24x768xf32>,
    %c0_i32_9 = arith.constant 0 : i32
    %10 = arith.cmpi eq, %arg3, %c0_i32_9 : i32
    %11 = arith.extui %10 : i1 to i32
    %c0_i32_10 = arith.constant 0 : i32
    %12 = arith.cmpi ne, %11, %c0_i32_10 : i32
    scf.if %12 {
      %c0_11 = arith.constant 0 : index
      %c0_12 = arith.constant 0 : index
      %13 = vector.load %arg8[%c0_11, %c0_12] : memref<24x768xf32, #tpu.memory_space<vmem>>, vector<24x768xf32>
      %c0_13 = arith.constant 0 : index
      %c0_14 = arith.constant 0 : index
      %14 = vector.load %arg6[%c0_13, %c0_14] : memref<1x768xf32, #tpu.memory_space<vmem>>, vector<1x768xf32>
      %15 = vector.broadcast %14 : vector<1x768xf32> to vector<24x768xf32>
      %16 = arith.addf %13, %15 : vector<24x768xf32>
      %17 = arith.truncf %16 : vector<24x768xf32> to vector<24x768xbf16>
      %c0_15 = arith.constant 0 : index
      %c0_16 = arith.constant 0 : index
      %c0_17 = arith.constant 0 : index
      %18 = vector.load %arg7[%c0_15, %c0_16, %c0_17] : memref<1x24x768xbf16, #tpu.memory_space<vmem>>, vector<1x24x768xbf16>
      %19 = vector.shape_cast %18 : vector<1x24x768xbf16> to vector<24x768xbf16>
      %20 = vector.shape_cast %17 : vector<24x768xbf16> to vector<1x24x768xbf16>
      tpu.vector_store %arg7[%c0_15, %c0_16, %c0_17], %20 {strides = array<i32>} : memref<1x24x768xbf16, #tpu.memory_space<vmem>>, vector<1x24x768xbf16>,
    } else {
    }
    return
  }
  func.func @transform_0(%arg0: i32, %arg1: i32, %arg2: i32, %arg3: i32) -> (i32, i32, i32) {
    %c0_i32 = arith.constant 0 : i32
    return %arg0, %arg1, %arg3 : i32, i32, i32
  }
  func.func @transform_1(%arg0: i32, %arg1: i32, %arg2: i32, %arg3: i32) -> (i32, i32) {
    %c0_i32 = arith.constant 0 : i32
    return %arg3, %arg2 : i32, i32
  }
  func.func @transform_2(%arg0: i32, %arg1: i32, %arg2: i32, %arg3: i32) -> (i32, i32) {
    %c0_i32 = arith.constant 0 : i32
    %c0_i32_0 = arith.constant 0 : i32
    return %c0_i32, %arg2 : i32, i32
  }
  func.func @transform_3(%arg0: i32, %arg1: i32, %arg2: i32, %arg3: i32) -> (i32, i32, i32) {
    %c0_i32 = arith.constant 0 : i32
    return %arg0, %arg1, %arg2 : i32, i32, i32
  }
}

module attributes {stable_mosaic.version = 11 : i64} {
  func.func @_linear_kernel(%arg0: i32, %arg1: i32, %arg2: i32, %arg3: i32, %arg4: memref<1x24x256xbf16, #tpu.memory_space<vmem>>, %arg5: memref<256x1024xbf16, #tpu.memory_space<vmem>>, %arg6: memref<1x1024xf32, #tpu.memory_space<vmem>>, %arg7: memref<1x24x1024xbf16, #tpu.memory_space<vmem>>, %arg8: memref<24x1024xf32, #tpu.memory_space<vmem>>) attributes {dimension_semantics = [#tpu.dimension_semantics<parallel>, #tpu.dimension_semantics<parallel>, #tpu.dimension_semantics<parallel>, #tpu.dimension_semantics<arbitrary>], iteration_bounds = array<i64: 2, 1, 1, 1>, scalar_prefetch = 0 : i64, scratch_operands = 1 : i64, tpu.core_type = #tpu.core_type<tc>, window_params = [{transform_indices = @transform_0, window_bounds = array<i64: 1, 24, 256>}, {transform_indices = @transform_1, window_bounds = array<i64: 256, 1024>}, {transform_indices = @transform_2, window_bounds = array<i64: 1, 1024>}, {transform_indices = @transform_3, window_bounds = array<i64: 1, 24, 1024>}]} {
    %c0_i32 = arith.constant 0 : i32
    %0 = arith.cmpi eq, %arg3, %c0_i32 : i32
    %1 = arith.extui %0 : i1 to i32
    %c0_i32_0 = arith.constant 0 : i32
    %2 = arith.cmpi ne, %1, %c0_i32_0 : i32
    scf.if %2 {
      %cst_11 = arith.constant 0.000000e+00 : f32
      %13 = vector.broadcast %cst_11 : f32 to vector<24x1024xf32>
      %c0_12 = arith.constant 0 : index
      %c0_13 = arith.constant 0 : index
      %14 = vector.load %arg8[%c0_12, %c0_13] : memref<24x1024xf32, #tpu.memory_space<vmem>>, vector<24x1024xf32>
      tpu.vector_store %arg8[%c0_12, %c0_13], %13 {strides = array<i32>} : memref<24x1024xf32, #tpu.memory_space<vmem>>, vector<24x1024xf32>,
    } else {
    }
    %c0 = arith.constant 0 : index
    %c0_1 = arith.constant 0 : index
    %3 = vector.load %arg8[%c0, %c0_1] : memref<24x1024xf32, #tpu.memory_space<vmem>>, vector<24x1024xf32>
    %c0_2 = arith.constant 0 : index
    %c0_3 = arith.constant 0 : index
    %c0_4 = arith.constant 0 : index
    %4 = vector.load %arg4[%c0_2, %c0_3, %c0_4] : memref<1x24x256xbf16, #tpu.memory_space<vmem>>, vector<1x24x256xbf16>
    %5 = vector.shape_cast %4 : vector<1x24x256xbf16> to vector<24x256xbf16>
    %c0_5 = arith.constant 0 : index
    %c0_6 = arith.constant 0 : index
    %6 = vector.load %arg5[%c0_5, %c0_6] : memref<256x1024xbf16, #tpu.memory_space<vmem>>, vector<256x1024xbf16>
    %cst = arith.constant dense<0.000000e+00> : vector<24x1024xf32>
    %7 = tpu.matmul %5, %6, %cst {dimension_numbers = #tpu.dot_dimension_numbers<[1], [0], [0], [1], [0, 0, 1, 1], [], []>} : vector<24x256xbf16>, vector<256x1024xbf16>, vector<24x1024xf32> -> vector<24x1024xf32>
    %8 = arith.addf %3, %7 : vector<24x1024xf32>
    %c0_7 = arith.constant 0 : index
    %c0_8 = arith.constant 0 : index
    %9 = vector.load %arg8[%c0_7, %c0_8] : memref<24x1024xf32, #tpu.memory_space<vmem>>, vector<24x1024xf32>
    tpu.vector_store %arg8[%c0_7, %c0_8], %8 {strides = array<i32>} : memref<24x1024xf32, #tpu.memory_space<vmem>>, vector<24x1024xf32>,
    %c0_i32_9 = arith.constant 0 : i32
    %10 = arith.cmpi eq, %arg3, %c0_i32_9 : i32
    %11 = arith.extui %10 : i1 to i32
    %c0_i32_10 = arith.constant 0 : i32
    %12 = arith.cmpi ne, %11, %c0_i32_10 : i32
    scf.if %12 {
      %c0_11 = arith.constant 0 : index
      %c0_12 = arith.constant 0 : index
      %13 = vector.load %arg8[%c0_11, %c0_12] : memref<24x1024xf32, #tpu.memory_space<vmem>>, vector<24x1024xf32>
      %c0_13 = arith.constant 0 : index
      %c0_14 = arith.constant 0 : index
      %14 = vector.load %arg6[%c0_13, %c0_14] : memref<1x1024xf32, #tpu.memory_space<vmem>>, vector<1x1024xf32>
      %15 = vector.broadcast %14 : vector<1x1024xf32> to vector<24x1024xf32>
      %16 = arith.addf %13, %15 : vector<24x1024xf32>
      %cst_15 = arith.constant 5.000000e-01 : f32
      %17 = vector.broadcast %cst_15 : f32 to vector<24x1024xf32>
      %18 = arith.mulf %17, %16 : vector<24x1024xf32>
      %cst_16 = arith.constant 4.471500e-02 : f32
      %19 = vector.broadcast %cst_16 : f32 to vector<24x1024xf32>
      %20 = arith.mulf %19, %16 : vector<24x1024xf32>
      %21 = arith.mulf %20, %16 : vector<24x1024xf32>
      %22 = arith.mulf %21, %16 : vector<24x1024xf32>
      %23 = arith.addf %16, %22 : vector<24x1024xf32>
      %cst_17 = arith.constant 0.797884583 : f32
      %24 = vector.broadcast %cst_17 : f32 to vector<24x1024xf32>
      %25 = arith.mulf %24, %23 : vector<24x1024xf32>
      %26 = math.tanh %25 : vector<24x1024xf32>
      %cst_18 = arith.constant 1.000000e+00 : f32
      %27 = vector.broadcast %cst_18 : f32 to vector<24x1024xf32>
      %28 = arith.addf %27, %26 : vector<24x1024xf32>
      %29 = arith.mulf %18, %28 : vector<24x1024xf32>
      %30 = arith.truncf %29 : vector<24x1024xf32> to vector<24x1024xbf16>
      %c0_19 = arith.constant 0 : index
      %c0_20 = arith.constant 0 : index
      %c0_21 = arith.constant 0 : index
      %31 = vector.load %arg7[%c0_19, %c0_20, %c0_21] : memref<1x24x1024xbf16, #tpu.memory_space<vmem>>, vector<1x24x1024xbf16>
      %32 = vector.shape_cast %31 : vector<1x24x1024xbf16> to vector<24x1024xbf16>
      %33 = vector.shape_cast %30 : vector<24x1024xbf16> to vector<1x24x1024xbf16>
      tpu.vector_store %arg7[%c0_19, %c0_20, %c0_21], %33 {strides = array<i32>} : memref<1x24x1024xbf16, #tpu.memory_space<vmem>>, vector<1x24x1024xbf16>,
    } else {
    }
    return
  }
  func.func @transform_0(%arg0: i32, %arg1: i32, %arg2: i32, %arg3: i32) -> (i32, i32, i32) {
    %c0_i32 = arith.constant 0 : i32
    return %arg0, %arg1, %arg3 : i32, i32, i32
  }
  func.func @transform_1(%arg0: i32, %arg1: i32, %arg2: i32, %arg3: i32) -> (i32, i32) {
    %c0_i32 = arith.constant 0 : i32
    return %arg3, %arg2 : i32, i32
  }
  func.func @transform_2(%arg0: i32, %arg1: i32, %arg2: i32, %arg3: i32) -> (i32, i32) {
    %c0_i32 = arith.constant 0 : i32
    %c0_i32_0 = arith.constant 0 : i32
    return %c0_i32, %arg2 : i32, i32
  }
  func.func @transform_3(%arg0: i32, %arg1: i32, %arg2: i32, %arg3: i32) -> (i32, i32, i32) {
    %c0_i32 = arith.constant 0 : i32
    return %arg0, %arg1, %arg2 : i32, i32, i32
  }
}

module attributes {stable_mosaic.version = 11 : i64} {
  func.func @_linear_res_kernel(%arg0: i32, %arg1: i32, %arg2: i32, %arg3: i32, %arg4: memref<1x24x256xbf16, #tpu.memory_space<vmem>>, %arg5: memref<256x256xbf16, #tpu.memory_space<vmem>>, %arg6: memref<1x256xf32, #tpu.memory_space<vmem>>, %arg7: memref<1x1x256xf32, #tpu.memory_space<vmem>>, %arg8: memref<1x24x256xbf16, #tpu.memory_space<vmem>>, %arg9: memref<1x24x256xbf16, #tpu.memory_space<vmem>>, %arg10: memref<24x256xf32, #tpu.memory_space<vmem>>) attributes {dimension_semantics = [#tpu.dimension_semantics<parallel>, #tpu.dimension_semantics<parallel>, #tpu.dimension_semantics<parallel>, #tpu.dimension_semantics<arbitrary>], iteration_bounds = array<i64: 2, 1, 1, 5>, scalar_prefetch = 0 : i64, scratch_operands = 1 : i64, tpu.core_type = #tpu.core_type<tc>, window_params = [{transform_indices = @transform_0, window_bounds = array<i64: 1, 24, 256>}, {transform_indices = @transform_1, window_bounds = array<i64: 256, 256>}, {transform_indices = @transform_2, window_bounds = array<i64: 1, 256>}, {transform_indices = @transform_3, window_bounds = array<i64: 1, 1, 256>}, {transform_indices = @transform_4, window_bounds = array<i64: 1, 24, 256>}, {transform_indices = @transform_5, window_bounds = array<i64: 1, 24, 256>}]} {
    %c0_i32 = arith.constant 0 : i32
    %0 = arith.cmpi eq, %arg3, %c0_i32 : i32
    %1 = arith.extui %0 : i1 to i32
    %c0_i32_0 = arith.constant 0 : i32
    %2 = arith.cmpi ne, %1, %c0_i32_0 : i32
    scf.if %2 {
      %cst_10 = arith.constant 0.000000e+00 : f32
      %13 = vector.broadcast %cst_10 : f32 to vector<24x256xf32>
      %c0_11 = arith.constant 0 : index
      %c0_12 = arith.constant 0 : index
      %14 = vector.load %arg10[%c0_11, %c0_12] : memref<24x256xf32, #tpu.memory_space<vmem>>, vector<24x256xf32>
      tpu.vector_store %arg10[%c0_11, %c0_12], %13 {strides = array<i32>} : memref<24x256xf32, #tpu.memory_space<vmem>>, vector<24x256xf32>,
    } else {
    }
    %c0 = arith.constant 0 : index
    %c0_1 = arith.constant 0 : index
    %3 = vector.load %arg10[%c0, %c0_1] : memref<24x256xf32, #tpu.memory_space<vmem>>, vector<24x256xf32>
    %c0_2 = arith.constant 0 : index
    %c0_3 = arith.constant 0 : index
    %c0_4 = arith.constant 0 : index
    %4 = vector.load %arg4[%c0_2, %c0_3, %c0_4] : memref<1x24x256xbf16, #tpu.memory_space<vmem>>, vector<1x24x256xbf16>
    %5 = vector.shape_cast %4 : vector<1x24x256xbf16> to vector<24x256xbf16>
    %c0_5 = arith.constant 0 : index
    %c0_6 = arith.constant 0 : index
    %6 = vector.load %arg5[%c0_5, %c0_6] : memref<256x256xbf16, #tpu.memory_space<vmem>>, vector<256x256xbf16>
    %cst = arith.constant dense<0.000000e+00> : vector<24x256xf32>
    %7 = tpu.matmul %5, %6, %cst {dimension_numbers = #tpu.dot_dimension_numbers<[1], [0], [0], [1], [0, 0, 1, 1], [], []>} : vector<24x256xbf16>, vector<256x256xbf16>, vector<24x256xf32> -> vector<24x256xf32>
    %8 = arith.addf %3, %7 : vector<24x256xf32>
    %c0_7 = arith.constant 0 : index
    %c0_8 = arith.constant 0 : index
    %9 = vector.load %arg10[%c0_7, %c0_8] : memref<24x256xf32, #tpu.memory_space<vmem>>, vector<24x256xf32>
    tpu.vector_store %arg10[%c0_7, %c0_8], %8 {strides = array<i32>} : memref<24x256xf32, #tpu.memory_space<vmem>>, vector<24x256xf32>,
    %c4_i32 = arith.constant 4 : i32
    %10 = arith.cmpi eq, %arg3, %c4_i32 : i32
    %11 = arith.extui %10 : i1 to i32
    %c0_i32_9 = arith.constant 0 : i32
    %12 = arith.cmpi ne, %11, %c0_i32_9 : i32
    scf.if %12 {
      %c0_10 = arith.constant 0 : index
      %c0_11 = arith.constant 0 : index
      %13 = vector.load %arg10[%c0_10, %c0_11] : memref<24x256xf32, #tpu.memory_space<vmem>>, vector<24x256xf32>
      %c0_12 = arith.constant 0 : index
      %c0_13 = arith.constant 0 : index
      %14 = vector.load %arg6[%c0_12, %c0_13] : memref<1x256xf32, #tpu.memory_space<vmem>>, vector<1x256xf32>
      %15 = vector.broadcast %14 : vector<1x256xf32> to vector<24x256xf32>
      %16 = arith.addf %13, %15 : vector<24x256xf32>
      %c0_14 = arith.constant 0 : index
      %c0_15 = arith.constant 0 : index
      %c0_16 = arith.constant 0 : index
      %17 = vector.load %arg8[%c0_14, %c0_15, %c0_16] : memref<1x24x256xbf16, #tpu.memory_space<vmem>>, vector<1x24x256xbf16>
      %18 = vector.shape_cast %17 : vector<1x24x256xbf16> to vector<24x256xbf16>
      %19 = arith.extf %18 : vector<24x256xbf16> to vector<24x256xf32>
      %c0_17 = arith.constant 0 : index
      %c0_18 = arith.constant 0 : index
      %c0_19 = arith.constant 0 : index
      %20 = vector.load %arg7[%c0_17, %c0_18, %c0_19] : memref<1x1x256xf32, #tpu.memory_space<vmem>>, vector<1x1x256xf32>
      %21 = vector.shape_cast %20 : vector<1x1x256xf32> to vector<1x256xf32>
      %22 = vector.broadcast %21 : vector<1x256xf32> to vector<24x256xf32>
      %23 = arith.mulf %22, %16 : vector<24x256xf32>
      %24 = arith.addf %19, %23 : vector<24x256xf32>
      %25 = arith.truncf %24 : vector<24x256xf32> to vector<24x256xbf16>
      %c0_20 = arith.constant 0 : index
      %c0_21 = arith.constant 0 : index
      %c0_22 = arith.constant 0 : index
      %26 = vector.load %arg9[%c0_20, %c0_21, %c0_22] : memref<1x24x256xbf16, #tpu.memory_space<vmem>>, vector<1x24x256xbf16>
      %27 = vector.shape_cast %26 : vector<1x24x256xbf16> to vector<24x256xbf16>
      %28 = vector.shape_cast %25 : vector<24x256xbf16> to vector<1x24x256xbf16>
      tpu.vector_store %arg9[%c0_20, %c0_21, %c0_22], %28 {strides = array<i32>} : memref<1x24x256xbf16, #tpu.memory_space<vmem>>, vector<1x24x256xbf16>,
    } else {
    }
    return
  }
  func.func @transform_0(%arg0: i32, %arg1: i32, %arg2: i32, %arg3: i32) -> (i32, i32, i32) {
    %c0_i32 = arith.constant 0 : i32
    return %arg0, %arg1, %arg3 : i32, i32, i32
  }
  func.func @transform_1(%arg0: i32, %arg1: i32, %arg2: i32, %arg3: i32) -> (i32, i32) {
    %c0_i32 = arith.constant 0 : i32
    return %arg3, %arg2 : i32, i32
  }
  func.func @transform_2(%arg0: i32, %arg1: i32, %arg2: i32, %arg3: i32) -> (i32, i32) {
    %c0_i32 = arith.constant 0 : i32
    %c0_i32_0 = arith.constant 0 : i32
    return %c0_i32, %arg2 : i32, i32
  }
  func.func @transform_3(%arg0: i32, %arg1: i32, %arg2: i32, %arg3: i32) -> (i32, i32, i32) {
    %c0_i32 = arith.constant 0 : i32
    %c0_i32_0 = arith.constant 0 : i32
    return %arg0, %c0_i32, %arg2 : i32, i32, i32
  }
  func.func @transform_4(%arg0: i32, %arg1: i32, %arg2: i32, %arg3: i32) -> (i32, i32, i32) {
    %c0_i32 = arith.constant 0 : i32
    return %arg0, %arg1, %arg2 : i32, i32, i32
  }
  func.func @transform_5(%arg0: i32, %arg1: i32, %arg2: i32, %arg3: i32) -> (i32, i32, i32) {
    %c0_i32 = arith.constant 0 : i32
    return %arg0, %arg1, %arg2 : i32, i32, i32
  }
}

module attributes {stable_mosaic.version = 11 : i64} {
  func.func @_linear_kernel(%arg0: i32, %arg1: i32, %arg2: i32, %arg3: i32, %arg4: memref<1x16x256xbf16, #tpu.memory_space<vmem>>, %arg5: memref<256x16xbf16, #tpu.memory_space<vmem>>, %arg6: memref<1x16xf32, #tpu.memory_space<vmem>>, %arg7: memref<1x16x16xbf16, #tpu.memory_space<vmem>>, %arg8: memref<16x16xf32, #tpu.memory_space<vmem>>) attributes {dimension_semantics = [#tpu.dimension_semantics<parallel>, #tpu.dimension_semantics<parallel>, #tpu.dimension_semantics<parallel>, #tpu.dimension_semantics<arbitrary>], iteration_bounds = array<i64: 2, 1, 1, 1>, scalar_prefetch = 0 : i64, scratch_operands = 1 : i64, tpu.core_type = #tpu.core_type<tc>, window_params = [{transform_indices = @transform_0, window_bounds = array<i64: 1, 16, 256>}, {transform_indices = @transform_1, window_bounds = array<i64: 256, 16>}, {transform_indices = @transform_2, window_bounds = array<i64: 1, 16>}, {transform_indices = @transform_3, window_bounds = array<i64: 1, 16, 16>}]} {
    %c0_i32 = arith.constant 0 : i32
    %0 = arith.cmpi eq, %arg3, %c0_i32 : i32
    %1 = arith.extui %0 : i1 to i32
    %c0_i32_0 = arith.constant 0 : i32
    %2 = arith.cmpi ne, %1, %c0_i32_0 : i32
    scf.if %2 {
      %cst_11 = arith.constant 0.000000e+00 : f32
      %13 = vector.broadcast %cst_11 : f32 to vector<16x16xf32>
      %c0_12 = arith.constant 0 : index
      %c0_13 = arith.constant 0 : index
      %14 = vector.load %arg8[%c0_12, %c0_13] : memref<16x16xf32, #tpu.memory_space<vmem>>, vector<16x16xf32>
      tpu.vector_store %arg8[%c0_12, %c0_13], %13 {strides = array<i32>} : memref<16x16xf32, #tpu.memory_space<vmem>>, vector<16x16xf32>,
    } else {
    }
    %c0 = arith.constant 0 : index
    %c0_1 = arith.constant 0 : index
    %3 = vector.load %arg8[%c0, %c0_1] : memref<16x16xf32, #tpu.memory_space<vmem>>, vector<16x16xf32>
    %c0_2 = arith.constant 0 : index
    %c0_3 = arith.constant 0 : index
    %c0_4 = arith.constant 0 : index
    %4 = vector.load %arg4[%c0_2, %c0_3, %c0_4] : memref<1x16x256xbf16, #tpu.memory_space<vmem>>, vector<1x16x256xbf16>
    %5 = vector.shape_cast %4 : vector<1x16x256xbf16> to vector<16x256xbf16>
    %c0_5 = arith.constant 0 : index
    %c0_6 = arith.constant 0 : index
    %6 = vector.load %arg5[%c0_5, %c0_6] : memref<256x16xbf16, #tpu.memory_space<vmem>>, vector<256x16xbf16>
    %cst = arith.constant dense<0.000000e+00> : vector<16x16xf32>
    %7 = tpu.matmul %5, %6, %cst {dimension_numbers = #tpu.dot_dimension_numbers<[1], [0], [0], [1], [0, 0, 1, 1], [], []>} : vector<16x256xbf16>, vector<256x16xbf16>, vector<16x16xf32> -> vector<16x16xf32>
    %8 = arith.addf %3, %7 : vector<16x16xf32>
    %c0_7 = arith.constant 0 : index
    %c0_8 = arith.constant 0 : index
    %9 = vector.load %arg8[%c0_7, %c0_8] : memref<16x16xf32, #tpu.memory_space<vmem>>, vector<16x16xf32>
    tpu.vector_store %arg8[%c0_7, %c0_8], %8 {strides = array<i32>} : memref<16x16xf32, #tpu.memory_space<vmem>>, vector<16x16xf32>,
    %c0_i32_9 = arith.constant 0 : i32
    %10 = arith.cmpi eq, %arg3, %c0_i32_9 : i32
    %11 = arith.extui %10 : i1 to i32
    %c0_i32_10 = arith.constant 0 : i32
    %12 = arith.cmpi ne, %11, %c0_i32_10 : i32
    scf.if %12 {
      %c0_11 = arith.constant 0 : index
      %c0_12 = arith.constant 0 : index
      %13 = vector.load %arg8[%c0_11, %c0_12] : memref<16x16xf32, #tpu.memory_space<vmem>>, vector<16x16xf32>
      %c0_13 = arith.constant 0 : index
      %c0_14 = arith.constant 0 : index
      %14 = vector.load %arg6[%c0_13, %c0_14] : memref<1x16xf32, #tpu.memory_space<vmem>>, vector<1x16xf32>
      %15 = vector.broadcast %14 : vector<1x16xf32> to vector<16x16xf32>
      %16 = arith.addf %13, %15 : vector<16x16xf32>
      %17 = arith.truncf %16 : vector<16x16xf32> to vector<16x16xbf16>
      %c0_15 = arith.constant 0 : index
      %c0_16 = arith.constant 0 : index
      %c0_17 = arith.constant 0 : index
      %18 = vector.load %arg7[%c0_15, %c0_16, %c0_17] : memref<1x16x16xbf16, #tpu.memory_space<vmem>>, vector<1x16x16xbf16>
      %19 = vector.shape_cast %18 : vector<1x16x16xbf16> to vector<16x16xbf16>
      %20 = vector.shape_cast %17 : vector<16x16xbf16> to vector<1x16x16xbf16>
      tpu.vector_store %arg7[%c0_15, %c0_16, %c0_17], %20 {strides = array<i32>} : memref<1x16x16xbf16, #tpu.memory_space<vmem>>, vector<1x16x16xbf16>,
    } else {
    }
    return
  }
  func.func @transform_0(%arg0: i32, %arg1: i32, %arg2: i32, %arg3: i32) -> (i32, i32, i32) {
    %c0_i32 = arith.constant 0 : i32
    return %arg0, %arg1, %arg3 : i32, i32, i32
  }
  func.func @transform_1(%arg0: i32, %arg1: i32, %arg2: i32, %arg3: i32) -> (i32, i32) {
    %c0_i32 = arith.constant 0 : i32
    return %arg3, %arg2 : i32, i32
  }
  func.func @transform_2(%arg0: i32, %arg1: i32, %arg2: i32, %arg3: i32) -> (i32, i32) {
    %c0_i32 = arith.constant 0 : i32
    %c0_i32_0 = arith.constant 0 : i32
    return %c0_i32, %arg2 : i32, i32
  }
  func.func @transform_3(%arg0: i32, %arg1: i32, %arg2: i32, %arg3: i32) -> (i32, i32, i32) {
    %c0_i32 = arith.constant 0 : i32
    return %arg0, %arg1, %arg2 : i32, i32, i32
  }
}

</mosaic_0001>

<bundles_post_ra>
// kernel: flux_forward.42
= control target key start
LH: loop header
LB: loop body
LE: loop exit
PB: predicated region body
PF: predicated region fallthrough
CT: control target
= control target key end

     0   :  { %s546_s12 = smov 0   ;;  %s548_s13 = smov 0   ;;  %s593_s0 = inlined_call_operand.vmem [shape: bf16[2,16,256], index: 0, kind: input, shape index: {}]   ;;  %s594_s1 = inlined_call_operand.vmem [shape: f32[2,1,256], index: 1, kind: input, shape index: {}]   ;;  %s595_s2 = inlined_call_operand.vmem [shape: f32[2,1,256], index: 2, kind: input, shape index: {}]   ;;  %s596_s3 = inlined_call_operand.vmem [shape: bf16[2,16,256], index: 3, kind: output, shape index: {}]  }
   0x1   :  { %s550_s14 = smov 0  }
   0x2 LB: > { %s25_s15 = sadd.s32 1, %s520_s13  ;;  %p459_p0 = scmp.ge.s32.totalorder %s524_s14, 1  ;;  %s524_s14 = sphi %s550_s14, %s13_s14   ;;  %s520_s13 = sphi %s548_s13, %s598_s13   ;;  %s516_s12 = sphi %s546_s12, %s597_s12  }
   0x3   : > { %p27_p1 = scmp.ge.s32.totalorder %s25_s15, 2  ;;  %p177_p2 = scmp.lt.s32.totalorder %s524_s14, 3 }
   0x5   : > { %s600_s15 = smov (%p27_p1, %s25_s15), 0  ;;  %p178_p3 = pnand %p459_p0, %p177_p2 }
   0x6   : > { %p220_p4 = scmp.lt.s32.totalorder (!%p178_p3), %s516_s12, 1 }
   0x7   : > { %181 = sbr.rel (%p178_p3) target bundleno = 335 (0x14f), region = 32 }
   0xc   : > { %s602_s12 = smov (!%p220_p4, %s516_s12), 1  ;;  %v291_v26 = vlaneseq }
   0xd   : > { %s470_s16 = sshll.u32 %s602_s12, 4  ;;  %s462_s20 = sshll.u32 %s602_s12, 1 }
   0xe   : > { %s228_s19 = scalar_lea.vmem %s593_s0, %s470_s16  ;;  %s233_s23 = scalar_lea.vmem %s594_s1, %s462_s20  ;;  %v292_v29 = vshrl.u32 %v291_v26, 7 }
   0xf   : > { %v249_v0 = vld [vmem:[%s228_s19] sm:$0xff]  ;;  %v250_v1 = vld [vmem:[%s228_s19 + $0x8] sm:$0xff]  ;;  %s237_s26 = scalar_lea.vmem %s595_s2, %s462_s20  ;;  %s247_s29 = scalar_lea.vmem %s596_s3, %s470_s16 }
  0x10   : > { %v251_v2 = vunpack.c.l.bf16 %v249_v0  ;;  %v252_v3 = vunpack.c.h.bf16 %v249_v0  ;;  %v253_v4 = vunpack.c.l.bf16 %v250_v1  ;;  %v254_v5 = vunpack.c.h.bf16 %v250_v1  ;;  %v288_v30 = vld [vmem:[%s233_s23] sm:$0x3] }
  0x11   : > { %v289_v31 = vadd.f32 1.0, %v288_v30  ;;  %v293_v32 = vsub.s32 0, %v292_v29  ;;  %v297_v33 = vsub.s32 1, %v292_v29  ;;  %v305_v34 = vld [vmem:[%s237_s26] sm:$0x3] }
  0x12   : > { %v255_v6 = vadd.f32 %v252_v3, %v251_v2  ;;  %v258_v7 = vadd.f32 %v254_v5, %v253_v4 }
  0x13   : > { %v294_v35 = vrot.slane %v289_v31, %v293_v32  ;;  %v298_v36 = vrot.slane %v289_v31, %v297_v33  ;;  %v310_v38 = vrot.slane %v305_v34, %v293_v32  ;;  %v314_v39 = vrot.slane %v305_v34, %v297_v33 }
  0x14   : > { %256 = vadd.xlane.f32.xlu0 %v255_v6 }
  0x18   : > { %259 = vadd.xlane.f32.xlu0 %v258_v7 }
  0x9d   : > { %v257_v8 = vpop.xlane.xlu0 %256 }
  0x9e   : > { %v262_v9 = vmul.f32 0.00390625, %v257_v8 }
  0xa0   : > { %v264_v10 = vsub.f32 %v251_v2, %v262_v9  ;;  %v265_v11 = vsub.f32 %v252_v3, %v262_v9 }
  0xa1   : > { %v260_v12 = vpop.xlane.xlu0 %259 }
  0xa2   : > { %v263_v13 = vmul.f32 0.00390625, %v260_v12  ;;  %v268_v14 = vmul.f32 %v264_v10, %v264_v10  ;;  %v269_v15 = vmul.f32 %v265_v11, %v265_v11 }
  0xa4   : > { %v266_v16 = vsub.f32 %v253_v4, %v263_v13  ;;  %v267_v17 = vsub.f32 %v254_v5, %v263_v13  ;;  %v272_v18 = vadd.f32 %v269_v15, %v268_v14 }
  0xa6   : > { %273 = vadd.xlane.f32.xlu1 %v272_v18  ;;  %v270_v19 = vmul.f32 %v266_v16, %v266_v16  ;;  %v271_v20 = vmul.f32 %v267_v17, %v267_v17 }
  0xa8   : > { %v275_v21 = vadd.f32 %v271_v20, %v270_v19 }
  0xaa   : > { %276 = vadd.xlane.f32.xlu1 %v275_v21 }
 0x12f   : > { %v274_v22 = vpop.xlane.xlu1 %273 }
 0x130   : > { %v278_v23 = vmul.f32 0.00390625, %v274_v22 }
 0x132   : > { %v280_v24 = vadd.f32 1e-06, %v278_v23 }
 0x133   : > { %v277_v25 = vpop.xlane.xlu1 %276 }
 0x134   : > { %498 = vrsqrt.f32 %v280_v24  ;;  %v279_v27 = vmul.f32 0.00390625, %v277_v25 }
 0x136   : > { %v281_v28 = vadd.f32 1e-06, %v279_v27 }
 0x138   : > { %500 = vrsqrt.f32 %v281_v28 }
 0x141   : > { %v499_v37 = vpop.eup %498 }
 0x142   : > { %v284_v40 = vmul.f32 %v499_v37, %v264_v10  ;;  %v285_v41 = vmul.f32 %v499_v37, %v265_v11 }
 0x144   : > { %v301_v42 = vmul.f32 %v294_v35, %v284_v40  ;;  %v302_v43 = vmul.f32 %v298_v36, %v285_v41 }
 0x145   : > { %v501_v44 = vpop.eup %500 }
 0x146   : > { %v317_v45 = vadd.f32 %v310_v38, %v301_v42  ;;  %v318_v46 = vadd.f32 %v314_v39, %v302_v43  ;;  %v286_v47 = vmul.f32 %v501_v44, %v266_v16  ;;  %v287_v48 = vmul.f32 %v501_v44, %v267_v17 }
 0x148   : > { %v472_v49 = vpack.c.bf16 %v318_v46, %v317_v45  ;;  %v303_v50 = vmul.f32 %v294_v35, %v286_v47  ;;  %v304_v51 = vmul.f32 %v298_v36, %v287_v48 }
 0x14a   : > { %333 = vst [vmem:[%s247_s29] sm:$0xff] %v472_v49  ;;  %v319_v52 = vadd.f32 %v310_v38, %v303_v50  ;;  %v320_v53 = vadd.f32 %v314_v39, %v304_v51 }
 0x14c   : > { %v473_v54 = vpack.c.bf16 %v320_v53, %v319_v52 }
 0x14e   : > { %334 = vst [vmem:[%s247_s29 + $0x8] sm:$0xff] %v473_v54 }
 0x14f PF: > { %s13_s14 = sadd.s32 1, %s524_s14   ;;  %s597_s12 = smov %s520_s13 }
 0x150   : > { %p10_p5 = scmp.ge.s32.totalorder %s13_s14, 4   ;;  %s598_s13 = smov %s600_s15 }
 0x152   :  { %12 = sbr.rel (!%p10_p5) target bundleno = 2 (0x2), region = 68 }

// kernel: flux_forward.40
= control target key start
LH: loop header
LB: loop body
LE: loop exit
PB: predicated region body
PF: predicated region fallthrough
CT: control target
= control target key end

     0   :  { %s677_s12 = smov 0   ;;  %s679_s13 = smov 0   ;;  %s719_s0 = inlined_call_operand.vmem [shape: bf16[2,16,16], index: 0, kind: input, shape index: {}]   ;;  %s720_s1 = inlined_call_operand.vmem [shape: bf16[16,256], index: 1, kind: input, shape index: {}]   ;;  %s721_s2 = inlined_call_operand.vmem [shape: f32[1,256], index: 2, kind: input, shape index: {}]   ;;  %s722_s3 = inlined_call_operand.vmem [shape: bf16[2,16,256], index: 3, kind: output, shape index: {}]  }
   0x1   :  { %s681_s14 = smov 0  }
   0x2 LB: > { %s39_s15 = sadd.s32 1, %s650_s13  ;;  %p586_p0 = scmp.ge.s32.totalorder %s654_s14, 1  ;;  %s654_s14 = sphi %s681_s14, %s13_s14   ;;  %s650_s13 = sphi %s679_s13, %s724_s13   ;;  %s646_s12 = sphi %s677_s12, %s723_s12  }
   0x3   : > { %p41_p1 = scmp.ge.s32.totalorder %s39_s15, 2  ;;  %p208_p2 = scmp.lt.s32.totalorder %s654_s14, 3 }
   0x5   : > { %s726_s15 = smov (%p41_p1, %s39_s15), 0  ;;  %p209_p3 = pnand %p586_p0, %p208_p2 }
   0x6   : > { %p263_p4 = scmp.lt.s32.totalorder (!%p209_p3), %s646_s12, 1 }
   0x7   : > { %212 = sbr.rel (%p209_p3) target bundleno = 221 (0xdd), region = 32 }
   0xc   : > { %v628_v0 = vld [vmem:[%s720_s1 + $0x4] ss:$8 sps:$4 sm:$0xff]   ;;  %v630_v1 = vld [vmem:[%s720_s1] ss:$8 sps:$4 sm:$0xff]   ;;  %v656_v2 = vmov 0   ;;  %s728_s12 = smov (!%p263_p4, %s646_s12), 1  ;;  %v404_v4 = vlaneseq }
   0xd   : > { %376 = vmatprep.mubr.bf16.mxu0 %v656_v2  ;;  %358 = vmatprep.subr.bf16.mxu0 %v628_v0  ;;  %s599_s20 = sshll.u32 %s728_s12, 3  ;;  %vm340_vm0 = vcmask 130048   ;;  %v402_v8 = vld [vmem:[%s721_s2] sm:$0x3]  ;;  %s600_s26 = sshll.u32 %s728_s12, 4 }
   0xe   : > { %359 = vmatpush1.bf16.msra.mxu0 %v630_v1  ;;  %s273_s23 = scalar_lea.vmem %s719_s0, %s599_s20  ;;  %v405_v5 = vshrl.u32 %v404_v4, 7  ;;  %s305_s29 = scalar_lea.vmem %s722_s3, %s600_s26 }
   0xf   : > { %v631_v3 = vld [vmem:[%s273_s23] sm:$0xff]  }
  0x10   : > { %v406_v6 = vsub.s32 0, %v405_v5  ;;  %v410_v7 = vsub.s32 1, %v405_v5 }
  0x11   : > { %594 = vmatmul.mubr.msk.bf16.vlgmr.msra.gmra.mxu0 %vm340_vm0, %v631_v3 }
  0x12   : > { %v407_v9 = vrot.slane %v402_v8, %v406_v6  ;;  %v411_v10 = vrot.slane %v402_v8, %v410_v7 }
  0xd1   : > { %v378_v11 = vpop.f32.mrf.mxu0 }
  0xd2   : > { %v414_v13 = vadd.f32 %v407_v9, %v378_v11 }
  0xd3   : > { %v380_v12 = vpop.f32.mrf.mxu0 }
  0xd4   : > { %v415_v14 = vadd.f32 %v411_v10, %v380_v12 }
  0xd5   : > { %v382_v15 = vpop.f32.mrf.mxu0 }
  0xd6   : > { %v601_v16 = vpack.c.bf16 %v415_v14, %v414_v13  ;;  %v416_v18 = vadd.f32 %v407_v9, %v382_v15 }
  0xd7   : > { %v384_v17 = vpop.f32.mrf.mxu0 }
  0xd8   : > { %430 = vst [vmem:[%s305_s29] sm:$0xff] %v601_v16  ;;  %v417_v19 = vadd.f32 %v411_v10, %v384_v17 }
  0xda   : > { %v602_v20 = vpack.c.bf16 %v417_v19, %v416_v18 }
  0xdc   : > { %431 = vst [vmem:[%s305_s29 + $0x8] sm:$0xff] %v602_v20 }
  0xdd PF: > { %s13_s14 = sadd.s32 1, %s654_s14   ;;  %s723_s12 = smov %s650_s13 }
  0xde   : > { %p10_p5 = scmp.ge.s32.totalorder %s13_s14, 4   ;;  %s724_s13 = smov %s726_s15 }
  0xe0   :  { %12 = sbr.rel (!%p10_p5) target bundleno = 2 (0x2), region = 76 }

// kernel: flux_forward.43
= control target key start
LH: loop header
LB: loop body
LE: loop exit
PB: predicated region body
PF: predicated region fallthrough
CT: control target
= control target key end

     0   :  { %s1676_s12 = smov 0   ;;  %s1678_s13 = smov 0   ;;  %s2026_s0 = inlined_call_operand.vmem [shape: bf16[2,16,256], index: 0, kind: input, shape index: {}]   ;;  %s2027_s1 = inlined_call_operand.vmem [shape: bf16[256,768], index: 1, kind: input, shape index: {}]   ;;  %s2028_s2 = inlined_call_operand.vmem [shape: f32[1,768], index: 2, kind: input, shape index: {}]   ;;  %s2029_s3 = inlined_call_operand.vmem [shape: bf16[2,16,768], index: 3, kind: output, shape index: {}]  }
   0x1   :  { %s1680_s14 = smov 0  }
   0x2 LB: > { %s39_s15 = sadd.s32 1, %s1650_s13  ;;  %p1343_p0 = scmp.ge.s32.totalorder %s1654_s14, 1  ;;  %s1654_s14 = sphi %s1680_s14, %s13_s14   ;;  %s1650_s13 = sphi %s1678_s13, %s2031_s13   ;;  %s1646_s12 = sphi %s1676_s12, %s2030_s12  }
   0x3   : > { %p41_p1 = scmp.ge.s32.totalorder %s39_s15, 2  ;;  %p211_p2 = scmp.lt.s32.totalorder %s1654_s14, 3 }
   0x5   : > { %s2033_s15 = smov (%p41_p1, %s39_s15), 0  ;;  %p212_p3 = pnand %p1343_p0, %p211_p2 }
   0x6   : > { %p269_p4 = scmp.lt.s32.totalorder (!%p212_p3), %s1646_s12, 1 }
   0x7   : > { %215 = sbr.rel (%p212_p3) target bundleno = 345 (0x159), region = 32 }
   0xc   : > { %v1485_v0 = vld [vmem:[%s2027_s1 + $0x154] ss:$24 sps:$4 sm:$0xff]   ;;  %v1487_v1 = vld [vmem:[%s2027_s1 + $0x150] ss:$24 sps:$4 sm:$0xff]   ;;  %v1488_v2 = vld [vmem:[%s2027_s1 + $0x124] ss:$24 sps:$4 sm:$0xff]  }
   0xd   : > { %932 = vmatprep.subr.bf16.mxu0 %v1485_v0  ;;  %v1490_v3 = vld [vmem:[%s2027_s1 + $0x120] ss:$24 sps:$4 sm:$0xff]   ;;  %v1491_v4 = vld [vmem:[%s2027_s1 + $0xf4] ss:$24 sps:$4 sm:$0xff]   ;;  %v1493_v5 = vld [vmem:[%s2027_s1 + $0xf0] ss:$24 sps:$4 sm:$0xff]  }
   0xe   : > { %933 = vmatpush1.bf16.msra.mxu0 %v1487_v1  ;;  %v1494_v6 = vld [vmem:[%s2027_s1 + $0xc4] ss:$24 sps:$4 sm:$0xff]   ;;  %v1496_v7 = vld [vmem:[%s2027_s1 + $0xc0] ss:$24 sps:$4 sm:$0xff]   ;;  %v1497_v8 = vld [vmem:[%s2027_s1 + $0x94] ss:$24 sps:$4 sm:$0xff]  }
   0xf   : > { %934 = vmatprep.subr.bf16.mxu0 %v1488_v2  ;;  %s2035_s12 = smov (!%p269_p4, %s1646_s12), 1  ;;  %v1499_v9 = vld [vmem:[%s2027_s1 + $0x90] ss:$24 sps:$4 sm:$0xff]   ;;  %v1500_v10 = vld [vmem:[%s2027_s1 + $0x64] ss:$24 sps:$4 sm:$0xff]  }
  0x10   : > { %s1453_s11 = sshll.u32 %s2035_s12, 4  ;;  %v1502_v11 = vld [vmem:[%s2027_s1 + $0x60] ss:$24 sps:$4 sm:$0xff]   ;;  %v1503_v12 = vld [vmem:[%s2027_s1 + $0x34] ss:$24 sps:$4 sm:$0xff]   ;;  %s1460_s6 = smul.u32 48, %s2035_s12 }
  0x11   : > { %v1530_v13 = vld [vmem:[%s2027_s1 + $0x15c] ss:$24 sps:$4 sm:$0xff]   ;;  %v1532_v14 = vld [vmem:[%s2027_s1 + $0x158] ss:$24 sps:$4 sm:$0xff]   ;;  %s1745_s26 = scalar_lea.vmem %s2026_s0, %s1453_s11  ;;  %v1536_v17 = vld [vmem:[%s2027_s1 + $0x12c] ss:$24 sps:$4 sm:$0xff]  }
  0x12   : > { %935 = vmatpush1.bf16.msra.mxu0 %v1490_v3  ;;  %v1505_v15 = vld [vmem:[%s2027_s1 + $0x30] ss:$24 sps:$4 sm:$0xff]   ;;  %v1506_v16 = vld [vmem:[%s2027_s1 + $0x4] ss:$24 sps:$4 sm:$0xff]   ;;  %975 = vmatprep.subr.bf16.mxu1 %v1530_v13  ;;  %v1508_v20 = vld [vmem:[%s2027_s1] ss:$24 sps:$4 sm:$0xff]   ;;  %s2009_s9 = scalar_lea.vmem %s2029_s3, %s1460_s6 }
  0x13   : > { %936 = vmatprep.subr.bf16.mxu0 %v1491_v4  ;;  %976 = vmatpush1.bf16.msra.mxu1 %v1532_v14  ;;  %v1757_v18 = vld [vmem:[%s1745_s26 + $0x4] ss:$8 sps:$4 sm:$0xff]   ;;  %v1540_v19 = vld [vmem:[%s2027_s1 + $0x128] ss:$24 sps:$4 sm:$0xff]   ;;  %v1545_v21 = vld [vmem:[%s2027_s1 + $0xfc] ss:$24 sps:$4 sm:$0xff]  }
  0x14   : > { %977 = vmatprep.subr.bf16.mxu1 %v1536_v17  ;;  %964 = vmatprep.mubr.bf16.mxu0 %v1757_v18  ;;  %v1547_v22 = vld [vmem:[%s2027_s1 + $0xf8] ss:$24 sps:$4 sm:$0xff]   ;;  %v1509_v23 = vld [vmem:[%s2027_s1 + $0x2d4] ss:$24 sps:$4 sm:$0xff]   ;;  %v1512_v26 = vld [vmem:[%s2027_s1 + $0x2a4] ss:$24 sps:$4 sm:$0xff]  }
  0x15   : > { %1007 = vmatprep.mubr.bf16.mxu1 %v1757_v18  ;;  %v1511_v24 = vld [vmem:[%s2027_s1 + $0x2d0] ss:$24 sps:$4 sm:$0xff]   ;;  %v1551_v25 = vld [vmem:[%s2027_s1 + $0xcc] ss:$24 sps:$4 sm:$0xff]   ;;  %v1557_v28 = vld [vmem:[%s2027_s1 + $0x9c] ss:$24 sps:$4 sm:$0xff]  }
  0x16   : > { %937 = vmatpush1.bf16.msra.mxu0 %v1493_v5  ;;  %v1553_v27 = vld [vmem:[%s2027_s1 + $0xc8] ss:$24 sps:$4 sm:$0xff]   ;;  %v1515_v30 = vld [vmem:[%s2027_s1 + $0x274] ss:$24 sps:$4 sm:$0xff]   ;;  %v1559_v31 = vld [vmem:[%s2027_s1 + $0x98] ss:$24 sps:$4 sm:$0xff]  }
  0x17   : > { %938 = vmatprep.subr.bf16.mxu0 %v1494_v6  ;;  %978 = vmatpush1.bf16.msra.mxu1 %v1540_v19  ;;  %v1514_v29 = vld [vmem:[%s2027_s1 + $0x2a0] ss:$24 sps:$4 sm:$0xff]   ;;  %v1563_v32 = vld [vmem:[%s2027_s1 + $0x6c] ss:$24 sps:$4 sm:$0xff]   ;;  %v1517_v33 = vld [vmem:[%s2027_s1 + $0x270] ss:$24 sps:$4 sm:$0xff]  }
  0x18   : > { %979 = vmatprep.subr.bf16.mxu1 %v1545_v21  ;;  %v1518_v34 = vld [vmem:[%s2027_s1 + $0x244] ss:$24 sps:$4 sm:$0xff]   ;;  %v1565_v35 = vld [vmem:[%s2027_s1 + $0x68] ss:$24 sps:$4 sm:$0xff]   ;;  %v1521_v38 = vld [vmem:[%s2027_s1 + $0x214] ss:$24 sps:$4 sm:$0xff]  }
  0x19   : > { %v1569_v36 = vld [vmem:[%s2027_s1 + $0x3c] ss:$24 sps:$4 sm:$0xff]   ;;  %v1520_v37 = vld [vmem:[%s2027_s1 + $0x240] ss:$24 sps:$4 sm:$0xff]   ;;  %v1575_v40 = vld [vmem:[%s2027_s1 + $0xc] ss:$24 sps:$4 sm:$0xff]  }
  0x1a   : > { %939 = vmatpush1.bf16.msra.mxu0 %v1496_v7  ;;  %v1571_v39 = vld [vmem:[%s2027_s1 + $0x38] ss:$24 sps:$4 sm:$0xff]   ;;  %v1524_v42 = vld [vmem:[%s2027_s1 + $0x1e4] ss:$24 sps:$4 sm:$0xff]   ;;  %v1577_v43 = vld [vmem:[%s2027_s1 + $0x8] ss:$24 sps:$4 sm:$0xff]  }
  0x1b   : > { %940 = vmatprep.subr.bf16.mxu0 %v1497_v8  ;;  %980 = vmatpush1.bf16.msra.mxu1 %v1547_v22  ;;  %v1523_v41 = vld [vmem:[%s2027_s1 + $0x210] ss:$24 sps:$4 sm:$0xff]   ;;  %v1581_v44 = vld [vmem:[%s2027_s1 + $0x2dc] ss:$24 sps:$4 sm:$0xff]   ;;  %v1526_v45 = vld [vmem:[%s2027_s1 + $0x1e0] ss:$24 sps:$4 sm:$0xff]  }
  0x1c   : > { %981 = vmatprep.subr.bf16.mxu1 %v1551_v25  ;;  %v1527_v46 = vld [vmem:[%s2027_s1 + $0x1b4] ss:$24 sps:$4 sm:$0xff]   ;;  %v1583_v47 = vld [vmem:[%s2027_s1 + $0x2d8] ss:$24 sps:$4 sm:$0xff]   ;;  %v1533_v50 = vld [vmem:[%s2027_s1 + $0x184] ss:$24 sps:$4 sm:$0xff]  }
  0x1d   : > { %v1587_v48 = vld [vmem:[%s2027_s1 + $0x2ac] ss:$24 sps:$4 sm:$0xff]   ;;  %v1529_v49 = vld [vmem:[%s2027_s1 + $0x1b0] ss:$24 sps:$4 sm:$0xff]   ;;  %v1593_v52 = vld [vmem:[%s2027_s1 + $0x27c] ss:$24 sps:$4 sm:$0xff]  }
  0x1e   : > { %941 = vmatpush1.bf16.msra.mxu0 %v1499_v9  ;;  %v1589_v51 = vld [vmem:[%s2027_s1 + $0x2a8] ss:$24 sps:$4 sm:$0xff]   ;;  %v1544_v54 = vld [vmem:[%s2027_s1 + $0x164] ss:$24 sps:$4 sm:$0xff]   ;;  %v1595_v55 = vld [vmem:[%s2027_s1 + $0x278] ss:$24 sps:$4 sm:$0xff]  }
  0x1f   : > { %942 = vmatprep.subr.bf16.mxu0 %v1500_v10  ;;  %982 = vmatpush1.bf16.msra.mxu1 %v1553_v27  ;;  %v1535_v53 = vld [vmem:[%s2027_s1 + $0x180] ss:$24 sps:$4 sm:$0xff]   ;;  %v1599_v56 = vld [vmem:[%s2027_s1 + $0x24c] ss:$24 sps:$4 sm:$0xff]   ;;  %v1605_v61 = vld [vmem:[%s2027_s1 + $0x21c] ss:$24 sps:$4 sm:$0xff]  }
  0x20   : > { %983 = vmatprep.subr.bf16.mxu1 %v1557_v28  ;;  %v1876_v57 = vld [vmem:[%s1745_s26] ss:$8 sps:$4 sm:$0xff]   ;;  %v1550_v59 = vld [vmem:[%s2027_s1 + $0x134] ss:$24 sps:$4 sm:$0xff]   ;;  %v1607_v63 = vld [vmem:[%s2027_s1 + $0x218] ss:$24 sps:$4 sm:$0xff]  }
  0x21   : > { %v1542_v58 = vld [vmem:[%s2027_s1 + $0x160] ss:$24 sps:$4 sm:$0xff]   ;;  %v1548_v62 = vld [vmem:[%s2027_s1 + $0x130] ss:$24 sps:$4 sm:$0xff]   ;;  %v1556_v0 = vld [vmem:[%s2027_s1 + $0x104] ss:$24 sps:$4 sm:$0xff]  }
  0x22   : > { %943 = vmatpush1.bf16.msra.mxu0 %v1502_v11  ;;  %v1601_v60 = vld [vmem:[%s2027_s1 + $0x248] ss:$24 sps:$4 sm:$0xff]   ;;  %v1611_v1 = vld [vmem:[%s2027_s1 + $0x1ec] ss:$24 sps:$4 sm:$0xff]   ;;  %v1617_v5 = vld [vmem:[%s2027_s1 + $0x1bc] ss:$24 sps:$4 sm:$0xff]  }
  0x23   : > { %944 = vmatprep.subr.bf16.mxu0 %v1503_v12  ;;  %984 = vmatpush1.bf16.msra.mxu1 %v1559_v31  ;;  %v1554_v2 = vld [vmem:[%s2027_s1 + $0x100] ss:$24 sps:$4 sm:$0xff]   ;;  %v1562_v4 = vld [vmem:[%s2027_s1 + $0xd4] ss:$24 sps:$4 sm:$0xff]   ;;  %v1560_v6 = vld [vmem:[%s2027_s1 + $0xd0] ss:$24 sps:$4 sm:$0xff]  }
  0x24   : > { %985 = vmatprep.subr.bf16.mxu1 %v1563_v32  ;;  %v1613_v3 = vld [vmem:[%s2027_s1 + $0x1e8] ss:$24 sps:$4 sm:$0xff]   ;;  %v1619_v7 = vld [vmem:[%s2027_s1 + $0x1b8] ss:$24 sps:$4 sm:$0xff]   ;;  %v1568_v8 = vld [vmem:[%s2027_s1 + $0xa4] ss:$24 sps:$4 sm:$0xff]  }
  0x25   : > { %v1623_v9 = vld [vmem:[%s2027_s1 + $0x18c] ss:$24 sps:$4 sm:$0xff]   ;;  %v1566_v10 = vld [vmem:[%s2027_s1 + $0xa0] ss:$24 sps:$4 sm:$0xff]   ;;  %v1572_v13 = vld [vmem:[%s2027_s1 + $0x70] ss:$24 sps:$4 sm:$0xff]  }
  0x26   : > { %945 = vmatpush1.bf16.msra.mxu0 %v1505_v15  ;;  %v1625_v11 = vld [vmem:[%s2027_s1 + $0x188] ss:$24 sps:$4 sm:$0xff]   ;;  %v1574_v12 = vld [vmem:[%s2027_s1 + $0x74] ss:$24 sps:$4 sm:$0xff]   ;;  %v1580_v14 = vld [vmem:[%s2027_s1 + $0x44] ss:$24 sps:$4 sm:$0xff]  }
  0x27   : > { %946 = vmatprep.subr.bf16.mxu0 %v1506_v16  ;;  %986 = vmatpush1.bf16.msra.mxu1 %v1565_v35  ;;  %v1578_v15 = vld [vmem:[%s2027_s1 + $0x40] ss:$24 sps:$4 sm:$0xff]   ;;  %v1586_v16 = vld [vmem:[%s2027_s1 + $0x14] ss:$24 sps:$4 sm:$0xff]   ;;  %v1584_v17 = vld [vmem:[%s2027_s1 + $0x10] ss:$24 sps:$4 sm:$0xff]  }
  0x28   : > { %987 = vmatprep.subr.bf16.mxu1 %v1569_v36  ;;  %v1590_v19 = vld [vmem:[%s2027_s1 + $0x2e0] ss:$24 sps:$4 sm:$0xff]   ;;  %v1596_v21 = vld [vmem:[%s2027_s1 + $0x2b0] ss:$24 sps:$4 sm:$0xff]   ;;  %v1604_v22 = vld [vmem:[%s2027_s1 + $0x284] ss:$24 sps:$4 sm:$0xff]  }
  0x29   : > { %v1608_v25 = vld [vmem:[%s2027_s1 + $0x250] ss:$24 sps:$4 sm:$0xff]   ;;  %v1614_v27 = vld [vmem:[%s2027_s1 + $0x220] ss:$24 sps:$4 sm:$0xff]   ;;  %v1622_v28 = vld [vmem:[%s2027_s1 + $0x1f4] ss:$24 sps:$4 sm:$0xff]  }
  0x2a   : > { %947 = vmatpush1.bf16.msra.mxu0 %v1508_v20  ;;  %v1598_v20 = vld [vmem:[%s2027_s1 + $0x2b4] ss:$24 sps:$4 sm:$0xff]   ;;  %v1626_v31 = vld [vmem:[%s2027_s1 + $0x1c0] ss:$24 sps:$4 sm:$0xff]  }
  0x2b   : > { %948 = vmatprep.subr.bf16.mxu0 %v1509_v23  ;;  %988 = vmatpush1.bf16.msra.mxu1 %v1571_v39  ;;  %v1602_v23 = vld [vmem:[%s2027_s1 + $0x280] ss:$24 sps:$4 sm:$0xff]   ;;  %v1631_v32 = vld [vmem:[%s2027_s1 + $0x194] ss:$24 sps:$4 sm:$0xff]  }
  0x2c   : > { %989 = vmatprep.subr.bf16.mxu1 %v1575_v40 }
  0x2e   : > { %949 = vmatpush2.bf16.msra.mxu0 %v1511_v24  ;;  %v1610_v24 = vld [vmem:[%s2027_s1 + $0x254] ss:$24 sps:$4 sm:$0xff]  }
  0x2f   : > { %950 = vmatprep.subr.bf16.mxu0 %v1512_v26  ;;  %990 = vmatpush1.bf16.msra.mxu1 %v1577_v43  ;;  %v1616_v26 = vld [vmem:[%s2027_s1 + $0x224] ss:$24 sps:$4 sm:$0xff]  }
  0x30   : > { %991 = vmatprep.subr.bf16.mxu1 %v1581_v44 }
  0x32   : > { %951 = vmatpush2.bf16.msra.mxu0 %v1514_v29  ;;  %v1620_v29 = vld [vmem:[%s2027_s1 + $0x1f0] ss:$24 sps:$4 sm:$0xff]  }
  0x33   : > { %952 = vmatprep.subr.bf16.mxu0 %v1515_v30  ;;  %992 = vmatpush2.bf16.msra.mxu1 %v1583_v47  ;;  %v1628_v30 = vld [vmem:[%s2027_s1 + $0x1c4] ss:$24 sps:$4 sm:$0xff]  }
  0x34   : > { %993 = vmatprep.subr.bf16.mxu1 %v1587_v48 }
  0x36   : > { %953 = vmatpush2.bf16.msra.mxu0 %v1517_v33  ;;  %v1629_v33 = vld [vmem:[%s2027_s1 + $0x190] ss:$24 sps:$4 sm:$0xff]  }
  0x37   : > { %954 = vmatprep.subr.bf16.mxu0 %v1518_v34  ;;  %994 = vmatpush2.bf16.msra.mxu1 %v1589_v51  ;;  %v1102_v34 = vlaneseq }
  0x38   : > { %995 = vmatprep.subr.bf16.mxu1 %v1593_v52 }
  0x39   : > { %v1103_v35 = vshrl.u32 %v1102_v34, 7 }
  0x3a   : > { %955 = vmatpush2.bf16.msra.mxu0 %v1520_v37  ;;  %v1100_v37 = vld [vmem:[%s2028_s2] sm:$0x3f] }
  0x3b   : > { %956 = vmatprep.subr.bf16.mxu0 %v1521_v38  ;;  %996 = vmatpush2.bf16.msra.mxu1 %v1595_v55  ;;  %v1120_v36 = vsub.s32 4, %v1103_v35  ;;  %v1124_v39 = vsub.s32 5, %v1103_v35  ;;  %v1112_v55 = vsub.s32 2, %v1103_v35 }
  0x3c   : > { %997 = vmatprep.subr.bf16.mxu1 %v1599_v56  ;;  %v1116_v56 = vsub.s32 3, %v1103_v35 }
  0x3d   : > { %v1121_v38 = vrot.slane %v1100_v37, %v1120_v36  ;;  %v1125_v40 = vrot.slane %v1100_v37, %v1124_v39 }
  0x3e   : > { %957 = vmatpush2.bf16.msra.mxu0 %v1523_v41  ;;  %v1104_v41 = vsub.s32 0, %v1103_v35 }
  0x3f   : > { %958 = vmatprep.subr.bf16.mxu0 %v1524_v42  ;;  %998 = vmatpush2.bf16.msra.mxu1 %v1601_v60  ;;  %v1108_v42 = vsub.s32 1, %v1103_v35 }
  0x40   : > { %999 = vmatprep.subr.bf16.mxu1 %v1605_v61  ;;  %v1105_v43 = vrot.slane %v1100_v37, %v1104_v41 }
  0x41   : > { %v1109_v44 = vrot.slane %v1100_v37, %v1108_v42 }
  0x42   : > { %959 = vmatpush2.bf16.msra.mxu0 %v1526_v45 }
  0x43   : > { %960 = vmatprep.subr.bf16.mxu0 %v1527_v46  ;;  %1000 = vmatpush2.bf16.msra.mxu1 %v1607_v63 }
  0x44   : > { %1001 = vmatprep.subr.bf16.mxu1 %v1611_v1 }
  0x46   : > { %961 = vmatpush2.bf16.msra.mxu0 %v1529_v49 }
  0x47   : > { %962 = vmatprep.subr.bf16.mxu0 %v1533_v50  ;;  %1002 = vmatpush2.bf16.msra.mxu1 %v1613_v3 }
  0x48   : > { %1003 = vmatprep.subr.bf16.mxu1 %v1617_v5 }
  0x4a   : > { %963 = vmatpush2.bf16.msra.mxu0 %v1535_v53 }
  0x4b   : > { %1018 = vmatprep.subr.bf16.mxu0 %v1544_v54  ;;  %1004 = vmatpush2.bf16.msra.mxu1 %v1619_v7 }
  0x4c   : > { %1005 = vmatprep.subr.bf16.mxu1 %v1623_v9 }
  0x4d   : > { %965 = vmatmul.mubr.bf16.vlgmr.msra.gmra.mxu0 %v1876_v57 }
  0x4e   : > { %1019 = vmatpush1.bf16.msra.mxu0 %v1542_v58  ;;  %1050 = vmatprep.mubr.bf16.mxu0 %v1757_v18  ;;  %v1592_v18 = vld [vmem:[%s2027_s1 + $0x2e4] ss:$24 sps:$4 sm:$0xff]   ;;  %v1117_v58 = vrot.slane %v1100_v37, %v1116_v56 }
  0x4f   : > { %1020 = vmatprep.subr.bf16.mxu0 %v1550_v59  ;;  %1006 = vmatpush2.bf16.msra.mxu1 %v1625_v11 }
  0x52   : > { %1021 = vmatpush1.bf16.msra.mxu0 %v1548_v62  ;;  %1008 = vmatmul.mubr.bf16.vlgmr.msra.gmra.mxu1 %v1876_v57 }
  0x53   : > { %1022 = vmatprep.subr.bf16.mxu0 %v1556_v0 }
  0x56   : > { %1023 = vmatpush1.bf16.msra.mxu0 %v1554_v2 }
  0x57   : > { %1024 = vmatprep.subr.bf16.mxu0 %v1562_v4 }
  0x5a   : > { %1025 = vmatpush1.bf16.msra.mxu0 %v1560_v6 }
  0x5b   : > { %1026 = vmatprep.subr.bf16.mxu0 %v1568_v8 }
  0x5e   : > { %1027 = vmatpush1.bf16.msra.mxu0 %v1566_v10 }
  0x5f   : > { %1028 = vmatprep.subr.bf16.mxu0 %v1574_v12 }
  0x62   : > { %1029 = vmatpush1.bf16.msra.mxu0 %v1572_v13 }
  0x63   : > { %1030 = vmatprep.subr.bf16.mxu0 %v1580_v14 }
  0x66   : > { %1031 = vmatpush1.bf16.msra.mxu0 %v1578_v15 }
  0x67   : > { %1032 = vmatprep.subr.bf16.mxu0 %v1586_v16 }
  0x6a   : > { %1033 = vmatpush1.bf16.msra.mxu0 %v1584_v17 }
  0x6b   : > { %1034 = vmatprep.subr.bf16.mxu0 %v1592_v18 }
  0x6e   : > { %1035 = vmatpush2.bf16.msra.mxu0 %v1590_v19 }
  0x6f   : > { %1036 = vmatprep.subr.bf16.mxu0 %v1598_v20 }
  0x72   : > { %1037 = vmatpush2.bf16.msra.mxu0 %v1596_v21 }
  0x73   : > { %1038 = vmatprep.subr.bf16.mxu0 %v1604_v22 }
  0x76   : > { %1039 = vmatpush2.bf16.msra.mxu0 %v1602_v23 }
  0x77   : > { %1040 = vmatprep.subr.bf16.mxu0 %v1610_v24 }
  0x7a   : > { %1041 = vmatpush2.bf16.msra.mxu0 %v1608_v25 }
  0x7b   : > { %1042 = vmatprep.subr.bf16.mxu0 %v1616_v26 }
  0x7e   : > { %1043 = vmatpush2.bf16.msra.mxu0 %v1614_v27 }
  0x7f   : > { %1044 = vmatprep.subr.bf16.mxu0 %v1622_v28 }
  0x82   : > { %1045 = vmatpush2.bf16.msra.mxu0 %v1620_v29 }
  0x83   : > { %1046 = vmatprep.subr.bf16.mxu0 %v1628_v30 }
  0x86   : > { %1047 = vmatpush2.bf16.msra.mxu0 %v1626_v31 }
  0x87   : > { %1048 = vmatprep.subr.bf16.mxu0 %v1631_v32 }
  0x8a   : > { %1049 = vmatpush2.bf16.msra.mxu0 %v1629_v33 }
  0x8d   : > { %1051 = vmatmul.mubr.bf16.vlgmr.msra.gmra.mxu0 %v1876_v57  ;;  %v1113_v57 = vrot.slane %v1100_v37, %v1112_v55 }
 0x10d   : > { %v966_v45 = vpop.f32.mrf.mxu0 }
 0x10e   : > { %v1132_v46 = vadd.f32 %v1105_v43, %v966_v45 }
 0x10f   : > { %v968_v47 = vpop.f32.mrf.mxu0 }
 0x110   : > { %v1133_v48 = vadd.f32 %v1109_v44, %v968_v47 }
 0x111   : > { %v970_v49 = vpop.f32.mrf.mxu0 }
 0x112   : > { %v1454_v50 = vpack.c.bf16 %v1133_v48, %v1132_v46  ;;  %v1138_v52 = vadd.f32 %v1105_v43, %v970_v49  ;;  %v1009_v59 = vpop.f32.mrf.mxu1 }
 0x113   : > { %v972_v51 = vpop.f32.mrf.mxu0  ;;  %v1134_v60 = vadd.f32 %v1113_v57, %v1009_v59 }
 0x114   : > { %1180 = vst [vmem:[%s2009_s9] sm:$0xff] %v1454_v50  ;;  %v1139_v53 = vadd.f32 %v1109_v44, %v972_v51  ;;  %v1011_v61 = vpop.f32.mrf.mxu1 }
 0x115   : > { %v1135_v62 = vadd.f32 %v1117_v58, %v1011_v61 }
 0x116   : > { %v1457_v54 = vpack.c.bf16 %v1139_v53, %v1138_v52  ;;  %v1013_v63 = vpop.f32.mrf.mxu1 }
 0x117   : > { %v1455_v0 = vpack.c.bf16 %v1135_v62, %v1134_v60  ;;  %v1140_v1 = vadd.f32 %v1113_v57, %v1013_v63 }
 0x118   : > { %1183 = vst [vmem:[%s2009_s9 + $0x18] sm:$0xff] %v1457_v54  ;;  %v1015_v2 = vpop.f32.mrf.mxu1 }
 0x119   : > { %1181 = vst [vmem:[%s2009_s9 + $0x8] sm:$0xff] %v1455_v0  ;;  %v1141_v3 = vadd.f32 %v1117_v58, %v1015_v2 }
 0x11b   : > { %v1458_v4 = vpack.c.bf16 %v1141_v3, %v1140_v1 }
 0x11d   : > { %1184 = vst [vmem:[%s2009_s9 + $0x20] sm:$0xff] %v1458_v4 }
 0x14d   : > { %v1052_v5 = vpop.f32.mrf.mxu0 }
 0x14e   : > { %v1136_v7 = vadd.f32 %v1121_v38, %v1052_v5 }
 0x14f   : > { %v1054_v6 = vpop.f32.mrf.mxu0 }
 0x150   : > { %v1137_v8 = vadd.f32 %v1125_v40, %v1054_v6 }
 0x151   : > { %v1056_v9 = vpop.f32.mrf.mxu0 }
 0x152   : > { %v1456_v10 = vpack.c.bf16 %v1137_v8, %v1136_v7  ;;  %v1142_v12 = vadd.f32 %v1121_v38, %v1056_v9 }
 0x153   : > { %v1058_v11 = vpop.f32.mrf.mxu0 }
 0x154   : > { %1182 = vst [vmem:[%s2009_s9 + $0x10] sm:$0xff] %v1456_v10  ;;  %v1143_v13 = vadd.f32 %v1125_v40, %v1058_v11 }
 0x156   : > { %v1459_v14 = vpack.c.bf16 %v1143_v13, %v1142_v12 }
 0x158   : > { %1185 = vst [vmem:[%s2009_s9 + $0x28] sm:$0xff] %v1459_v14 }
 0x159 PF: > { %s13_s14 = sadd.s32 1, %s1654_s14   ;;  %s2030_s12 = smov %s1650_s13 }
 0x15a   : > { %p10_p5 = scmp.ge.s32.totalorder %s13_s14, 4   ;;  %s2031_s13 = smov %s2033_s15 }
 0x15c   :  { %12 = sbr.rel (!%p10_p5) target bundleno = 2 (0x2), region = 76 }

// kernel: flux_forward.44
= control target key start
LH: loop header
LB: loop body
LE: loop exit
PB: predicated region body
PF: predicated region fallthrough
CT: control target
= control target key end

     0   :  { %s502_s12 = smov 0   ;;  %s504_s13 = smov 0   ;;  %s549_s0 = inlined_call_operand.vmem [shape: bf16[2,8,256], index: 0, kind: input, shape index: {}]   ;;  %s550_s1 = inlined_call_operand.vmem [shape: f32[2,1,256], index: 1, kind: input, shape index: {}]   ;;  %s551_s2 = inlined_call_operand.vmem [shape: f32[2,1,256], index: 2, kind: input, shape index: {}]   ;;  %s552_s3 = inlined_call_operand.vmem [shape: bf16[2,8,256], index: 3, kind: output, shape index: {}]  }
   0x1   :  { %s506_s14 = smov 0  }
   0x2 LB: > { %s25_s15 = sadd.s32 1, %s476_s13  ;;  %p419_p0 = scmp.ge.s32.totalorder %s480_s14, 1  ;;  %s480_s14 = sphi %s506_s14, %s13_s14   ;;  %s476_s13 = sphi %s504_s13, %s554_s13   ;;  %s472_s12 = sphi %s502_s12, %s553_s12  }
   0x3   : > { %p27_p1 = scmp.ge.s32.totalorder %s25_s15, 2  ;;  %p175_p2 = scmp.lt.s32.totalorder %s480_s14, 3 }
   0x5   : > { %s556_s15 = smov (%p27_p1, %s25_s15), 0  ;;  %p176_p3 = pnand %p419_p0, %p175_p2 }
   0x6   : > { %p215_p4 = scmp.lt.s32.totalorder (!%p176_p3), %s472_s12, 1 }
   0x7   : > { %179 = sbr.rel (%p176_p3) target bundleno = 331 (0x14b), region = 32 }
   0xc   : > { %s558_s12 = smov (!%p215_p4, %s472_s12), 1  ;;  %v264_v14 = vlaneseq }
   0xd   : > { %s429_s16 = sshll.u32 %s558_s12, 3  ;;  %s422_s20 = sshll.u32 %s558_s12, 1 }
   0xe   : > { %s223_s19 = scalar_lea.vmem %s549_s0, %s429_s16  ;;  %s227_s23 = scalar_lea.vmem %s550_s1, %s422_s20  ;;  %v265_v15 = vshrl.u32 %v264_v14, 7 }
   0xf   : > { %v241_v0 = vld [vmem:[%s223_s19] sm:$0xff]  ;;  %s231_s26 = scalar_lea.vmem %s551_s2, %s422_s20  ;;  %s240_s29 = scalar_lea.vmem %s552_s3, %s429_s16 }
  0x10   : > { %v242_v1 = vunpack.c.l.bf16 %v241_v0  ;;  %v243_v2 = vunpack.c.h.bf16 %v241_v0  ;;  %v261_v16 = vld [vmem:[%s227_s23] sm:$0x3]  ;;  %v266_v18 = vsub.s32 0, %v265_v15  ;;  %v270_v19 = vsub.s32 1, %v265_v15 }
  0x11   : > { %v262_v17 = vadd.f32 1.0, %v261_v16  ;;  %v276_v20 = vld [vmem:[%s231_s26] sm:$0x3] }
  0x12   : > { %v244_v3 = vadd.f32 %v243_v2, %v242_v1  ;;  %v281_v24 = vrot.slane %v276_v20, %v266_v18  ;;  %v285_v25 = vrot.slane %v276_v20, %v270_v19 }
  0x13   : > { %v267_v21 = vrot.slane %v262_v17, %v266_v18  ;;  %v271_v22 = vrot.slane %v262_v17, %v270_v19 }
  0x14   : > { %245 = vadd.xlane.f32.xlu0 %v244_v3 }
  0x9d   : > { %v246_v4 = vpop.xlane.xlu0 %245 }
  0x9e   : > { %v248_v5 = vmul.f32 0.00390625, %v246_v4 }
  0xa0   : > { %v249_v6 = vsub.f32 %v242_v1, %v248_v5  ;;  %v250_v7 = vsub.f32 %v243_v2, %v248_v5 }
  0xa2   : > { %v251_v8 = vmul.f32 %v249_v6, %v249_v6  ;;  %v252_v9 = vmul.f32 %v250_v7, %v250_v7 }
  0xa4   : > { %v253_v10 = vadd.f32 %v252_v9, %v251_v8 }
  0xa6   : > { %254 = vadd.xlane.f32.xlu0 %v253_v10 }
 0x12f   : > { %v255_v11 = vpop.xlane.xlu0 %254 }
 0x130   : > { %v256_v12 = vmul.f32 0.00390625, %v255_v11 }
 0x132   : > { %v257_v13 = vadd.f32 1e-06, %v256_v12 }
 0x134   : > { %456 = vrsqrt.f32 %v257_v13 }
 0x141   : > { %v457_v23 = vpop.eup %456 }
 0x142   : > { %v259_v26 = vmul.f32 %v457_v23, %v249_v6  ;;  %v260_v27 = vmul.f32 %v457_v23, %v250_v7 }
 0x144   : > { %v274_v28 = vmul.f32 %v267_v21, %v259_v26  ;;  %v275_v29 = vmul.f32 %v271_v22, %v260_v27 }
 0x146   : > { %v288_v30 = vadd.f32 %v281_v24, %v274_v28  ;;  %v289_v31 = vadd.f32 %v285_v25, %v275_v29 }
 0x148   : > { %v431_v32 = vpack.c.bf16 %v289_v31, %v288_v30 }
 0x14a   : > { %298 = vst [vmem:[%s240_s29] sm:$0xff] %v431_v32 }
 0x14b PF: > { %s13_s14 = sadd.s32 1, %s480_s14   ;;  %s553_s12 = smov %s476_s13 }
 0x14c   : > { %p10_p5 = scmp.ge.s32.totalorder %s13_s14, 4   ;;  %s554_s13 = smov %s556_s15 }
 0x14e   :  { %12 = sbr.rel (!%p10_p5) target bundleno = 2 (0x2), region = 68 }

// kernel: flux_forward.41
= control target key start
LH: loop header
LB: loop body
LE: loop exit
PB: predicated region body
PF: predicated region fallthrough
CT: control target
= control target key end

     0   :  { %s647_s12 = smov 0   ;;  %s649_s13 = smov 0   ;;  %s692_s0 = inlined_call_operand.vmem [shape: bf16[2,8,24], index: 0, kind: input, shape index: {}]   ;;  %s693_s1 = inlined_call_operand.vmem [shape: bf16[24,256], index: 1, kind: input, shape index: {}]   ;;  %s694_s2 = inlined_call_operand.vmem [shape: f32[1,256], index: 2, kind: input, shape index: {}]   ;;  %s695_s3 = inlined_call_operand.vmem [shape: bf16[2,8,256], index: 3, kind: output, shape index: {}]  }
   0x1   :  { %s651_s14 = smov 0  }
   0x2 LB: > { %s39_s15 = sadd.s32 1, %s620_s13  ;;  %p557_p0 = scmp.ge.s32.totalorder %s624_s14, 1  ;;  %s624_s14 = sphi %s651_s14, %s13_s14   ;;  %s620_s13 = sphi %s649_s13, %s697_s13   ;;  %s616_s12 = sphi %s647_s12, %s696_s12  }
   0x3   : > { %p41_p1 = scmp.ge.s32.totalorder %s39_s15, 2  ;;  %p205_p2 = scmp.lt.s32.totalorder %s624_s14, 3 }
   0x5   : > { %s699_s15 = smov (%p41_p1, %s39_s15), 0  ;;  %p206_p3 = pnand %p557_p0, %p205_p2 }
   0x6   : > { %p256_p4 = scmp.lt.s32.totalorder (!%p206_p3), %s616_s12, 1 }
   0x7   : > { %209 = sbr.rel (%p206_p3) target bundleno = 223 (0xdf), region = 32 }
   0xc   : > { %v309_v0 = vld [vmem:[%s693_s1 + $0x10] sm:$0xff]  ;;  %vm329_vm0 = vcmask 1043456   ;;  %v599_v3 = vld [vmem:[%s693_s1 + $0x4] ss:$8 sps:$4 sm:$0xff]   ;;  %v626_v4 = vmov 0   ;;  %s701_s12 = smov (!%p256_p4, %s616_s12), 1  ;;  %v388_v8 = vlaneseq }
   0xd   : > { %v564_v1 = vcombine.high %v309_v0, %v309_v0  ;;  %v563_v2 = vcombine.low %v309_v0, %v309_v0  ;;  %368 = vmatprep.mubr.bf16.mxu0 %v626_v4  ;;  %v601_v6 = vld [vmem:[%s693_s1] ss:$8 sps:$4 sm:$0xff]   ;;  %s558_s22 = sshll.u32 %s701_s12, 2  ;;  %vm325_vm1 = vcmask 195584   ;;  %s570_s28 = sshll.u32 %s701_s12, 3 }
   0xe   : > { %s265_s25 = scalar_lea.vmem %s692_s0, %s558_s22  ;;  %v389_v9 = vshrl.u32 %v388_v8, 7  ;;  %v386_v12 = vld [vmem:[%s694_s2] sm:$0x3]  ;;  %s295_s4 = scalar_lea.vmem %s695_s3, %s570_s28 }
   0xf   : > { %565 = vmatprep.subr.msk.bf16.mxu0 %vm329_vm0, %v564_v1  ;;  %v331_v5 = vsel %vm329_vm0, %v563_v2, 0  ;;  %v306_v7 = vld [vmem:[%s265_s25] sm:$0xf] }
  0x10   : > { %349 = vmatpush1.bf16.msra.mxu0 %v331_v5  ;;  %v390_v10 = vsub.s32 0, %v389_v9  ;;  %v394_v11 = vsub.s32 1, %v389_v9 }
  0x11   : > { %350 = vmatprep.subr.bf16.mxu0 %v599_v3 }
  0x12   : > { %v391_v13 = vrot.slane %v386_v12, %v390_v10  ;;  %v395_v14 = vrot.slane %v386_v12, %v394_v11 }
  0x14   : > { %351 = vmatpush1.bf16.msra.mxu0 %v601_v6 }
  0x17   : > { %566 = vmatmul.mubr.msk.bf16.vlgmr.msra.gmra.mxu0 %vm325_vm1, %v306_v7 }
  0xd7   : > { %v370_v15 = vpop.f32.mrf.mxu0 }
  0xd8   : > { %v398_v17 = vadd.f32 %v391_v13, %v370_v15 }
  0xd9   : > { %v372_v16 = vpop.f32.mrf.mxu0 }
  0xda   : > { %v399_v18 = vadd.f32 %v395_v14, %v372_v16 }
  0xdb   : > { %v374_v19 = vpop.f32.mrf.mxu0 }
  0xdc   : > { %v571_v20 = vpack.c.bf16 %v399_v18, %v398_v17 }
  0xdd   : > { %v375_v21 = vpop.f32.mrf.mxu0 }
  0xde   : > { %408 = vst [vmem:[%s295_s4] sm:$0xff] %v571_v20 }
  0xdf PF: > { %s13_s14 = sadd.s32 1, %s624_s14   ;;  %s696_s12 = smov %s620_s13 }
  0xe0   : > { %p10_p5 = scmp.ge.s32.totalorder %s13_s14, 4   ;;  %s697_s13 = smov %s699_s15 }
  0xe2   :  { %12 = sbr.rel (!%p10_p5) target bundleno = 2 (0x2), region = 76 }

// kernel: flux_forward.45
= control target key start
LH: loop header
LB: loop body
LE: loop exit
PB: predicated region body
PF: predicated region fallthrough
CT: control target
= control target key end

     0   :  { %s1597_s12 = smov 0   ;;  %s1599_s13 = smov 0   ;;  %s1941_s0 = inlined_call_operand.vmem [shape: bf16[2,8,256], index: 0, kind: input, shape index: {}]   ;;  %s1942_s1 = inlined_call_operand.vmem [shape: bf16[256,768], index: 1, kind: input, shape index: {}]   ;;  %s1943_s2 = inlined_call_operand.vmem [shape: f32[1,768], index: 2, kind: input, shape index: {}]   ;;  %s1944_s3 = inlined_call_operand.vmem [shape: bf16[2,8,768], index: 3, kind: output, shape index: {}]  }
   0x1   :  { %s1601_s14 = smov 0  }
   0x2 LB: > { %s39_s15 = sadd.s32 1, %s1571_s13  ;;  %p1271_p0 = scmp.ge.s32.totalorder %s1575_s14, 1  ;;  %s1575_s14 = sphi %s1601_s14, %s13_s14   ;;  %s1571_s13 = sphi %s1599_s13, %s1946_s13   ;;  %s1567_s12 = sphi %s1597_s12, %s1945_s12  }
   0x3   : > { %p41_p1 = scmp.ge.s32.totalorder %s39_s15, 2  ;;  %p209_p2 = scmp.lt.s32.totalorder %s1575_s14, 3 }
   0x5   : > { %s1948_s15 = smov (%p41_p1, %s39_s15), 0  ;;  %p210_p3 = pnand %p1271_p0, %p209_p2 }
   0x6   : > { %p264_p4 = scmp.lt.s32.totalorder (!%p210_p3), %s1567_s12, 1 }
   0x7   : > { %213 = sbr.rel (%p210_p3) target bundleno = 341 (0x155), region = 32 }
   0xc   : > { %v1407_v0 = vld [vmem:[%s1942_s1 + $0x154] ss:$24 sps:$4 sm:$0xff]   ;;  %v1409_v1 = vld [vmem:[%s1942_s1 + $0x150] ss:$24 sps:$4 sm:$0xff]   ;;  %v1410_v2 = vld [vmem:[%s1942_s1 + $0x124] ss:$24 sps:$4 sm:$0xff]  }
   0xd   : > { %908 = vmatprep.subr.bf16.mxu0 %v1407_v0  ;;  %v1412_v3 = vld [vmem:[%s1942_s1 + $0x120] ss:$24 sps:$4 sm:$0xff]   ;;  %v1413_v4 = vld [vmem:[%s1942_s1 + $0xf4] ss:$24 sps:$4 sm:$0xff]   ;;  %v1415_v5 = vld [vmem:[%s1942_s1 + $0xf0] ss:$24 sps:$4 sm:$0xff]  }
   0xe   : > { %909 = vmatpush1.bf16.msra.mxu0 %v1409_v1  ;;  %v1416_v6 = vld [vmem:[%s1942_s1 + $0xc4] ss:$24 sps:$4 sm:$0xff]   ;;  %v1418_v7 = vld [vmem:[%s1942_s1 + $0xc0] ss:$24 sps:$4 sm:$0xff]   ;;  %v1419_v8 = vld [vmem:[%s1942_s1 + $0x94] ss:$24 sps:$4 sm:$0xff]  }
   0xf   : > { %910 = vmatprep.subr.bf16.mxu0 %v1410_v2  ;;  %s1950_s12 = smov (!%p264_p4, %s1567_s12), 1  ;;  %v1421_v9 = vld [vmem:[%s1942_s1 + $0x90] ss:$24 sps:$4 sm:$0xff]   ;;  %v1422_v10 = vld [vmem:[%s1942_s1 + $0x64] ss:$24 sps:$4 sm:$0xff]  }
  0x10   : > { %s1378_s11 = sshll.u32 %s1950_s12, 3  ;;  %v1424_v11 = vld [vmem:[%s1942_s1 + $0x60] ss:$24 sps:$4 sm:$0xff]   ;;  %v1425_v12 = vld [vmem:[%s1942_s1 + $0x34] ss:$24 sps:$4 sm:$0xff]   ;;  %s1382_s30 = smul.u32 24, %s1950_s12 }
  0x11   : > { %v1452_v13 = vld [vmem:[%s1942_s1 + $0x15c] ss:$24 sps:$4 sm:$0xff]   ;;  %s275_s24 = scalar_lea.vmem %s1941_s0, %s1378_s11  ;;  %v1454_v14 = vld [vmem:[%s1942_s1 + $0x158] ss:$24 sps:$4 sm:$0xff]   ;;  %v1458_v17 = vld [vmem:[%s1942_s1 + $0x12c] ss:$24 sps:$4 sm:$0xff]  }
  0x12   : > { %911 = vmatpush1.bf16.msra.mxu0 %v1412_v3  ;;  %v1427_v15 = vld [vmem:[%s1942_s1 + $0x30] ss:$24 sps:$4 sm:$0xff]   ;;  %v1428_v16 = vld [vmem:[%s1942_s1 + $0x4] ss:$24 sps:$4 sm:$0xff]   ;;  %949 = vmatprep.subr.bf16.mxu1 %v1452_v13  ;;  %v1430_v21 = vld [vmem:[%s1942_s1] ss:$24 sps:$4 sm:$0xff]   ;;  %s306_s6 = scalar_lea.vmem %s1944_s3, %s1382_s30 }
  0x13   : > { %912 = vmatprep.subr.bf16.mxu0 %v1413_v4  ;;  %950 = vmatpush1.bf16.msra.mxu1 %v1454_v14  ;;  %v1675_v18 = vld [vmem:[%s275_s24] sm:$0xff]  ;;  %v1466_v22 = vld [vmem:[%s1942_s1 + $0xfc] ss:$24 sps:$4 sm:$0xff]   ;;  %v1468_v23 = vld [vmem:[%s1942_s1 + $0xf8] ss:$24 sps:$4 sm:$0xff]  }
  0x14   : > { %v1679_v19 = vcombine.high %v1675_v18, %v1675_v18  ;;  %v1461_v20 = vld [vmem:[%s1942_s1 + $0x128] ss:$24 sps:$4 sm:$0xff]   ;;  %951 = vmatprep.subr.bf16.mxu1 %v1458_v17  ;;  %v1431_v24 = vld [vmem:[%s1942_s1 + $0x2d4] ss:$24 sps:$4 sm:$0xff]   ;;  %v1434_v27 = vld [vmem:[%s1942_s1 + $0x2a4] ss:$24 sps:$4 sm:$0xff]   ;;  %v1799_v58 = vcombine.low %v1675_v18, %v1675_v18 }
  0x15   : > { %v1472_v25 = vld [vmem:[%s1942_s1 + $0xcc] ss:$24 sps:$4 sm:$0xff]   ;;  %v1433_v26 = vld [vmem:[%s1942_s1 + $0x2d0] ss:$24 sps:$4 sm:$0xff]   ;;  %v1478_v29 = vld [vmem:[%s1942_s1 + $0x9c] ss:$24 sps:$4 sm:$0xff]  }
  0x16   : > { %913 = vmatpush1.bf16.msra.mxu0 %v1415_v5  ;;  %940 = vmatprep.mubr.bf16.mxu0 %v1679_v19  ;;  %v1474_v28 = vld [vmem:[%s1942_s1 + $0xc8] ss:$24 sps:$4 sm:$0xff]   ;;  %v1437_v31 = vld [vmem:[%s1942_s1 + $0x274] ss:$24 sps:$4 sm:$0xff]   ;;  %v1480_v32 = vld [vmem:[%s1942_s1 + $0x98] ss:$24 sps:$4 sm:$0xff]  }
  0x17   : > { %914 = vmatprep.subr.bf16.mxu0 %v1416_v6  ;;  %981 = vmatprep.mubr.bf16.mxu1 %v1679_v19  ;;  %v1436_v30 = vld [vmem:[%s1942_s1 + $0x2a0] ss:$24 sps:$4 sm:$0xff]   ;;  %v1484_v33 = vld [vmem:[%s1942_s1 + $0x6c] ss:$24 sps:$4 sm:$0xff]   ;;  %v1439_v34 = vld [vmem:[%s1942_s1 + $0x270] ss:$24 sps:$4 sm:$0xff]  }
  0x18   : > { %952 = vmatpush1.bf16.msra.mxu1 %v1461_v20  ;;  %v1440_v35 = vld [vmem:[%s1942_s1 + $0x244] ss:$24 sps:$4 sm:$0xff]   ;;  %v1486_v36 = vld [vmem:[%s1942_s1 + $0x68] ss:$24 sps:$4 sm:$0xff]   ;;  %v1443_v39 = vld [vmem:[%s1942_s1 + $0x214] ss:$24 sps:$4 sm:$0xff]  }
  0x19   : > { %953 = vmatprep.subr.bf16.mxu1 %v1466_v22  ;;  %v1490_v37 = vld [vmem:[%s1942_s1 + $0x3c] ss:$24 sps:$4 sm:$0xff]   ;;  %v1442_v38 = vld [vmem:[%s1942_s1 + $0x240] ss:$24 sps:$4 sm:$0xff]   ;;  %v1496_v41 = vld [vmem:[%s1942_s1 + $0xc] ss:$24 sps:$4 sm:$0xff]  }
  0x1a   : > { %915 = vmatpush1.bf16.msra.mxu0 %v1418_v7  ;;  %v1492_v40 = vld [vmem:[%s1942_s1 + $0x38] ss:$24 sps:$4 sm:$0xff]   ;;  %v1446_v43 = vld [vmem:[%s1942_s1 + $0x1e4] ss:$24 sps:$4 sm:$0xff]   ;;  %v1498_v44 = vld [vmem:[%s1942_s1 + $0x8] ss:$24 sps:$4 sm:$0xff]  }
  0x1b   : > { %916 = vmatprep.subr.bf16.mxu0 %v1419_v8  ;;  %v1445_v42 = vld [vmem:[%s1942_s1 + $0x210] ss:$24 sps:$4 sm:$0xff]   ;;  %v1502_v45 = vld [vmem:[%s1942_s1 + $0x2dc] ss:$24 sps:$4 sm:$0xff]   ;;  %v1448_v46 = vld [vmem:[%s1942_s1 + $0x1e0] ss:$24 sps:$4 sm:$0xff]  }
  0x1c   : > { %954 = vmatpush1.bf16.msra.mxu1 %v1468_v23  ;;  %v1449_v47 = vld [vmem:[%s1942_s1 + $0x1b4] ss:$24 sps:$4 sm:$0xff]   ;;  %v1504_v48 = vld [vmem:[%s1942_s1 + $0x2d8] ss:$24 sps:$4 sm:$0xff]   ;;  %v1455_v51 = vld [vmem:[%s1942_s1 + $0x184] ss:$24 sps:$4 sm:$0xff]  }
  0x1d   : > { %955 = vmatprep.subr.bf16.mxu1 %v1472_v25  ;;  %v1508_v49 = vld [vmem:[%s1942_s1 + $0x2ac] ss:$24 sps:$4 sm:$0xff]   ;;  %v1451_v50 = vld [vmem:[%s1942_s1 + $0x1b0] ss:$24 sps:$4 sm:$0xff]   ;;  %v1514_v53 = vld [vmem:[%s1942_s1 + $0x27c] ss:$24 sps:$4 sm:$0xff]  }
  0x1e   : > { %917 = vmatpush1.bf16.msra.mxu0 %v1421_v9  ;;  %v1510_v52 = vld [vmem:[%s1942_s1 + $0x2a8] ss:$24 sps:$4 sm:$0xff]   ;;  %v1465_v55 = vld [vmem:[%s1942_s1 + $0x164] ss:$24 sps:$4 sm:$0xff]   ;;  %v1516_v56 = vld [vmem:[%s1942_s1 + $0x278] ss:$24 sps:$4 sm:$0xff]  }
  0x1f   : > { %918 = vmatprep.subr.bf16.mxu0 %v1422_v10  ;;  %v1457_v54 = vld [vmem:[%s1942_s1 + $0x180] ss:$24 sps:$4 sm:$0xff]   ;;  %v1520_v57 = vld [vmem:[%s1942_s1 + $0x24c] ss:$24 sps:$4 sm:$0xff]   ;;  %v1526_v62 = vld [vmem:[%s1942_s1 + $0x21c] ss:$24 sps:$4 sm:$0xff]  }
  0x20   : > { %956 = vmatpush1.bf16.msra.mxu1 %v1474_v28  ;;  %v1463_v59 = vld [vmem:[%s1942_s1 + $0x160] ss:$24 sps:$4 sm:$0xff]   ;;  %v1471_v61 = vld [vmem:[%s1942_s1 + $0x134] ss:$24 sps:$4 sm:$0xff]   ;;  %v1469_v63 = vld [vmem:[%s1942_s1 + $0x130] ss:$24 sps:$4 sm:$0xff]  }
  0x21   : > { %957 = vmatprep.subr.bf16.mxu1 %v1478_v29  ;;  %v1522_v60 = vld [vmem:[%s1942_s1 + $0x248] ss:$24 sps:$4 sm:$0xff]   ;;  %v1528_v0 = vld [vmem:[%s1942_s1 + $0x218] ss:$24 sps:$4 sm:$0xff]   ;;  %v1477_v1 = vld [vmem:[%s1942_s1 + $0x104] ss:$24 sps:$4 sm:$0xff]  }
  0x22   : > { %919 = vmatpush1.bf16.msra.mxu0 %v1424_v11  ;;  %v1532_v2 = vld [vmem:[%s1942_s1 + $0x1ec] ss:$24 sps:$4 sm:$0xff]   ;;  %v1475_v3 = vld [vmem:[%s1942_s1 + $0x100] ss:$24 sps:$4 sm:$0xff]   ;;  %v1538_v6 = vld [vmem:[%s1942_s1 + $0x1bc] ss:$24 sps:$4 sm:$0xff]  }
  0x23   : > { %920 = vmatprep.subr.bf16.mxu0 %v1425_v12  ;;  %v1534_v4 = vld [vmem:[%s1942_s1 + $0x1e8] ss:$24 sps:$4 sm:$0xff]   ;;  %v1483_v5 = vld [vmem:[%s1942_s1 + $0xd4] ss:$24 sps:$4 sm:$0xff]   ;;  %v1540_v8 = vld [vmem:[%s1942_s1 + $0x1b8] ss:$24 sps:$4 sm:$0xff]  }
  0x24   : > { %958 = vmatpush1.bf16.msra.mxu1 %v1480_v32  ;;  %v1481_v7 = vld [vmem:[%s1942_s1 + $0xd0] ss:$24 sps:$4 sm:$0xff]   ;;  %v1489_v9 = vld [vmem:[%s1942_s1 + $0xa4] ss:$24 sps:$4 sm:$0xff]   ;;  %v1487_v11 = vld [vmem:[%s1942_s1 + $0xa0] ss:$24 sps:$4 sm:$0xff]  }
  0x25   : > { %959 = vmatprep.subr.bf16.mxu1 %v1484_v33  ;;  %v1544_v10 = vld [vmem:[%s1942_s1 + $0x18c] ss:$24 sps:$4 sm:$0xff]   ;;  %v1546_v12 = vld [vmem:[%s1942_s1 + $0x188] ss:$24 sps:$4 sm:$0xff]  }
  0x26   : > { %921 = vmatpush1.bf16.msra.mxu0 %v1427_v15  ;;  %v1495_v13 = vld [vmem:[%s1942_s1 + $0x74] ss:$24 sps:$4 sm:$0xff]   ;;  %v1493_v14 = vld [vmem:[%s1942_s1 + $0x70] ss:$24 sps:$4 sm:$0xff]   ;;  %v1501_v15 = vld [vmem:[%s1942_s1 + $0x44] ss:$24 sps:$4 sm:$0xff]  }
  0x27   : > { %922 = vmatprep.subr.bf16.mxu0 %v1428_v16  ;;  %v1499_v16 = vld [vmem:[%s1942_s1 + $0x40] ss:$24 sps:$4 sm:$0xff]   ;;  %v1507_v17 = vld [vmem:[%s1942_s1 + $0x14] ss:$24 sps:$4 sm:$0xff]   ;;  %v1505_v18 = vld [vmem:[%s1942_s1 + $0x10] ss:$24 sps:$4 sm:$0xff]  }
  0x28   : > { %960 = vmatpush1.bf16.msra.mxu1 %v1486_v36  ;;  %v1511_v20 = vld [vmem:[%s1942_s1 + $0x2e0] ss:$24 sps:$4 sm:$0xff]   ;;  %v1517_v22 = vld [vmem:[%s1942_s1 + $0x2b0] ss:$24 sps:$4 sm:$0xff]   ;;  %v1525_v23 = vld [vmem:[%s1942_s1 + $0x284] ss:$24 sps:$4 sm:$0xff]  }
  0x29   : > { %961 = vmatprep.subr.bf16.mxu1 %v1490_v37  ;;  %v1531_v25 = vld [vmem:[%s1942_s1 + $0x254] ss:$24 sps:$4 sm:$0xff]   ;;  %v1535_v28 = vld [vmem:[%s1942_s1 + $0x220] ss:$24 sps:$4 sm:$0xff]  }
  0x2a   : > { %923 = vmatpush1.bf16.msra.mxu0 %v1430_v21  ;;  %v1519_v21 = vld [vmem:[%s1942_s1 + $0x2b4] ss:$24 sps:$4 sm:$0xff]   ;;  %v1547_v32 = vld [vmem:[%s1942_s1 + $0x1c0] ss:$24 sps:$4 sm:$0xff]  }
  0x2b   : > { %924 = vmatprep.subr.bf16.mxu0 %v1431_v24  ;;  %v1523_v24 = vld [vmem:[%s1942_s1 + $0x280] ss:$24 sps:$4 sm:$0xff]   ;;  %v1543_v29 = vld [vmem:[%s1942_s1 + $0x1f4] ss:$24 sps:$4 sm:$0xff]  }
  0x2c   : > { %962 = vmatpush1.bf16.msra.mxu1 %v1492_v40  ;;  %v1552_v33 = vld [vmem:[%s1942_s1 + $0x194] ss:$24 sps:$4 sm:$0xff]  }
  0x2d   : > { %963 = vmatprep.subr.bf16.mxu1 %v1496_v41 }
  0x2e   : > { %925 = vmatpush2.bf16.msra.mxu0 %v1433_v26  ;;  %v1529_v26 = vld [vmem:[%s1942_s1 + $0x250] ss:$24 sps:$4 sm:$0xff]  }
  0x2f   : > { %926 = vmatprep.subr.bf16.mxu0 %v1434_v27  ;;  %v1537_v27 = vld [vmem:[%s1942_s1 + $0x224] ss:$24 sps:$4 sm:$0xff]  }
  0x30   : > { %964 = vmatpush1.bf16.msra.mxu1 %v1498_v44 }
  0x31   : > { %965 = vmatprep.subr.bf16.mxu1 %v1502_v45 }
  0x32   : > { %927 = vmatpush2.bf16.msra.mxu0 %v1436_v30  ;;  %v1541_v30 = vld [vmem:[%s1942_s1 + $0x1f0] ss:$24 sps:$4 sm:$0xff]  }
  0x33   : > { %928 = vmatprep.subr.bf16.mxu0 %v1437_v31  ;;  %v1549_v31 = vld [vmem:[%s1942_s1 + $0x1c4] ss:$24 sps:$4 sm:$0xff]  }
  0x34   : > { %966 = vmatpush2.bf16.msra.mxu1 %v1504_v48 }
  0x35   : > { %967 = vmatprep.subr.bf16.mxu1 %v1508_v49 }
  0x36   : > { %929 = vmatpush2.bf16.msra.mxu0 %v1439_v34  ;;  %v1550_v34 = vld [vmem:[%s1942_s1 + $0x190] ss:$24 sps:$4 sm:$0xff]  }
  0x37   : > { %930 = vmatprep.subr.bf16.mxu0 %v1440_v35  ;;  %v1054_v35 = vlaneseq }
  0x38   : > { %968 = vmatpush2.bf16.msra.mxu1 %v1510_v52 }
  0x39   : > { %969 = vmatprep.subr.bf16.mxu1 %v1514_v53  ;;  %v1055_v36 = vshrl.u32 %v1054_v35, 7 }
  0x3a   : > { %931 = vmatpush2.bf16.msra.mxu0 %v1442_v38  ;;  %v1052_v38 = vld [vmem:[%s1943_s2] sm:$0x3f] }
  0x3b   : > { %932 = vmatprep.subr.bf16.mxu0 %v1443_v39  ;;  %v1072_v37 = vsub.s32 4, %v1055_v36  ;;  %v1076_v40 = vsub.s32 5, %v1055_v36  ;;  %v1064_v53 = vsub.s32 2, %v1055_v36 }
  0x3c   : > { %970 = vmatpush2.bf16.msra.mxu1 %v1516_v56 }
  0x3d   : > { %971 = vmatprep.subr.bf16.mxu1 %v1520_v57  ;;  %v1073_v39 = vrot.slane %v1052_v38, %v1072_v37  ;;  %v1077_v41 = vrot.slane %v1052_v38, %v1076_v40 }
  0x3e   : > { %933 = vmatpush2.bf16.msra.mxu0 %v1445_v42  ;;  %v1056_v42 = vsub.s32 0, %v1055_v36 }
  0x3f   : > { %934 = vmatprep.subr.bf16.mxu0 %v1446_v43  ;;  %v1060_v43 = vsub.s32 1, %v1055_v36 }
  0x40   : > { %972 = vmatpush2.bf16.msra.mxu1 %v1522_v60  ;;  %v1057_v44 = vrot.slane %v1052_v38, %v1056_v42 }
  0x41   : > { %973 = vmatprep.subr.bf16.mxu1 %v1526_v62  ;;  %v1061_v45 = vrot.slane %v1052_v38, %v1060_v43 }
  0x42   : > { %935 = vmatpush2.bf16.msra.mxu0 %v1448_v46 }
  0x43   : > { %936 = vmatprep.subr.bf16.mxu0 %v1449_v47 }
  0x44   : > { %974 = vmatpush2.bf16.msra.mxu1 %v1528_v0 }
  0x45   : > { %975 = vmatprep.subr.bf16.mxu1 %v1532_v2 }
  0x46   : > { %937 = vmatpush2.bf16.msra.mxu0 %v1451_v50 }
  0x47   : > { %938 = vmatprep.subr.bf16.mxu0 %v1455_v51 }
  0x48   : > { %976 = vmatpush2.bf16.msra.mxu1 %v1534_v4 }
  0x49   : > { %977 = vmatprep.subr.bf16.mxu1 %v1538_v6 }
  0x4a   : > { %939 = vmatpush2.bf16.msra.mxu0 %v1457_v54  ;;  %v1068_v54 = vsub.s32 3, %v1055_v36 }
  0x4b   : > { %990 = vmatprep.subr.bf16.mxu0 %v1465_v55  ;;  %v1065_v55 = vrot.slane %v1052_v38, %v1064_v53 }
  0x4c   : > { %978 = vmatpush2.bf16.msra.mxu1 %v1540_v8  ;;  %v1069_v56 = vrot.slane %v1052_v38, %v1068_v54 }
  0x4d   : > { %941 = vmatmul.mubr.bf16.vlgmr.msra.gmra.mxu0 %v1799_v58  ;;  %979 = vmatprep.subr.bf16.mxu1 %v1544_v10 }
  0x4e   : > { %991 = vmatpush1.bf16.msra.mxu0 %v1463_v59  ;;  %1022 = vmatprep.mubr.bf16.mxu0 %v1679_v19  ;;  %v1513_v19 = vld [vmem:[%s1942_s1 + $0x2e4] ss:$24 sps:$4 sm:$0xff]  }
  0x4f   : > { %992 = vmatprep.subr.bf16.mxu0 %v1471_v61 }
  0x50   : > { %980 = vmatpush2.bf16.msra.mxu1 %v1546_v12 }
  0x52   : > { %993 = vmatpush1.bf16.msra.mxu0 %v1469_v63 }
  0x53   : > { %994 = vmatprep.subr.bf16.mxu0 %v1477_v1  ;;  %982 = vmatmul.mubr.bf16.vlgmr.msra.gmra.mxu1 %v1799_v58 }
  0x56   : > { %995 = vmatpush1.bf16.msra.mxu0 %v1475_v3 }
  0x57   : > { %996 = vmatprep.subr.bf16.mxu0 %v1483_v5 }
  0x5a   : > { %997 = vmatpush1.bf16.msra.mxu0 %v1481_v7 }
  0x5b   : > { %998 = vmatprep.subr.bf16.mxu0 %v1489_v9 }
  0x5e   : > { %999 = vmatpush1.bf16.msra.mxu0 %v1487_v11 }
  0x5f   : > { %1000 = vmatprep.subr.bf16.mxu0 %v1495_v13 }
  0x62   : > { %1001 = vmatpush1.bf16.msra.mxu0 %v1493_v14 }
  0x63   : > { %1002 = vmatprep.subr.bf16.mxu0 %v1501_v15 }
  0x66   : > { %1003 = vmatpush1.bf16.msra.mxu0 %v1499_v16 }
  0x67   : > { %1004 = vmatprep.subr.bf16.mxu0 %v1507_v17 }
  0x6a   : > { %1005 = vmatpush1.bf16.msra.mxu0 %v1505_v18 }
  0x6b   : > { %1006 = vmatprep.subr.bf16.mxu0 %v1513_v19 }
  0x6e   : > { %1007 = vmatpush2.bf16.msra.mxu0 %v1511_v20 }
  0x6f   : > { %1008 = vmatprep.subr.bf16.mxu0 %v1519_v21 }
  0x72   : > { %1009 = vmatpush2.bf16.msra.mxu0 %v1517_v22 }
  0x73   : > { %1010 = vmatprep.subr.bf16.mxu0 %v1525_v23 }
  0x76   : > { %1011 = vmatpush2.bf16.msra.mxu0 %v1523_v24 }
  0x77   : > { %1012 = vmatprep.subr.bf16.mxu0 %v1531_v25 }
  0x7a   : > { %1013 = vmatpush2.bf16.msra.mxu0 %v1529_v26 }
  0x7b   : > { %1014 = vmatprep.subr.bf16.mxu0 %v1537_v27 }
  0x7e   : > { %1015 = vmatpush2.bf16.msra.mxu0 %v1535_v28 }
  0x7f   : > { %1016 = vmatprep.subr.bf16.mxu0 %v1543_v29 }
  0x82   : > { %1017 = vmatpush2.bf16.msra.mxu0 %v1541_v30 }
  0x83   : > { %1018 = vmatprep.subr.bf16.mxu0 %v1549_v31 }
  0x86   : > { %1019 = vmatpush2.bf16.msra.mxu0 %v1547_v32 }
  0x87   : > { %1020 = vmatprep.subr.bf16.mxu0 %v1552_v33 }
  0x8a   : > { %1021 = vmatpush2.bf16.msra.mxu0 %v1550_v34 }
  0x8d   : > { %1023 = vmatmul.mubr.bf16.vlgmr.msra.gmra.mxu0 %v1799_v58 }
 0x10d   : > { %v942_v46 = vpop.f32.mrf.mxu0 }
 0x10e   : > { %v1084_v47 = vadd.f32 %v1057_v44, %v942_v46 }
 0x10f   : > { %v944_v48 = vpop.f32.mrf.mxu0 }
 0x110   : > { %v1085_v49 = vadd.f32 %v1061_v45, %v944_v48 }
 0x111   : > { %v946_v50 = vpop.f32.mrf.mxu0 }
 0x112   : > { %v1379_v51 = vpack.c.bf16 %v1085_v49, %v1084_v47 }
 0x113   : > { %v947_v52 = vpop.f32.mrf.mxu0  ;;  %v983_v57 = vpop.f32.mrf.mxu1 }
 0x114   : > { %1114 = vst [vmem:[%s306_s6] sm:$0xff] %v1379_v51  ;;  %v1086_v58 = vadd.f32 %v1065_v55, %v983_v57 }
 0x115   : > { %v985_v59 = vpop.f32.mrf.mxu1 }
 0x116   : > { %v1087_v60 = vadd.f32 %v1069_v56, %v985_v59 }
 0x117   : > { %v987_v61 = vpop.f32.mrf.mxu1 }
 0x118   : > { %v1380_v62 = vpack.c.bf16 %v1087_v60, %v1086_v58 }
 0x119   : > { %v988_v63 = vpop.f32.mrf.mxu1 }
 0x11a   : > { %1115 = vst [vmem:[%s306_s6 + $0x8] sm:$0xff] %v1380_v62 }
 0x14d   : > { %v1024_v0 = vpop.f32.mrf.mxu0 }
 0x14e   : > { %v1088_v2 = vadd.f32 %v1073_v39, %v1024_v0 }
 0x14f   : > { %v1026_v1 = vpop.f32.mrf.mxu0 }
 0x150   : > { %v1089_v3 = vadd.f32 %v1077_v41, %v1026_v1 }
 0x151   : > { %v1028_v4 = vpop.f32.mrf.mxu0 }
 0x152   : > { %v1381_v5 = vpack.c.bf16 %v1089_v3, %v1088_v2 }
 0x153   : > { %v1029_v6 = vpop.f32.mrf.mxu0 }
 0x154   : > { %1116 = vst [vmem:[%s306_s6 + $0x10] sm:$0xff] %v1381_v5 }
 0x155 PF: > { %s13_s14 = sadd.s32 1, %s1575_s14   ;;  %s1945_s12 = smov %s1571_s13 }
 0x156   : > { %p10_p5 = scmp.ge.s32.totalorder %s13_s14, 4   ;;  %s1946_s13 = smov %s1948_s15 }
 0x158   :  { %12 = sbr.rel (!%p10_p5) target bundleno = 2 (0x2), region = 76 }

// kernel: flux_forward.46
= control target key start
LH: loop header
LB: loop body
LE: loop exit
PB: predicated region body
PF: predicated region fallthrough
CT: control target
= control target key end

     0   :  { %s1311_s12 = smov 0   ;;  %s1313_s13 = smov 0   ;;  %s1489_s0 = inlined_call_operand.vmem [shape: bf16[2,2,24,128], index: 0, kind: input, shape index: {}]   ;;  %s1490_s1 = inlined_call_operand.vmem [shape: bf16[2,2,24,128], index: 1, kind: input, shape index: {}]   ;;  %s1491_s2 = inlined_call_operand.vmem [shape: bf16[2,2,24,128], index: 2, kind: input, shape index: {}]   ;;  %s1492_s3 = inlined_call_operand.vmem [shape: bf16[2,24,256], index: 3, kind: output, shape index: {}]  }
   0x1   :  { %s1315_s14 = smov 0  }
   0x2 LB: > { %s32_s15 = sadd.s32 1, %s1282_s13  ;;  %p1092_p0 = scmp.ge.s32.totalorder %s1286_s14, 1  ;;  %s1286_s14 = sphi %s1315_s14, %s13_s14   ;;  %s1282_s13 = sphi %s1313_s13, %s1494_s13   ;;  %s1278_s12 = sphi %s1311_s12, %s1493_s12  }
   0x3   : > { %p34_p1 = scmp.ge.s32.totalorder %s32_s15, 2  ;;  %p211_p2 = scmp.lt.s32.totalorder %s1286_s14, 3 }
   0x5   : > { %s1496_s15 = smov (%p34_p1, %s32_s15), 0  ;;  %p212_p3 = pnand %p1092_p0, %p211_p2 }
   0x6   : > { %p275_p4 = scmp.lt.s32.totalorder (!%p212_p3), %s1278_s12, 1 }
   0x7   : > { %215 = sbr.rel (%p212_p3) target bundleno = 1314 (0x522), region = 32 }
   0xc   : > { %s1498_s12 = smov (!%p275_p4, %s1278_s12), 1  ;;  %vm328_vm0 = vcmask 7168   ;;  %v1288_v4 = vmov -inf   ;;  %vm418_vm1 = vcmask 195584   ;;  %v1289_v12 = vmov 0  }
   0xd   : > { %s1329_s16 = smul.u32 24, %s1498_s12  ;;  %331 = vst.msk [vmem:[#allocation2 + $0x10] sm:$0xff] %vm328_vm0, %v1288_v4  ;;  %329 = vst.msk [vmem:[#allocation2] sm:$0xff] %vm328_vm0, %v1288_v4  ;;  %1214 = vset.pattern.permute.xlu1 %v1289_v12  ;;  %1215 = vset.pattern.permute.xlu0 %v1289_v12  ;;  %v1290_v13 = vmov 0.0   ;;  %vm523_vm2 = vcmask 1043456  }
   0xe   : > { %330 = vst.msk [vmem:[#allocation2 + $0x8] sm:$0xff] %vm328_vm0, %v1288_v4  ;;  %333 = vst.msk [vmem:[#allocation3 + $0x8] sm:$0xff] %vm328_vm0, %v1290_v13 }
   0xf   : > { %s1335_s19 = scalar_lea.vmem %s1490_s1, %s1329_s16  ;;  %s1341_s22 = scalar_lea.vmem %s1489_s0, %s1329_s16  ;;  %332 = vst.msk [vmem:[#allocation3] sm:$0xff] %vm328_vm0, %v1290_v13  ;;  %334 = vst.msk [vmem:[#allocation3 + $0x10] sm:$0xff] %vm328_vm0, %v1290_v13 }
  0x10   : > { %v1216_v0 = vld [vmem:[%s1335_s19 + $0x8] ss:$0 sps:$4 sm:$0xff]   ;;  %v1217_v1 = vld [vmem:[%s1335_s19] sm:$0xff]   ;;  %s1396_s25 = scalar_lea.vmem %s1491_s2, %s1329_s16  ;;  %v1222_v29 = vld [vmem:[%s1335_s19 + $0x14] ss:$0 sps:$4 sm:$0xff]   ;;  %s1470_s28 = scalar_lea.vmem %s1492_s3, %s1329_s16 }
  0x11   : > { %1152 = vmatprep.subr.bf16.mxu0 %v1216_v0  ;;  %v1218_v2 = vld [vmem:[%s1341_s22] sm:$0xff]   ;;  %v1219_v3 = vld [vmem:[%s1341_s22 + $0x8] ss:$0 sps:$4 sm:$0xff]   ;;  %v1224_v44 = vld [vmem:[%s1341_s22 + $0xc] sm:$0xff]  }
  0x12   : > { %1153 = vmatpush3.bf16.xpose.msra.mxu0 %v1216_v0  ;;  %1156 = vmatprep.mubr.bf16.mxu0 %v1218_v2  ;;  %v1220_v26 = vld [vmem:[%s1396_s25 + $0x8] ss:$0 sps:$4 sm:$0xff]   ;;  %v1221_v27 = vld [vmem:[%s1396_s25] sm:$0xff]   ;;  %v1223_v45 = vld [vmem:[%s1335_s19 + $0xc] sm:$0xff]  }
  0x13   : > { %1154 = vmatprep.subr.bf16.mxu0 %v1217_v1  ;;  %1184 = vmatprep.subr.msk.bf16.mxu1 %vm523_vm2, %v1220_v26  ;;  %v525_v28 = vsel %vm523_vm2, %v1220_v26, 0  ;;  %v1225_v46 = vld [vmem:[%s1341_s22 + $0x14] ss:$0 sps:$4 sm:$0xff]  }
  0x14   : > { %v1359_v14 = vld [vmem:[#allocation2 + $0x10] sm:$0xff]  ;;  %v1361_v16 = vld [vmem:[#allocation2] sm:$0xff]  ;;  %1161 = vmatpush3.bf16.msra.mxu1 %v525_v28 }
  0x15   : > { %v1374_v21 = vld [vmem:[#allocation2 + $0x8] sm:$0xff]  ;;  %1162 = vmatprep.subr.bf16.mxu1 %v1221_v27 }
  0x18   : > { %1163 = vmatpush3.bf16.msra.mxu1 %v1221_v27 }
  0x19   : > { %1168 = vmatprep.subr.bf16.mxu1 %v1222_v29 }
  0x1a   : > { %1155 = vmatpush3.bf16.xpose.msra.mxu0 %v1217_v1 }
  0x21   : > { %1157 = vmatmul.mubr.bf16.vlgmr.msra.gmra.mxu0 %v1219_v3 }
  0xe1   : > { %v1158_v5 = vpop.f32.mrf.mxu0 }
  0xe2   : > { %v425_v6 = vsel %vm418_vm1, %v1158_v5, -inf }
  0xe3   : > { %426 = vmax.xlane.f32.xlu1 %v425_v6  ;;  %v401_v7 = vpop.f32.mrf.mxu0  ;;  %v1227_v6 = vld [vmem:[%s1396_s25 + $0xc] sm:$0xff]  }
  0xe4   : > { %v419_v8 = vsel %vm418_vm1, %v401_v7, -inf }
  0xe5   : > { %420 = vmax.xlane.f32.xlu0 %v419_v8  ;;  %v1159_v9 = vpop.f32.mrf.mxu0 }
  0xe7   : > { %v404_v10 = vpop.f32.mrf.mxu0 }
  0xe8   : > { %v422_v11 = vsel %vm418_vm1, %v404_v10, -inf }
  0xe9   : > { %423 = vmax.xlane.f32.xlu0 %v422_v11 }
 0x16c   : > { %v427_v15 = vpop.xlane.xlu1 %426 }
 0x16d   : > { %v1364_v17 = vmax.f32 %v1359_v14, %v427_v15 }
 0x16e   : > { %v421_v18 = vpop.xlane.xlu0 %420 }
 0x16f   : > { %v433_v19 = vsub.f32 %v1359_v14, %v1364_v17  ;;  %583 = vst.msk [vmem:[#allocation2 + $0x10] sm:$0xff] %vm328_vm0, %v1364_v17  ;;  %v1371_v20 = vmax.f32 %v1361_v16, %v421_v18 }
 0x170   : > { %629 = vst.msk [vmem:[#allocation2 + $0x10] sm:$0xff] %vm328_vm0, %v1288_v4 }
 0x171   : > { %v431_v22 = vsub.f32 %v1361_v16, %v1371_v20  ;;  %581 = vst.msk [vmem:[#allocation2] sm:$0xff] %vm328_vm0, %v1371_v20  ;;  %442 = vperm.xlu1 %1214, %v1371_v20  }
 0x172   : > { %627 = vst.msk [vmem:[#allocation2] sm:$0xff] %vm328_vm0, %v1288_v4  ;;  %v424_v23 = vpop.xlane.xlu0 %423 }
 0x173   : > { %v1383_v24 = vmax.f32 %v1374_v21, %v424_v23  ;;  %v434_v8 = vmul.f32 1.442695, %v431_v22 }
 0x175   : > { %v432_v25 = vsub.f32 %v1374_v21, %v1383_v24  ;;  %582 = vst.msk [vmem:[#allocation2 + $0x8] sm:$0xff] %vm328_vm0, %v1383_v24  ;;  %452 = vperm.xlu1 %1214, %v1364_v17   ;;  %447 = vperm.xlu0 %1215, %v1383_v24   ;;  %v464_v21 = vld [vmem:[#allocation3] sm:$0xff]  ;;  %v466_v17 = vld [vmem:[#allocation3 + $0x10] sm:$0xff] }
 0x176   : > { %628 = vst.msk [vmem:[#allocation2 + $0x8] sm:$0xff] %vm328_vm0, %v1288_v4  ;;  %v1226_v4 = vld [vmem:[%s1396_s25 + $0x14] ss:$0 sps:$4 sm:$0xff]  }
 0x177   : > { %v721_v61 = vld [vmem:[#allocation2 + $0x10] sm:$0xff]  ;;  %1185 = vmatprep.subr.msk.bf16.mxu0 %vm523_vm2, %v1226_v4 }
 0x179   : > { %v719_v58 = vld [vmem:[#allocation2] sm:$0xff] }
 0x17d   : > { %v1417_v62 = vld [vmem:[#allocation2 + $0x8] sm:$0xff] }
 0x1ec   : > { %v443_v30 = vpop.permute.xlu1 %442 }
 0x1ed   : > { %v455_v31 = vsub.f32 %v401_v7, %v443_v30 }
 0x1ef   : > { %v458_v32 = vmul.f32 1.442695, %v455_v31 }
 0x1f0   : > { %v453_v33 = vpop.permute.xlu1 %452  ;;  %v448_v34 = vpop.permute.xlu0 %447 }
 0x1f1   : > { %v457_v35 = vsub.f32 %v1158_v5, %v453_v33  ;;  %v456_v36 = vsub.f32 %v404_v10, %v448_v34  ;;  %1228 = vpow2.f32 %v458_v32  ;;  %v827_v5 = vsel %vm523_vm2, %v1226_v4, 0 }
 0x1f2   : > { %1177 = vmatpush3.bf16.msra.mxu0 %v827_v5 }
 0x1f3   : > { %v462_v37 = vmul.f32 1.442695, %v457_v35  ;;  %v460_v38 = vmul.f32 1.442695, %v456_v36  ;;  %1178 = vmatprep.subr.bf16.mxu0 %v1227_v6 }
 0x1f5   : > { %1230 = vpow2.f32 %v462_v37 }
 0x1f6   : > { %1232 = vpow2.f32 %v460_v38  ;;  %1179 = vmatpush3.bf16.msra.mxu0 %v1227_v6 }
 0x1f7   : > { %1234 = vpow2.f32 %v434_v8 }
 0x1fe   : > { %v1229_v39 = vpop.eup %1228 }
 0x1ff   : > { %v470_v10 = vsel %vm418_vm1, %v1229_v39, 0.0 }
 0x202   : > { %v1231_v40 = vpop.eup %1230 }
 0x203   : > { %v1233_v41 = vpop.eup %1232  ;;  %v507_v42 = vpack.c.bf16 %v1231_v40, %v1231_v40  ;;  %v476_v15 = vsel %vm418_vm1, %v1231_v40, 0.0 }
 0x204   : > { %v506_v43 = vpack.c.bf16 %v1233_v41, %v1229_v39  ;;  %v473_v7 = vsel %vm418_vm1, %v1233_v41, 0.0  ;;  %v1235_v23 = vpop.eup %1234  ;;  %v436_v41 = vmul.f32 1.442695, %v432_v25 }
 0x205   : > { %v467_v25 = vmul.f32 %v1235_v23, %v464_v21 }
 0x206   : > { %1164 = vmatprep.mubr.msk.bf16.mxu1 %vm418_vm1, %v506_v43  ;;  %v438_v43 = vmul.f32 1.442695, %v433_v19 }
 0x207   : > { %1165 = vmatmul.mubr.msk.bf16.vlgmr.msra.gmra.mxu1 %vm418_vm1, %v507_v42 }
 0x208   : > { %1169 = vmatpush3.bf16.xpose.msra.mxu1 %v1222_v29  ;;  %1172 = vmatprep.mubr.bf16.mxu1 %v1224_v44 }
 0x209   : > { %1170 = vmatprep.subr.bf16.mxu1 %v1223_v45 }
 0x210   : > { %1171 = vmatpush3.bf16.xpose.msra.mxu1 %v1223_v45 }
 0x217   : > { %1173 = vmatmul.mubr.bf16.vlgmr.msra.gmra.mxu1 %v1225_v46  ;;  %v465_v46 = vld [vmem:[#allocation3 + $0x8] sm:$0xff] }
 0x2c7   : > { %v1408_v47 = vpop.f32.mrf.mxu1 }
 0x2c9   : > { %v1410_v48 = vpop.f32.mrf.mxu1 }
 0x2cb   : > { %v1167_v49 = vpop.f32.mrf.mxu1 }
 0x2cd   : > { %v1412_v50 = vpop.f32.mrf.mxu1 }
 0x2d7   : > { %v1174_v51 = vpop.f32.mrf.mxu1 }
 0x2d8   : > { %v728_v56 = vsel %vm418_vm1, %v1174_v51, -inf }
 0x2d9   : > { %v705_v52 = vpop.f32.mrf.mxu1 }
 0x2da   : > { %v722_v53 = vsel %vm418_vm1, %v705_v52, -inf }
 0x2db   : > { %723 = vmax.xlane.f32.xlu1 %v722_v53  ;;  %v1175_v54 = vpop.f32.mrf.mxu1 }
 0x2dd   : > { %v708_v55 = vpop.f32.mrf.mxu1 }
 0x2de   : > { %v725_v57 = vsel %vm418_vm1, %v708_v55, -inf }
 0x2df   : > { %729 = vmax.xlane.f32.xlu1 %v728_v56  ;;  %726 = vmax.xlane.f32.xlu0 %v725_v57 }
 0x364   : > { %v724_v59 = vpop.xlane.xlu1 %723 }
 0x365   : > { %v731_v60 = vmax.f32 %v719_v58, %v724_v59 }
 0x367   : > { %883 = vst.msk [vmem:[#allocation2] sm:$0xff] %vm328_vm0, %v731_v60  ;;  %745 = vperm.xlu1 %1214, %v731_v60   ;;  %v734_v9 = vsub.f32 %v719_v58, %v731_v60 }
 0x368   : > { %v730_v63 = vpop.xlane.xlu1 %729  ;;  %v727_v0 = vpop.xlane.xlu0 %726 }
 0x369   : > { %v733_v1 = vmax.f32 %v721_v61, %v730_v63  ;;  %v732_v2 = vmax.f32 %v1417_v62, %v727_v0  ;;  %v737_v11 = vmul.f32 1.442695, %v734_v9 }
 0x36b   : > { %885 = vst.msk [vmem:[#allocation2 + $0x10] sm:$0xff] %vm328_vm0, %v733_v1  ;;  %v735_v3 = vsub.f32 %v1417_v62, %v732_v2  ;;  %884 = vst.msk [vmem:[#allocation2 + $0x8] sm:$0xff] %vm328_vm0, %v732_v2  ;;  %755 = vperm.xlu0 %1215, %v733_v1   ;;  %750 = vperm.xlu1 %1214, %v732_v2   ;;  %v736_v12 = vsub.f32 %v721_v61, %v733_v1  ;;  %1236 = vpow2.f32 %v737_v11 }
 0x36d   : > { %v741_v18 = vmul.f32 1.442695, %v736_v12  ;;  %v739_v44 = vmul.f32 1.442695, %v735_v3 }
 0x36f   : > { %1238 = vpow2.f32 %v741_v18 }
 0x378   : > { %v1434_v26 = vpop.eup %1236 }
 0x37c   : > { %v1437_v16 = vpop.eup %1238 }
 0x38a   : > { %474 = vadd.xlane.f32.xlu0 %v473_v7 }
 0x38f   : > { %471 = vadd.xlane.f32.xlu1 %v470_v10 }
 0x393   : > { %477 = vadd.xlane.f32.xlu1 %v476_v15 }
 0x3a0   : > { %490 = vperm.xlu0 %1215, %v1235_v23  }
 0x3a4   : > { %793 = vperm.xlu0 %1215, %v1434_v26  }
 0x3a8   : > { %803 = vperm.xlu0 %1215, %v1437_v16  }
 0x3e2   : > { %v746_v20 = vpop.permute.xlu1 %745 }
 0x3e3   : > { %v758_v22 = vsub.f32 %v705_v52, %v746_v20 }
 0x3e5   : > { %v761_v27 = vmul.f32 1.442695, %v758_v22 }
 0x3e6   : > { %v756_v28 = vpop.permute.xlu0 %755  ;;  %v751_v29 = vpop.permute.xlu1 %750 }
 0x3e7   : > { %1240 = vpow2.f32 %v761_v27  ;;  %v760_v30 = vsub.f32 %v1174_v51, %v756_v28  ;;  %v759_v31 = vsub.f32 %v708_v55, %v751_v29 }
 0x3e9   : > { %v765_v32 = vmul.f32 1.442695, %v760_v30  ;;  %v763_v33 = vmul.f32 1.442695, %v759_v31 }
 0x3eb   : > { %1242 = vpow2.f32 %v765_v32 }
 0x3ec   : > { %1244 = vpow2.f32 %v763_v33 }
 0x3ed   : > { %1246 = vpow2.f32 %v436_v41 }
 0x3ee   : > { %1248 = vpow2.f32 %v438_v43 }
 0x3ef   : > { %1250 = vpow2.f32 %v739_v44 }
 0x3f4   : > { %v1241_v34 = vpop.eup %1240 }
 0x3f5   : > { %v773_v35 = vsel %vm418_vm1, %v1241_v34, 0.0 }
 0x3f6   : > { %774 = vadd.xlane.f32.xlu1 %v773_v35 }
 0x3f8   : > { %v1243_v36 = vpop.eup %1242 }
 0x3f9   : > { %v1245_v37 = vpop.eup %1244  ;;  %v810_v38 = vpack.c.bf16 %v1243_v36, %v1243_v36  ;;  %v779_v42 = vsel %vm418_vm1, %v1243_v36, 0.0 }
 0x3fa   : > { %v776_v39 = vsel %vm418_vm1, %v1245_v37, 0.0  ;;  %v809_v40 = vpack.c.bf16 %v1245_v37, %v1241_v34  ;;  %v1247_v45 = vpop.eup %1246 }
 0x3fb   : > { %777 = vadd.xlane.f32.xlu1 %v776_v39  ;;  %v468_v49 = vmul.f32 %v1247_v45, %v465_v46  ;;  %v1249_v51 = vpop.eup %1248 }
 0x3fc   : > { %1180 = vmatprep.mubr.msk.bf16.mxu0 %vm418_vm1, %v809_v40  ;;  %v1251_v24 = vpop.eup %1250  ;;  %v469_v54 = vmul.f32 %v1249_v51, %v466_v17 }
 0x3fd   : > { %1181 = vmatmul.mubr.msk.bf16.vlgmr.msra.gmra.mxu0 %vm418_vm1, %v810_v38 }
 0x3ff   : > { %780 = vadd.xlane.f32.xlu1 %v779_v42 }
 0x410   : > { %495 = vperm.xlu1 %1214, %v1247_v45  }
 0x413   : > { %v475_v52 = vpop.xlane.xlu0 %474 }
 0x414   : > { %v480_v53 = vadd.f32 %v475_v52, %v468_v49  ;;  %500 = vperm.xlu1 %1214, %v1249_v51  }
 0x416   : > { %483 = vst.msk [vmem:[#allocation3 + $0x8] sm:$0xff] %vm328_vm0, %v480_v53 }
 0x418   : > { %798 = vperm.xlu1 %1214, %v1251_v24   ;;  %v472_v14 = vpop.xlane.xlu1 %471 }
 0x419   : > { %v479_v19 = vadd.f32 %v472_v14, %v467_v25 }
 0x41b   : > { %482 = vst.msk [vmem:[#allocation3] sm:$0xff] %vm328_vm0, %v479_v19  ;;  %v491_v18 = vpop.permute.xlu0 %490 }
 0x41c   : > { %v478_v55 = vpop.xlane.xlu1 %477  ;;  %v503_v30 = vmul.f32 0.0, %v491_v18 }
 0x41d   : > { %v481_v56 = vadd.f32 %v478_v55, %v469_v54  ;;  %v588_v57 = vld [vmem:[#allocation3 + $0x8] sm:$0xff] }
 0x41e   : > { %1252 = vrcp.f32 %v588_v57  ;;  %631 = vst.msk [vmem:[#allocation3 + $0x8] sm:$0xff] %vm328_vm0, %v1290_v13  ;;  %v575_v36 = vadd.f32 %v1410_v48, %v503_v30 }
 0x41f   : > { %484 = vst.msk [vmem:[#allocation3 + $0x10] sm:$0xff] %vm328_vm0, %v481_v56  ;;  %v794_v20 = vpop.permute.xlu0 %793 }
 0x420   : > { %v806_v44 = vmul.f32 0.0, %v794_v20 }
 0x422   : > { %v587_v58 = vld [vmem:[#allocation3] sm:$0xff] }
 0x423   : > { %1254 = vrcp.f32 %v587_v58  ;;  %630 = vst.msk [vmem:[#allocation3] sm:$0xff] %vm328_vm0, %v1290_v13  ;;  %v804_v28 = vpop.permute.xlu0 %803 }
 0x424   : > { %v808_v25 = vmul.f32 0.0, %v804_v28 }
 0x425   : > { %v768_v3 = vld [vmem:[#allocation3 + $0x8] sm:$0xff] }
 0x426   : > { %v589_v59 = vld [vmem:[#allocation3 + $0x10] sm:$0xff]  ;;  %v771_v4 = vmul.f32 %v1251_v24, %v768_v3 }
 0x427   : > { %1256 = vrcp.f32 %v589_v59  ;;  %632 = vst.msk [vmem:[#allocation3 + $0x10] sm:$0xff] %vm328_vm0, %v1290_v13 }
 0x42a   : > { %v767_v63 = vld [vmem:[#allocation3] sm:$0xff] }
 0x42b   : > { %v1253_v60 = vpop.eup %1252  ;;  %v770_v0 = vmul.f32 %v1434_v26, %v767_v63 }
 0x42c   : > { %600 = vperm.xlu0 %1215, %v1253_v60  }
 0x42e   : > { %v769_v6 = vld [vmem:[#allocation3 + $0x10] sm:$0xff] }
 0x42f   : > { %v772_v13 = vmul.f32 %v1437_v16, %v769_v6 }
 0x430   : > { %v1255_v61 = vpop.eup %1254 }
 0x431   : > { %595 = vperm.xlu1 %1214, %v1255_v61  }
 0x434   : > { %v1257_v62 = vpop.eup %1256 }
 0x435   : > { %605 = vperm.xlu1 %1214, %v1257_v62  }
 0x47f   : > { %v775_v1 = vpop.xlane.xlu1 %774 }
 0x480   : > { %v782_v2 = vadd.f32 %v775_v1, %v770_v0 }
 0x482   : > { %785 = vst.msk [vmem:[#allocation3] sm:$0xff] %vm328_vm0, %v782_v2 }
 0x484   : > { %v778_v5 = vpop.xlane.xlu1 %777 }
 0x485   : > { %v783_v7 = vadd.f32 %v778_v5, %v771_v4 }
 0x487   : > { %786 = vst.msk [vmem:[#allocation3 + $0x8] sm:$0xff] %vm328_vm0, %v783_v7 }
 0x488   : > { %v781_v8 = vpop.xlane.xlu1 %780 }
 0x489   : > { %v784_v9 = vadd.f32 %v781_v8, %v772_v13  ;;  %v889_v10 = vld [vmem:[#allocation3] sm:$0xff] }
 0x48a   : > { %1258 = vrcp.f32 %v889_v10 }
 0x48b   : > { %787 = vst.msk [vmem:[#allocation3 + $0x10] sm:$0xff] %vm328_vm0, %v784_v9 }
 0x48c   : > { %v496_v26 = vpop.permute.xlu1 %495 }
 0x48d   : > { %v504_v16 = vmul.f32 0.0, %v496_v26 }
 0x48e   : > { %v890_v11 = vld [vmem:[#allocation3 + $0x8] sm:$0xff] }
 0x48f   : > { %1260 = vrcp.f32 %v890_v11  ;;  %v576_v29 = vadd.f32 %v1412_v50, %v504_v16 }
 0x490   : > { %v501_v27 = vpop.permute.xlu1 %500 }
 0x491   : > { %v505_v35 = vmul.f32 0.0, %v501_v27 }
 0x492   : > { %v891_v12 = vld [vmem:[#allocation3 + $0x10] sm:$0xff] }
 0x493   : > { %1262 = vrcp.f32 %v891_v12  ;;  %v577_v39 = vadd.f32 %v1408_v47, %v505_v35 }
 0x494   : > { %v799_v32 = vpop.permute.xlu1 %798 }
 0x495   : > { %v807_v53 = vmul.f32 0.0, %v799_v32 }
 0x497   : > { %v1259_v15 = vpop.eup %1258 }
 0x498   : > { %897 = vperm.xlu0 %1215, %v1259_v15  }
 0x49c   : > { %v1261_v23 = vpop.eup %1260 }
 0x49d   : > { %902 = vperm.xlu1 %1214, %v1261_v23  }
 0x4a0   : > { %v1263_v22 = vpop.eup %1262 }
 0x4a1   : > { %907 = vperm.xlu0 %1215, %v1263_v22  }
 0x4a7   : > { %v601_v31 = vpop.permute.xlu0 %600 }
 0x4a8   : > { %v609_v33 = vmul.f32 %v601_v31, %v576_v29 }
 0x4aa   : > { %v1131_v34 = vpack.c.bf16 %v609_v33, %v609_v33 }
 0x4ac   : > { %625 = vst [vmem:[%s1470_s28 + $0x8] sm:$0xf] %v1131_v34  ;;  %v596_v37 = vpop.permute.xlu1 %595 }
 0x4ad   : > { %v608_v38 = vmul.f32 %v596_v37, %v575_v36 }
 0x4af   : > { %v1130_v50 = vpack.c.bf16 %v608_v38, %v608_v38 }
 0x4b0   : > { %v606_v40 = vpop.permute.xlu1 %605 }
 0x4b1   : > { %624 = vst [vmem:[%s1470_s28] sm:$0xf] %v1130_v50  ;;  %v610_v41 = vmul.f32 %v606_v40, %v577_v39 }
 0x4b3   : > { %v1132_v42 = vpack.c.bf16 %v610_v41, %v610_v41 }
 0x4b5   : > { %626 = vst [vmem:[%s1470_s28 + $0x10] sm:$0xf] %v1132_v42 }
 0x4bd   : > { %v1182_v43 = vpop.f32.mrf.mxu0 }
 0x4be   : > { %v879_v17 = vadd.f32 %v1182_v43, %v808_v25 }
 0x4bf   : > { %v863_v45 = vpop.f32.mrf.mxu0 }
 0x4c0   : > { %v877_v46 = vadd.f32 %v863_v45, %v806_v44 }
 0x4c1   : > { %v1183_v49 = vpop.f32.mrf.mxu0 }
 0x4c3   : > { %v866_v48 = vpop.f32.mrf.mxu0 }
 0x4c4   : > { %v878_v24 = vadd.f32 %v866_v48, %v807_v53 }
 0x513   : > { %v898_v51 = vpop.permute.xlu0 %897 }
 0x514   : > { %v910_v52 = vmul.f32 %v898_v51, %v877_v46 }
 0x516   : > { %v1133_v21 = vpack.c.bf16 %v910_v52, %v910_v52 }
 0x518   : > { %926 = vst [vmem:[%s1470_s28 + $0x4] sm:$0xf] %v1133_v21  ;;  %v903_v47 = vpop.permute.xlu1 %902 }
 0x519   : > { %v911_v14 = vmul.f32 %v903_v47, %v878_v24 }
 0x51b   : > { %v1134_v19 = vpack.c.bf16 %v911_v14, %v911_v14 }
 0x51c   : > { %v908_v54 = vpop.permute.xlu0 %907 }
 0x51d   : > { %927 = vst [vmem:[%s1470_s28 + $0xc] sm:$0xf] %v1134_v19  ;;  %v912_v55 = vmul.f32 %v908_v54, %v879_v17 }
 0x51f   : > { %v1135_v56 = vpack.c.bf16 %v912_v55, %v912_v55 }
 0x521   : > { %928 = vst [vmem:[%s1470_s28 + $0x14] sm:$0xf] %v1135_v56 }
 0x522 PF: > { %s13_s14 = sadd.s32 1, %s1286_s14   ;;  %s1493_s12 = smov %s1282_s13 }
 0x523   : > { %p10_p5 = scmp.ge.s32.totalorder %s13_s14, 4   ;;  %s1494_s13 = smov %s1496_s15 }
 0x525   :  { %12 = sbr.rel (!%p10_p5) target bundleno = 2 (0x2), region = 71 }

// kernel: flux_forward.47
= control target key start
LH: loop header
LB: loop body
LE: loop exit
PB: predicated region body
PF: predicated region fallthrough
CT: control target
= control target key end

     0   :  { %s1164_s18 = smov 0   ;;  %s1166_s19 = smov 0   ;;  %s1315_s0 = inlined_call_operand.vmem [shape: bf16[2,16,256], index: 0, kind: input, shape index: {}]   ;;  %s1316_s1 = inlined_call_operand.vmem [shape: bf16[256,256], index: 1, kind: input, shape index: {}]   ;;  %s1317_s2 = inlined_call_operand.vmem [shape: f32[1,256], index: 2, kind: input, shape index: {}]   ;;  %s1318_s3 = inlined_call_operand.vmem [shape: f32[2,1,256], index: 3, kind: input, shape index: {}]   ;;  %s1319_s4 = inlined_call_operand.vmem [shape: bf16[2,16,256], index: 4, kind: input, shape index: {}]   ;;  %s1320_s5 = inlined_call_operand.vmem [shape: bf16[2,16,256], index: 5, kind: output, shape index: {}]  }
   0x1   :  { %s1168_s20 = smov 0  }
   0x2 LB: > { %s41_s21 = sadd.s32 1, %s1128_s19  ;;  %p984_p0 = scmp.ge.s32.totalorder %s1132_s20, 1  ;;  %s1132_s20 = sphi %s1168_s20, %s15_s20   ;;  %s1128_s19 = sphi %s1166_s19, %s1322_s19   ;;  %s1124_s18 = sphi %s1164_s18, %s1321_s18  }
   0x3   : > { %p43_p1 = scmp.ge.s32.totalorder %s41_s21, 2  ;;  %p302_p2 = scmp.lt.s32.totalorder %s1132_s20, 3 }
   0x5   : > { %s1324_s21 = smov (%p43_p1, %s41_s21), 0  ;;  %p303_p3 = pnand %p984_p0, %p302_p2 }
   0x6   : > { %p386_p4 = scmp.lt.s32.totalorder (!%p303_p3), %s1124_s18, 1 }
   0x7   : > { %306 = sbr.rel (%p303_p3) target bundleno = 285 (0x11d), region = 40 }
   0xc   : > { %v1059_v0 = vld [vmem:[%s1316_s1 + $0x74] ss:$8 sps:$4 sm:$0xff]   ;;  %v1061_v1 = vld [vmem:[%s1316_s1 + $0x70] ss:$8 sps:$4 sm:$0xff]   ;;  %v1062_v2 = vld [vmem:[%s1316_s1 + $0x64] ss:$8 sps:$4 sm:$0xff]   ;;  %v734_v34 = vlaneseq }
   0xd   : > { %674 = vmatprep.subr.bf16.mxu0 %v1059_v0  ;;  %v1064_v3 = vld [vmem:[%s1316_s1 + $0x60] ss:$8 sps:$4 sm:$0xff]   ;;  %v1065_v4 = vld [vmem:[%s1316_s1 + $0x54] ss:$8 sps:$4 sm:$0xff]   ;;  %v1067_v5 = vld [vmem:[%s1316_s1 + $0x50] ss:$8 sps:$4 sm:$0xff]  }
   0xe   : > { %675 = vmatpush1.bf16.msra.mxu0 %v1061_v1  ;;  %v1068_v6 = vld [vmem:[%s1316_s1 + $0x44] ss:$8 sps:$4 sm:$0xff]   ;;  %v1070_v7 = vld [vmem:[%s1316_s1 + $0x40] ss:$8 sps:$4 sm:$0xff]   ;;  %v1071_v8 = vld [vmem:[%s1316_s1 + $0x34] ss:$8 sps:$4 sm:$0xff]  }
   0xf   : > { %676 = vmatprep.subr.bf16.mxu0 %v1062_v2  ;;  %s1326_s18 = smov (!%p386_p4, %s1124_s18), 1  ;;  %v1073_v9 = vld [vmem:[%s1316_s1 + $0x30] ss:$8 sps:$4 sm:$0xff]   ;;  %v1074_v10 = vld [vmem:[%s1316_s1 + $0x24] ss:$8 sps:$4 sm:$0xff]   ;;  %v735_v35 = vshrl.u32 %v734_v34, 7 }
  0x10   : > { %s1218_s23 = sshll.u32 %s1326_s18, 4  ;;  %v1076_v11 = vld [vmem:[%s1316_s1 + $0x20] ss:$8 sps:$4 sm:$0xff]   ;;  %v1077_v12 = vld [vmem:[%s1316_s1 + $0x14] ss:$8 sps:$4 sm:$0xff]   ;;  %s987_s6 = sshll.u32 %s1326_s18, 1 }
  0x11   : > { %s1227_s28 = scalar_lea.vmem %s1315_s0, %s1218_s23  ;;  %v1079_v14 = vld [vmem:[%s1316_s1 + $0x10] ss:$8 sps:$4 sm:$0xff]   ;;  %v1080_v15 = vld [vmem:[%s1316_s1 + $0x4] ss:$8 sps:$4 sm:$0xff]   ;;  %v1082_v16 = vld [vmem:[%s1316_s1] ss:$8 sps:$4 sm:$0xff]   ;;  %s424_s9 = scalar_lea.vmem %s1318_s3, %s987_s6 }
  0x12   : > { %677 = vmatpush1.bf16.msra.mxu0 %v1064_v3  ;;  %v1109_v13 = vld [vmem:[%s1227_s28 + $0x4] ss:$8 sps:$4 sm:$0xff]   ;;  %v1083_v17 = vld [vmem:[%s1316_s1 + $0xf4] ss:$8 sps:$4 sm:$0xff]   ;;  %v1085_v18 = vld [vmem:[%s1316_s1 + $0xf0] ss:$8 sps:$4 sm:$0xff]   ;;  %s439_s14 = scalar_lea.vmem %s1319_s4, %s1218_s23  ;;  %s455_s15 = scalar_lea.vmem %s1320_s5, %s1218_s23 }
  0x13   : > { %678 = vmatprep.subr.bf16.mxu0 %v1065_v4  ;;  %706 = vmatprep.mubr.bf16.mxu0 %v1109_v13  ;;  %v1086_v19 = vld [vmem:[%s1316_s1 + $0xe4] ss:$8 sps:$4 sm:$0xff]   ;;  %v1088_v20 = vld [vmem:[%s1316_s1 + $0xe0] ss:$8 sps:$4 sm:$0xff]   ;;  %v1089_v21 = vld [vmem:[%s1316_s1 + $0xd4] ss:$8 sps:$4 sm:$0xff]  }
  0x14   : > { %v1091_v22 = vld [vmem:[%s1316_s1 + $0xd0] ss:$8 sps:$4 sm:$0xff]   ;;  %v1092_v23 = vld [vmem:[%s1316_s1 + $0xc4] ss:$8 sps:$4 sm:$0xff]   ;;  %v1094_v24 = vld [vmem:[%s1316_s1 + $0xc0] ss:$8 sps:$4 sm:$0xff]  }
  0x15   : > { %v1095_v25 = vld [vmem:[%s1316_s1 + $0xb4] ss:$8 sps:$4 sm:$0xff]   ;;  %v1097_v26 = vld [vmem:[%s1316_s1 + $0xb0] ss:$8 sps:$4 sm:$0xff]   ;;  %v1098_v27 = vld [vmem:[%s1316_s1 + $0xa4] ss:$8 sps:$4 sm:$0xff]  }
  0x16   : > { %679 = vmatpush1.bf16.msra.mxu0 %v1067_v5  ;;  %v1100_v28 = vld [vmem:[%s1316_s1 + $0xa0] ss:$8 sps:$4 sm:$0xff]   ;;  %v1101_v29 = vld [vmem:[%s1316_s1 + $0x94] ss:$8 sps:$4 sm:$0xff]   ;;  %v1103_v30 = vld [vmem:[%s1316_s1 + $0x90] ss:$8 sps:$4 sm:$0xff]  }
  0x17   : > { %680 = vmatprep.subr.bf16.mxu0 %v1068_v6  ;;  %v1104_v31 = vld [vmem:[%s1316_s1 + $0x84] ss:$8 sps:$4 sm:$0xff]   ;;  %v1106_v32 = vld [vmem:[%s1316_s1 + $0x80] ss:$8 sps:$4 sm:$0xff]   ;;  %v736_v36 = vsub.s32 0, %v735_v35  ;;  %v740_v38 = vsub.s32 1, %v735_v35 }
  0x18   : > { %v1107_v33 = vld [vmem:[%s1227_s28] ss:$8 sps:$4 sm:$0xff]  }
  0x19   : > { %v732_v37 = vld [vmem:[%s1317_s2] sm:$0x3]  ;;  %v749_v49 = vld [vmem:[%s439_s14 + $0x8] sm:$0xff] }
  0x1a   : > { %681 = vmatpush1.bf16.msra.mxu0 %v1070_v7  ;;  %v754_v39 = vld [vmem:[%s424_s9] sm:$0x3]  ;;  %v737_v40 = vrot.slane %v732_v37, %v736_v36  ;;  %v741_v43 = vrot.slane %v732_v37, %v740_v38  ;;  %v752_v57 = vunpack.c.l.bf16 %v749_v49  ;;  %v753_v62 = vunpack.c.h.bf16 %v749_v49 }
  0x1b   : > { %682 = vmatprep.subr.bf16.mxu0 %v1071_v8  ;;  %v748_v41 = vld [vmem:[%s439_s14] sm:$0xff]  ;;  %v759_v42 = vrot.slane %v754_v39, %v736_v36  ;;  %v763_v47 = vrot.slane %v754_v39, %v740_v38 }
  0x1c   : > { %v750_v46 = vunpack.c.l.bf16 %v748_v41  ;;  %v751_v52 = vunpack.c.h.bf16 %v748_v41 }
  0x1e   : > { %683 = vmatpush1.bf16.msra.mxu0 %v1073_v9 }
  0x1f   : > { %684 = vmatprep.subr.bf16.mxu0 %v1074_v10 }
  0x22   : > { %685 = vmatpush1.bf16.msra.mxu0 %v1076_v11 }
  0x23   : > { %686 = vmatprep.subr.bf16.mxu0 %v1077_v12 }
  0x26   : > { %687 = vmatpush1.bf16.msra.mxu0 %v1079_v14 }
  0x27   : > { %688 = vmatprep.subr.bf16.mxu0 %v1080_v15 }
  0x2a   : > { %689 = vmatpush1.bf16.msra.mxu0 %v1082_v16 }
  0x2b   : > { %690 = vmatprep.subr.bf16.mxu0 %v1083_v17 }
  0x2e   : > { %691 = vmatpush2.bf16.msra.mxu0 %v1085_v18 }
  0x2f   : > { %692 = vmatprep.subr.bf16.mxu0 %v1086_v19 }
  0x32   : > { %693 = vmatpush2.bf16.msra.mxu0 %v1088_v20 }
  0x33   : > { %694 = vmatprep.subr.bf16.mxu0 %v1089_v21 }
  0x36   : > { %695 = vmatpush2.bf16.msra.mxu0 %v1091_v22 }
  0x37   : > { %696 = vmatprep.subr.bf16.mxu0 %v1092_v23 }
  0x3a   : > { %697 = vmatpush2.bf16.msra.mxu0 %v1094_v24 }
  0x3b   : > { %698 = vmatprep.subr.bf16.mxu0 %v1095_v25 }
  0x3e   : > { %699 = vmatpush2.bf16.msra.mxu0 %v1097_v26 }
  0x3f   : > { %700 = vmatprep.subr.bf16.mxu0 %v1098_v27 }
  0x42   : > { %701 = vmatpush2.bf16.msra.mxu0 %v1100_v28 }
  0x43   : > { %702 = vmatprep.subr.bf16.mxu0 %v1101_v29 }
  0x46   : > { %703 = vmatpush2.bf16.msra.mxu0 %v1103_v30 }
  0x47   : > { %704 = vmatprep.subr.bf16.mxu0 %v1104_v31 }
  0x4a   : > { %705 = vmatpush2.bf16.msra.mxu0 %v1106_v32 }
  0x4d   : > { %707 = vmatmul.mubr.bf16.vlgmr.msra.gmra.mxu0 %v1107_v33 }
 0x10d   : > { %v708_v44 = vpop.f32.mrf.mxu0 }
 0x10e   : > { %v744_v45 = vadd.f32 %v737_v40, %v708_v44 }
 0x10f   : > { %v710_v48 = vpop.f32.mrf.mxu0 }
 0x110   : > { %v766_v50 = vmul.f32 %v759_v42, %v744_v45  ;;  %v745_v51 = vadd.f32 %v741_v43, %v710_v48 }
 0x111   : > { %v712_v53 = vpop.f32.mrf.mxu0 }
 0x112   : > { %v770_v54 = vadd.f32 %v766_v50, %v750_v46  ;;  %v767_v55 = vmul.f32 %v763_v47, %v745_v51  ;;  %v746_v56 = vadd.f32 %v737_v40, %v712_v53 }
 0x113   : > { %v714_v58 = vpop.f32.mrf.mxu0 }
 0x114   : > { %v771_v59 = vadd.f32 %v767_v55, %v751_v52  ;;  %v768_v60 = vmul.f32 %v759_v42, %v746_v56  ;;  %v747_v61 = vadd.f32 %v741_v43, %v714_v58 }
 0x116   : > { %v1033_v63 = vpack.c.bf16 %v771_v59, %v770_v54  ;;  %v772_v0 = vadd.f32 %v768_v60, %v752_v57  ;;  %v769_v1 = vmul.f32 %v763_v47, %v747_v61 }
 0x118   : > { %786 = vst [vmem:[%s455_s15] sm:$0xff] %v1033_v63  ;;  %v773_v2 = vadd.f32 %v769_v1, %v753_v62 }
 0x11a   : > { %v1034_v3 = vpack.c.bf16 %v773_v2, %v772_v0 }
 0x11c   : > { %787 = vst [vmem:[%s455_s15 + $0x8] sm:$0xff] %v1034_v3 }
 0x11d PF: > { %s15_s20 = sadd.s32 1, %s1132_s20   ;;  %s1321_s18 = smov %s1128_s19 }
 0x11e   : > { %p12_p5 = scmp.ge.s32.totalorder %s15_s20, 4   ;;  %s1322_s19 = smov %s1324_s21 }
 0x120   :  { %14 = sbr.rel (!%p12_p5) target bundleno = 2 (0x2), region = 90 }

// kernel: flux_forward.49
= control target key start
LH: loop header
LB: loop body
LE: loop exit
PB: predicated region body
PF: predicated region fallthrough
CT: control target
= control target key end

     0   :  { %s2028_s12 = smov 0   ;;  %s2030_s13 = smov 0   ;;  %s2586_s0 = inlined_call_operand.vmem [shape: bf16[2,16,256], index: 0, kind: input, shape index: {}]   ;;  %s2587_s1 = inlined_call_operand.vmem [shape: bf16[256,1024], index: 1, kind: input, shape index: {}]   ;;  %s2588_s2 = inlined_call_operand.vmem [shape: f32[1,1024], index: 2, kind: input, shape index: {}]   ;;  %s2589_s3 = inlined_call_operand.vmem [shape: bf16[2,16,1024], index: 3, kind: output, shape index: {}]  }
   0x1   :  { %s2032_s14 = smov 0  }
   0x2 LB: > { %s39_s15 = sadd.s32 1, %s2002_s13  ;;  %p1770_p0 = scmp.ge.s32.totalorder %s2006_s14, 1  ;;  %s2006_s14 = sphi %s2032_s14, %s13_s14   ;;  %s2002_s13 = sphi %s2030_s13, %s2591_s13   ;;  %s1998_s12 = sphi %s2028_s12, %s2590_s12  }
   0x3   : > { %p41_p1 = scmp.ge.s32.totalorder %s39_s15, 2  ;;  %p211_p2 = scmp.lt.s32.totalorder %s2006_s14, 3 }
   0x5   : > { %s2593_s15 = smov (%p41_p1, %s39_s15), 0  ;;  %p212_p3 = pnand %p1770_p0, %p211_p2 }
   0x6   : > { %p269_p4 = scmp.lt.s32.totalorder (!%p212_p3), %s1998_s12, 1 }
   0x7   : > { %215 = sbr.rel (%p212_p3) target bundleno = 378 (0x17a), region = 32 }
   0xc   : > { %v410_v0 = vld [vmem:[%s2587_s1 + $0x1c0] sm:$0xff]  ;;  %v411_v2 = vld [vmem:[%s2587_s1 + $0x1c8] sm:$0xff]  ;;  %s2595_s12 = smov (!%p269_p4, %s1998_s12), 1 }
   0xd   : > { %v414_v1 = vld [vmem:[%s2587_s1 + $0x1e0] sm:$0xff]  ;;  %v415_v4 = vld [vmem:[%s2587_s1 + $0x1e8] sm:$0xff]  ;;  %s1915_s18 = sshll.u32 %s2595_s12, 4  ;;  %s1916_s28 = sshll.u32 %s2595_s12, 6 }
   0xe   : > { %v1834_v3 = vcombine.high %v410_v0, %v414_v1  ;;  %v1833_v5 = vcombine.low %v410_v0, %v414_v1  ;;  %v402_v6 = vld [vmem:[%s2587_s1 + $0x180] sm:$0xff]  ;;  %v1836_v8 = vcombine.high %v411_v2, %v415_v4  ;;  %v1835_v9 = vcombine.low %v411_v2, %v415_v4  ;;  %v403_v11 = vld [vmem:[%s2587_s1 + $0x188] sm:$0xff]  ;;  %s2140_s29 = scalar_lea.vmem %s2586_s0, %s1915_s18 }
   0xf   : > { %v406_v7 = vld [vmem:[%s2587_s1 + $0x1a0] sm:$0xff]  ;;  %v407_v12 = vld [vmem:[%s2587_s1 + $0x1a8] sm:$0xff] }
  0x10   : > { %v1826_v10 = vcombine.high %v402_v6, %v406_v7  ;;  %v394_v13 = vld [vmem:[%s2587_s1 + $0x140] sm:$0xff]  ;;  %1132 = vmatprep.subr.bf16.mxu0 %v1834_v3  ;;  %v1828_v14 = vcombine.high %v403_v11, %v407_v12  ;;  %v395_v16 = vld [vmem:[%s2587_s1 + $0x148] sm:$0xff]  ;;  %1175 = vmatprep.subr.bf16.mxu1 %v1836_v8  ;;  %v1825_v18 = vcombine.low %v402_v6, %v406_v7 }
  0x11   : > { %v398_v15 = vld [vmem:[%s2587_s1 + $0x160] sm:$0xff]  ;;  %v399_v17 = vld [vmem:[%s2587_s1 + $0x168] sm:$0xff]  ;;  %1133 = vmatpush1.bf16.msra.mxu0 %v1833_v5  ;;  %1176 = vmatpush1.bf16.msra.mxu1 %v1835_v9  ;;  %v1827_v19 = vcombine.low %v403_v11, %v407_v12 }
  0x12   : > { %1134 = vmatprep.subr.bf16.mxu0 %v1826_v10  ;;  %v1818_v20 = vcombine.high %v394_v13, %v398_v15  ;;  %1177 = vmatprep.subr.bf16.mxu1 %v1828_v14  ;;  %v1820_v21 = vcombine.high %v395_v16, %v399_v17  ;;  %v386_v22 = vld [vmem:[%s2587_s1 + $0x100] sm:$0xff]  ;;  %v387_v24 = vld [vmem:[%s2587_s1 + $0x108] sm:$0xff]  ;;  %v1817_v26 = vcombine.low %v394_v13, %v398_v15 }
  0x13   : > { %v390_v23 = vld [vmem:[%s2587_s1 + $0x120] sm:$0xff]  ;;  %v391_v25 = vld [vmem:[%s2587_s1 + $0x128] sm:$0xff]  ;;  %v1819_v27 = vcombine.low %v395_v16, %v399_v17 }
  0x14   : > { %v1810_v28 = vcombine.high %v386_v22, %v390_v23  ;;  %v1812_v29 = vcombine.high %v387_v24, %v391_v25  ;;  %v378_v30 = vld [vmem:[%s2587_s1 + $0xc0] sm:$0xff]  ;;  %v379_v32 = vld [vmem:[%s2587_s1 + $0xc8] sm:$0xff]  ;;  %v1809_v34 = vcombine.low %v386_v22, %v390_v23  ;;  %v1811_v35 = vcombine.low %v387_v24, %v391_v25 }
  0x15   : > { %1135 = vmatpush1.bf16.msra.mxu0 %v1825_v18  ;;  %1178 = vmatpush1.bf16.msra.mxu1 %v1827_v19  ;;  %v382_v31 = vld [vmem:[%s2587_s1 + $0xe0] sm:$0xff]  ;;  %v383_v33 = vld [vmem:[%s2587_s1 + $0xe8] sm:$0xff] }
  0x16   : > { %1136 = vmatprep.subr.bf16.mxu0 %v1818_v20  ;;  %1179 = vmatprep.subr.bf16.mxu1 %v1820_v21  ;;  %v1802_v36 = vcombine.high %v378_v30, %v382_v31  ;;  %v1804_v37 = vcombine.high %v379_v32, %v383_v33  ;;  %v370_v38 = vld [vmem:[%s2587_s1 + $0x80] sm:$0xff]  ;;  %v371_v40 = vld [vmem:[%s2587_s1 + $0x88] sm:$0xff]  ;;  %v1801_v42 = vcombine.low %v378_v30, %v382_v31 }
  0x17   : > { %v374_v39 = vld [vmem:[%s2587_s1 + $0xa0] sm:$0xff]  ;;  %v375_v41 = vld [vmem:[%s2587_s1 + $0xa8] sm:$0xff]  ;;  %v1803_v43 = vcombine.low %v379_v32, %v383_v33 }
  0x18   : > { %v1794_v44 = vcombine.high %v370_v38, %v374_v39  ;;  %v1796_v45 = vcombine.high %v371_v40, %v375_v41  ;;  %v362_v46 = vld [vmem:[%s2587_s1 + $0x40] sm:$0xff]  ;;  %v363_v48 = vld [vmem:[%s2587_s1 + $0x48] sm:$0xff]  ;;  %v1793_v50 = vcombine.low %v370_v38, %v374_v39  ;;  %v1795_v51 = vcombine.low %v371_v40, %v375_v41 }
  0x19   : > { %1137 = vmatpush1.bf16.msra.mxu0 %v1817_v26  ;;  %1180 = vmatpush1.bf16.msra.mxu1 %v1819_v27  ;;  %v366_v47 = vld [vmem:[%s2587_s1 + $0x60] sm:$0xff]  ;;  %v367_v49 = vld [vmem:[%s2587_s1 + $0x68] sm:$0xff] }
  0x1a   : > { %1138 = vmatprep.subr.bf16.mxu0 %v1810_v28  ;;  %1181 = vmatprep.subr.bf16.mxu1 %v1812_v29  ;;  %v1786_v52 = vcombine.high %v362_v46, %v366_v47  ;;  %v1788_v53 = vcombine.high %v363_v48, %v367_v49  ;;  %v354_v54 = vld [vmem:[%s2587_s1] sm:$0xff]  ;;  %v355_v57 = vld [vmem:[%s2587_s1 + $0x8] sm:$0xff]  ;;  %v1785_v59 = vcombine.low %v362_v46, %v366_v47 }
  0x1b   : > { %v358_v55 = vld [vmem:[%s2587_s1 + $0x20] sm:$0xff]  ;;  %v359_v58 = vld [vmem:[%s2587_s1 + $0x28] sm:$0xff]  ;;  %v1787_v60 = vcombine.low %v363_v48, %v367_v49 }
  0x1c   : > { %v2149_v56 = vld [vmem:[%s2140_s29 + $0x4] ss:$8 sps:$4 sm:$0xff]   ;;  %v1778_v61 = vcombine.high %v354_v54, %v358_v55  ;;  %v1780_v62 = vcombine.high %v355_v57, %v359_v58  ;;  %v1777_v3 = vcombine.low %v354_v54, %v358_v55  ;;  %v1779_v4 = vcombine.low %v355_v57, %v359_v58 }
  0x1d   : > { %1139 = vmatpush1.bf16.msra.mxu0 %v1809_v34  ;;  %1182 = vmatpush1.bf16.msra.mxu1 %v1811_v35  ;;  %v474_v63 = vld [vmem:[%s2587_s1 + $0x3c0] sm:$0xff]  ;;  %v475_v1 = vld [vmem:[%s2587_s1 + $0x3c8] sm:$0xff] }
  0x1e   : > { %1140 = vmatprep.subr.bf16.mxu0 %v1802_v36  ;;  %1183 = vmatprep.subr.bf16.mxu1 %v1804_v37  ;;  %v478_v0 = vld [vmem:[%s2587_s1 + $0x3e0] sm:$0xff]  ;;  %v479_v2 = vld [vmem:[%s2587_s1 + $0x3e8] sm:$0xff] }
  0x1f   : > { %1164 = vmatprep.mubr.bf16.mxu0 %v2149_v56  ;;  %1207 = vmatprep.mubr.bf16.mxu1 %v2149_v56  ;;  %v1898_v5 = vcombine.high %v474_v63, %v478_v0  ;;  %v1900_v6 = vcombine.high %v475_v1, %v479_v2  ;;  %v466_v7 = vld [vmem:[%s2587_s1 + $0x380] sm:$0xff]  ;;  %v467_v9 = vld [vmem:[%s2587_s1 + $0x388] sm:$0xff]  ;;  %v1897_v11 = vcombine.low %v474_v63, %v478_v0  ;;  %v412_v0 = vld [vmem:[%s2587_s1 + $0x1d0] sm:$0xff] }
  0x20   : > { %v470_v8 = vld [vmem:[%s2587_s1 + $0x3a0] sm:$0xff]  ;;  %v471_v10 = vld [vmem:[%s2587_s1 + $0x3a8] sm:$0xff]  ;;  %v1899_v12 = vcombine.low %v475_v1, %v479_v2  ;;  %v416_v1 = vld [vmem:[%s2587_s1 + $0x1f0] sm:$0xff] }
  0x21   : > { %1141 = vmatpush1.bf16.msra.mxu0 %v1801_v42  ;;  %1184 = vmatpush1.bf16.msra.mxu1 %v1803_v43  ;;  %v1890_v13 = vcombine.high %v466_v7, %v470_v8  ;;  %v1892_v14 = vcombine.high %v467_v9, %v471_v10  ;;  %v458_v15 = vld [vmem:[%s2587_s1 + $0x340] sm:$0xff]  ;;  %v459_v17 = vld [vmem:[%s2587_s1 + $0x348] sm:$0xff]  ;;  %v1889_v19 = vcombine.low %v466_v7, %v470_v8  ;;  %v413_v2 = vld [vmem:[%s2587_s1 + $0x1d8] sm:$0xff] }
  0x22   : > { %1142 = vmatprep.subr.bf16.mxu0 %v1794_v44  ;;  %1185 = vmatprep.subr.bf16.mxu1 %v1796_v45  ;;  %v462_v16 = vld [vmem:[%s2587_s1 + $0x360] sm:$0xff]  ;;  %v463_v18 = vld [vmem:[%s2587_s1 + $0x368] sm:$0xff]  ;;  %v1891_v20 = vcombine.low %v467_v9, %v471_v10  ;;  %v404_v8 = vld [vmem:[%s2587_s1 + $0x190] sm:$0xff] }
  0x23   : > { %v1882_v21 = vcombine.high %v458_v15, %v462_v16  ;;  %v1884_v22 = vcombine.high %v459_v17, %v463_v18  ;;  %v450_v23 = vld [vmem:[%s2587_s1 + $0x300] sm:$0xff]  ;;  %v451_v25 = vld [vmem:[%s2587_s1 + $0x308] sm:$0xff]  ;;  %v1881_v27 = vcombine.low %v458_v15, %v462_v16  ;;  %v1883_v28 = vcombine.low %v459_v17, %v463_v18  ;;  %v408_v9 = vld [vmem:[%s2587_s1 + $0x1b0] sm:$0xff] }
  0x24   : > { %v454_v24 = vld [vmem:[%s2587_s1 + $0x320] sm:$0xff]  ;;  %v455_v26 = vld [vmem:[%s2587_s1 + $0x328] sm:$0xff]  ;;  %v1830_v15 = vcombine.high %v404_v8, %v408_v9  ;;  %v396_v17 = vld [vmem:[%s2587_s1 + $0x150] sm:$0xff] }
  0x25   : > { %1143 = vmatpush1.bf16.msra.mxu0 %v1793_v50  ;;  %1186 = vmatpush1.bf16.msra.mxu1 %v1795_v51  ;;  %v1874_v29 = vcombine.high %v450_v23, %v454_v24  ;;  %v1876_v30 = vcombine.high %v451_v25, %v455_v26  ;;  %v442_v31 = vld [vmem:[%s2587_s1 + $0x2c0] sm:$0xff]  ;;  %v443_v33 = vld [vmem:[%s2587_s1 + $0x2c8] sm:$0xff]  ;;  %v1873_v35 = vcombine.low %v450_v23, %v454_v24  ;;  %v400_v18 = vld [vmem:[%s2587_s1 + $0x170] sm:$0xff] }
  0x26   : > { %1144 = vmatprep.subr.bf16.mxu0 %v1786_v52  ;;  %1187 = vmatprep.subr.bf16.mxu1 %v1788_v53  ;;  %v446_v32 = vld [vmem:[%s2587_s1 + $0x2e0] sm:$0xff]  ;;  %v447_v34 = vld [vmem:[%s2587_s1 + $0x2e8] sm:$0xff]  ;;  %v1875_v36 = vcombine.low %v451_v25, %v455_v26  ;;  %v1822_v23 = vcombine.high %v396_v17, %v400_v18  ;;  %v388_v25 = vld [vmem:[%s2587_s1 + $0x110] sm:$0xff] }
  0x27   : > { %v1866_v37 = vcombine.high %v442_v31, %v446_v32  ;;  %v1868_v38 = vcombine.high %v443_v33, %v447_v34  ;;  %v434_v39 = vld [vmem:[%s2587_s1 + $0x280] sm:$0xff]  ;;  %v435_v41 = vld [vmem:[%s2587_s1 + $0x288] sm:$0xff]  ;;  %v1865_v43 = vcombine.low %v442_v31, %v446_v32  ;;  %v1867_v44 = vcombine.low %v443_v33, %v447_v34  ;;  %v392_v26 = vld [vmem:[%s2587_s1 + $0x130] sm:$0xff] }
  0x28   : > { %v438_v40 = vld [vmem:[%s2587_s1 + $0x2a0] sm:$0xff]  ;;  %v439_v42 = vld [vmem:[%s2587_s1 + $0x2a8] sm:$0xff]  ;;  %v1814_v31 = vcombine.high %v388_v25, %v392_v26  ;;  %v380_v33 = vld [vmem:[%s2587_s1 + $0xd0] sm:$0xff] }
  0x29   : > { %1145 = vmatpush1.bf16.msra.mxu0 %v1785_v59  ;;  %1188 = vmatpush1.bf16.msra.mxu1 %v1787_v60  ;;  %v1858_v45 = vcombine.high %v434_v39, %v438_v40  ;;  %v1860_v46 = vcombine.high %v435_v41, %v439_v42  ;;  %v426_v47 = vld [vmem:[%s2587_s1 + $0x240] sm:$0xff]  ;;  %v427_v49 = vld [vmem:[%s2587_s1 + $0x248] sm:$0xff]  ;;  %v1857_v51 = vcombine.low %v434_v39, %v438_v40  ;;  %v384_v34 = vld [vmem:[%s2587_s1 + $0xf0] sm:$0xff] }
  0x2a   : > { %1146 = vmatprep.subr.bf16.mxu0 %v1778_v61  ;;  %1189 = vmatprep.subr.bf16.mxu1 %v1780_v62  ;;  %v430_v48 = vld [vmem:[%s2587_s1 + $0x260] sm:$0xff]  ;;  %v431_v50 = vld [vmem:[%s2587_s1 + $0x268] sm:$0xff]  ;;  %v1859_v52 = vcombine.low %v435_v41, %v439_v42  ;;  %v372_v40 = vld [vmem:[%s2587_s1 + $0x90] sm:$0xff] }
  0x2b   : > { %v1850_v53 = vcombine.high %v426_v47, %v430_v48  ;;  %v1852_v54 = vcombine.high %v427_v49, %v431_v50  ;;  %v418_v55 = vld [vmem:[%s2587_s1 + $0x200] sm:$0xff]  ;;  %v419_v58 = vld [vmem:[%s2587_s1 + $0x208] sm:$0xff]  ;;  %v1849_v60 = vcombine.low %v426_v47, %v430_v48  ;;  %v1851_v61 = vcombine.low %v427_v49, %v431_v50  ;;  %v376_v41 = vld [vmem:[%s2587_s1 + $0xb0] sm:$0xff] }
  0x2c   : > { %v422_v57 = vld [vmem:[%s2587_s1 + $0x220] sm:$0xff]  ;;  %v423_v59 = vld [vmem:[%s2587_s1 + $0x228] sm:$0xff]  ;;  %v373_v42 = vld [vmem:[%s2587_s1 + $0x98] sm:$0xff] }
  0x2d   : > { %1147 = vmatpush1.bf16.msra.mxu0 %v1777_v3  ;;  %1190 = vmatpush1.bf16.msra.mxu1 %v1779_v4  ;;  %v1842_v62 = vcombine.high %v418_v55, %v422_v57  ;;  %v1844_v63 = vcombine.high %v419_v58, %v423_v59  ;;  %v417_v3 = vld [vmem:[%s2587_s1 + $0x1f8] sm:$0xff]  ;;  %v1841_v4 = vcombine.low %v418_v55, %v422_v57  ;;  %v2274_v10 = vld [vmem:[%s2140_s29] ss:$8 sps:$4 sm:$0xff]   ;;  %v364_v48 = vld [vmem:[%s2587_s1 + $0x50] sm:$0xff]  ;;  %s2515_s29 = scalar_lea.vmem %s2589_s3, %s1916_s28 }
  0x2e   : > { %1148 = vmatprep.subr.bf16.mxu0 %v1898_v5  ;;  %1191 = vmatprep.subr.bf16.mxu1 %v1900_v6  ;;  %v1843_v5 = vcombine.low %v419_v58, %v423_v59  ;;  %v1838_v6 = vcombine.high %v412_v0, %v416_v1  ;;  %v1840_v7 = vcombine.high %v413_v2, %v417_v3  ;;  %v368_v49 = vld [vmem:[%s2587_s1 + $0x70] sm:$0xff]  ;;  %v365_v50 = vld [vmem:[%s2587_s1 + $0x58] sm:$0xff] }
  0x2f   : > { %v356_v57 = vld [vmem:[%s2587_s1 + $0x10] sm:$0xff]  ;;  %v357_v59 = vld [vmem:[%s2587_s1 + $0x18] sm:$0xff] }
  0x30   : > { %v360_v58 = vld [vmem:[%s2587_s1 + $0x30] sm:$0xff] }
  0x31   : > { %1149 = vmatpush2.bf16.msra.mxu0 %v1897_v11  ;;  %1192 = vmatpush2.bf16.msra.mxu1 %v1899_v12  ;;  %v405_v11 = vld [vmem:[%s2587_s1 + $0x198] sm:$0xff] }
  0x32   : > { %1150 = vmatprep.subr.bf16.mxu0 %v1890_v13  ;;  %1193 = vmatprep.subr.bf16.mxu1 %v1892_v14  ;;  %v409_v12 = vld [vmem:[%s2587_s1 + $0x1b8] sm:$0xff]  ;;  %v1837_v13 = vcombine.low %v412_v0, %v416_v1  ;;  %v1839_v14 = vcombine.low %v413_v2, %v417_v3  ;;  %v476_v1 = vld [vmem:[%s2587_s1 + $0x3d0] sm:$0xff] }
  0x33   : > { %v1832_v16 = vcombine.high %v405_v11, %v409_v12  ;;  %v480_v2 = vld [vmem:[%s2587_s1 + $0x3f0] sm:$0xff]  ;;  %v477_v3 = vld [vmem:[%s2587_s1 + $0x3d8] sm:$0xff] }
  0x35   : > { %1151 = vmatpush2.bf16.msra.mxu0 %v1889_v19  ;;  %1194 = vmatpush2.bf16.msra.mxu1 %v1891_v20  ;;  %v397_v19 = vld [vmem:[%s2587_s1 + $0x158] sm:$0xff] }
  0x36   : > { %1152 = vmatprep.subr.bf16.mxu0 %v1882_v21  ;;  %1195 = vmatprep.subr.bf16.mxu1 %v1884_v22  ;;  %v401_v20 = vld [vmem:[%s2587_s1 + $0x178] sm:$0xff]  ;;  %v1829_v21 = vcombine.low %v404_v8, %v408_v9  ;;  %v1831_v22 = vcombine.low %v405_v11, %v409_v12  ;;  %v468_v9 = vld [vmem:[%s2587_s1 + $0x390] sm:$0xff] }
  0x37   : > { %v1824_v24 = vcombine.high %v397_v19, %v401_v20  ;;  %v472_v11 = vld [vmem:[%s2587_s1 + $0x3b0] sm:$0xff]  ;;  %v469_v12 = vld [vmem:[%s2587_s1 + $0x398] sm:$0xff] }
  0x39   : > { %1153 = vmatpush2.bf16.msra.mxu0 %v1881_v27  ;;  %1196 = vmatpush2.bf16.msra.mxu1 %v1883_v28  ;;  %v389_v27 = vld [vmem:[%s2587_s1 + $0x118] sm:$0xff] }
  0x3a   : > { %1154 = vmatprep.subr.bf16.mxu0 %v1874_v29  ;;  %1197 = vmatprep.subr.bf16.mxu1 %v1876_v30  ;;  %v393_v28 = vld [vmem:[%s2587_s1 + $0x138] sm:$0xff]  ;;  %v1821_v29 = vcombine.low %v396_v17, %v400_v18  ;;  %v1823_v30 = vcombine.low %v397_v19, %v401_v20  ;;  %v460_v18 = vld [vmem:[%s2587_s1 + $0x350] sm:$0xff] }
  0x3b   : > { %v1816_v32 = vcombine.high %v389_v27, %v393_v28  ;;  %v464_v19 = vld [vmem:[%s2587_s1 + $0x370] sm:$0xff]  ;;  %v461_v20 = vld [vmem:[%s2587_s1 + $0x358] sm:$0xff] }
  0x3d   : > { %1155 = vmatpush2.bf16.msra.mxu0 %v1873_v35  ;;  %1198 = vmatpush2.bf16.msra.mxu1 %v1875_v36  ;;  %v385_v35 = vld [vmem:[%s2587_s1 + $0xf8] sm:$0xff]  ;;  %v1813_v36 = vcombine.low %v388_v25, %v392_v26  ;;  %v452_v26 = vld [vmem:[%s2587_s1 + $0x310] sm:$0xff] }
  0x3e   : > { %1156 = vmatprep.subr.bf16.mxu0 %v1866_v37  ;;  %1199 = vmatprep.subr.bf16.mxu1 %v1868_v38  ;;  %v1815_v37 = vcombine.low %v389_v27, %v393_v28  ;;  %v1806_v38 = vcombine.high %v380_v33, %v384_v34  ;;  %v456_v27 = vld [vmem:[%s2587_s1 + $0x330] sm:$0xff]  ;;  %v453_v28 = vld [vmem:[%s2587_s1 + $0x318] sm:$0xff] }
  0x41   : > { %1157 = vmatpush2.bf16.msra.mxu0 %v1865_v43  ;;  %1200 = vmatpush2.bf16.msra.mxu1 %v1867_v44  ;;  %v377_v43 = vld [vmem:[%s2587_s1 + $0xb8] sm:$0xff]  ;;  %v1805_v44 = vcombine.low %v380_v33, %v384_v34  ;;  %v444_v34 = vld [vmem:[%s2587_s1 + $0x2d0] sm:$0xff] }
  0x42   : > { %1158 = vmatprep.subr.bf16.mxu0 %v1858_v45  ;;  %1201 = vmatprep.subr.bf16.mxu1 %v1860_v46  ;;  %v1798_v46 = vcombine.high %v372_v40, %v376_v41  ;;  %v1800_v47 = vcombine.high %v373_v42, %v377_v43 }
  0x45   : > { %1159 = vmatpush2.bf16.msra.mxu0 %v1857_v51  ;;  %1202 = vmatpush2.bf16.msra.mxu1 %v1859_v52  ;;  %v369_v51 = vld [vmem:[%s2587_s1 + $0x78] sm:$0xff]  ;;  %v1797_v52 = vcombine.low %v372_v40, %v376_v41  ;;  %v436_v41 = vld [vmem:[%s2587_s1 + $0x290] sm:$0xff] }
  0x46   : > { %1160 = vmatprep.subr.bf16.mxu0 %v1850_v53  ;;  %1203 = vmatprep.subr.bf16.mxu1 %v1852_v54  ;;  %v1799_v53 = vcombine.low %v373_v42, %v377_v43  ;;  %v1790_v54 = vcombine.high %v364_v48, %v368_v49  ;;  %v1792_v55 = vcombine.high %v365_v50, %v369_v51  ;;  %v440_v42 = vld [vmem:[%s2587_s1 + $0x2b0] sm:$0xff]  ;;  %v437_v43 = vld [vmem:[%s2587_s1 + $0x298] sm:$0xff] }
  0x49   : > { %1161 = vmatpush2.bf16.msra.mxu0 %v1849_v60  ;;  %1204 = vmatpush2.bf16.msra.mxu1 %v1851_v61  ;;  %v361_v60 = vld [vmem:[%s2587_s1 + $0x38] sm:$0xff]  ;;  %v1789_v61 = vcombine.low %v364_v48, %v368_v49  ;;  %v428_v49 = vld [vmem:[%s2587_s1 + $0x250] sm:$0xff] }
  0x4a   : > { %1162 = vmatprep.subr.bf16.mxu0 %v1842_v62  ;;  %1205 = vmatprep.subr.bf16.mxu1 %v1844_v63  ;;  %v1791_v62 = vcombine.low %v365_v50, %v369_v51  ;;  %v1782_v63 = vcombine.high %v356_v57, %v360_v58  ;;  %v1784_v0 = vcombine.high %v357_v59, %v361_v60  ;;  %v432_v50 = vld [vmem:[%s2587_s1 + $0x270] sm:$0xff]  ;;  %v429_v51 = vld [vmem:[%s2587_s1 + $0x258] sm:$0xff] }
  0x4d   : > { %1163 = vmatpush2.bf16.msra.mxu0 %v1841_v4  ;;  %1206 = vmatpush2.bf16.msra.mxu1 %v1843_v5  ;;  %v481_v4 = vld [vmem:[%s2587_s1 + $0x3f8] sm:$0xff]  ;;  %v1781_v5 = vcombine.low %v356_v57, %v360_v58  ;;  %v420_v58 = vld [vmem:[%s2587_s1 + $0x210] sm:$0xff] }
  0x4e   : > { %1218 = vmatprep.subr.bf16.mxu0 %v1838_v6  ;;  %1261 = vmatprep.subr.bf16.mxu1 %v1840_v7  ;;  %v1783_v6 = vcombine.low %v357_v59, %v361_v60  ;;  %v1902_v7 = vcombine.high %v476_v1, %v480_v2  ;;  %v1904_v8 = vcombine.high %v477_v3, %v481_v4  ;;  %v424_v59 = vld [vmem:[%s2587_s1 + $0x230] sm:$0xff]  ;;  %v421_v60 = vld [vmem:[%s2587_s1 + $0x218] sm:$0xff] }
  0x50   : > { %1165 = vmatmul.mubr.bf16.vlgmr.msra.gmra.mxu0 %v2274_v10  ;;  %1208 = vmatmul.mubr.bf16.vlgmr.msra.gmra.mxu1 %v2274_v10 }
  0x51   : > { %1219 = vmatpush1.bf16.msra.mxu0 %v1837_v13  ;;  %1262 = vmatpush1.bf16.msra.mxu1 %v1839_v14  ;;  %v473_v13 = vld [vmem:[%s2587_s1 + $0x3b8] sm:$0xff]  ;;  %v1901_v14 = vcombine.low %v476_v1, %v480_v2  ;;  %v1845_v2 = vcombine.low %v420_v58, %v424_v59 }
  0x52   : > { %1220 = vmatprep.subr.bf16.mxu0 %v1830_v15  ;;  %1263 = vmatprep.subr.bf16.mxu1 %v1832_v16  ;;  %v1903_v15 = vcombine.low %v477_v3, %v481_v4  ;;  %v1894_v16 = vcombine.high %v468_v9, %v472_v11  ;;  %v1896_v17 = vcombine.high %v469_v12, %v473_v13  ;;  %v1357_v4 = vlaneseq }
  0x53   : > { %1250 = vmatprep.mubr.bf16.mxu0 %v2149_v56  ;;  %1293 = vmatprep.mubr.bf16.mxu1 %v2149_v56  ;;  %v381_v56 = vld [vmem:[%s2587_s1 + $0xd8] sm:$0xff] }
  0x54   : > { %v1808_v39 = vcombine.high %v381_v56, %v385_v35  ;;  %v1807_v45 = vcombine.low %v381_v56, %v385_v35  ;;  %v448_v56 = vld [vmem:[%s2587_s1 + $0x2f0] sm:$0xff]  ;;  %v445_v35 = vld [vmem:[%s2587_s1 + $0x2d8] sm:$0xff] }
  0x55   : > { %1221 = vmatpush1.bf16.msra.mxu0 %v1829_v21  ;;  %1264 = vmatpush1.bf16.msra.mxu1 %v1831_v22  ;;  %v465_v21 = vld [vmem:[%s2587_s1 + $0x378] sm:$0xff]  ;;  %v1893_v22 = vcombine.low %v468_v9, %v472_v11 }
  0x56   : > { %1222 = vmatprep.subr.bf16.mxu0 %v1822_v23  ;;  %1265 = vmatprep.subr.bf16.mxu1 %v1824_v24  ;;  %v1895_v23 = vcombine.low %v469_v12, %v473_v13  ;;  %v1886_v24 = vcombine.high %v460_v18, %v464_v19  ;;  %v1888_v25 = vcombine.high %v461_v20, %v465_v21 }
  0x59   : > { %1223 = vmatpush1.bf16.msra.mxu0 %v1821_v29  ;;  %1266 = vmatpush1.bf16.msra.mxu1 %v1823_v30  ;;  %v457_v29 = vld [vmem:[%s2587_s1 + $0x338] sm:$0xff]  ;;  %v1885_v30 = vcombine.low %v460_v18, %v464_v19 }
  0x5a   : > { %1224 = vmatprep.subr.bf16.mxu0 %v1814_v31  ;;  %1267 = vmatprep.subr.bf16.mxu1 %v1816_v32  ;;  %v1887_v31 = vcombine.low %v461_v20, %v465_v21  ;;  %v1878_v32 = vcombine.high %v452_v26, %v456_v27  ;;  %v1880_v33 = vcombine.high %v453_v28, %v457_v29 }
  0x5d   : > { %1225 = vmatpush1.bf16.msra.mxu0 %v1813_v36  ;;  %1268 = vmatpush1.bf16.msra.mxu1 %v1815_v37  ;;  %v449_v36 = vld [vmem:[%s2587_s1 + $0x2f8] sm:$0xff]  ;;  %v1877_v37 = vcombine.low %v452_v26, %v456_v27 }
  0x5e   : > { %1226 = vmatprep.subr.bf16.mxu0 %v1806_v38  ;;  %1269 = vmatprep.subr.bf16.mxu1 %v1808_v39  ;;  %v1879_v38 = vcombine.low %v453_v28, %v457_v29  ;;  %v1870_v39 = vcombine.high %v444_v34, %v448_v56  ;;  %v1872_v40 = vcombine.high %v445_v35, %v449_v36 }
  0x61   : > { %1227 = vmatpush1.bf16.msra.mxu0 %v1805_v44  ;;  %1270 = vmatpush1.bf16.msra.mxu1 %v1807_v45  ;;  %v441_v44 = vld [vmem:[%s2587_s1 + $0x2b8] sm:$0xff]  ;;  %v1869_v45 = vcombine.low %v444_v34, %v448_v56 }
  0x62   : > { %1228 = vmatprep.subr.bf16.mxu0 %v1798_v46  ;;  %1271 = vmatprep.subr.bf16.mxu1 %v1800_v47  ;;  %v1871_v46 = vcombine.low %v445_v35, %v449_v36  ;;  %v1862_v47 = vcombine.high %v436_v41, %v440_v42  ;;  %v1864_v48 = vcombine.high %v437_v43, %v441_v44 }
  0x65   : > { %1229 = vmatpush1.bf16.msra.mxu0 %v1797_v52  ;;  %1272 = vmatpush1.bf16.msra.mxu1 %v1799_v53  ;;  %v433_v52 = vld [vmem:[%s2587_s1 + $0x278] sm:$0xff]  ;;  %v1861_v53 = vcombine.low %v436_v41, %v440_v42 }
  0x66   : > { %1230 = vmatprep.subr.bf16.mxu0 %v1790_v54  ;;  %1273 = vmatprep.subr.bf16.mxu1 %v1792_v55  ;;  %v1863_v54 = vcombine.low %v437_v43, %v441_v44  ;;  %v1854_v55 = vcombine.high %v428_v49, %v432_v50  ;;  %v1856_v57 = vcombine.high %v429_v51, %v433_v52 }
  0x69   : > { %1231 = vmatpush1.bf16.msra.mxu0 %v1789_v61  ;;  %1274 = vmatpush1.bf16.msra.mxu1 %v1791_v62  ;;  %v425_v61 = vld [vmem:[%s2587_s1 + $0x238] sm:$0xff]  ;;  %v1853_v62 = vcombine.low %v428_v49, %v432_v50 }
  0x6a   : > { %1232 = vmatprep.subr.bf16.mxu0 %v1782_v63  ;;  %1275 = vmatprep.subr.bf16.mxu1 %v1784_v0  ;;  %v1855_v63 = vcombine.low %v429_v51, %v433_v52  ;;  %v1846_v0 = vcombine.high %v420_v58, %v424_v59  ;;  %v1848_v1 = vcombine.high %v421_v60, %v425_v61 }
  0x6b   : > { %v1847_v3 = vcombine.low %v421_v60, %v425_v61 }
  0x6d   : > { %1233 = vmatpush1.bf16.msra.mxu0 %v1781_v5  ;;  %1276 = vmatpush1.bf16.msra.mxu1 %v1783_v6  ;;  %v2456_v5 = vshrl.u32 %v1357_v4, 7 }
  0x6e   : > { %1234 = vmatprep.subr.bf16.mxu0 %v1902_v7  ;;  %1277 = vmatprep.subr.bf16.mxu1 %v1904_v8  ;;  %v2462_v7 = vld [vmem:[%s2588_s2] sm:$0xff] }
  0x6f   : > { %v1359_v6 = vsub.s32 0, %v2456_v5  ;;  %v1367_v8 = vsub.s32 2, %v2456_v5  ;;  %v1363_v9 = vsub.s32 1, %v2456_v5  ;;  %v1371_v11 = vsub.s32 3, %v2456_v5 }
  0x71   : > { %1235 = vmatpush2.bf16.msra.mxu0 %v1901_v14  ;;  %1278 = vmatpush2.bf16.msra.mxu1 %v1903_v15  ;;  %v1360_v12 = vrot.slane %v2462_v7, %v1359_v6  ;;  %v1364_v13 = vrot.slane %v2462_v7, %v1363_v9  ;;  %v1372_v15 = vrot.slane %v2462_v7, %v1371_v11 }
  0x72   : > { %1236 = vmatprep.subr.bf16.mxu0 %v1894_v16  ;;  %1279 = vmatprep.subr.bf16.mxu1 %v1896_v17 }
  0x75   : > { %1237 = vmatpush2.bf16.msra.mxu0 %v1893_v22  ;;  %1280 = vmatpush2.bf16.msra.mxu1 %v1895_v23 }
  0x76   : > { %1238 = vmatprep.subr.bf16.mxu0 %v1886_v24  ;;  %1281 = vmatprep.subr.bf16.mxu1 %v1888_v25 }
  0x79   : > { %1239 = vmatpush2.bf16.msra.mxu0 %v1885_v30  ;;  %1282 = vmatpush2.bf16.msra.mxu1 %v1887_v31 }
  0x7a   : > { %1240 = vmatprep.subr.bf16.mxu0 %v1878_v32  ;;  %1283 = vmatprep.subr.bf16.mxu1 %v1880_v33 }
  0x7d   : > { %1241 = vmatpush2.bf16.msra.mxu0 %v1877_v37  ;;  %1284 = vmatpush2.bf16.msra.mxu1 %v1879_v38 }
  0x7e   : > { %1242 = vmatprep.subr.bf16.mxu0 %v1870_v39  ;;  %1285 = vmatprep.subr.bf16.mxu1 %v1872_v40 }
  0x81   : > { %1243 = vmatpush2.bf16.msra.mxu0 %v1869_v45  ;;  %1286 = vmatpush2.bf16.msra.mxu1 %v1871_v46 }
  0x82   : > { %1244 = vmatprep.subr.bf16.mxu0 %v1862_v47  ;;  %1287 = vmatprep.subr.bf16.mxu1 %v1864_v48 }
  0x85   : > { %1245 = vmatpush2.bf16.msra.mxu0 %v1861_v53  ;;  %1288 = vmatpush2.bf16.msra.mxu1 %v1863_v54 }
  0x86   : > { %1246 = vmatprep.subr.bf16.mxu0 %v1854_v55  ;;  %1289 = vmatprep.subr.bf16.mxu1 %v1856_v57 }
  0x89   : > { %1247 = vmatpush2.bf16.msra.mxu0 %v1853_v62  ;;  %1290 = vmatpush2.bf16.msra.mxu1 %v1855_v63 }
  0x8a   : > { %1248 = vmatprep.subr.bf16.mxu0 %v1846_v0  ;;  %1291 = vmatprep.subr.bf16.mxu1 %v1848_v1 }
  0x8d   : > { %1249 = vmatpush2.bf16.msra.mxu0 %v1845_v2  ;;  %1292 = vmatpush2.bf16.msra.mxu1 %v1847_v3 }
  0x90   : > { %1251 = vmatmul.mubr.bf16.vlgmr.msra.gmra.mxu0 %v2274_v10  ;;  %1294 = vmatmul.mubr.bf16.vlgmr.msra.gmra.mxu1 %v2274_v10  ;;  %v1368_v10 = vrot.slane %v2462_v7, %v1367_v8 }
 0x110   : > { %v1166_v14 = vpop.f32.mrf.mxu0  ;;  %v1209_v17 = vpop.f32.mrf.mxu1 }
 0x111   : > { %v2471_v16 = vadd.f32 %v1360_v12, %v1166_v14  ;;  %v2473_v18 = vadd.f32 %v1368_v10, %v1209_v17 }
 0x112   : > { %v1168_v19 = vpop.f32.mrf.mxu0  ;;  %v1211_v22 = vpop.f32.mrf.mxu1 }
 0x113   : > { %v1429_v20 = vmul.f32 0.044715, %v2471_v16  ;;  %v2476_v21 = vadd.f32 %v1364_v13, %v1168_v19  ;;  %v1431_v23 = vmul.f32 0.044715, %v2473_v18  ;;  %v2479_v24 = vadd.f32 %v1372_v15, %v1211_v22 }
 0x114   : > { %v1170_v25 = vpop.f32.mrf.mxu0  ;;  %v1213_v29 = vpop.f32.mrf.mxu1 }
 0x115   : > { %v1445_v26 = vmul.f32 %v1429_v20, %v2471_v16  ;;  %v1430_v27 = vmul.f32 0.044715, %v2476_v21  ;;  %v2483_v28 = vadd.f32 %v1360_v12, %v1170_v25  ;;  %v1447_v30 = vmul.f32 %v1431_v23, %v2473_v18 }
 0x116   : > { %v1432_v31 = vmul.f32 0.044715, %v2479_v24  ;;  %v2487_v32 = vadd.f32 %v1368_v10, %v1213_v29  ;;  %v1172_v33 = vpop.f32.mrf.mxu0  ;;  %v1215_v39 = vpop.f32.mrf.mxu1  ;;  %v1414_v17 = vmul.f32 0.5, %v2476_v21  ;;  %v1415_v20 = vmul.f32 0.5, %v2473_v18 }
 0x117   : > { %v1461_v34 = vmul.f32 %v1445_v26, %v2471_v16  ;;  %v1446_v56 = vmul.f32 %v1430_v27, %v2476_v21  ;;  %v1437_v35 = vmul.f32 0.044715, %v2483_v28  ;;  %v1463_v36 = vmul.f32 %v1447_v30, %v2473_v18 }
 0x118   : > { %v1448_v37 = vmul.f32 %v1432_v31, %v2479_v24  ;;  %v1439_v38 = vmul.f32 0.044715, %v2487_v32  ;;  %v1406_v43 = vadd.f32 %v1364_v13, %v1172_v33  ;;  %v1408_v50 = vadd.f32 %v1372_v15, %v1215_v39 }
 0x119   : > { %v1477_v40 = vadd.f32 %v1461_v34, %v2471_v16  ;;  %v1462_v41 = vmul.f32 %v1446_v56, %v2476_v21  ;;  %v1453_v42 = vmul.f32 %v1437_v35, %v2483_v28  ;;  %v1479_v44 = vadd.f32 %v1463_v36, %v2473_v18 }
 0x11a   : > { %v1464_v45 = vmul.f32 %v1448_v37, %v2479_v24  ;;  %v1455_v46 = vmul.f32 %v1439_v38, %v2487_v32  ;;  %v1438_v54 = vmul.f32 0.044715, %v1406_v43  ;;  %v1440_v62 = vmul.f32 0.044715, %v1408_v50 }
 0x11b   : > { %v1493_v47 = vmul.f32 0.7978846, %v1477_v40  ;;  %v1478_v48 = vadd.f32 %v1462_v41, %v2476_v21  ;;  %v1469_v49 = vmul.f32 %v1453_v42, %v2483_v28  ;;  %v1495_v51 = vmul.f32 0.7978846, %v1479_v44 }
 0x11c   : > { %v1480_v52 = vadd.f32 %v1464_v45, %v2479_v24  ;;  %v1471_v53 = vmul.f32 %v1455_v46, %v2487_v32  ;;  %v1454_v60 = vmul.f32 %v1438_v54, %v1406_v43  ;;  %v1456_v1 = vmul.f32 %v1440_v62, %v1408_v50 }
 0x11d   : > { %1952 = vtanh.f32 %v1493_v47  ;;  %v1494_v55 = vmul.f32 0.7978846, %v1478_v48  ;;  %v1485_v57 = vadd.f32 %v1469_v49, %v2483_v28  ;;  %v1413_v15 = vmul.f32 0.5, %v2471_v16 }
 0x11e   : > { %1954 = vtanh.f32 %v1495_v51  ;;  %v1496_v58 = vmul.f32 0.7978846, %v1480_v52  ;;  %v1487_v59 = vadd.f32 %v1471_v53, %v2487_v32  ;;  %v1470_v63 = vmul.f32 %v1454_v60, %v1406_v43 }
 0x11f   : > { %1956 = vtanh.f32 %v1494_v55  ;;  %v1501_v61 = vmul.f32 0.7978846, %v1485_v57  ;;  %v1472_v3 = vmul.f32 %v1456_v1, %v1408_v50  ;;  %v1416_v22 = vmul.f32 0.5, %v2479_v24 }
 0x120   : > { %1958 = vtanh.f32 %v1496_v58  ;;  %v1503_v0 = vmul.f32 0.7978846, %v1487_v59  ;;  %v1486_v2 = vadd.f32 %v1470_v63, %v1406_v43  ;;  %v1421_v24 = vmul.f32 0.5, %v2483_v28 }
 0x121   : > { %1960 = vtanh.f32 %v1501_v61  ;;  %v1488_v6 = vadd.f32 %v1472_v3, %v1408_v50  ;;  %v1422_v34 = vmul.f32 0.5, %v1406_v43  ;;  %v1423_v39 = vmul.f32 0.5, %v2487_v32 }
 0x122   : > { %v1502_v4 = vmul.f32 0.7978846, %v1486_v2  ;;  %1962 = vtanh.f32 %v1503_v0  ;;  %v1424_v40 = vmul.f32 0.5, %v1408_v50  ;;  %v1375_v47 = vsub.s32 4, %v2456_v5 }
 0x123   : > { %v1504_v8 = vmul.f32 0.7978846, %v1488_v6  ;;  %v1383_v28 = vsub.s32 6, %v2456_v5  ;;  %v1379_v43 = vsub.s32 5, %v2456_v5  ;;  %v1387_v48 = vsub.s32 7, %v2456_v5 }
 0x124   : > { %1964 = vtanh.f32 %v1502_v4  ;;  %v1376_v49 = vrot.slane %v2462_v7, %v1375_v47 }
 0x125   : > { %1966 = vtanh.f32 %v1504_v8  ;;  %v1384_v32 = vrot.slane %v2462_v7, %v1383_v28  ;;  %v1380_v50 = vrot.slane %v2462_v7, %v1379_v43  ;;  %v1388_v52 = vrot.slane %v2462_v7, %v1387_v48 }
 0x12a   : > { %v1953_v9 = vpop.eup %1952 }
 0x12b   : > { %v1955_v11 = vpop.eup %1954  ;;  %v1525_v12 = vadd.f32 1.0, %v1953_v9 }
 0x12c   : > { %v1957_v10 = vpop.eup %1956  ;;  %v1527_v13 = vadd.f32 1.0, %v1955_v11 }
 0x12d   : > { %v1959_v14 = vpop.eup %1958  ;;  %v1526_v19 = vadd.f32 1.0, %v1957_v10  ;;  %v1541_v26 = vmul.f32 %v1525_v12, %v1413_v15 }
 0x12e   : > { %v1528_v23 = vadd.f32 1.0, %v1959_v14  ;;  %v1961_v25 = vpop.eup %1960  ;;  %v1543_v29 = vmul.f32 %v1527_v13, %v1415_v20 }
 0x12f   : > { %v1542_v27 = vmul.f32 %v1526_v19, %v1414_v17  ;;  %v1963_v21 = vpop.eup %1962  ;;  %v1533_v33 = vadd.f32 1.0, %v1961_v25 }
 0x130   : > { %v1544_v16 = vmul.f32 %v1528_v23, %v1416_v22  ;;  %v1535_v35 = vadd.f32 1.0, %v1963_v21 }
 0x131   : > { %v1917_v30 = vpack.c.bf16 %v1542_v27, %v1541_v26  ;;  %v1965_v18 = vpop.eup %1964  ;;  %v1549_v37 = vmul.f32 %v1533_v33, %v1421_v24 }
 0x132   : > { %v1918_v31 = vpack.c.bf16 %v1544_v16, %v1543_v29  ;;  %v1534_v56 = vadd.f32 1.0, %v1965_v18  ;;  %v1967_v36 = vpop.eup %1966  ;;  %v1551_v44 = vmul.f32 %v1535_v35, %v1423_v39 }
 0x133   : > { %1605 = vst [vmem:[%s2515_s29] sm:$0xff] %v1917_v30  ;;  %v1536_v41 = vadd.f32 1.0, %v1967_v36 }
 0x134   : > { %1606 = vst [vmem:[%s2515_s29 + $0x8] sm:$0xff] %v1918_v31  ;;  %v1550_v38 = vmul.f32 %v1534_v56, %v1422_v34 }
 0x135   : > { %v1552_v45 = vmul.f32 %v1536_v41, %v1424_v40 }
 0x136   : > { %v1921_v42 = vpack.c.bf16 %v1550_v38, %v1549_v37 }
 0x137   : > { %v1922_v46 = vpack.c.bf16 %v1552_v45, %v1551_v44 }
 0x138   : > { %1609 = vst [vmem:[%s2515_s29 + $0x20] sm:$0xff] %v1921_v42 }
 0x139   : > { %1610 = vst [vmem:[%s2515_s29 + $0x28] sm:$0xff] %v1922_v46 }
 0x150   : > { %v1252_v51 = vpop.f32.mrf.mxu0  ;;  %v1295_v54 = vpop.f32.mrf.mxu1 }
 0x151   : > { %v2531_v53 = vadd.f32 %v1376_v49, %v1252_v51  ;;  %v2533_v55 = vadd.f32 %v1384_v32, %v1295_v54 }
 0x152   : > { %v1254_v57 = vpop.f32.mrf.mxu0  ;;  %v1297_v5 = vpop.f32.mrf.mxu1 }
 0x153   : > { %v1433_v58 = vmul.f32 0.044715, %v2531_v53  ;;  %v2536_v59 = vadd.f32 %v1380_v50, %v1254_v57  ;;  %v1435_v60 = vmul.f32 0.044715, %v2533_v55  ;;  %v2539_v61 = vadd.f32 %v1388_v52, %v1297_v5 }
 0x154   : > { %v1256_v62 = vpop.f32.mrf.mxu0  ;;  %v1299_v1 = vpop.f32.mrf.mxu1  ;;  %v1419_v54 = vmul.f32 0.5, %v2533_v55 }
 0x155   : > { %v1449_v63 = vmul.f32 %v1433_v58, %v2531_v53  ;;  %v1434_v7 = vmul.f32 0.044715, %v2536_v59  ;;  %v2543_v0 = vadd.f32 %v1376_v49, %v1256_v62  ;;  %v1451_v2 = vmul.f32 %v1435_v60, %v2533_v55 }
 0x156   : > { %v1436_v3 = vmul.f32 0.044715, %v2539_v61  ;;  %v2547_v4 = vadd.f32 %v1384_v32, %v1299_v1  ;;  %v1258_v6 = vpop.f32.mrf.mxu0  ;;  %v1301_v14 = vpop.f32.mrf.mxu1  ;;  %v1418_v51 = vmul.f32 0.5, %v2536_v59  ;;  %v1420_v57 = vmul.f32 0.5, %v2539_v61 }
 0x157   : > { %v1465_v8 = vmul.f32 %v1449_v63, %v2531_v53  ;;  %v1450_v9 = vmul.f32 %v1434_v7, %v2536_v59  ;;  %v1441_v11 = vmul.f32 0.044715, %v2543_v0  ;;  %v1467_v12 = vmul.f32 %v1451_v2, %v2533_v55 }
 0x158   : > { %v1452_v10 = vmul.f32 %v1436_v3, %v2539_v61  ;;  %v1443_v13 = vmul.f32 0.044715, %v2547_v4  ;;  %v1410_v20 = vadd.f32 %v1380_v50, %v1258_v6  ;;  %v1412_v16 = vadd.f32 %v1388_v52, %v1301_v14 }
 0x159   : > { %v1481_v15 = vadd.f32 %v1465_v8, %v2531_v53  ;;  %v1466_v17 = vmul.f32 %v1450_v9, %v2536_v59  ;;  %v1457_v19 = vmul.f32 %v1441_v11, %v2543_v0  ;;  %v1483_v22 = vadd.f32 %v1467_v12, %v2533_v55 }
 0x15a   : > { %v1468_v23 = vmul.f32 %v1452_v10, %v2539_v61  ;;  %v1459_v25 = vmul.f32 %v1443_v13, %v2547_v4  ;;  %v1442_v33 = vmul.f32 0.044715, %v1410_v20  ;;  %v1444_v37 = vmul.f32 0.044715, %v1412_v16 }
 0x15b   : > { %v1497_v26 = vmul.f32 0.7978846, %v1481_v15  ;;  %v1482_v27 = vadd.f32 %v1466_v17, %v2536_v59  ;;  %v1473_v29 = vmul.f32 %v1457_v19, %v2543_v0  ;;  %v1499_v30 = vmul.f32 0.7978846, %v1483_v22 }
 0x15c   : > { %v1484_v21 = vadd.f32 %v1468_v23, %v2539_v61  ;;  %v1475_v31 = vmul.f32 %v1459_v25, %v2547_v4  ;;  %v1458_v35 = vmul.f32 %v1442_v33, %v1410_v20  ;;  %v1460_v40 = vmul.f32 %v1444_v37, %v1412_v16 }
 0x15d   : > { %1968 = vtanh.f32 %v1497_v26  ;;  %v1498_v18 = vmul.f32 0.7978846, %v1482_v27  ;;  %v1489_v24 = vadd.f32 %v1473_v29, %v2543_v0  ;;  %v1417_v50 = vmul.f32 0.5, %v2531_v53 }
 0x15e   : > { %1970 = vtanh.f32 %v1499_v30  ;;  %v1500_v34 = vmul.f32 0.7978846, %v1484_v21  ;;  %v1491_v56 = vadd.f32 %v1475_v31, %v2547_v4  ;;  %v1474_v38 = vmul.f32 %v1458_v35, %v1410_v20 }
 0x15f   : > { %1972 = vtanh.f32 %v1498_v18  ;;  %v1505_v36 = vmul.f32 0.7978846, %v1489_v24  ;;  %v1476_v42 = vmul.f32 %v1460_v40, %v1412_v16  ;;  %v1425_v59 = vmul.f32 0.5, %v2543_v0 }
 0x160   : > { %1974 = vtanh.f32 %v1500_v34  ;;  %v1507_v39 = vmul.f32 0.7978846, %v1491_v56  ;;  %v1490_v41 = vadd.f32 %v1474_v38, %v1410_v20  ;;  %v1426_v55 = vmul.f32 0.5, %v1410_v20 }
 0x161   : > { %1976 = vtanh.f32 %v1505_v36  ;;  %v1492_v45 = vadd.f32 %v1476_v42, %v1412_v16  ;;  %v1427_v10 = vmul.f32 0.5, %v2547_v4  ;;  %v1428_v13 = vmul.f32 0.5, %v1412_v16 }
 0x162   : > { %v1506_v44 = vmul.f32 0.7978846, %v1490_v41  ;;  %1978 = vtanh.f32 %v1507_v39 }
 0x163   : > { %v1508_v46 = vmul.f32 0.7978846, %v1492_v45 }
 0x164   : > { %1980 = vtanh.f32 %v1506_v44 }
 0x165   : > { %1982 = vtanh.f32 %v1508_v46 }
 0x16a   : > { %v1969_v47 = vpop.eup %1968 }
 0x16b   : > { %v1971_v28 = vpop.eup %1970  ;;  %v1529_v43 = vadd.f32 1.0, %v1969_v47 }
 0x16c   : > { %v1973_v48 = vpop.eup %1972  ;;  %v1531_v49 = vadd.f32 1.0, %v1971_v28 }
 0x16d   : > { %v1975_v32 = vpop.eup %1974  ;;  %v1530_v52 = vadd.f32 1.0, %v1973_v48  ;;  %v1545_v60 = vmul.f32 %v1529_v43, %v1417_v50 }
 0x16e   : > { %v1532_v58 = vadd.f32 1.0, %v1975_v32  ;;  %v1977_v5 = vpop.eup %1976  ;;  %v1547_v63 = vmul.f32 %v1531_v49, %v1419_v54 }
 0x16f   : > { %v1546_v62 = vmul.f32 %v1530_v52, %v1418_v51  ;;  %v1979_v2 = vpop.eup %1978  ;;  %v1537_v6 = vadd.f32 1.0, %v1977_v5 }
 0x170   : > { %v1548_v7 = vmul.f32 %v1532_v58, %v1420_v57  ;;  %v1539_v61 = vadd.f32 1.0, %v1979_v2 }
 0x171   : > { %v1919_v1 = vpack.c.bf16 %v1546_v62, %v1545_v60  ;;  %v1981_v53 = vpop.eup %1980  ;;  %v1553_v11 = vmul.f32 %v1537_v6, %v1425_v59 }
 0x172   : > { %v1920_v3 = vpack.c.bf16 %v1548_v7, %v1547_v63  ;;  %v1538_v8 = vadd.f32 1.0, %v1981_v53  ;;  %v1983_v9 = vpop.eup %1982  ;;  %v1555_v17 = vmul.f32 %v1539_v61, %v1427_v10 }
 0x173   : > { %1607 = vst [vmem:[%s2515_s29 + $0x10] sm:$0xff] %v1919_v1  ;;  %v1540_v14 = vadd.f32 1.0, %v1983_v9 }
 0x174   : > { %1608 = vst [vmem:[%s2515_s29 + $0x18] sm:$0xff] %v1920_v3  ;;  %v1554_v12 = vmul.f32 %v1538_v8, %v1426_v55 }
 0x175   : > { %v1556_v19 = vmul.f32 %v1540_v14, %v1428_v13 }
 0x176   : > { %v1923_v15 = vpack.c.bf16 %v1554_v12, %v1553_v11 }
 0x177   : > { %v1924_v22 = vpack.c.bf16 %v1556_v19, %v1555_v17 }
 0x178   : > { %1611 = vst [vmem:[%s2515_s29 + $0x30] sm:$0xff] %v1923_v15 }
 0x179   : > { %1612 = vst [vmem:[%s2515_s29 + $0x38] sm:$0xff] %v1924_v22 }
 0x17a PF: > { %s13_s14 = sadd.s32 1, %s2006_s14   ;;  %s2590_s12 = smov %s2002_s13 }
 0x17b   : > { %p10_p5 = scmp.ge.s32.totalorder %s13_s14, 4   ;;  %s2591_s13 = smov %s2593_s15 }
 0x17d   :  { %12 = sbr.rel (!%p10_p5) target bundleno = 2 (0x2), region = 76 }

// kernel: flux_forward.51
= control target key start
LH: loop header
LB: loop body
LE: loop exit
PB: predicated region body
PF: predicated region fallthrough
CT: control target
= control target key end

     0   :  { %s1115_s18 = smov 0   ;;  %s1117_s19 = smov 0   ;;  %s1262_s0 = inlined_call_operand.vmem [shape: bf16[2,8,256], index: 0, kind: input, shape index: {}]   ;;  %s1263_s1 = inlined_call_operand.vmem [shape: bf16[256,256], index: 1, kind: input, shape index: {}]   ;;  %s1264_s2 = inlined_call_operand.vmem [shape: f32[1,256], index: 2, kind: input, shape index: {}]   ;;  %s1265_s3 = inlined_call_operand.vmem [shape: f32[2,1,256], index: 3, kind: input, shape index: {}]   ;;  %s1266_s4 = inlined_call_operand.vmem [shape: bf16[2,8,256], index: 4, kind: input, shape index: {}]   ;;  %s1267_s5 = inlined_call_operand.vmem [shape: bf16[2,8,256], index: 5, kind: output, shape index: {}]  }
   0x1   :  { %s1119_s20 = smov 0  }
   0x2 LB: > { %s41_s21 = sadd.s32 1, %s1079_s19  ;;  %p938_p0 = scmp.ge.s32.totalorder %s1083_s20, 1  ;;  %s1083_s20 = sphi %s1119_s20, %s15_s20   ;;  %s1079_s19 = sphi %s1117_s19, %s1269_s19   ;;  %s1075_s18 = sphi %s1115_s18, %s1268_s18  }
   0x3   : > { %p43_p1 = scmp.ge.s32.totalorder %s41_s21, 2  ;;  %p298_p2 = scmp.lt.s32.totalorder %s1083_s20, 3 }
   0x5   : > { %s1271_s21 = smov (%p43_p1, %s41_s21), 0  ;;  %p299_p3 = pnand %p938_p0, %p298_p2 }
   0x6   : > { %p378_p4 = scmp.lt.s32.totalorder (!%p299_p3), %s1075_s18, 1 }
   0x7   : > { %302 = sbr.rel (%p299_p3) target bundleno = 281 (0x119), region = 40 }
   0xc   : > { %v1011_v0 = vld [vmem:[%s1263_s1 + $0x74] ss:$8 sps:$4 sm:$0xff]   ;;  %v1013_v1 = vld [vmem:[%s1263_s1 + $0x70] ss:$8 sps:$4 sm:$0xff]   ;;  %v1014_v2 = vld [vmem:[%s1263_s1 + $0x64] ss:$8 sps:$4 sm:$0xff]   ;;  %v705_v35 = vlaneseq }
   0xd   : > { %653 = vmatprep.subr.bf16.mxu0 %v1011_v0  ;;  %v1016_v3 = vld [vmem:[%s1263_s1 + $0x60] ss:$8 sps:$4 sm:$0xff]   ;;  %v1017_v4 = vld [vmem:[%s1263_s1 + $0x54] ss:$8 sps:$4 sm:$0xff]   ;;  %v1019_v5 = vld [vmem:[%s1263_s1 + $0x50] ss:$8 sps:$4 sm:$0xff]  }
   0xe   : > { %654 = vmatpush1.bf16.msra.mxu0 %v1013_v1  ;;  %v1020_v6 = vld [vmem:[%s1263_s1 + $0x44] ss:$8 sps:$4 sm:$0xff]   ;;  %v1022_v7 = vld [vmem:[%s1263_s1 + $0x40] ss:$8 sps:$4 sm:$0xff]   ;;  %s1273_s18 = smov (!%p378_p4, %s1075_s18), 1  ;;  %v706_v36 = vshrl.u32 %v705_v35, 7 }
   0xf   : > { %655 = vmatprep.subr.bf16.mxu0 %v1014_v2  ;;  %v1023_v8 = vld [vmem:[%s1263_s1 + $0x34] ss:$8 sps:$4 sm:$0xff]   ;;  %v1025_v9 = vld [vmem:[%s1263_s1 + $0x30] ss:$8 sps:$4 sm:$0xff]   ;;  %s1166_s17 = sshll.u32 %s1273_s18, 3  ;;  %s941_s29 = sshll.u32 %s1273_s18, 1 }
  0x10   : > { %v1026_v10 = vld [vmem:[%s1263_s1 + $0x24] ss:$8 sps:$4 sm:$0xff]   ;;  %s389_s26 = scalar_lea.vmem %s1262_s0, %s1166_s17  ;;  %v1028_v11 = vld [vmem:[%s1263_s1 + $0x20] ss:$8 sps:$4 sm:$0xff]   ;;  %v1029_v12 = vld [vmem:[%s1263_s1 + $0x14] ss:$8 sps:$4 sm:$0xff]   ;;  %s415_s7 = scalar_lea.vmem %s1265_s3, %s941_s29 }
  0x11   : > { %v453_v13 = vld [vmem:[%s389_s26] sm:$0xff]  ;;  %v1031_v15 = vld [vmem:[%s1263_s1 + $0x10] ss:$8 sps:$4 sm:$0xff]   ;;  %v1035_v18 = vld [vmem:[%s1263_s1 + $0xf4] ss:$8 sps:$4 sm:$0xff]   ;;  %v707_v37 = vsub.s32 0, %v706_v36  ;;  %s429_s12 = scalar_lea.vmem %s1266_s4, %s1166_s17  ;;  %s443_s14 = scalar_lea.vmem %s1267_s5, %s1166_s17 }
  0x12   : > { %656 = vmatpush1.bf16.msra.mxu0 %v1016_v3  ;;  %v947_v14 = vcombine.high %v453_v13, %v453_v13  ;;  %v1032_v16 = vld [vmem:[%s1263_s1 + $0x4] ss:$8 sps:$4 sm:$0xff]   ;;  %v1034_v17 = vld [vmem:[%s1263_s1] ss:$8 sps:$4 sm:$0xff]   ;;  %v1037_v19 = vld [vmem:[%s1263_s1 + $0xf0] ss:$8 sps:$4 sm:$0xff]   ;;  %v946_v34 = vcombine.low %v453_v13, %v453_v13 }
  0x13   : > { %657 = vmatprep.subr.bf16.mxu0 %v1017_v4  ;;  %v1038_v20 = vld [vmem:[%s1263_s1 + $0xe4] ss:$8 sps:$4 sm:$0xff]   ;;  %v1040_v21 = vld [vmem:[%s1263_s1 + $0xe0] ss:$8 sps:$4 sm:$0xff]   ;;  %v1041_v22 = vld [vmem:[%s1263_s1 + $0xd4] ss:$8 sps:$4 sm:$0xff]  }
  0x14   : > { %685 = vmatprep.mubr.bf16.mxu0 %v947_v14  ;;  %v1043_v23 = vld [vmem:[%s1263_s1 + $0xd0] ss:$8 sps:$4 sm:$0xff]   ;;  %v1044_v24 = vld [vmem:[%s1263_s1 + $0xc4] ss:$8 sps:$4 sm:$0xff]   ;;  %v1046_v25 = vld [vmem:[%s1263_s1 + $0xc0] ss:$8 sps:$4 sm:$0xff]  }
  0x15   : > { %v1047_v26 = vld [vmem:[%s1263_s1 + $0xb4] ss:$8 sps:$4 sm:$0xff]   ;;  %v1049_v27 = vld [vmem:[%s1263_s1 + $0xb0] ss:$8 sps:$4 sm:$0xff]   ;;  %v1050_v28 = vld [vmem:[%s1263_s1 + $0xa4] ss:$8 sps:$4 sm:$0xff]  }
  0x16   : > { %658 = vmatpush1.bf16.msra.mxu0 %v1019_v5  ;;  %v1052_v29 = vld [vmem:[%s1263_s1 + $0xa0] ss:$8 sps:$4 sm:$0xff]   ;;  %v1053_v30 = vld [vmem:[%s1263_s1 + $0x94] ss:$8 sps:$4 sm:$0xff]   ;;  %v1055_v31 = vld [vmem:[%s1263_s1 + $0x90] ss:$8 sps:$4 sm:$0xff]  }
  0x17   : > { %659 = vmatprep.subr.bf16.mxu0 %v1020_v6  ;;  %v1056_v32 = vld [vmem:[%s1263_s1 + $0x84] ss:$8 sps:$4 sm:$0xff]   ;;  %v1058_v33 = vld [vmem:[%s1263_s1 + $0x80] ss:$8 sps:$4 sm:$0xff]   ;;  %v711_v39 = vsub.s32 1, %v706_v36 }
  0x18   : > { %v703_v38 = vld [vmem:[%s1264_s2] sm:$0x3] }
  0x19   : > { %v720_v40 = vld [vmem:[%s415_s7] sm:$0x3]  ;;  %v708_v41 = vrot.slane %v703_v38, %v707_v37  ;;  %v712_v44 = vrot.slane %v703_v38, %v711_v39 }
  0x1a   : > { %660 = vmatpush1.bf16.msra.mxu0 %v1022_v7  ;;  %v717_v42 = vld [vmem:[%s429_s12] sm:$0xff]  ;;  %v725_v43 = vrot.slane %v720_v40, %v707_v37  ;;  %v729_v48 = vrot.slane %v720_v40, %v711_v39 }
  0x1b   : > { %661 = vmatprep.subr.bf16.mxu0 %v1023_v8  ;;  %v718_v47 = vunpack.c.l.bf16 %v717_v42  ;;  %v719_v52 = vunpack.c.h.bf16 %v717_v42 }
  0x1e   : > { %662 = vmatpush1.bf16.msra.mxu0 %v1025_v9 }
  0x1f   : > { %663 = vmatprep.subr.bf16.mxu0 %v1026_v10 }
  0x22   : > { %664 = vmatpush1.bf16.msra.mxu0 %v1028_v11 }
  0x23   : > { %665 = vmatprep.subr.bf16.mxu0 %v1029_v12 }
  0x26   : > { %666 = vmatpush1.bf16.msra.mxu0 %v1031_v15 }
  0x27   : > { %667 = vmatprep.subr.bf16.mxu0 %v1032_v16 }
  0x2a   : > { %668 = vmatpush1.bf16.msra.mxu0 %v1034_v17 }
  0x2b   : > { %669 = vmatprep.subr.bf16.mxu0 %v1035_v18 }
  0x2e   : > { %670 = vmatpush2.bf16.msra.mxu0 %v1037_v19 }
  0x2f   : > { %671 = vmatprep.subr.bf16.mxu0 %v1038_v20 }
  0x32   : > { %672 = vmatpush2.bf16.msra.mxu0 %v1040_v21 }
  0x33   : > { %673 = vmatprep.subr.bf16.mxu0 %v1041_v22 }
  0x36   : > { %674 = vmatpush2.bf16.msra.mxu0 %v1043_v23 }
  0x37   : > { %675 = vmatprep.subr.bf16.mxu0 %v1044_v24 }
  0x3a   : > { %676 = vmatpush2.bf16.msra.mxu0 %v1046_v25 }
  0x3b   : > { %677 = vmatprep.subr.bf16.mxu0 %v1047_v26 }
  0x3e   : > { %678 = vmatpush2.bf16.msra.mxu0 %v1049_v27 }
  0x3f   : > { %679 = vmatprep.subr.bf16.mxu0 %v1050_v28 }
  0x42   : > { %680 = vmatpush2.bf16.msra.mxu0 %v1052_v29 }
  0x43   : > { %681 = vmatprep.subr.bf16.mxu0 %v1053_v30 }
  0x46   : > { %682 = vmatpush2.bf16.msra.mxu0 %v1055_v31 }
  0x47   : > { %683 = vmatprep.subr.bf16.mxu0 %v1056_v32 }
  0x4a   : > { %684 = vmatpush2.bf16.msra.mxu0 %v1058_v33 }
  0x4d   : > { %686 = vmatmul.mubr.bf16.vlgmr.msra.gmra.mxu0 %v946_v34 }
 0x10d   : > { %v687_v45 = vpop.f32.mrf.mxu0 }
 0x10e   : > { %v715_v46 = vadd.f32 %v708_v41, %v687_v45 }
 0x10f   : > { %v689_v49 = vpop.f32.mrf.mxu0 }
 0x110   : > { %v732_v50 = vmul.f32 %v725_v43, %v715_v46  ;;  %v716_v51 = vadd.f32 %v712_v44, %v689_v49 }
 0x111   : > { %v691_v53 = vpop.f32.mrf.mxu0 }
 0x112   : > { %v734_v54 = vadd.f32 %v732_v50, %v718_v47  ;;  %v733_v55 = vmul.f32 %v729_v48, %v716_v51 }
 0x113   : > { %v692_v56 = vpop.f32.mrf.mxu0 }
 0x114   : > { %v735_v57 = vadd.f32 %v733_v55, %v719_v52 }
 0x116   : > { %v986_v58 = vpack.c.bf16 %v735_v57, %v734_v54 }
 0x118   : > { %744 = vst [vmem:[%s443_s14] sm:$0xff] %v986_v58 }
 0x119 PF: > { %s15_s20 = sadd.s32 1, %s1083_s20   ;;  %s1268_s18 = smov %s1079_s19 }
 0x11a   : > { %p12_p5 = scmp.ge.s32.totalorder %s15_s20, 4   ;;  %s1269_s19 = smov %s1271_s21 }
 0x11c   :  { %14 = sbr.rel (!%p12_p5) target bundleno = 2 (0x2), region = 90 }

// kernel: flux_forward.50
= control target key start
LH: loop header
LB: loop body
LE: loop exit
PB: predicated region body
PF: predicated region fallthrough
CT: control target
= control target key end

     0   :  { %s2148_s18 = smov 0   ;;  %s2150_s19 = smov 0   ;;  %s2613_s0 = inlined_call_operand.vmem [shape: bf16[2,16,1024], index: 0, kind: input, shape index: {}]   ;;  %s2614_s1 = inlined_call_operand.vmem [shape: bf16[1024,256], index: 1, kind: input, shape index: {}]   ;;  %s2615_s2 = inlined_call_operand.vmem [shape: f32[1,256], index: 2, kind: input, shape index: {}]   ;;  %s2616_s3 = inlined_call_operand.vmem [shape: f32[2,1,256], index: 3, kind: input, shape index: {}]   ;;  %s2617_s4 = inlined_call_operand.vmem [shape: bf16[2,16,256], index: 4, kind: input, shape index: {}]   ;;  %s2618_s5 = inlined_call_operand.vmem [shape: bf16[2,16,256], index: 5, kind: output, shape index: {}]  }
   0x1   :  { %s2152_s20 = smov 0  }
   0x2 LB: > { %s41_s21 = sadd.s32 1, %s2112_s19  ;;  %p1725_p0 = scmp.ge.s32.totalorder %s2116_s20, 1  ;;  %s2116_s20 = sphi %s2152_s20, %s15_s20   ;;  %s2112_s19 = sphi %s2150_s19, %s2620_s19   ;;  %s2108_s18 = sphi %s2148_s18, %s2619_s18  }
   0x3   : > { %p43_p1 = scmp.ge.s32.totalorder %s41_s21, 2  ;;  %p302_p2 = scmp.lt.s32.totalorder %s2116_s20, 3 }
   0x5   : > { %s2622_s21 = smov (%p43_p1, %s41_s21), 0  ;;  %p303_p3 = pnand %p1725_p0, %p302_p2 }
   0x6   : > { %p386_p4 = scmp.lt.s32.totalorder (!%p303_p3), %s2108_s18, 1 }
   0x7   : > { %306 = sbr.rel (%p303_p3) target bundleno = 353 (0x161), region = 40 }
   0xc   : > { %v1902_v0 = vld [vmem:[%s2614_s1 + $0x74] ss:$8 sps:$4 sm:$0xff]   ;;  %v1906_v2 = vld [vmem:[%s2614_s1 + $0x70] ss:$8 sps:$4 sm:$0xff]   ;;  %v1908_v4 = vld [vmem:[%s2614_s1 + $0x64] ss:$8 sps:$4 sm:$0xff]  }
   0xd   : > { %v1904_v1 = vld [vmem:[%s2614_s1 + $0x174] ss:$8 sps:$4 sm:$0xff]   ;;  %1286 = vmatprep.subr.bf16.mxu0 %v1902_v0  ;;  %v1907_v3 = vld [vmem:[%s2614_s1 + $0x170] ss:$8 sps:$4 sm:$0xff]   ;;  %v1910_v5 = vld [vmem:[%s2614_s1 + $0x164] ss:$8 sps:$4 sm:$0xff]  }
   0xe   : > { %1329 = vmatprep.subr.bf16.mxu1 %v1904_v1  ;;  %1287 = vmatpush1.bf16.msra.mxu0 %v1906_v2  ;;  %v1912_v6 = vld [vmem:[%s2614_s1 + $0x60] ss:$8 sps:$4 sm:$0xff]   ;;  %v1914_v8 = vld [vmem:[%s2614_s1 + $0x54] ss:$8 sps:$4 sm:$0xff]   ;;  %v1918_v10 = vld [vmem:[%s2614_s1 + $0x50] ss:$8 sps:$4 sm:$0xff]  }
   0xf   : > { %1330 = vmatpush1.bf16.msra.mxu1 %v1907_v3  ;;  %1288 = vmatprep.subr.bf16.mxu0 %v1908_v4  ;;  %v1913_v7 = vld [vmem:[%s2614_s1 + $0x160] ss:$8 sps:$4 sm:$0xff]   ;;  %v1916_v9 = vld [vmem:[%s2614_s1 + $0x154] ss:$8 sps:$4 sm:$0xff]   ;;  %v1919_v11 = vld [vmem:[%s2614_s1 + $0x150] ss:$8 sps:$4 sm:$0xff]  }
  0x10   : > { %1331 = vmatprep.subr.bf16.mxu1 %v1910_v5  ;;  %v1920_v12 = vld [vmem:[%s2614_s1 + $0x44] ss:$8 sps:$4 sm:$0xff]   ;;  %v1924_v14 = vld [vmem:[%s2614_s1 + $0x40] ss:$8 sps:$4 sm:$0xff]   ;;  %v1926_v16 = vld [vmem:[%s2614_s1 + $0x34] ss:$8 sps:$4 sm:$0xff]  }
  0x11   : > { %v1922_v13 = vld [vmem:[%s2614_s1 + $0x144] ss:$8 sps:$4 sm:$0xff]   ;;  %v1925_v15 = vld [vmem:[%s2614_s1 + $0x140] ss:$8 sps:$4 sm:$0xff]   ;;  %v1928_v17 = vld [vmem:[%s2614_s1 + $0x134] ss:$8 sps:$4 sm:$0xff]  }
  0x12   : > { %1289 = vmatpush1.bf16.msra.mxu0 %v1912_v6  ;;  %v1930_v18 = vld [vmem:[%s2614_s1 + $0x30] ss:$8 sps:$4 sm:$0xff]   ;;  %v1932_v20 = vld [vmem:[%s2614_s1 + $0x24] ss:$8 sps:$4 sm:$0xff]   ;;  %v1936_v22 = vld [vmem:[%s2614_s1 + $0x20] ss:$8 sps:$4 sm:$0xff]  }
  0x13   : > { %1332 = vmatpush1.bf16.msra.mxu1 %v1913_v7  ;;  %1290 = vmatprep.subr.bf16.mxu0 %v1914_v8  ;;  %v1931_v19 = vld [vmem:[%s2614_s1 + $0x130] ss:$8 sps:$4 sm:$0xff]   ;;  %v1934_v21 = vld [vmem:[%s2614_s1 + $0x124] ss:$8 sps:$4 sm:$0xff]   ;;  %v1937_v23 = vld [vmem:[%s2614_s1 + $0x120] ss:$8 sps:$4 sm:$0xff]  }
  0x14   : > { %1333 = vmatprep.subr.bf16.mxu1 %v1916_v9  ;;  %v1938_v24 = vld [vmem:[%s2614_s1 + $0x14] ss:$8 sps:$4 sm:$0xff]   ;;  %v1942_v26 = vld [vmem:[%s2614_s1 + $0x10] ss:$8 sps:$4 sm:$0xff]   ;;  %v1944_v28 = vld [vmem:[%s2614_s1 + $0x4] ss:$8 sps:$4 sm:$0xff]  }
  0x15   : > { %v1940_v25 = vld [vmem:[%s2614_s1 + $0x114] ss:$8 sps:$4 sm:$0xff]   ;;  %v1943_v27 = vld [vmem:[%s2614_s1 + $0x110] ss:$8 sps:$4 sm:$0xff]   ;;  %v1946_v29 = vld [vmem:[%s2614_s1 + $0x104] ss:$8 sps:$4 sm:$0xff]  }
  0x16   : > { %1291 = vmatpush1.bf16.msra.mxu0 %v1918_v10  ;;  %v1948_v30 = vld [vmem:[%s2614_s1] ss:$8 sps:$4 sm:$0xff]   ;;  %v1950_v32 = vld [vmem:[%s2614_s1 + $0xf4] ss:$8 sps:$4 sm:$0xff]   ;;  %v1954_v34 = vld [vmem:[%s2614_s1 + $0xf0] ss:$8 sps:$4 sm:$0xff]  }
  0x17   : > { %1334 = vmatpush1.bf16.msra.mxu1 %v1919_v11  ;;  %1292 = vmatprep.subr.bf16.mxu0 %v1920_v12  ;;  %v1949_v31 = vld [vmem:[%s2614_s1 + $0x100] ss:$8 sps:$4 sm:$0xff]   ;;  %v1952_v33 = vld [vmem:[%s2614_s1 + $0x1f4] ss:$8 sps:$4 sm:$0xff]   ;;  %v1955_v35 = vld [vmem:[%s2614_s1 + $0x1f0] ss:$8 sps:$4 sm:$0xff]  }
  0x18   : > { %1335 = vmatprep.subr.bf16.mxu1 %v1922_v13  ;;  %v1956_v36 = vld [vmem:[%s2614_s1 + $0xe4] ss:$8 sps:$4 sm:$0xff]   ;;  %s2624_s18 = smov (!%p386_p4, %s2108_s18), 1  ;;  %v1960_v38 = vld [vmem:[%s2614_s1 + $0xe0] ss:$8 sps:$4 sm:$0xff]  }
  0x19   : > { %v1958_v37 = vld [vmem:[%s2614_s1 + $0x1e4] ss:$8 sps:$4 sm:$0xff]   ;;  %v1961_v39 = vld [vmem:[%s2614_s1 + $0x1e0] ss:$8 sps:$4 sm:$0xff]   ;;  %v1962_v40 = vld [vmem:[%s2614_s1 + $0xd4] ss:$8 sps:$4 sm:$0xff]  }
  0x1a   : > { %1293 = vmatpush1.bf16.msra.mxu0 %v1924_v14  ;;  %s1873_s16 = sshll.u32 %s2624_s18, 6  ;;  %v1964_v41 = vld [vmem:[%s2614_s1 + $0x1d4] ss:$8 sps:$4 sm:$0xff]   ;;  %v1966_v42 = vld [vmem:[%s2614_s1 + $0xd0] ss:$8 sps:$4 sm:$0xff]   ;;  %s1728_s9 = sshll.u32 %s2624_s18, 1 }
  0x1b   : > { %1336 = vmatpush1.bf16.msra.mxu1 %v1925_v15  ;;  %1294 = vmatprep.subr.bf16.mxu0 %v1926_v16  ;;  %v1967_v43 = vld [vmem:[%s2614_s1 + $0x1d0] ss:$8 sps:$4 sm:$0xff]   ;;  %s2308_s29 = scalar_lea.vmem %s2613_s0, %s1873_s16  ;;  %v1968_v44 = vld [vmem:[%s2614_s1 + $0xc4] ss:$8 sps:$4 sm:$0xff]   ;;  %v1972_v46 = vld [vmem:[%s2614_s1 + $0xc0] ss:$8 sps:$4 sm:$0xff]   ;;  %s424_s12 = scalar_lea.vmem %s2616_s3, %s1728_s9 }
  0x1c   : > { %1337 = vmatprep.subr.bf16.mxu1 %v1928_v17  ;;  %v1970_v45 = vld [vmem:[%s2614_s1 + $0x1c4] ss:$8 sps:$4 sm:$0xff]   ;;  %v1973_v47 = vld [vmem:[%s2614_s1 + $0x1c0] ss:$8 sps:$4 sm:$0xff]   ;;  %v1974_v52 = vld [vmem:[%s2614_s1 + $0xb4] ss:$8 sps:$4 sm:$0xff]  }
  0x1d   : > { %v470_v48 = vld [vmem:[%s2308_s29] sm:$0xff]  ;;  %v471_v50 = vld [vmem:[%s2308_s29 + $0x8] sm:$0xff]  ;;  %v1976_v54 = vld [vmem:[%s2614_s1 + $0x1b4] ss:$8 sps:$4 sm:$0xff]   ;;  %s1874_s13 = sshll.u32 %s2624_s18, 4 }
  0x1e   : > { %1295 = vmatpush1.bf16.msra.mxu0 %v1930_v18  ;;  %v474_v49 = vld [vmem:[%s2308_s29 + $0x20] sm:$0xff]  ;;  %v475_v51 = vld [vmem:[%s2308_s29 + $0x28] sm:$0xff]  ;;  %v1978_v56 = vld [vmem:[%s2614_s1 + $0xb0] ss:$8 sps:$4 sm:$0xff]   ;;  %s439_s22 = scalar_lea.vmem %s2617_s4, %s1874_s13  ;;  %s455_s25 = scalar_lea.vmem %s2618_s5, %s1874_s13 }
  0x1f   : > { %1338 = vmatpush1.bf16.msra.mxu1 %v1931_v19  ;;  %1296 = vmatprep.subr.bf16.mxu0 %v1932_v20  ;;  %v1734_v53 = vcombine.high %v470_v48, %v474_v49  ;;  %v1736_v55 = vcombine.high %v471_v50, %v475_v51  ;;  %v1979_v57 = vld [vmem:[%s2614_s1 + $0x1b0] ss:$8 sps:$4 sm:$0xff]   ;;  %v1980_v58 = vld [vmem:[%s2614_s1 + $0xa4] ss:$8 sps:$4 sm:$0xff]   ;;  %v1984_v60 = vld [vmem:[%s2614_s1 + $0xa0] ss:$8 sps:$4 sm:$0xff]   ;;  %v1733_v8 = vcombine.low %v470_v48, %v474_v49 }
  0x20   : > { %1339 = vmatprep.subr.bf16.mxu1 %v1934_v21  ;;  %v1982_v59 = vld [vmem:[%s2614_s1 + $0x1a4] ss:$8 sps:$4 sm:$0xff]   ;;  %v1985_v61 = vld [vmem:[%s2614_s1 + $0x1a0] ss:$8 sps:$4 sm:$0xff]   ;;  %v1986_v62 = vld [vmem:[%s2614_s1 + $0x94] ss:$8 sps:$4 sm:$0xff]   ;;  %v1735_v9 = vcombine.low %v471_v50, %v475_v51 }
  0x21   : > { %1318 = vmatprep.mubr.bf16.mxu0 %v1734_v53  ;;  %1361 = vmatprep.mubr.bf16.mxu1 %v1736_v55  ;;  %v1988_v63 = vld [vmem:[%s2614_s1 + $0x194] ss:$8 sps:$4 sm:$0xff]   ;;  %v1990_v0 = vld [vmem:[%s2614_s1 + $0x90] ss:$8 sps:$4 sm:$0xff]   ;;  %v1992_v2 = vld [vmem:[%s2614_s1 + $0x84] ss:$8 sps:$4 sm:$0xff]  }
  0x22   : > { %1297 = vmatpush1.bf16.msra.mxu0 %v1936_v22  ;;  %v1991_v1 = vld [vmem:[%s2614_s1 + $0x190] ss:$8 sps:$4 sm:$0xff]   ;;  %v1994_v3 = vld [vmem:[%s2614_s1 + $0x184] ss:$8 sps:$4 sm:$0xff]   ;;  %v1996_v4 = vld [vmem:[%s2614_s1 + $0x80] ss:$8 sps:$4 sm:$0xff]  }
  0x23   : > { %1340 = vmatpush1.bf16.msra.mxu1 %v1937_v23  ;;  %1298 = vmatprep.subr.bf16.mxu0 %v1938_v24  ;;  %v1997_v5 = vld [vmem:[%s2614_s1 + $0x180] ss:$8 sps:$4 sm:$0xff]   ;;  %v2000_v6 = vld [vmem:[%s2614_s1 + $0x274] ss:$8 sps:$4 sm:$0xff]   ;;  %v1998_v10 = vld [vmem:[%s2614_s1 + $0x270] ss:$8 sps:$4 sm:$0xff]  }
  0x24   : > { %1341 = vmatprep.subr.bf16.mxu1 %v1940_v25  ;;  %v2003_v7 = vld [vmem:[%s2614_s1 + $0x374] ss:$8 sps:$4 sm:$0xff]   ;;  %v2001_v11 = vld [vmem:[%s2614_s1 + $0x370] ss:$8 sps:$4 sm:$0xff]   ;;  %v2006_v12 = vld [vmem:[%s2614_s1 + $0x264] ss:$8 sps:$4 sm:$0xff]  }
  0x25   : > { %v2009_v13 = vld [vmem:[%s2614_s1 + $0x364] ss:$8 sps:$4 sm:$0xff]   ;;  %v2004_v14 = vld [vmem:[%s2614_s1 + $0x260] ss:$8 sps:$4 sm:$0xff]   ;;  %v2012_v16 = vld [vmem:[%s2614_s1 + $0x254] ss:$8 sps:$4 sm:$0xff]  }
  0x26   : > { %1299 = vmatpush1.bf16.msra.mxu0 %v1942_v26  ;;  %v2007_v15 = vld [vmem:[%s2614_s1 + $0x360] ss:$8 sps:$4 sm:$0xff]   ;;  %v2015_v17 = vld [vmem:[%s2614_s1 + $0x354] ss:$8 sps:$4 sm:$0xff]   ;;  %v2010_v18 = vld [vmem:[%s2614_s1 + $0x250] ss:$8 sps:$4 sm:$0xff]  }
  0x27   : > { %1342 = vmatpush1.bf16.msra.mxu1 %v1943_v27  ;;  %1300 = vmatprep.subr.bf16.mxu0 %v1944_v28  ;;  %v2013_v19 = vld [vmem:[%s2614_s1 + $0x350] ss:$8 sps:$4 sm:$0xff]   ;;  %v2018_v20 = vld [vmem:[%s2614_s1 + $0x244] ss:$8 sps:$4 sm:$0xff]   ;;  %v2016_v22 = vld [vmem:[%s2614_s1 + $0x240] ss:$8 sps:$4 sm:$0xff]  }
  0x28   : > { %1343 = vmatprep.subr.bf16.mxu1 %v1946_v29  ;;  %v2021_v21 = vld [vmem:[%s2614_s1 + $0x344] ss:$8 sps:$4 sm:$0xff]   ;;  %v2019_v23 = vld [vmem:[%s2614_s1 + $0x340] ss:$8 sps:$4 sm:$0xff]   ;;  %v2024_v24 = vld [vmem:[%s2614_s1 + $0x234] ss:$8 sps:$4 sm:$0xff]  }
  0x29   : > { %v2027_v25 = vld [vmem:[%s2614_s1 + $0x334] ss:$8 sps:$4 sm:$0xff]   ;;  %v2022_v26 = vld [vmem:[%s2614_s1 + $0x230] ss:$8 sps:$4 sm:$0xff]   ;;  %v2030_v28 = vld [vmem:[%s2614_s1 + $0x224] ss:$8 sps:$4 sm:$0xff]  }
  0x2a   : > { %1301 = vmatpush1.bf16.msra.mxu0 %v1948_v30  ;;  %v2025_v27 = vld [vmem:[%s2614_s1 + $0x330] ss:$8 sps:$4 sm:$0xff]   ;;  %v2033_v29 = vld [vmem:[%s2614_s1 + $0x324] ss:$8 sps:$4 sm:$0xff]   ;;  %v2028_v30 = vld [vmem:[%s2614_s1 + $0x220] ss:$8 sps:$4 sm:$0xff]  }
  0x2b   : > { %1344 = vmatpush1.bf16.msra.mxu1 %v1949_v31  ;;  %1302 = vmatprep.subr.bf16.mxu0 %v1950_v32  ;;  %v2031_v31 = vld [vmem:[%s2614_s1 + $0x320] ss:$8 sps:$4 sm:$0xff]   ;;  %v2036_v32 = vld [vmem:[%s2614_s1 + $0x214] ss:$8 sps:$4 sm:$0xff]   ;;  %v2046_v48 = vld [vmem:[%s2614_s1 + $0x2f0] ss:$8 sps:$4 sm:$0xff]  }
  0x2c   : > { %1345 = vmatprep.subr.bf16.mxu1 %v1952_v33  ;;  %v2039_v33 = vld [vmem:[%s2614_s1 + $0x314] ss:$8 sps:$4 sm:$0xff]   ;;  %v2049_v49 = vld [vmem:[%s2614_s1 + $0x3f0] ss:$8 sps:$4 sm:$0xff]   ;;  %v2054_v50 = vld [vmem:[%s2614_s1 + $0x2e4] ss:$8 sps:$4 sm:$0xff]  }
  0x2d   : > { %v2057_v51 = vld [vmem:[%s2614_s1 + $0x3e4] ss:$8 sps:$4 sm:$0xff]   ;;  %v2055_v53 = vld [vmem:[%s2614_s1 + $0x3e0] ss:$8 sps:$4 sm:$0xff]   ;;  %v2063_v55 = vld [vmem:[%s2614_s1 + $0x3d4] ss:$8 sps:$4 sm:$0xff]  }
  0x2e   : > { %1303 = vmatpush2.bf16.msra.mxu0 %v1954_v34  ;;  %v2453_v34 = vld [vmem:[%s2308_s29 + $0x10] sm:$0xff] }
  0x2f   : > { %1346 = vmatpush2.bf16.msra.mxu1 %v1955_v35  ;;  %1304 = vmatprep.subr.bf16.mxu0 %v1956_v36  ;;  %v2456_v35 = vld [vmem:[%s2308_s29 + $0x30] sm:$0xff]  ;;  %v2459_v36 = vld [vmem:[%s2308_s29 + $0x18] sm:$0xff] }
  0x30   : > { %1347 = vmatprep.subr.bf16.mxu1 %v1958_v37  ;;  %v2462_v37 = vld [vmem:[%s2308_s29 + $0x38] sm:$0xff] }
  0x32   : > { %1305 = vmatpush2.bf16.msra.mxu0 %v1960_v38  ;;  %v2034_v38 = vld [vmem:[%s2614_s1 + $0x210] ss:$8 sps:$4 sm:$0xff]  }
  0x33   : > { %1348 = vmatpush2.bf16.msra.mxu1 %v1961_v39  ;;  %1306 = vmatprep.subr.bf16.mxu0 %v1962_v40  ;;  %v2037_v39 = vld [vmem:[%s2614_s1 + $0x310] ss:$8 sps:$4 sm:$0xff]   ;;  %v1738_v40 = vcombine.high %v2453_v34, %v2456_v35 }
  0x34   : > { %1349 = vmatprep.subr.bf16.mxu1 %v1964_v41  ;;  %v2042_v41 = vld [vmem:[%s2614_s1 + $0x204] ss:$8 sps:$4 sm:$0xff]  }
  0x36   : > { %1307 = vmatpush2.bf16.msra.mxu0 %v1966_v42  ;;  %v2045_v42 = vld [vmem:[%s2614_s1 + $0x304] ss:$8 sps:$4 sm:$0xff]  }
  0x37   : > { %1350 = vmatpush2.bf16.msra.mxu1 %v1967_v43  ;;  %1308 = vmatprep.subr.bf16.mxu0 %v1968_v44  ;;  %v1740_v43 = vcombine.high %v2459_v36, %v2462_v37  ;;  %v2040_v44 = vld [vmem:[%s2614_s1 + $0x200] ss:$8 sps:$4 sm:$0xff]  }
  0x38   : > { %1351 = vmatprep.subr.bf16.mxu1 %v1970_v45  ;;  %v2043_v45 = vld [vmem:[%s2614_s1 + $0x300] ss:$8 sps:$4 sm:$0xff]  }
  0x3a   : > { %1309 = vmatpush2.bf16.msra.mxu0 %v1972_v46  ;;  %v2048_v46 = vld [vmem:[%s2614_s1 + $0x2f4] ss:$8 sps:$4 sm:$0xff]  }
  0x3b   : > { %1352 = vmatpush2.bf16.msra.mxu1 %v1973_v47  ;;  %1310 = vmatprep.subr.bf16.mxu0 %v1974_v52  ;;  %v2051_v47 = vld [vmem:[%s2614_s1 + $0x3f4] ss:$8 sps:$4 sm:$0xff]   ;;  %v2052_v52 = vld [vmem:[%s2614_s1 + $0x2e0] ss:$8 sps:$4 sm:$0xff]  }
  0x3c   : > { %1353 = vmatprep.subr.bf16.mxu1 %v1976_v54  ;;  %v2060_v54 = vld [vmem:[%s2614_s1 + $0x2d4] ss:$8 sps:$4 sm:$0xff]  }
  0x3e   : > { %1311 = vmatpush2.bf16.msra.mxu0 %v1978_v56  ;;  %v2058_v56 = vld [vmem:[%s2614_s1 + $0x2d0] ss:$8 sps:$4 sm:$0xff]  }
  0x3f   : > { %1354 = vmatpush2.bf16.msra.mxu1 %v1979_v57  ;;  %1312 = vmatprep.subr.bf16.mxu0 %v1980_v58  ;;  %v2061_v57 = vld [vmem:[%s2614_s1 + $0x3d0] ss:$8 sps:$4 sm:$0xff]   ;;  %v2066_v58 = vld [vmem:[%s2614_s1 + $0x2c4] ss:$8 sps:$4 sm:$0xff]  }
  0x40   : > { %1355 = vmatprep.subr.bf16.mxu1 %v1982_v59  ;;  %v2069_v59 = vld [vmem:[%s2614_s1 + $0x3c4] ss:$8 sps:$4 sm:$0xff]  }
  0x42   : > { %1313 = vmatpush2.bf16.msra.mxu0 %v1984_v60  ;;  %v2064_v60 = vld [vmem:[%s2614_s1 + $0x2c0] ss:$8 sps:$4 sm:$0xff]  }
  0x43   : > { %1356 = vmatpush2.bf16.msra.mxu1 %v1985_v61  ;;  %1314 = vmatprep.subr.bf16.mxu0 %v1986_v62  ;;  %v2067_v61 = vld [vmem:[%s2614_s1 + $0x3c0] ss:$8 sps:$4 sm:$0xff]   ;;  %v2072_v62 = vld [vmem:[%s2614_s1 + $0x2b4] ss:$8 sps:$4 sm:$0xff]  }
  0x44   : > { %1357 = vmatprep.subr.bf16.mxu1 %v1988_v63  ;;  %v2075_v63 = vld [vmem:[%s2614_s1 + $0x3b4] ss:$8 sps:$4 sm:$0xff]  }
  0x46   : > { %1315 = vmatpush2.bf16.msra.mxu0 %v1990_v0  ;;  %v2070_v0 = vld [vmem:[%s2614_s1 + $0x2b0] ss:$8 sps:$4 sm:$0xff]  }
  0x47   : > { %1358 = vmatpush2.bf16.msra.mxu1 %v1991_v1  ;;  %1316 = vmatprep.subr.bf16.mxu0 %v1992_v2  ;;  %v2073_v1 = vld [vmem:[%s2614_s1 + $0x3b0] ss:$8 sps:$4 sm:$0xff]   ;;  %v2078_v2 = vld [vmem:[%s2614_s1 + $0x2a4] ss:$8 sps:$4 sm:$0xff]  }
  0x48   : > { %1359 = vmatprep.subr.bf16.mxu1 %v1994_v3  ;;  %v2081_v3 = vld [vmem:[%s2614_s1 + $0x3a4] ss:$8 sps:$4 sm:$0xff]  }
  0x4a   : > { %1317 = vmatpush2.bf16.msra.mxu0 %v1996_v4  ;;  %v2076_v4 = vld [vmem:[%s2614_s1 + $0x2a0] ss:$8 sps:$4 sm:$0xff]  }
  0x4b   : > { %1360 = vmatpush2.bf16.msra.mxu1 %v1997_v5  ;;  %1372 = vmatprep.subr.bf16.mxu0 %v2000_v6  ;;  %v2079_v5 = vld [vmem:[%s2614_s1 + $0x3a0] ss:$8 sps:$4 sm:$0xff]   ;;  %v2084_v6 = vld [vmem:[%s2614_s1 + $0x294] ss:$8 sps:$4 sm:$0xff]  }
  0x4c   : > { %1415 = vmatprep.subr.bf16.mxu1 %v2003_v7  ;;  %v2087_v7 = vld [vmem:[%s2614_s1 + $0x394] ss:$8 sps:$4 sm:$0xff]  }
  0x4d   : > { %1319 = vmatmul.mubr.bf16.vlgmr.msra.gmra.mxu0 %v1733_v8  ;;  %v2082_v8 = vld [vmem:[%s2614_s1 + $0x290] ss:$8 sps:$4 sm:$0xff]  }
  0x4e   : > { %1362 = vmatmul.mubr.bf16.vlgmr.msra.gmra.mxu1 %v1735_v9  ;;  %1373 = vmatpush1.bf16.msra.mxu0 %v1998_v10  ;;  %v2085_v9 = vld [vmem:[%s2614_s1 + $0x390] ss:$8 sps:$4 sm:$0xff]   ;;  %v2090_v10 = vld [vmem:[%s2614_s1 + $0x284] ss:$8 sps:$4 sm:$0xff]  }
  0x4f   : > { %1416 = vmatpush1.bf16.msra.mxu1 %v2001_v11  ;;  %1374 = vmatprep.subr.bf16.mxu0 %v2006_v12  ;;  %v2093_v11 = vld [vmem:[%s2614_s1 + $0x384] ss:$8 sps:$4 sm:$0xff]   ;;  %v2088_v12 = vld [vmem:[%s2614_s1 + $0x280] ss:$8 sps:$4 sm:$0xff]  }
  0x50   : > { %1417 = vmatprep.subr.bf16.mxu1 %v2009_v13  ;;  %1404 = vmatprep.mubr.bf16.mxu0 %v1738_v40  ;;  %v2091_v13 = vld [vmem:[%s2614_s1 + $0x380] ss:$8 sps:$4 sm:$0xff]  }
  0x51   : > { %1447 = vmatprep.mubr.bf16.mxu1 %v1740_v43 }
  0x52   : > { %1375 = vmatpush1.bf16.msra.mxu0 %v2004_v14  ;;  %v1737_v14 = vcombine.low %v2453_v34, %v2456_v35 }
  0x53   : > { %1418 = vmatpush1.bf16.msra.mxu1 %v2007_v15  ;;  %1376 = vmatprep.subr.bf16.mxu0 %v2012_v16  ;;  %v1739_v15 = vcombine.low %v2459_v36, %v2462_v37 }
  0x54   : > { %1419 = vmatprep.subr.bf16.mxu1 %v2015_v17 }
  0x56   : > { %1377 = vmatpush1.bf16.msra.mxu0 %v2010_v18  ;;  %v1475_v18 = vlaneseq }
  0x57   : > { %1420 = vmatpush1.bf16.msra.mxu1 %v2013_v19  ;;  %1378 = vmatprep.subr.bf16.mxu0 %v2018_v20 }
  0x58   : > { %1421 = vmatprep.subr.bf16.mxu1 %v2021_v21  ;;  %v1476_v21 = vshrl.u32 %v1475_v18, 7 }
  0x5a   : > { %1379 = vmatpush1.bf16.msra.mxu0 %v2016_v22 }
  0x5b   : > { %1422 = vmatpush1.bf16.msra.mxu1 %v2019_v23  ;;  %1380 = vmatprep.subr.bf16.mxu0 %v2024_v24  ;;  %v1477_v24 = vsub.s32 0, %v1476_v21 }
  0x5c   : > { %1423 = vmatprep.subr.bf16.mxu1 %v2027_v25 }
  0x5e   : > { %1381 = vmatpush1.bf16.msra.mxu0 %v2022_v26 }
  0x5f   : > { %1424 = vmatpush1.bf16.msra.mxu1 %v2025_v27  ;;  %1382 = vmatprep.subr.bf16.mxu0 %v2030_v28  ;;  %v1473_v27 = vld [vmem:[%s2615_s2] sm:$0x3] }
  0x60   : > { %1425 = vmatprep.subr.bf16.mxu1 %v2033_v29  ;;  %v1495_v29 = vld [vmem:[%s424_s12] sm:$0x3]  ;;  %v1478_v35 = vrot.slane %v1473_v27, %v1477_v24 }
  0x61   : > { %v1500_v36 = vrot.slane %v1495_v29, %v1477_v24 }
  0x62   : > { %1383 = vmatpush1.bf16.msra.mxu0 %v2028_v30  ;;  %v1481_v30 = vsub.s32 1, %v1476_v21 }
  0x63   : > { %1426 = vmatpush1.bf16.msra.mxu1 %v2031_v31  ;;  %1384 = vmatprep.subr.bf16.mxu0 %v2036_v32 }
  0x64   : > { %1427 = vmatprep.subr.bf16.mxu1 %v2039_v33  ;;  %v1482_v43 = vrot.slane %v1473_v27, %v1481_v30 }
  0x66   : > { %1385 = vmatpush1.bf16.msra.mxu0 %v2034_v38 }
  0x67   : > { %1428 = vmatpush1.bf16.msra.mxu1 %v2037_v39  ;;  %1386 = vmatprep.subr.bf16.mxu0 %v2042_v41  ;;  %v1489_v41 = vld [vmem:[%s439_s22] sm:$0xff] }
  0x68   : > { %1429 = vmatprep.subr.bf16.mxu1 %v2045_v42 }
  0x6a   : > { %1387 = vmatpush1.bf16.msra.mxu0 %v2040_v44  ;;  %v1504_v44 = vrot.slane %v1495_v29, %v1481_v30 }
  0x6b   : > { %1430 = vmatpush1.bf16.msra.mxu1 %v2043_v45  ;;  %1388 = vmatprep.subr.bf16.mxu0 %v2048_v46 }
  0x6c   : > { %1431 = vmatprep.subr.bf16.mxu1 %v2051_v47 }
  0x6e   : > { %1389 = vmatpush2.bf16.msra.mxu0 %v2046_v48 }
  0x6f   : > { %1432 = vmatpush2.bf16.msra.mxu1 %v2049_v49  ;;  %1390 = vmatprep.subr.bf16.mxu0 %v2054_v50 }
  0x70   : > { %1433 = vmatprep.subr.bf16.mxu1 %v2057_v51  ;;  %v1491_v51 = vunpack.c.l.bf16 %v1489_v41 }
  0x72   : > { %1391 = vmatpush2.bf16.msra.mxu0 %v2052_v52  ;;  %v1492_v52 = vunpack.c.h.bf16 %v1489_v41 }
  0x73   : > { %1434 = vmatpush2.bf16.msra.mxu1 %v2055_v53  ;;  %1392 = vmatprep.subr.bf16.mxu0 %v2060_v54 }
  0x74   : > { %1435 = vmatprep.subr.bf16.mxu1 %v2063_v55 }
  0x76   : > { %1393 = vmatpush2.bf16.msra.mxu0 %v2058_v56 }
  0x77   : > { %1436 = vmatpush2.bf16.msra.mxu1 %v2061_v57  ;;  %1394 = vmatprep.subr.bf16.mxu0 %v2066_v58  ;;  %v1490_v57 = vld [vmem:[%s439_s22 + $0x8] sm:$0xff] }
  0x78   : > { %1437 = vmatprep.subr.bf16.mxu1 %v2069_v59 }
  0x7a   : > { %1395 = vmatpush2.bf16.msra.mxu0 %v2064_v60 }
  0x7b   : > { %1438 = vmatpush2.bf16.msra.mxu1 %v2067_v61  ;;  %1396 = vmatprep.subr.bf16.mxu0 %v2072_v62 }
  0x7c   : > { %1439 = vmatprep.subr.bf16.mxu1 %v2075_v63  ;;  %v1493_v63 = vunpack.c.l.bf16 %v1490_v57 }
  0x7e   : > { %1397 = vmatpush2.bf16.msra.mxu0 %v2070_v0  ;;  %v1494_v0 = vunpack.c.h.bf16 %v1490_v57 }
  0x7f   : > { %1440 = vmatpush2.bf16.msra.mxu1 %v2073_v1  ;;  %1398 = vmatprep.subr.bf16.mxu0 %v2078_v2 }
  0x80   : > { %1441 = vmatprep.subr.bf16.mxu1 %v2081_v3 }
  0x82   : > { %1399 = vmatpush2.bf16.msra.mxu0 %v2076_v4 }
  0x83   : > { %1442 = vmatpush2.bf16.msra.mxu1 %v2079_v5  ;;  %1400 = vmatprep.subr.bf16.mxu0 %v2084_v6 }
  0x84   : > { %1443 = vmatprep.subr.bf16.mxu1 %v2087_v7 }
  0x86   : > { %1401 = vmatpush2.bf16.msra.mxu0 %v2082_v8 }
  0x87   : > { %1444 = vmatpush2.bf16.msra.mxu1 %v2085_v9  ;;  %1402 = vmatprep.subr.bf16.mxu0 %v2090_v10 }
  0x88   : > { %1445 = vmatprep.subr.bf16.mxu1 %v2093_v11 }
  0x8a   : > { %1403 = vmatpush2.bf16.msra.mxu0 %v2088_v12 }
  0x8b   : > { %1446 = vmatpush2.bf16.msra.mxu1 %v2091_v13 }
  0x8d   : > { %1405 = vmatmul.mubr.bf16.vlgmr.msra.gmra.mxu0 %v1737_v14 }
  0x8e   : > { %1448 = vmatmul.mubr.bf16.vlgmr.msra.gmra.mxu1 %v1739_v15 }
 0x10d   : > { %v1320_v16 = vpop.f32.mrf.mxu0 }
 0x10e   : > { %v1363_v17 = vpop.f32.mrf.mxu1 }
 0x10f   : > { %v1322_v19 = vpop.f32.mrf.mxu0  ;;  %v1364_v28 = vadd.f32 %v1363_v17, %v1320_v16 }
 0x110   : > { %v1365_v20 = vpop.f32.mrf.mxu1 }
 0x111   : > { %v1324_v22 = vpop.f32.mrf.mxu0  ;;  %v1366_v33 = vadd.f32 %v1365_v20, %v1322_v19 }
 0x112   : > { %v1367_v23 = vpop.f32.mrf.mxu1 }
 0x113   : > { %v1326_v25 = vpop.f32.mrf.mxu0  ;;  %v1368_v39 = vadd.f32 %v1367_v23, %v1324_v22 }
 0x114   : > { %v1369_v26 = vpop.f32.mrf.mxu1 }
 0x115   : > { %v1370_v47 = vadd.f32 %v1369_v26, %v1326_v25 }
 0x14d   : > { %v1406_v31 = vpop.f32.mrf.mxu0 }
 0x14e   : > { %v1449_v32 = vpop.f32.mrf.mxu1  ;;  %v1407_v34 = vadd.f32 %v1406_v31, %v1364_v28 }
 0x14f   : > { %v1408_v37 = vpop.f32.mrf.mxu0 }
 0x150   : > { %v1451_v38 = vpop.f32.mrf.mxu1  ;;  %v1450_v40 = vadd.f32 %v1449_v32, %v1407_v34  ;;  %v1409_v42 = vadd.f32 %v1408_v37, %v1366_v33 }
 0x151   : > { %v1410_v45 = vpop.f32.mrf.mxu0 }
 0x152   : > { %v1453_v46 = vpop.f32.mrf.mxu1  ;;  %v1485_v48 = vadd.f32 %v1478_v35, %v1450_v40  ;;  %v1452_v49 = vadd.f32 %v1451_v38, %v1409_v42  ;;  %v1411_v50 = vadd.f32 %v1410_v45, %v1368_v39 }
 0x153   : > { %v1412_v53 = vpop.f32.mrf.mxu0 }
 0x154   : > { %v1507_v54 = vmul.f32 %v1500_v36, %v1485_v48  ;;  %v1486_v55 = vadd.f32 %v1482_v43, %v1452_v49  ;;  %v1454_v56 = vadd.f32 %v1453_v46, %v1411_v50  ;;  %v1413_v58 = vadd.f32 %v1412_v53, %v1370_v47  ;;  %v1455_v59 = vpop.f32.mrf.mxu1 }
 0x156   : > { %v1508_v60 = vmul.f32 %v1504_v44, %v1486_v55  ;;  %v1487_v61 = vadd.f32 %v1478_v35, %v1454_v56  ;;  %v1456_v62 = vadd.f32 %v1455_v59, %v1413_v58  ;;  %v1511_v1 = vadd.f32 %v1507_v54, %v1491_v51 }
 0x158   : > { %v1512_v2 = vadd.f32 %v1508_v60, %v1492_v52  ;;  %v1509_v3 = vmul.f32 %v1500_v36, %v1487_v61  ;;  %v1488_v4 = vadd.f32 %v1482_v43, %v1456_v62 }
 0x15a   : > { %v1876_v5 = vpack.c.bf16 %v1512_v2, %v1511_v1  ;;  %v1510_v6 = vmul.f32 %v1504_v44, %v1488_v4  ;;  %v1513_v7 = vadd.f32 %v1509_v3, %v1493_v63 }
 0x15c   : > { %1527 = vst [vmem:[%s455_s25] sm:$0xff] %v1876_v5  ;;  %v1514_v8 = vadd.f32 %v1510_v6, %v1494_v0 }
 0x15e   : > { %v1877_v9 = vpack.c.bf16 %v1514_v8, %v1513_v7 }
 0x160   : > { %1528 = vst [vmem:[%s455_s25 + $0x8] sm:$0xff] %v1877_v9 }
 0x161 PF: > { %s15_s20 = sadd.s32 1, %s2116_s20   ;;  %s2619_s18 = smov %s2112_s19 }
 0x162   : > { %p12_p5 = scmp.ge.s32.totalorder %s15_s20, 4   ;;  %s2620_s19 = smov %s2622_s21 }
 0x164   :  { %14 = sbr.rel (!%p12_p5) target bundleno = 2 (0x2), region = 90 }

// kernel: flux_forward.53
= control target key start
LH: loop header
LB: loop body
LE: loop exit
PB: predicated region body
PF: predicated region fallthrough
CT: control target
= control target key end

     0   :  { %s1840_s12 = smov 0   ;;  %s1842_s13 = smov 0   ;;  %s2312_s0 = inlined_call_operand.vmem [shape: bf16[2,8,256], index: 0, kind: input, shape index: {}]   ;;  %s2313_s1 = inlined_call_operand.vmem [shape: bf16[256,1024], index: 1, kind: input, shape index: {}]   ;;  %s2314_s2 = inlined_call_operand.vmem [shape: f32[1,1024], index: 2, kind: input, shape index: {}]   ;;  %s2315_s3 = inlined_call_operand.vmem [shape: bf16[2,8,1024], index: 3, kind: output, shape index: {}]  }
   0x1   :  { %s1844_s14 = smov 0  }
   0x2 LB: > { %s39_s15 = sadd.s32 1, %s1814_s13  ;;  %p1607_p0 = scmp.ge.s32.totalorder %s1818_s14, 1  ;;  %s1818_s14 = sphi %s1844_s14, %s13_s14   ;;  %s1814_s13 = sphi %s1842_s13, %s2317_s13   ;;  %s1810_s12 = sphi %s1840_s12, %s2316_s12  }
   0x3   : > { %p41_p1 = scmp.ge.s32.totalorder %s39_s15, 2  ;;  %p209_p2 = scmp.lt.s32.totalorder %s1818_s14, 3 }
   0x5   : > { %s2319_s15 = smov (%p41_p1, %s39_s15), 0  ;;  %p210_p3 = pnand %p1607_p0, %p209_p2 }
   0x6   : > { %p264_p4 = scmp.lt.s32.totalorder (!%p210_p3), %s1810_s12, 1 }
   0x7   : > { %213 = sbr.rel (%p210_p3) target bundleno = 373 (0x175), region = 32 }
   0xc   : > { %v385_v0 = vld [vmem:[%s2313_s1 + $0x1c0] sm:$0xff]  ;;  %v386_v2 = vld [vmem:[%s2313_s1 + $0x1c8] sm:$0xff]  ;;  %s2321_s12 = smov (!%p264_p4, %s1810_s12), 1 }
   0xd   : > { %v389_v1 = vld [vmem:[%s2313_s1 + $0x1e0] sm:$0xff]  ;;  %v390_v4 = vld [vmem:[%s2313_s1 + $0x1e8] sm:$0xff]  ;;  %s1748_s18 = sshll.u32 %s2321_s12, 3 }
   0xe   : > { %v1671_v3 = vcombine.high %v385_v0, %v389_v1  ;;  %v1670_v5 = vcombine.low %v385_v0, %v389_v1  ;;  %v377_v6 = vld [vmem:[%s2313_s1 + $0x180] sm:$0xff]  ;;  %v1673_v8 = vcombine.high %v386_v2, %v390_v4  ;;  %v1672_v9 = vcombine.low %v386_v2, %v390_v4  ;;  %v378_v11 = vld [vmem:[%s2313_s1 + $0x188] sm:$0xff]  ;;  %s275_s25 = scalar_lea.vmem %s2312_s0, %s1748_s18 }
   0xf   : > { %v381_v7 = vld [vmem:[%s2313_s1 + $0x1a0] sm:$0xff]  ;;  %v382_v12 = vld [vmem:[%s2313_s1 + $0x1a8] sm:$0xff] }
  0x10   : > { %v1663_v10 = vcombine.high %v377_v6, %v381_v7  ;;  %v369_v13 = vld [vmem:[%s2313_s1 + $0x140] sm:$0xff]  ;;  %1104 = vmatprep.subr.bf16.mxu0 %v1671_v3  ;;  %v1665_v14 = vcombine.high %v378_v11, %v382_v12  ;;  %v370_v16 = vld [vmem:[%s2313_s1 + $0x148] sm:$0xff]  ;;  %1145 = vmatprep.subr.bf16.mxu1 %v1673_v8  ;;  %v1662_v18 = vcombine.low %v377_v6, %v381_v7 }
  0x11   : > { %v373_v15 = vld [vmem:[%s2313_s1 + $0x160] sm:$0xff]  ;;  %v374_v17 = vld [vmem:[%s2313_s1 + $0x168] sm:$0xff]  ;;  %1105 = vmatpush1.bf16.msra.mxu0 %v1670_v5  ;;  %1146 = vmatpush1.bf16.msra.mxu1 %v1672_v9  ;;  %v1664_v19 = vcombine.low %v378_v11, %v382_v12 }
  0x12   : > { %1106 = vmatprep.subr.bf16.mxu0 %v1663_v10  ;;  %v1655_v20 = vcombine.high %v369_v13, %v373_v15  ;;  %1147 = vmatprep.subr.bf16.mxu1 %v1665_v14  ;;  %v1657_v21 = vcombine.high %v370_v16, %v374_v17  ;;  %v361_v22 = vld [vmem:[%s2313_s1 + $0x100] sm:$0xff]  ;;  %v362_v24 = vld [vmem:[%s2313_s1 + $0x108] sm:$0xff]  ;;  %v1654_v26 = vcombine.low %v369_v13, %v373_v15 }
  0x13   : > { %v365_v23 = vld [vmem:[%s2313_s1 + $0x120] sm:$0xff]  ;;  %v366_v25 = vld [vmem:[%s2313_s1 + $0x128] sm:$0xff]  ;;  %v1656_v27 = vcombine.low %v370_v16, %v374_v17 }
  0x14   : > { %v1647_v28 = vcombine.high %v361_v22, %v365_v23  ;;  %v1649_v29 = vcombine.high %v362_v24, %v366_v25  ;;  %v353_v30 = vld [vmem:[%s2313_s1 + $0xc0] sm:$0xff]  ;;  %v354_v32 = vld [vmem:[%s2313_s1 + $0xc8] sm:$0xff]  ;;  %v1646_v34 = vcombine.low %v361_v22, %v365_v23  ;;  %v1648_v35 = vcombine.low %v362_v24, %v366_v25 }
  0x15   : > { %1107 = vmatpush1.bf16.msra.mxu0 %v1662_v18  ;;  %1148 = vmatpush1.bf16.msra.mxu1 %v1664_v19  ;;  %v357_v31 = vld [vmem:[%s2313_s1 + $0xe0] sm:$0xff]  ;;  %v358_v33 = vld [vmem:[%s2313_s1 + $0xe8] sm:$0xff] }
  0x16   : > { %1108 = vmatprep.subr.bf16.mxu0 %v1655_v20  ;;  %1149 = vmatprep.subr.bf16.mxu1 %v1657_v21  ;;  %v1639_v36 = vcombine.high %v353_v30, %v357_v31  ;;  %v1641_v37 = vcombine.high %v354_v32, %v358_v33  ;;  %v345_v38 = vld [vmem:[%s2313_s1 + $0x80] sm:$0xff]  ;;  %v346_v40 = vld [vmem:[%s2313_s1 + $0x88] sm:$0xff]  ;;  %v1638_v42 = vcombine.low %v353_v30, %v357_v31 }
  0x17   : > { %v349_v39 = vld [vmem:[%s2313_s1 + $0xa0] sm:$0xff]  ;;  %v350_v41 = vld [vmem:[%s2313_s1 + $0xa8] sm:$0xff]  ;;  %v1640_v43 = vcombine.low %v354_v32, %v358_v33 }
  0x18   : > { %v1631_v44 = vcombine.high %v345_v38, %v349_v39  ;;  %v1633_v45 = vcombine.high %v346_v40, %v350_v41  ;;  %v337_v46 = vld [vmem:[%s2313_s1 + $0x40] sm:$0xff]  ;;  %v338_v48 = vld [vmem:[%s2313_s1 + $0x48] sm:$0xff]  ;;  %v1630_v50 = vcombine.low %v345_v38, %v349_v39  ;;  %v1632_v51 = vcombine.low %v346_v40, %v350_v41 }
  0x19   : > { %1109 = vmatpush1.bf16.msra.mxu0 %v1654_v26  ;;  %1150 = vmatpush1.bf16.msra.mxu1 %v1656_v27  ;;  %v341_v47 = vld [vmem:[%s2313_s1 + $0x60] sm:$0xff]  ;;  %v342_v49 = vld [vmem:[%s2313_s1 + $0x68] sm:$0xff] }
  0x1a   : > { %1110 = vmatprep.subr.bf16.mxu0 %v1647_v28  ;;  %1151 = vmatprep.subr.bf16.mxu1 %v1649_v29  ;;  %v1623_v52 = vcombine.high %v337_v46, %v341_v47  ;;  %v1952_v53 = vld [vmem:[%s275_s25] sm:$0xff]  ;;  %v1625_v54 = vcombine.high %v338_v48, %v342_v49  ;;  %v330_v58 = vld [vmem:[%s2313_s1 + $0x8] sm:$0xff]  ;;  %v1622_v60 = vcombine.low %v337_v46, %v341_v47  ;;  %s1749_s25 = sshll.u32 %s2321_s12, 5 }
  0x1b   : > { %v329_v55 = vld [vmem:[%s2313_s1] sm:$0xff]  ;;  %v1962_v57 = vcombine.high %v1952_v53, %v1952_v53  ;;  %v334_v59 = vld [vmem:[%s2313_s1 + $0x28] sm:$0xff]  ;;  %v1624_v61 = vcombine.low %v338_v48, %v342_v49  ;;  %s2289_s28 = scalar_lea.vmem %s2315_s3, %s1749_s25 }
  0x1c   : > { %v333_v56 = vld [vmem:[%s2313_s1 + $0x20] sm:$0xff]  ;;  %v1617_v63 = vcombine.high %v330_v58, %v334_v59  ;;  %v450_v2 = vld [vmem:[%s2313_s1 + $0x3c8] sm:$0xff]  ;;  %v1616_v5 = vcombine.low %v330_v58, %v334_v59 }
  0x1d   : > { %1111 = vmatpush1.bf16.msra.mxu0 %v1646_v34  ;;  %1152 = vmatpush1.bf16.msra.mxu1 %v1648_v35  ;;  %v1615_v62 = vcombine.high %v329_v55, %v333_v56  ;;  %v449_v0 = vld [vmem:[%s2313_s1 + $0x3c0] sm:$0xff]  ;;  %v454_v3 = vld [vmem:[%s2313_s1 + $0x3e8] sm:$0xff]  ;;  %v1614_v4 = vcombine.low %v329_v55, %v333_v56 }
  0x1e   : > { %1112 = vmatprep.subr.bf16.mxu0 %v1639_v36  ;;  %1153 = vmatprep.subr.bf16.mxu1 %v1641_v37  ;;  %v453_v1 = vld [vmem:[%s2313_s1 + $0x3e0] sm:$0xff]  ;;  %v1737_v7 = vcombine.high %v450_v2, %v454_v3  ;;  %v442_v10 = vld [vmem:[%s2313_s1 + $0x388] sm:$0xff]  ;;  %v1736_v13 = vcombine.low %v450_v2, %v454_v3  ;;  %v387_v2 = vld [vmem:[%s2313_s1 + $0x1d0] sm:$0xff] }
  0x1f   : > { %1136 = vmatprep.mubr.bf16.mxu0 %v1962_v57  ;;  %1177 = vmatprep.mubr.bf16.mxu1 %v1962_v57  ;;  %v1735_v6 = vcombine.high %v449_v0, %v453_v1  ;;  %v441_v8 = vld [vmem:[%s2313_s1 + $0x380] sm:$0xff]  ;;  %v446_v11 = vld [vmem:[%s2313_s1 + $0x3a8] sm:$0xff]  ;;  %v1734_v12 = vcombine.low %v449_v0, %v453_v1  ;;  %v391_v3 = vld [vmem:[%s2313_s1 + $0x1f0] sm:$0xff] }
  0x20   : > { %v445_v9 = vld [vmem:[%s2313_s1 + $0x3a0] sm:$0xff]  ;;  %v1729_v15 = vcombine.high %v442_v10, %v446_v11  ;;  %v434_v18 = vld [vmem:[%s2313_s1 + $0x348] sm:$0xff]  ;;  %v1728_v21 = vcombine.low %v442_v10, %v446_v11  ;;  %v379_v10 = vld [vmem:[%s2313_s1 + $0x190] sm:$0xff] }
  0x21   : > { %1113 = vmatpush1.bf16.msra.mxu0 %v1638_v42  ;;  %1154 = vmatpush1.bf16.msra.mxu1 %v1640_v43  ;;  %v1727_v14 = vcombine.high %v441_v8, %v445_v9  ;;  %v433_v16 = vld [vmem:[%s2313_s1 + $0x340] sm:$0xff]  ;;  %v438_v19 = vld [vmem:[%s2313_s1 + $0x368] sm:$0xff]  ;;  %v1726_v20 = vcombine.low %v441_v8, %v445_v9  ;;  %v1675_v8 = vcombine.high %v387_v2, %v391_v3  ;;  %v383_v11 = vld [vmem:[%s2313_s1 + $0x1b0] sm:$0xff] }
  0x22   : > { %1114 = vmatprep.subr.bf16.mxu0 %v1631_v44  ;;  %1155 = vmatprep.subr.bf16.mxu1 %v1633_v45  ;;  %v437_v17 = vld [vmem:[%s2313_s1 + $0x360] sm:$0xff]  ;;  %v1721_v23 = vcombine.high %v434_v18, %v438_v19  ;;  %v426_v26 = vld [vmem:[%s2313_s1 + $0x308] sm:$0xff]  ;;  %v1720_v29 = vcombine.low %v434_v18, %v438_v19  ;;  %v375_v19 = vld [vmem:[%s2313_s1 + $0x170] sm:$0xff] }
  0x23   : > { %v1719_v22 = vcombine.high %v433_v16, %v437_v17  ;;  %v425_v24 = vld [vmem:[%s2313_s1 + $0x300] sm:$0xff]  ;;  %v430_v27 = vld [vmem:[%s2313_s1 + $0x328] sm:$0xff]  ;;  %v1718_v28 = vcombine.low %v433_v16, %v437_v17  ;;  %v1667_v17 = vcombine.high %v379_v10, %v383_v11 }
  0x24   : > { %v429_v25 = vld [vmem:[%s2313_s1 + $0x320] sm:$0xff]  ;;  %v1713_v31 = vcombine.high %v426_v26, %v430_v27  ;;  %v418_v34 = vld [vmem:[%s2313_s1 + $0x2c8] sm:$0xff]  ;;  %v1712_v37 = vcombine.low %v426_v26, %v430_v27  ;;  %v363_v26 = vld [vmem:[%s2313_s1 + $0x110] sm:$0xff] }
  0x25   : > { %1115 = vmatpush1.bf16.msra.mxu0 %v1630_v50  ;;  %1156 = vmatpush1.bf16.msra.mxu1 %v1632_v51  ;;  %v1711_v30 = vcombine.high %v425_v24, %v429_v25  ;;  %v417_v32 = vld [vmem:[%s2313_s1 + $0x2c0] sm:$0xff]  ;;  %v422_v35 = vld [vmem:[%s2313_s1 + $0x2e8] sm:$0xff]  ;;  %v1710_v36 = vcombine.low %v425_v24, %v429_v25  ;;  %v367_v27 = vld [vmem:[%s2313_s1 + $0x130] sm:$0xff] }
  0x26   : > { %1116 = vmatprep.subr.bf16.mxu0 %v1623_v52  ;;  %1157 = vmatprep.subr.bf16.mxu1 %v1625_v54  ;;  %v421_v33 = vld [vmem:[%s2313_s1 + $0x2e0] sm:$0xff]  ;;  %v1705_v39 = vcombine.high %v418_v34, %v422_v35  ;;  %v410_v42 = vld [vmem:[%s2313_s1 + $0x288] sm:$0xff]  ;;  %v1704_v45 = vcombine.low %v418_v34, %v422_v35  ;;  %v355_v34 = vld [vmem:[%s2313_s1 + $0xd0] sm:$0xff] }
  0x27   : > { %v1703_v38 = vcombine.high %v417_v32, %v421_v33  ;;  %v409_v40 = vld [vmem:[%s2313_s1 + $0x280] sm:$0xff]  ;;  %v414_v43 = vld [vmem:[%s2313_s1 + $0x2a8] sm:$0xff]  ;;  %v1702_v44 = vcombine.low %v417_v32, %v421_v33  ;;  %v1651_v32 = vcombine.high %v363_v26, %v367_v27  ;;  %v359_v35 = vld [vmem:[%s2313_s1 + $0xf0] sm:$0xff] }
  0x28   : > { %v413_v41 = vld [vmem:[%s2313_s1 + $0x2a0] sm:$0xff]  ;;  %v1697_v47 = vcombine.high %v410_v42, %v414_v43  ;;  %v402_v50 = vld [vmem:[%s2313_s1 + $0x248] sm:$0xff]  ;;  %v1696_v54 = vcombine.low %v410_v42, %v414_v43  ;;  %v351_v42 = vld [vmem:[%s2313_s1 + $0xb0] sm:$0xff] }
  0x29   : > { %1117 = vmatpush1.bf16.msra.mxu0 %v1622_v60  ;;  %1158 = vmatpush1.bf16.msra.mxu1 %v1624_v61  ;;  %v1695_v46 = vcombine.high %v409_v40, %v413_v41  ;;  %v401_v48 = vld [vmem:[%s2313_s1 + $0x240] sm:$0xff]  ;;  %v406_v51 = vld [vmem:[%s2313_s1 + $0x268] sm:$0xff]  ;;  %v1694_v52 = vcombine.low %v409_v40, %v413_v41  ;;  %v347_v41 = vld [vmem:[%s2313_s1 + $0x90] sm:$0xff] }
  0x2a   : > { %1118 = vmatprep.subr.bf16.mxu0 %v1615_v62  ;;  %1159 = vmatprep.subr.bf16.mxu1 %v1617_v63  ;;  %v405_v49 = vld [vmem:[%s2313_s1 + $0x260] sm:$0xff]  ;;  %v1689_v56 = vcombine.high %v402_v50, %v406_v51  ;;  %v394_v60 = vld [vmem:[%s2313_s1 + $0x208] sm:$0xff]  ;;  %v1688_v63 = vcombine.low %v402_v50, %v406_v51  ;;  %v348_v43 = vld [vmem:[%s2313_s1 + $0x98] sm:$0xff] }
  0x2b   : > { %v1687_v55 = vcombine.high %v401_v48, %v405_v49  ;;  %v393_v58 = vld [vmem:[%s2313_s1 + $0x200] sm:$0xff]  ;;  %v398_v61 = vld [vmem:[%s2313_s1 + $0x228] sm:$0xff]  ;;  %v1686_v62 = vcombine.low %v401_v48, %v405_v49  ;;  %v339_v49 = vld [vmem:[%s2313_s1 + $0x50] sm:$0xff] }
  0x2c   : > { %v397_v59 = vld [vmem:[%s2313_s1 + $0x220] sm:$0xff]  ;;  %v1681_v1 = vcombine.high %v394_v60, %v398_v61  ;;  %v343_v50 = vld [vmem:[%s2313_s1 + $0x70] sm:$0xff]  ;;  %v340_v51 = vld [vmem:[%s2313_s1 + $0x58] sm:$0xff] }
  0x2d   : > { %1119 = vmatpush1.bf16.msra.mxu0 %v1614_v4  ;;  %1160 = vmatpush1.bf16.msra.mxu1 %v1616_v5  ;;  %v1679_v0 = vcombine.high %v393_v58, %v397_v59  ;;  %v388_v4 = vld [vmem:[%s2313_s1 + $0x1d8] sm:$0xff] }
  0x2e   : > { %1120 = vmatprep.subr.bf16.mxu0 %v1735_v6  ;;  %1161 = vmatprep.subr.bf16.mxu1 %v1737_v7  ;;  %v392_v5 = vld [vmem:[%s2313_s1 + $0x1f8] sm:$0xff]  ;;  %v1678_v6 = vcombine.low %v393_v58, %v397_v59  ;;  %v1680_v7 = vcombine.low %v394_v60, %v398_v61  ;;  %v331_v59 = vld [vmem:[%s2313_s1 + $0x10] sm:$0xff] }
  0x2f   : > { %v1677_v9 = vcombine.high %v388_v4, %v392_v5  ;;  %v1676_v16 = vcombine.low %v388_v4, %v392_v5  ;;  %v335_v60 = vld [vmem:[%s2313_s1 + $0x30] sm:$0xff]  ;;  %v332_v61 = vld [vmem:[%s2313_s1 + $0x18] sm:$0xff] }
  0x30   : > { %v455_v4 = vld [vmem:[%s2313_s1 + $0x3f0] sm:$0xff]  ;;  %v452_v5 = vld [vmem:[%s2313_s1 + $0x3d8] sm:$0xff] }
  0x31   : > { %1121 = vmatpush2.bf16.msra.mxu0 %v1734_v12  ;;  %1162 = vmatpush2.bf16.msra.mxu1 %v1736_v13  ;;  %v2088_v12 = vcombine.low %v1952_v53, %v1952_v53  ;;  %v380_v13 = vld [vmem:[%s2313_s1 + $0x198] sm:$0xff]  ;;  %v371_v53 = vld [vmem:[%s2313_s1 + $0x150] sm:$0xff] }
  0x32   : > { %1122 = vmatprep.subr.bf16.mxu0 %v1727_v14  ;;  %1163 = vmatprep.subr.bf16.mxu1 %v1729_v15  ;;  %v384_v14 = vld [vmem:[%s2313_s1 + $0x1b8] sm:$0xff]  ;;  %v1674_v15 = vcombine.low %v387_v2, %v391_v3  ;;  %v1659_v24 = vcombine.high %v371_v53, %v375_v19  ;;  %v451_v3 = vld [vmem:[%s2313_s1 + $0x3d0] sm:$0xff] }
  0x33   : > { %v1669_v18 = vcombine.high %v380_v13, %v384_v14 }
  0x35   : > { %1123 = vmatpush2.bf16.msra.mxu0 %v1726_v20  ;;  %1164 = vmatpush2.bf16.msra.mxu1 %v1728_v21  ;;  %v372_v20 = vld [vmem:[%s2313_s1 + $0x158] sm:$0xff] }
  0x36   : > { %1124 = vmatprep.subr.bf16.mxu0 %v1719_v22  ;;  %1165 = vmatprep.subr.bf16.mxu1 %v1721_v23  ;;  %v376_v21 = vld [vmem:[%s2313_s1 + $0x178] sm:$0xff]  ;;  %v1666_v22 = vcombine.low %v379_v10, %v383_v11  ;;  %v1668_v23 = vcombine.low %v380_v13, %v384_v14  ;;  %v443_v11 = vld [vmem:[%s2313_s1 + $0x390] sm:$0xff] }
  0x37   : > { %v1661_v25 = vcombine.high %v372_v20, %v376_v21  ;;  %v447_v13 = vld [vmem:[%s2313_s1 + $0x3b0] sm:$0xff]  ;;  %v444_v14 = vld [vmem:[%s2313_s1 + $0x398] sm:$0xff] }
  0x39   : > { %1125 = vmatpush2.bf16.msra.mxu0 %v1718_v28  ;;  %1166 = vmatpush2.bf16.msra.mxu1 %v1720_v29  ;;  %v364_v28 = vld [vmem:[%s2313_s1 + $0x118] sm:$0xff] }
  0x3a   : > { %1126 = vmatprep.subr.bf16.mxu0 %v1711_v30  ;;  %1167 = vmatprep.subr.bf16.mxu1 %v1713_v31  ;;  %v368_v29 = vld [vmem:[%s2313_s1 + $0x138] sm:$0xff]  ;;  %v1658_v30 = vcombine.low %v371_v53, %v375_v19  ;;  %v1660_v31 = vcombine.low %v372_v20, %v376_v21  ;;  %v435_v19 = vld [vmem:[%s2313_s1 + $0x350] sm:$0xff] }
  0x3b   : > { %v1653_v33 = vcombine.high %v364_v28, %v368_v29  ;;  %v439_v20 = vld [vmem:[%s2313_s1 + $0x370] sm:$0xff]  ;;  %v436_v21 = vld [vmem:[%s2313_s1 + $0x358] sm:$0xff] }
  0x3d   : > { %1127 = vmatpush2.bf16.msra.mxu0 %v1710_v36  ;;  %1168 = vmatpush2.bf16.msra.mxu1 %v1712_v37  ;;  %v360_v36 = vld [vmem:[%s2313_s1 + $0xf8] sm:$0xff]  ;;  %v1650_v37 = vcombine.low %v363_v26, %v367_v27  ;;  %v427_v27 = vld [vmem:[%s2313_s1 + $0x310] sm:$0xff] }
  0x3e   : > { %1128 = vmatprep.subr.bf16.mxu0 %v1703_v38  ;;  %1169 = vmatprep.subr.bf16.mxu1 %v1705_v39  ;;  %v1652_v38 = vcombine.low %v364_v28, %v368_v29  ;;  %v1643_v39 = vcombine.high %v355_v34, %v359_v35  ;;  %v431_v28 = vld [vmem:[%s2313_s1 + $0x330] sm:$0xff]  ;;  %v428_v29 = vld [vmem:[%s2313_s1 + $0x318] sm:$0xff] }
  0x41   : > { %1129 = vmatpush2.bf16.msra.mxu0 %v1702_v44  ;;  %1170 = vmatpush2.bf16.msra.mxu1 %v1704_v45  ;;  %v352_v44 = vld [vmem:[%s2313_s1 + $0xb8] sm:$0xff]  ;;  %v1642_v45 = vcombine.low %v355_v34, %v359_v35  ;;  %v419_v35 = vld [vmem:[%s2313_s1 + $0x2d0] sm:$0xff] }
  0x42   : > { %1130 = vmatprep.subr.bf16.mxu0 %v1695_v46  ;;  %1171 = vmatprep.subr.bf16.mxu1 %v1697_v47  ;;  %v1635_v47 = vcombine.high %v347_v41, %v351_v42  ;;  %v1637_v48 = vcombine.high %v348_v43, %v352_v44 }
  0x45   : > { %1131 = vmatpush2.bf16.msra.mxu0 %v1694_v52  ;;  %1172 = vmatpush2.bf16.msra.mxu1 %v1696_v54  ;;  %v344_v52 = vld [vmem:[%s2313_s1 + $0x78] sm:$0xff]  ;;  %v1634_v54 = vcombine.low %v347_v41, %v351_v42  ;;  %v411_v42 = vld [vmem:[%s2313_s1 + $0x290] sm:$0xff] }
  0x46   : > { %1132 = vmatprep.subr.bf16.mxu0 %v1687_v55  ;;  %1173 = vmatprep.subr.bf16.mxu1 %v1689_v56  ;;  %v1636_v55 = vcombine.low %v348_v43, %v352_v44  ;;  %v1627_v56 = vcombine.high %v339_v49, %v343_v50  ;;  %v1629_v58 = vcombine.high %v340_v51, %v344_v52  ;;  %v415_v43 = vld [vmem:[%s2313_s1 + $0x2b0] sm:$0xff]  ;;  %v412_v44 = vld [vmem:[%s2313_s1 + $0x298] sm:$0xff] }
  0x49   : > { %1133 = vmatpush2.bf16.msra.mxu0 %v1686_v62  ;;  %1174 = vmatpush2.bf16.msra.mxu1 %v1688_v63  ;;  %v336_v62 = vld [vmem:[%s2313_s1 + $0x38] sm:$0xff]  ;;  %v1626_v63 = vcombine.low %v339_v49, %v343_v50  ;;  %v403_v50 = vld [vmem:[%s2313_s1 + $0x250] sm:$0xff] }
  0x4a   : > { %1134 = vmatprep.subr.bf16.mxu0 %v1679_v0  ;;  %1175 = vmatprep.subr.bf16.mxu1 %v1681_v1  ;;  %v1628_v0 = vcombine.low %v340_v51, %v344_v52  ;;  %v1619_v1 = vcombine.high %v331_v59, %v335_v60  ;;  %v1621_v2 = vcombine.high %v332_v61, %v336_v62  ;;  %v407_v51 = vld [vmem:[%s2313_s1 + $0x270] sm:$0xff]  ;;  %v404_v52 = vld [vmem:[%s2313_s1 + $0x258] sm:$0xff] }
  0x4d   : > { %1135 = vmatpush2.bf16.msra.mxu0 %v1678_v6  ;;  %1176 = vmatpush2.bf16.msra.mxu1 %v1680_v7  ;;  %v456_v6 = vld [vmem:[%s2313_s1 + $0x3f8] sm:$0xff]  ;;  %v1618_v7 = vcombine.low %v331_v59, %v335_v60  ;;  %v395_v60 = vld [vmem:[%s2313_s1 + $0x210] sm:$0xff] }
  0x4e   : > { %1186 = vmatprep.subr.bf16.mxu0 %v1675_v8  ;;  %1227 = vmatprep.subr.bf16.mxu1 %v1677_v9  ;;  %v1620_v8 = vcombine.low %v332_v61, %v336_v62  ;;  %v1739_v9 = vcombine.high %v451_v3, %v455_v4  ;;  %v1741_v10 = vcombine.high %v452_v5, %v456_v6  ;;  %v399_v61 = vld [vmem:[%s2313_s1 + $0x230] sm:$0xff]  ;;  %v396_v62 = vld [vmem:[%s2313_s1 + $0x218] sm:$0xff] }
  0x50   : > { %1137 = vmatmul.mubr.bf16.vlgmr.msra.gmra.mxu0 %v2088_v12  ;;  %1178 = vmatmul.mubr.bf16.vlgmr.msra.gmra.mxu1 %v2088_v12 }
  0x51   : > { %1187 = vmatpush1.bf16.msra.mxu0 %v1674_v15  ;;  %1228 = vmatpush1.bf16.msra.mxu1 %v1676_v16  ;;  %v448_v15 = vld [vmem:[%s2313_s1 + $0x3b8] sm:$0xff]  ;;  %v1738_v16 = vcombine.low %v451_v3, %v455_v4  ;;  %v1682_v4 = vcombine.low %v395_v60, %v399_v61 }
  0x52   : > { %1188 = vmatprep.subr.bf16.mxu0 %v1667_v17  ;;  %1229 = vmatprep.subr.bf16.mxu1 %v1669_v18  ;;  %v1740_v17 = vcombine.low %v452_v5, %v456_v6  ;;  %v1731_v18 = vcombine.high %v443_v11, %v447_v13  ;;  %v1733_v53 = vcombine.high %v444_v14, %v448_v15  ;;  %v1297_v6 = vlaneseq }
  0x53   : > { %1218 = vmatprep.mubr.bf16.mxu0 %v1962_v57  ;;  %1259 = vmatprep.mubr.bf16.mxu1 %v1962_v57  ;;  %v356_v57 = vld [vmem:[%s2313_s1 + $0xd8] sm:$0xff] }
  0x54   : > { %v1645_v40 = vcombine.high %v356_v57, %v360_v36  ;;  %v1644_v46 = vcombine.low %v356_v57, %v360_v36  ;;  %v423_v57 = vld [vmem:[%s2313_s1 + $0x2f0] sm:$0xff]  ;;  %v420_v36 = vld [vmem:[%s2313_s1 + $0x2d8] sm:$0xff] }
  0x55   : > { %1189 = vmatpush1.bf16.msra.mxu0 %v1666_v22  ;;  %1230 = vmatpush1.bf16.msra.mxu1 %v1668_v23  ;;  %v440_v22 = vld [vmem:[%s2313_s1 + $0x378] sm:$0xff]  ;;  %v1730_v23 = vcombine.low %v443_v11, %v447_v13 }
  0x56   : > { %1190 = vmatprep.subr.bf16.mxu0 %v1659_v24  ;;  %1231 = vmatprep.subr.bf16.mxu1 %v1661_v25  ;;  %v1732_v24 = vcombine.low %v444_v14, %v448_v15  ;;  %v1723_v25 = vcombine.high %v435_v19, %v439_v20  ;;  %v1725_v26 = vcombine.high %v436_v21, %v440_v22 }
  0x59   : > { %1191 = vmatpush1.bf16.msra.mxu0 %v1658_v30  ;;  %1232 = vmatpush1.bf16.msra.mxu1 %v1660_v31  ;;  %v432_v30 = vld [vmem:[%s2313_s1 + $0x338] sm:$0xff]  ;;  %v1722_v31 = vcombine.low %v435_v19, %v439_v20 }
  0x5a   : > { %1192 = vmatprep.subr.bf16.mxu0 %v1651_v32  ;;  %1233 = vmatprep.subr.bf16.mxu1 %v1653_v33  ;;  %v1724_v32 = vcombine.low %v436_v21, %v440_v22  ;;  %v1715_v33 = vcombine.high %v427_v27, %v431_v28  ;;  %v1717_v34 = vcombine.high %v428_v29, %v432_v30 }
  0x5d   : > { %1193 = vmatpush1.bf16.msra.mxu0 %v1650_v37  ;;  %1234 = vmatpush1.bf16.msra.mxu1 %v1652_v38  ;;  %v424_v37 = vld [vmem:[%s2313_s1 + $0x2f8] sm:$0xff]  ;;  %v1714_v38 = vcombine.low %v427_v27, %v431_v28 }
  0x5e   : > { %1194 = vmatprep.subr.bf16.mxu0 %v1643_v39  ;;  %1235 = vmatprep.subr.bf16.mxu1 %v1645_v40  ;;  %v1716_v39 = vcombine.low %v428_v29, %v432_v30  ;;  %v1707_v40 = vcombine.high %v419_v35, %v423_v57  ;;  %v1709_v41 = vcombine.high %v420_v36, %v424_v37 }
  0x61   : > { %1195 = vmatpush1.bf16.msra.mxu0 %v1642_v45  ;;  %1236 = vmatpush1.bf16.msra.mxu1 %v1644_v46  ;;  %v416_v45 = vld [vmem:[%s2313_s1 + $0x2b8] sm:$0xff]  ;;  %v1706_v46 = vcombine.low %v419_v35, %v423_v57 }
  0x62   : > { %1196 = vmatprep.subr.bf16.mxu0 %v1635_v47  ;;  %1237 = vmatprep.subr.bf16.mxu1 %v1637_v48  ;;  %v1708_v47 = vcombine.low %v420_v36, %v424_v37  ;;  %v1699_v48 = vcombine.high %v411_v42, %v415_v43  ;;  %v1701_v49 = vcombine.high %v412_v44, %v416_v45 }
  0x65   : > { %1197 = vmatpush1.bf16.msra.mxu0 %v1634_v54  ;;  %1238 = vmatpush1.bf16.msra.mxu1 %v1636_v55  ;;  %v408_v54 = vld [vmem:[%s2313_s1 + $0x278] sm:$0xff]  ;;  %v1698_v55 = vcombine.low %v411_v42, %v415_v43 }
  0x66   : > { %1198 = vmatprep.subr.bf16.mxu0 %v1627_v56  ;;  %1239 = vmatprep.subr.bf16.mxu1 %v1629_v58  ;;  %v1700_v56 = vcombine.low %v412_v44, %v416_v45  ;;  %v1691_v58 = vcombine.high %v403_v50, %v407_v51  ;;  %v1693_v59 = vcombine.high %v404_v52, %v408_v54 }
  0x69   : > { %1199 = vmatpush1.bf16.msra.mxu0 %v1626_v63  ;;  %1240 = vmatpush1.bf16.msra.mxu1 %v1628_v0  ;;  %v400_v63 = vld [vmem:[%s2313_s1 + $0x238] sm:$0xff]  ;;  %v1690_v0 = vcombine.low %v403_v50, %v407_v51 }
  0x6a   : > { %1200 = vmatprep.subr.bf16.mxu0 %v1619_v1  ;;  %1241 = vmatprep.subr.bf16.mxu1 %v1621_v2  ;;  %v1692_v1 = vcombine.low %v404_v52, %v408_v54  ;;  %v1683_v2 = vcombine.high %v395_v60, %v399_v61  ;;  %v1685_v3 = vcombine.high %v396_v62, %v400_v63 }
  0x6b   : > { %v1684_v5 = vcombine.low %v396_v62, %v400_v63 }
  0x6d   : > { %1201 = vmatpush1.bf16.msra.mxu0 %v1618_v7  ;;  %1242 = vmatpush1.bf16.msra.mxu1 %v1620_v8  ;;  %v2270_v7 = vshrl.u32 %v1297_v6, 7 }
  0x6e   : > { %1202 = vmatprep.subr.bf16.mxu0 %v1739_v9  ;;  %1243 = vmatprep.subr.bf16.mxu1 %v1741_v10  ;;  %v2276_v9 = vld [vmem:[%s2314_s2] sm:$0xff] }
  0x6f   : > { %v1299_v8 = vsub.s32 0, %v2270_v7  ;;  %v1307_v10 = vsub.s32 2, %v2270_v7  ;;  %v1303_v11 = vsub.s32 1, %v2270_v7  ;;  %v1311_v13 = vsub.s32 3, %v2270_v7 }
  0x70   : > { %v1327_v6 = vsub.s32 7, %v2270_v7 }
  0x71   : > { %1203 = vmatpush2.bf16.msra.mxu0 %v1738_v16  ;;  %1244 = vmatpush2.bf16.msra.mxu1 %v1740_v17  ;;  %v1300_v14 = vrot.slane %v2276_v9, %v1299_v8  ;;  %v1304_v15 = vrot.slane %v2276_v9, %v1303_v11  ;;  %v1312_v17 = vrot.slane %v2276_v9, %v1311_v13 }
  0x72   : > { %1204 = vmatprep.subr.bf16.mxu0 %v1731_v18  ;;  %1245 = vmatprep.subr.bf16.mxu1 %v1733_v53 }
  0x75   : > { %1205 = vmatpush2.bf16.msra.mxu0 %v1730_v23  ;;  %1246 = vmatpush2.bf16.msra.mxu1 %v1732_v24 }
  0x76   : > { %1206 = vmatprep.subr.bf16.mxu0 %v1723_v25  ;;  %1247 = vmatprep.subr.bf16.mxu1 %v1725_v26 }
  0x79   : > { %1207 = vmatpush2.bf16.msra.mxu0 %v1722_v31  ;;  %1248 = vmatpush2.bf16.msra.mxu1 %v1724_v32 }
  0x7a   : > { %1208 = vmatprep.subr.bf16.mxu0 %v1715_v33  ;;  %1249 = vmatprep.subr.bf16.mxu1 %v1717_v34 }
  0x7d   : > { %1209 = vmatpush2.bf16.msra.mxu0 %v1714_v38  ;;  %1250 = vmatpush2.bf16.msra.mxu1 %v1716_v39 }
  0x7e   : > { %1210 = vmatprep.subr.bf16.mxu0 %v1707_v40  ;;  %1251 = vmatprep.subr.bf16.mxu1 %v1709_v41 }
  0x81   : > { %1211 = vmatpush2.bf16.msra.mxu0 %v1706_v46  ;;  %1252 = vmatpush2.bf16.msra.mxu1 %v1708_v47 }
  0x82   : > { %1212 = vmatprep.subr.bf16.mxu0 %v1699_v48  ;;  %1253 = vmatprep.subr.bf16.mxu1 %v1701_v49 }
  0x85   : > { %1213 = vmatpush2.bf16.msra.mxu0 %v1698_v55  ;;  %1254 = vmatpush2.bf16.msra.mxu1 %v1700_v56 }
  0x86   : > { %1214 = vmatprep.subr.bf16.mxu0 %v1691_v58  ;;  %1255 = vmatprep.subr.bf16.mxu1 %v1693_v59 }
  0x89   : > { %1215 = vmatpush2.bf16.msra.mxu0 %v1690_v0  ;;  %1256 = vmatpush2.bf16.msra.mxu1 %v1692_v1 }
  0x8a   : > { %1216 = vmatprep.subr.bf16.mxu0 %v1683_v2  ;;  %1257 = vmatprep.subr.bf16.mxu1 %v1685_v3  ;;  %v1315_v3 = vsub.s32 4, %v2270_v7 }
  0x8c   : > { %v1316_v8 = vrot.slane %v2276_v9, %v1315_v3 }
  0x8d   : > { %1217 = vmatpush2.bf16.msra.mxu0 %v1682_v4  ;;  %1258 = vmatpush2.bf16.msra.mxu1 %v1684_v5  ;;  %v1323_v4 = vsub.s32 6, %v2270_v7  ;;  %v1319_v5 = vsub.s32 5, %v2270_v7 }
  0x8f   : > { %v1320_v11 = vrot.slane %v2276_v9, %v1319_v5 }
  0x90   : > { %1219 = vmatmul.mubr.bf16.vlgmr.msra.gmra.mxu0 %v2088_v12  ;;  %1260 = vmatmul.mubr.bf16.vlgmr.msra.gmra.mxu1 %v2088_v12  ;;  %v1308_v12 = vrot.slane %v2276_v9, %v1307_v10  ;;  %v1324_v10 = vrot.slane %v2276_v9, %v1323_v4 }
 0x110   : > { %v1138_v16 = vpop.f32.mrf.mxu0  ;;  %v1179_v53 = vpop.f32.mrf.mxu1 }
 0x111   : > { %v1337_v18 = vadd.f32 %v1300_v14, %v1138_v16  ;;  %v1339_v19 = vadd.f32 %v1308_v12, %v1179_v53  ;;  %v1328_v14 = vrot.slane %v2276_v9, %v1327_v6 }
 0x112   : > { %v1140_v20 = vpop.f32.mrf.mxu0  ;;  %v1181_v23 = vpop.f32.mrf.mxu1 }
 0x113   : > { %v1353_v21 = vmul.f32 0.044715, %v1337_v18  ;;  %v1338_v22 = vadd.f32 %v1304_v15, %v1140_v20  ;;  %v1355_v24 = vmul.f32 0.044715, %v1339_v19  ;;  %v1340_v25 = vadd.f32 %v1312_v17, %v1181_v23 }
 0x114   : > { %v1142_v26 = vpop.f32.mrf.mxu0  ;;  %v1183_v29 = vpop.f32.mrf.mxu1  ;;  %v1345_v54 = vmul.f32 0.5, %v1337_v18  ;;  %v1347_v58 = vmul.f32 0.5, %v1339_v19 }
 0x115   : > { %v1361_v27 = vmul.f32 %v1353_v21, %v1337_v18  ;;  %v1354_v28 = vmul.f32 0.044715, %v1338_v22  ;;  %v1363_v30 = vmul.f32 %v1355_v24, %v1339_v19  ;;  %v1356_v31 = vmul.f32 0.044715, %v1340_v25 }
 0x116   : > { %v1143_v32 = vpop.f32.mrf.mxu0  ;;  %v1184_v35 = vpop.f32.mrf.mxu1  ;;  %v1346_v55 = vmul.f32 0.5, %v1338_v22  ;;  %v1348_v59 = vmul.f32 0.5, %v1340_v25 }
 0x117   : > { %v1369_v33 = vmul.f32 %v1361_v27, %v1337_v18  ;;  %v1362_v34 = vmul.f32 %v1354_v28, %v1338_v22  ;;  %v1371_v57 = vmul.f32 %v1363_v30, %v1339_v19  ;;  %v1364_v36 = vmul.f32 %v1356_v31, %v1340_v25 }
 0x119   : > { %v1377_v37 = vadd.f32 %v1369_v33, %v1337_v18  ;;  %v1370_v38 = vmul.f32 %v1362_v34, %v1338_v22  ;;  %v1379_v39 = vadd.f32 %v1371_v57, %v1339_v19  ;;  %v1372_v40 = vmul.f32 %v1364_v36, %v1340_v25 }
 0x11b   : > { %v1385_v41 = vmul.f32 0.7978846, %v1377_v37  ;;  %v1378_v42 = vadd.f32 %v1370_v38, %v1338_v22  ;;  %v1387_v43 = vmul.f32 0.7978846, %v1379_v39  ;;  %v1380_v44 = vadd.f32 %v1372_v40, %v1340_v25 }
 0x11d   : > { %1780 = vtanh.f32 %v1385_v41  ;;  %v1386_v45 = vmul.f32 0.7978846, %v1378_v42  ;;  %v1388_v46 = vmul.f32 0.7978846, %v1380_v44 }
 0x11e   : > { %1782 = vtanh.f32 %v1387_v43 }
 0x11f   : > { %1784 = vtanh.f32 %v1386_v45 }
 0x120   : > { %1786 = vtanh.f32 %v1388_v46 }
 0x12a   : > { %v1781_v47 = vpop.eup %1780 }
 0x12b   : > { %v1783_v48 = vpop.eup %1782  ;;  %v1401_v49 = vadd.f32 1.0, %v1781_v47 }
 0x12c   : > { %v1785_v50 = vpop.eup %1784  ;;  %v1403_v51 = vadd.f32 1.0, %v1783_v48 }
 0x12d   : > { %v1787_v52 = vpop.eup %1786  ;;  %v1402_v56 = vadd.f32 1.0, %v1785_v50  ;;  %v1409_v61 = vmul.f32 %v1401_v49, %v1345_v54 }
 0x12e   : > { %v1404_v60 = vadd.f32 1.0, %v1787_v52  ;;  %v1411_v63 = vmul.f32 %v1403_v51, %v1347_v58 }
 0x12f   : > { %v1410_v62 = vmul.f32 %v1402_v56, %v1346_v55 }
 0x130   : > { %v1412_v0 = vmul.f32 %v1404_v60, %v1348_v59 }
 0x131   : > { %v1750_v1 = vpack.c.bf16 %v1410_v62, %v1409_v61 }
 0x132   : > { %v1751_v2 = vpack.c.bf16 %v1412_v0, %v1411_v63 }
 0x133   : > { %1449 = vst [vmem:[%s2289_s28] sm:$0xff] %v1750_v1 }
 0x134   : > { %1450 = vst [vmem:[%s2289_s28 + $0x8] sm:$0xff] %v1751_v2 }
 0x150   : > { %v1220_v13 = vpop.f32.mrf.mxu0  ;;  %v1261_v15 = vpop.f32.mrf.mxu1 }
 0x151   : > { %v1341_v12 = vadd.f32 %v1316_v8, %v1220_v13  ;;  %v1343_v16 = vadd.f32 %v1324_v10, %v1261_v15 }
 0x152   : > { %v1222_v17 = vpop.f32.mrf.mxu0  ;;  %v1263_v19 = vpop.f32.mrf.mxu1 }
 0x153   : > { %v1357_v18 = vmul.f32 0.044715, %v1341_v12  ;;  %v1342_v53 = vadd.f32 %v1320_v11, %v1222_v17  ;;  %v1359_v20 = vmul.f32 0.044715, %v1343_v16  ;;  %v1344_v21 = vadd.f32 %v1328_v14, %v1263_v19 }
 0x154   : > { %v1224_v22 = vpop.f32.mrf.mxu0  ;;  %v1265_v24 = vpop.f32.mrf.mxu1  ;;  %v1349_v47 = vmul.f32 0.5, %v1341_v12  ;;  %v1351_v50 = vmul.f32 0.5, %v1343_v16 }
 0x155   : > { %v1365_v7 = vmul.f32 %v1357_v18, %v1341_v12  ;;  %v1358_v23 = vmul.f32 0.044715, %v1342_v53  ;;  %v1367_v25 = vmul.f32 %v1359_v20, %v1343_v16  ;;  %v1360_v26 = vmul.f32 0.044715, %v1344_v21 }
 0x156   : > { %v1225_v27 = vpop.f32.mrf.mxu0  ;;  %v1266_v30 = vpop.f32.mrf.mxu1  ;;  %v1350_v48 = vmul.f32 0.5, %v1342_v53  ;;  %v1352_v51 = vmul.f32 0.5, %v1344_v21 }
 0x157   : > { %v1373_v28 = vmul.f32 %v1365_v7, %v1341_v12  ;;  %v1366_v29 = vmul.f32 %v1358_v23, %v1342_v53  ;;  %v1375_v9 = vmul.f32 %v1367_v25, %v1343_v16  ;;  %v1368_v31 = vmul.f32 %v1360_v26, %v1344_v21 }
 0x159   : > { %v1381_v32 = vadd.f32 %v1373_v28, %v1341_v12  ;;  %v1374_v33 = vmul.f32 %v1366_v29, %v1342_v53  ;;  %v1383_v34 = vadd.f32 %v1375_v9, %v1343_v16  ;;  %v1376_v35 = vmul.f32 %v1368_v31, %v1344_v21 }
 0x15b   : > { %v1389_v57 = vmul.f32 0.7978846, %v1381_v32  ;;  %v1382_v36 = vadd.f32 %v1374_v33, %v1342_v53  ;;  %v1391_v37 = vmul.f32 0.7978846, %v1383_v34  ;;  %v1384_v38 = vadd.f32 %v1376_v35, %v1344_v21 }
 0x15d   : > { %1788 = vtanh.f32 %v1389_v57  ;;  %v1390_v39 = vmul.f32 0.7978846, %v1382_v36  ;;  %v1392_v40 = vmul.f32 0.7978846, %v1384_v38 }
 0x15e   : > { %1790 = vtanh.f32 %v1391_v37 }
 0x15f   : > { %1792 = vtanh.f32 %v1390_v39 }
 0x160   : > { %1794 = vtanh.f32 %v1392_v40 }
 0x16a   : > { %v1789_v41 = vpop.eup %1788 }
 0x16b   : > { %v1791_v42 = vpop.eup %1790  ;;  %v1405_v43 = vadd.f32 1.0, %v1789_v41 }
 0x16c   : > { %v1793_v44 = vpop.eup %1792  ;;  %v1407_v45 = vadd.f32 1.0, %v1791_v42 }
 0x16d   : > { %v1795_v46 = vpop.eup %1794  ;;  %v1406_v49 = vadd.f32 1.0, %v1793_v44  ;;  %v1413_v54 = vmul.f32 %v1405_v43, %v1349_v47 }
 0x16e   : > { %v1408_v52 = vadd.f32 1.0, %v1795_v46  ;;  %v1415_v56 = vmul.f32 %v1407_v45, %v1351_v50 }
 0x16f   : > { %v1414_v55 = vmul.f32 %v1406_v49, %v1350_v48 }
 0x170   : > { %v1416_v58 = vmul.f32 %v1408_v52, %v1352_v51 }
 0x171   : > { %v1752_v59 = vpack.c.bf16 %v1414_v55, %v1413_v54 }
 0x172   : > { %v1753_v60 = vpack.c.bf16 %v1416_v58, %v1415_v56 }
 0x173   : > { %1451 = vst [vmem:[%s2289_s28 + $0x10] sm:$0xff] %v1752_v59 }
 0x174   : > { %1452 = vst [vmem:[%s2289_s28 + $0x18] sm:$0xff] %v1753_v60 }
 0x175 PF: > { %s13_s14 = sadd.s32 1, %s1818_s14   ;;  %s2316_s12 = smov %s1814_s13 }
 0x176   : > { %p10_p5 = scmp.ge.s32.totalorder %s13_s14, 4   ;;  %s2317_s13 = smov %s2319_s15 }
 0x178   :  { %12 = sbr.rel (!%p10_p5) target bundleno = 2 (0x2), region = 76 }

// kernel: flux_forward.54
= control target key start
LH: loop header
LB: loop body
LE: loop exit
PB: predicated region body
PF: predicated region fallthrough
CT: control target
= control target key end

     0   :  { %s2090_s18 = smov 0   ;;  %s2092_s19 = smov 0   ;;  %s2547_s0 = inlined_call_operand.vmem [shape: bf16[2,8,1024], index: 0, kind: input, shape index: {}]   ;;  %s2548_s1 = inlined_call_operand.vmem [shape: bf16[1024,256], index: 1, kind: input, shape index: {}]   ;;  %s2549_s2 = inlined_call_operand.vmem [shape: f32[1,256], index: 2, kind: input, shape index: {}]   ;;  %s2550_s3 = inlined_call_operand.vmem [shape: f32[2,1,256], index: 3, kind: input, shape index: {}]   ;;  %s2551_s4 = inlined_call_operand.vmem [shape: bf16[2,8,256], index: 4, kind: input, shape index: {}]   ;;  %s2552_s5 = inlined_call_operand.vmem [shape: bf16[2,8,256], index: 5, kind: output, shape index: {}]  }
   0x1   :  { %s2094_s20 = smov 0  }
   0x2 LB: > { %s41_s21 = sadd.s32 1, %s2054_s19  ;;  %p1661_p0 = scmp.ge.s32.totalorder %s2058_s20, 1  ;;  %s2058_s20 = sphi %s2094_s20, %s15_s20   ;;  %s2054_s19 = sphi %s2092_s19, %s2554_s19   ;;  %s2050_s18 = sphi %s2090_s18, %s2553_s18  }
   0x3   : > { %p43_p1 = scmp.ge.s32.totalorder %s41_s21, 2  ;;  %p298_p2 = scmp.lt.s32.totalorder %s2058_s20, 3 }
   0x5   : > { %s2556_s21 = smov (%p43_p1, %s41_s21), 0  ;;  %p299_p3 = pnand %p1661_p0, %p298_p2 }
   0x6   : > { %p378_p4 = scmp.lt.s32.totalorder (!%p299_p3), %s2050_s18, 1 }
   0x7   : > { %302 = sbr.rel (%p299_p3) target bundleno = 349 (0x15d), region = 40 }
   0xc   : > { %v1836_v0 = vld [vmem:[%s2548_s1 + $0x74] ss:$8 sps:$4 sm:$0xff]   ;;  %v1840_v2 = vld [vmem:[%s2548_s1 + $0x70] ss:$8 sps:$4 sm:$0xff]   ;;  %v1842_v4 = vld [vmem:[%s2548_s1 + $0x64] ss:$8 sps:$4 sm:$0xff]  }
   0xd   : > { %v1838_v1 = vld [vmem:[%s2548_s1 + $0x174] ss:$8 sps:$4 sm:$0xff]   ;;  %1253 = vmatprep.subr.bf16.mxu0 %v1836_v0  ;;  %v1841_v3 = vld [vmem:[%s2548_s1 + $0x170] ss:$8 sps:$4 sm:$0xff]   ;;  %v1844_v5 = vld [vmem:[%s2548_s1 + $0x164] ss:$8 sps:$4 sm:$0xff]  }
   0xe   : > { %1294 = vmatprep.subr.bf16.mxu1 %v1838_v1  ;;  %1254 = vmatpush1.bf16.msra.mxu0 %v1840_v2  ;;  %v1846_v6 = vld [vmem:[%s2548_s1 + $0x60] ss:$8 sps:$4 sm:$0xff]   ;;  %v1848_v8 = vld [vmem:[%s2548_s1 + $0x54] ss:$8 sps:$4 sm:$0xff]   ;;  %v1852_v10 = vld [vmem:[%s2548_s1 + $0x50] ss:$8 sps:$4 sm:$0xff]  }
   0xf   : > { %1295 = vmatpush1.bf16.msra.mxu1 %v1841_v3  ;;  %1255 = vmatprep.subr.bf16.mxu0 %v1842_v4  ;;  %v1847_v7 = vld [vmem:[%s2548_s1 + $0x160] ss:$8 sps:$4 sm:$0xff]   ;;  %v1850_v9 = vld [vmem:[%s2548_s1 + $0x154] ss:$8 sps:$4 sm:$0xff]   ;;  %v1853_v11 = vld [vmem:[%s2548_s1 + $0x150] ss:$8 sps:$4 sm:$0xff]  }
  0x10   : > { %1296 = vmatprep.subr.bf16.mxu1 %v1844_v5  ;;  %v1854_v12 = vld [vmem:[%s2548_s1 + $0x44] ss:$8 sps:$4 sm:$0xff]   ;;  %v1858_v14 = vld [vmem:[%s2548_s1 + $0x40] ss:$8 sps:$4 sm:$0xff]   ;;  %v1860_v16 = vld [vmem:[%s2548_s1 + $0x34] ss:$8 sps:$4 sm:$0xff]  }
  0x11   : > { %v1856_v13 = vld [vmem:[%s2548_s1 + $0x144] ss:$8 sps:$4 sm:$0xff]   ;;  %v1859_v15 = vld [vmem:[%s2548_s1 + $0x140] ss:$8 sps:$4 sm:$0xff]   ;;  %v1862_v17 = vld [vmem:[%s2548_s1 + $0x134] ss:$8 sps:$4 sm:$0xff]  }
  0x12   : > { %1256 = vmatpush1.bf16.msra.mxu0 %v1846_v6  ;;  %v1864_v18 = vld [vmem:[%s2548_s1 + $0x30] ss:$8 sps:$4 sm:$0xff]   ;;  %v1866_v20 = vld [vmem:[%s2548_s1 + $0x24] ss:$8 sps:$4 sm:$0xff]   ;;  %v1870_v22 = vld [vmem:[%s2548_s1 + $0x20] ss:$8 sps:$4 sm:$0xff]  }
  0x13   : > { %1297 = vmatpush1.bf16.msra.mxu1 %v1847_v7  ;;  %1257 = vmatprep.subr.bf16.mxu0 %v1848_v8  ;;  %v1865_v19 = vld [vmem:[%s2548_s1 + $0x130] ss:$8 sps:$4 sm:$0xff]   ;;  %v1868_v21 = vld [vmem:[%s2548_s1 + $0x124] ss:$8 sps:$4 sm:$0xff]   ;;  %v1871_v23 = vld [vmem:[%s2548_s1 + $0x120] ss:$8 sps:$4 sm:$0xff]  }
  0x14   : > { %1298 = vmatprep.subr.bf16.mxu1 %v1850_v9  ;;  %v1872_v24 = vld [vmem:[%s2548_s1 + $0x14] ss:$8 sps:$4 sm:$0xff]   ;;  %v1876_v26 = vld [vmem:[%s2548_s1 + $0x10] ss:$8 sps:$4 sm:$0xff]   ;;  %v1878_v28 = vld [vmem:[%s2548_s1 + $0x4] ss:$8 sps:$4 sm:$0xff]  }
  0x15   : > { %v1874_v25 = vld [vmem:[%s2548_s1 + $0x114] ss:$8 sps:$4 sm:$0xff]   ;;  %v1877_v27 = vld [vmem:[%s2548_s1 + $0x110] ss:$8 sps:$4 sm:$0xff]   ;;  %v1880_v29 = vld [vmem:[%s2548_s1 + $0x104] ss:$8 sps:$4 sm:$0xff]  }
  0x16   : > { %1258 = vmatpush1.bf16.msra.mxu0 %v1852_v10  ;;  %v1882_v30 = vld [vmem:[%s2548_s1] ss:$8 sps:$4 sm:$0xff]   ;;  %v1884_v32 = vld [vmem:[%s2548_s1 + $0xf4] ss:$8 sps:$4 sm:$0xff]   ;;  %v1888_v34 = vld [vmem:[%s2548_s1 + $0xf0] ss:$8 sps:$4 sm:$0xff]  }
  0x17   : > { %1299 = vmatpush1.bf16.msra.mxu1 %v1853_v11  ;;  %1259 = vmatprep.subr.bf16.mxu0 %v1854_v12  ;;  %v1883_v31 = vld [vmem:[%s2548_s1 + $0x100] ss:$8 sps:$4 sm:$0xff]   ;;  %v1886_v33 = vld [vmem:[%s2548_s1 + $0x1f4] ss:$8 sps:$4 sm:$0xff]   ;;  %v1889_v35 = vld [vmem:[%s2548_s1 + $0x1f0] ss:$8 sps:$4 sm:$0xff]  }
  0x18   : > { %1300 = vmatprep.subr.bf16.mxu1 %v1856_v13  ;;  %v1890_v36 = vld [vmem:[%s2548_s1 + $0xe4] ss:$8 sps:$4 sm:$0xff]   ;;  %s2558_s18 = smov (!%p378_p4, %s2050_s18), 1  ;;  %v1894_v38 = vld [vmem:[%s2548_s1 + $0xe0] ss:$8 sps:$4 sm:$0xff]  }
  0x19   : > { %v1892_v37 = vld [vmem:[%s2548_s1 + $0x1e4] ss:$8 sps:$4 sm:$0xff]   ;;  %v1895_v39 = vld [vmem:[%s2548_s1 + $0x1e0] ss:$8 sps:$4 sm:$0xff]   ;;  %v1896_v40 = vld [vmem:[%s2548_s1 + $0xd4] ss:$8 sps:$4 sm:$0xff]  }
  0x1a   : > { %1260 = vmatpush1.bf16.msra.mxu0 %v1858_v14  ;;  %s1808_s16 = sshll.u32 %s2558_s18, 5  ;;  %v1898_v41 = vld [vmem:[%s2548_s1 + $0x1d4] ss:$8 sps:$4 sm:$0xff]   ;;  %v1900_v42 = vld [vmem:[%s2548_s1 + $0xd0] ss:$8 sps:$4 sm:$0xff]   ;;  %s1664_s9 = sshll.u32 %s2558_s18, 1 }
  0x1b   : > { %1301 = vmatpush1.bf16.msra.mxu1 %v1859_v15  ;;  %1261 = vmatprep.subr.bf16.mxu0 %v1860_v16  ;;  %v1901_v43 = vld [vmem:[%s2548_s1 + $0x1d0] ss:$8 sps:$4 sm:$0xff]   ;;  %s2250_s29 = scalar_lea.vmem %s2547_s0, %s1808_s16  ;;  %v1902_v44 = vld [vmem:[%s2548_s1 + $0xc4] ss:$8 sps:$4 sm:$0xff]   ;;  %v1906_v49 = vld [vmem:[%s2548_s1 + $0xc0] ss:$8 sps:$4 sm:$0xff]   ;;  %s415_s12 = scalar_lea.vmem %s2550_s3, %s1664_s9 }
  0x1c   : > { %1302 = vmatprep.subr.bf16.mxu1 %v1862_v17  ;;  %v1904_v45 = vld [vmem:[%s2548_s1 + $0x1c4] ss:$8 sps:$4 sm:$0xff]   ;;  %v1907_v50 = vld [vmem:[%s2548_s1 + $0x1c0] ss:$8 sps:$4 sm:$0xff]   ;;  %v1908_v52 = vld [vmem:[%s2548_s1 + $0xb4] ss:$8 sps:$4 sm:$0xff]  }
  0x1d   : > { %v453_v46 = vld [vmem:[%s2250_s29] sm:$0xff]  ;;  %v454_v48 = vld [vmem:[%s2250_s29 + $0x8] sm:$0xff]  ;;  %v1910_v53 = vld [vmem:[%s2548_s1 + $0x1b4] ss:$8 sps:$4 sm:$0xff]   ;;  %s1809_s13 = sshll.u32 %s2558_s18, 3 }
  0x1e   : > { %1262 = vmatpush1.bf16.msra.mxu0 %v1864_v18  ;;  %v1670_v47 = vcombine.high %v453_v46, %v453_v46  ;;  %v1672_v51 = vcombine.high %v454_v48, %v454_v48  ;;  %v1912_v54 = vld [vmem:[%s2548_s1 + $0xb0] ss:$8 sps:$4 sm:$0xff]   ;;  %v1914_v56 = vld [vmem:[%s2548_s1 + $0xa4] ss:$8 sps:$4 sm:$0xff]   ;;  %v1918_v58 = vld [vmem:[%s2548_s1 + $0xa0] ss:$8 sps:$4 sm:$0xff]   ;;  %v1669_v6 = vcombine.low %v453_v46, %v453_v46  ;;  %v1671_v7 = vcombine.low %v454_v48, %v454_v48  ;;  %s429_s22 = scalar_lea.vmem %s2551_s4, %s1809_s13 }
  0x1f   : > { %1303 = vmatpush1.bf16.msra.mxu1 %v1865_v19  ;;  %1263 = vmatprep.subr.bf16.mxu0 %v1866_v20  ;;  %v1913_v55 = vld [vmem:[%s2548_s1 + $0x1b0] ss:$8 sps:$4 sm:$0xff]   ;;  %v1916_v57 = vld [vmem:[%s2548_s1 + $0x1a4] ss:$8 sps:$4 sm:$0xff]   ;;  %v1919_v59 = vld [vmem:[%s2548_s1 + $0x1a0] ss:$8 sps:$4 sm:$0xff]  }
  0x20   : > { %1304 = vmatprep.subr.bf16.mxu1 %v1868_v21  ;;  %1285 = vmatprep.mubr.bf16.mxu0 %v1670_v47  ;;  %v1920_v60 = vld [vmem:[%s2548_s1 + $0x94] ss:$8 sps:$4 sm:$0xff]   ;;  %v1924_v62 = vld [vmem:[%s2548_s1 + $0x90] ss:$8 sps:$4 sm:$0xff]   ;;  %v1926_v0 = vld [vmem:[%s2548_s1 + $0x84] ss:$8 sps:$4 sm:$0xff]  }
  0x21   : > { %1326 = vmatprep.mubr.bf16.mxu1 %v1672_v51  ;;  %v1922_v61 = vld [vmem:[%s2548_s1 + $0x194] ss:$8 sps:$4 sm:$0xff]   ;;  %v1925_v63 = vld [vmem:[%s2548_s1 + $0x190] ss:$8 sps:$4 sm:$0xff]   ;;  %v1928_v1 = vld [vmem:[%s2548_s1 + $0x184] ss:$8 sps:$4 sm:$0xff]  }
  0x22   : > { %1264 = vmatpush1.bf16.msra.mxu0 %v1870_v22  ;;  %v1930_v2 = vld [vmem:[%s2548_s1 + $0x80] ss:$8 sps:$4 sm:$0xff]   ;;  %v1938_v4 = vld [vmem:[%s2548_s1 + $0x274] ss:$8 sps:$4 sm:$0xff]   ;;  %v1936_v8 = vld [vmem:[%s2548_s1 + $0x270] ss:$8 sps:$4 sm:$0xff]  }
  0x23   : > { %1305 = vmatpush1.bf16.msra.mxu1 %v1871_v23  ;;  %1265 = vmatprep.subr.bf16.mxu0 %v1872_v24  ;;  %v1931_v3 = vld [vmem:[%s2548_s1 + $0x180] ss:$8 sps:$4 sm:$0xff]   ;;  %v1941_v5 = vld [vmem:[%s2548_s1 + $0x374] ss:$8 sps:$4 sm:$0xff]   ;;  %v1939_v9 = vld [vmem:[%s2548_s1 + $0x370] ss:$8 sps:$4 sm:$0xff]  }
  0x24   : > { %1306 = vmatprep.subr.bf16.mxu1 %v1874_v25  ;;  %v1944_v10 = vld [vmem:[%s2548_s1 + $0x264] ss:$8 sps:$4 sm:$0xff]   ;;  %v1942_v12 = vld [vmem:[%s2548_s1 + $0x260] ss:$8 sps:$4 sm:$0xff]   ;;  %v1950_v14 = vld [vmem:[%s2548_s1 + $0x254] ss:$8 sps:$4 sm:$0xff]  }
  0x25   : > { %v1947_v11 = vld [vmem:[%s2548_s1 + $0x364] ss:$8 sps:$4 sm:$0xff]   ;;  %v1945_v13 = vld [vmem:[%s2548_s1 + $0x360] ss:$8 sps:$4 sm:$0xff]   ;;  %v1953_v15 = vld [vmem:[%s2548_s1 + $0x354] ss:$8 sps:$4 sm:$0xff]  }
  0x26   : > { %1266 = vmatpush1.bf16.msra.mxu0 %v1876_v26  ;;  %v1948_v16 = vld [vmem:[%s2548_s1 + $0x250] ss:$8 sps:$4 sm:$0xff]   ;;  %v1956_v18 = vld [vmem:[%s2548_s1 + $0x244] ss:$8 sps:$4 sm:$0xff]   ;;  %v1954_v20 = vld [vmem:[%s2548_s1 + $0x240] ss:$8 sps:$4 sm:$0xff]  }
  0x27   : > { %1307 = vmatpush1.bf16.msra.mxu1 %v1877_v27  ;;  %1267 = vmatprep.subr.bf16.mxu0 %v1878_v28  ;;  %v1951_v17 = vld [vmem:[%s2548_s1 + $0x350] ss:$8 sps:$4 sm:$0xff]   ;;  %v1959_v19 = vld [vmem:[%s2548_s1 + $0x344] ss:$8 sps:$4 sm:$0xff]   ;;  %v1957_v21 = vld [vmem:[%s2548_s1 + $0x340] ss:$8 sps:$4 sm:$0xff]  }
  0x28   : > { %1308 = vmatprep.subr.bf16.mxu1 %v1880_v29  ;;  %v1962_v22 = vld [vmem:[%s2548_s1 + $0x234] ss:$8 sps:$4 sm:$0xff]   ;;  %v1960_v24 = vld [vmem:[%s2548_s1 + $0x230] ss:$8 sps:$4 sm:$0xff]   ;;  %v1968_v26 = vld [vmem:[%s2548_s1 + $0x224] ss:$8 sps:$4 sm:$0xff]  }
  0x29   : > { %v1965_v23 = vld [vmem:[%s2548_s1 + $0x334] ss:$8 sps:$4 sm:$0xff]   ;;  %v1963_v25 = vld [vmem:[%s2548_s1 + $0x330] ss:$8 sps:$4 sm:$0xff]   ;;  %v1971_v27 = vld [vmem:[%s2548_s1 + $0x324] ss:$8 sps:$4 sm:$0xff]  }
  0x2a   : > { %1268 = vmatpush1.bf16.msra.mxu0 %v1882_v30  ;;  %v1966_v28 = vld [vmem:[%s2548_s1 + $0x220] ss:$8 sps:$4 sm:$0xff]   ;;  %v1974_v30 = vld [vmem:[%s2548_s1 + $0x214] ss:$8 sps:$4 sm:$0xff]   ;;  %v1992_v46 = vld [vmem:[%s2548_s1 + $0x2e4] ss:$8 sps:$4 sm:$0xff]  }
  0x2b   : > { %1309 = vmatpush1.bf16.msra.mxu1 %v1883_v31  ;;  %1269 = vmatprep.subr.bf16.mxu0 %v1884_v32  ;;  %v1969_v29 = vld [vmem:[%s2548_s1 + $0x320] ss:$8 sps:$4 sm:$0xff]   ;;  %v1977_v31 = vld [vmem:[%s2548_s1 + $0x314] ss:$8 sps:$4 sm:$0xff]   ;;  %v1995_v47 = vld [vmem:[%s2548_s1 + $0x3e4] ss:$8 sps:$4 sm:$0xff]  }
  0x2c   : > { %1310 = vmatprep.subr.bf16.mxu1 %v1886_v33  ;;  %v2393_v32 = vld [vmem:[%s2250_s29 + $0x10] sm:$0xff]  ;;  %v2396_v33 = vld [vmem:[%s2250_s29 + $0x18] sm:$0xff]  ;;  %v1990_v48 = vld [vmem:[%s2548_s1 + $0x2e0] ss:$8 sps:$4 sm:$0xff]   ;;  %s443_s29 = scalar_lea.vmem %s2552_s5, %s1809_s13 }
  0x2d   : > { %v2001_v51 = vld [vmem:[%s2548_s1 + $0x3d4] ss:$8 sps:$4 sm:$0xff]  }
  0x2e   : > { %1270 = vmatpush2.bf16.msra.mxu0 %v1888_v34  ;;  %v1674_v34 = vcombine.high %v2393_v32, %v2393_v32 }
  0x2f   : > { %1311 = vmatpush2.bf16.msra.mxu1 %v1889_v35  ;;  %1271 = vmatprep.subr.bf16.mxu0 %v1890_v36  ;;  %v1676_v35 = vcombine.high %v2396_v33, %v2396_v33  ;;  %v1972_v36 = vld [vmem:[%s2548_s1 + $0x210] ss:$8 sps:$4 sm:$0xff]  }
  0x30   : > { %1312 = vmatprep.subr.bf16.mxu1 %v1892_v37  ;;  %v1975_v37 = vld [vmem:[%s2548_s1 + $0x310] ss:$8 sps:$4 sm:$0xff]  }
  0x32   : > { %1272 = vmatpush2.bf16.msra.mxu0 %v1894_v38  ;;  %v1980_v38 = vld [vmem:[%s2548_s1 + $0x204] ss:$8 sps:$4 sm:$0xff]  }
  0x33   : > { %1313 = vmatpush2.bf16.msra.mxu1 %v1895_v39  ;;  %1273 = vmatprep.subr.bf16.mxu0 %v1896_v40  ;;  %v1983_v39 = vld [vmem:[%s2548_s1 + $0x304] ss:$8 sps:$4 sm:$0xff]   ;;  %v1978_v40 = vld [vmem:[%s2548_s1 + $0x200] ss:$8 sps:$4 sm:$0xff]  }
  0x34   : > { %1314 = vmatprep.subr.bf16.mxu1 %v1898_v41  ;;  %v1981_v41 = vld [vmem:[%s2548_s1 + $0x300] ss:$8 sps:$4 sm:$0xff]  }
  0x36   : > { %1274 = vmatpush2.bf16.msra.mxu0 %v1900_v42  ;;  %v1986_v42 = vld [vmem:[%s2548_s1 + $0x2f4] ss:$8 sps:$4 sm:$0xff]  }
  0x37   : > { %1315 = vmatpush2.bf16.msra.mxu1 %v1901_v43  ;;  %1275 = vmatprep.subr.bf16.mxu0 %v1902_v44  ;;  %v1989_v43 = vld [vmem:[%s2548_s1 + $0x3f4] ss:$8 sps:$4 sm:$0xff]   ;;  %v1984_v44 = vld [vmem:[%s2548_s1 + $0x2f0] ss:$8 sps:$4 sm:$0xff]  }
  0x38   : > { %1316 = vmatprep.subr.bf16.mxu1 %v1904_v45  ;;  %v1987_v45 = vld [vmem:[%s2548_s1 + $0x3f0] ss:$8 sps:$4 sm:$0xff]  }
  0x3a   : > { %1276 = vmatpush2.bf16.msra.mxu0 %v1906_v49  ;;  %v1993_v49 = vld [vmem:[%s2548_s1 + $0x3e0] ss:$8 sps:$4 sm:$0xff]  }
  0x3b   : > { %1317 = vmatpush2.bf16.msra.mxu1 %v1907_v50  ;;  %1277 = vmatprep.subr.bf16.mxu0 %v1908_v52  ;;  %v1998_v50 = vld [vmem:[%s2548_s1 + $0x2d4] ss:$8 sps:$4 sm:$0xff]   ;;  %v1996_v52 = vld [vmem:[%s2548_s1 + $0x2d0] ss:$8 sps:$4 sm:$0xff]  }
  0x3c   : > { %1318 = vmatprep.subr.bf16.mxu1 %v1910_v53  ;;  %v1999_v53 = vld [vmem:[%s2548_s1 + $0x3d0] ss:$8 sps:$4 sm:$0xff]  }
  0x3e   : > { %1278 = vmatpush2.bf16.msra.mxu0 %v1912_v54  ;;  %v2004_v54 = vld [vmem:[%s2548_s1 + $0x2c4] ss:$8 sps:$4 sm:$0xff]  }
  0x3f   : > { %1319 = vmatpush2.bf16.msra.mxu1 %v1913_v55  ;;  %1279 = vmatprep.subr.bf16.mxu0 %v1914_v56  ;;  %v2007_v55 = vld [vmem:[%s2548_s1 + $0x3c4] ss:$8 sps:$4 sm:$0xff]   ;;  %v2002_v56 = vld [vmem:[%s2548_s1 + $0x2c0] ss:$8 sps:$4 sm:$0xff]  }
  0x40   : > { %1320 = vmatprep.subr.bf16.mxu1 %v1916_v57  ;;  %v2005_v57 = vld [vmem:[%s2548_s1 + $0x3c0] ss:$8 sps:$4 sm:$0xff]  }
  0x42   : > { %1280 = vmatpush2.bf16.msra.mxu0 %v1918_v58  ;;  %v2010_v58 = vld [vmem:[%s2548_s1 + $0x2b4] ss:$8 sps:$4 sm:$0xff]  }
  0x43   : > { %1321 = vmatpush2.bf16.msra.mxu1 %v1919_v59  ;;  %1281 = vmatprep.subr.bf16.mxu0 %v1920_v60  ;;  %v2013_v59 = vld [vmem:[%s2548_s1 + $0x3b4] ss:$8 sps:$4 sm:$0xff]   ;;  %v2008_v60 = vld [vmem:[%s2548_s1 + $0x2b0] ss:$8 sps:$4 sm:$0xff]  }
  0x44   : > { %1322 = vmatprep.subr.bf16.mxu1 %v1922_v61  ;;  %v2011_v61 = vld [vmem:[%s2548_s1 + $0x3b0] ss:$8 sps:$4 sm:$0xff]  }
  0x46   : > { %1282 = vmatpush2.bf16.msra.mxu0 %v1924_v62  ;;  %v2016_v62 = vld [vmem:[%s2548_s1 + $0x2a4] ss:$8 sps:$4 sm:$0xff]  }
  0x47   : > { %1323 = vmatpush2.bf16.msra.mxu1 %v1925_v63  ;;  %1283 = vmatprep.subr.bf16.mxu0 %v1926_v0  ;;  %v2019_v63 = vld [vmem:[%s2548_s1 + $0x3a4] ss:$8 sps:$4 sm:$0xff]   ;;  %v2014_v0 = vld [vmem:[%s2548_s1 + $0x2a0] ss:$8 sps:$4 sm:$0xff]  }
  0x48   : > { %1324 = vmatprep.subr.bf16.mxu1 %v1928_v1  ;;  %v2017_v1 = vld [vmem:[%s2548_s1 + $0x3a0] ss:$8 sps:$4 sm:$0xff]  }
  0x4a   : > { %1284 = vmatpush2.bf16.msra.mxu0 %v1930_v2  ;;  %v2022_v2 = vld [vmem:[%s2548_s1 + $0x294] ss:$8 sps:$4 sm:$0xff]  }
  0x4b   : > { %1325 = vmatpush2.bf16.msra.mxu1 %v1931_v3  ;;  %1335 = vmatprep.subr.bf16.mxu0 %v1938_v4  ;;  %v2025_v3 = vld [vmem:[%s2548_s1 + $0x394] ss:$8 sps:$4 sm:$0xff]   ;;  %v2020_v4 = vld [vmem:[%s2548_s1 + $0x290] ss:$8 sps:$4 sm:$0xff]  }
  0x4c   : > { %1376 = vmatprep.subr.bf16.mxu1 %v1941_v5  ;;  %v2023_v5 = vld [vmem:[%s2548_s1 + $0x390] ss:$8 sps:$4 sm:$0xff]  }
  0x4d   : > { %1286 = vmatmul.mubr.bf16.vlgmr.msra.gmra.mxu0 %v1669_v6  ;;  %v2028_v6 = vld [vmem:[%s2548_s1 + $0x284] ss:$8 sps:$4 sm:$0xff]  }
  0x4e   : > { %1327 = vmatmul.mubr.bf16.vlgmr.msra.gmra.mxu1 %v1671_v7  ;;  %1336 = vmatpush1.bf16.msra.mxu0 %v1936_v8  ;;  %v2031_v7 = vld [vmem:[%s2548_s1 + $0x384] ss:$8 sps:$4 sm:$0xff]   ;;  %v2026_v8 = vld [vmem:[%s2548_s1 + $0x280] ss:$8 sps:$4 sm:$0xff]  }
  0x4f   : > { %1377 = vmatpush1.bf16.msra.mxu1 %v1939_v9  ;;  %1337 = vmatprep.subr.bf16.mxu0 %v1944_v10  ;;  %v2029_v9 = vld [vmem:[%s2548_s1 + $0x380] ss:$8 sps:$4 sm:$0xff]   ;;  %v1673_v10 = vcombine.low %v2393_v32, %v2393_v32 }
  0x50   : > { %1378 = vmatprep.subr.bf16.mxu1 %v1947_v11  ;;  %1367 = vmatprep.mubr.bf16.mxu0 %v1674_v34  ;;  %v1675_v11 = vcombine.low %v2396_v33, %v2396_v33 }
  0x51   : > { %1408 = vmatprep.mubr.bf16.mxu1 %v1676_v35 }
  0x52   : > { %1338 = vmatpush1.bf16.msra.mxu0 %v1942_v12 }
  0x53   : > { %1379 = vmatpush1.bf16.msra.mxu1 %v1945_v13  ;;  %1339 = vmatprep.subr.bf16.mxu0 %v1950_v14 }
  0x54   : > { %1380 = vmatprep.subr.bf16.mxu1 %v1953_v15 }
  0x56   : > { %1340 = vmatpush1.bf16.msra.mxu0 %v1948_v16 }
  0x57   : > { %1381 = vmatpush1.bf16.msra.mxu1 %v1951_v17  ;;  %1341 = vmatprep.subr.bf16.mxu0 %v1956_v18 }
  0x58   : > { %1382 = vmatprep.subr.bf16.mxu1 %v1959_v19 }
  0x5a   : > { %1342 = vmatpush1.bf16.msra.mxu0 %v1954_v20 }
  0x5b   : > { %1383 = vmatpush1.bf16.msra.mxu1 %v1957_v21  ;;  %1343 = vmatprep.subr.bf16.mxu0 %v1962_v22  ;;  %v1428_v21 = vlaneseq }
  0x5c   : > { %1384 = vmatprep.subr.bf16.mxu1 %v1965_v23 }
  0x5d   : > { %v1429_v22 = vshrl.u32 %v1428_v21, 7 }
  0x5e   : > { %1344 = vmatpush1.bf16.msra.mxu0 %v1960_v24  ;;  %v1426_v24 = vld [vmem:[%s2549_s2] sm:$0x3] }
  0x5f   : > { %1385 = vmatpush1.bf16.msra.mxu1 %v1963_v25  ;;  %1345 = vmatprep.subr.bf16.mxu0 %v1968_v26  ;;  %v1430_v23 = vsub.s32 0, %v1429_v22  ;;  %v1434_v25 = vsub.s32 1, %v1429_v22 }
  0x60   : > { %1386 = vmatprep.subr.bf16.mxu1 %v1971_v27 }
  0x62   : > { %1346 = vmatpush1.bf16.msra.mxu0 %v1966_v28  ;;  %v1443_v28 = vld [vmem:[%s415_s12] sm:$0x3] }
  0x63   : > { %1387 = vmatpush1.bf16.msra.mxu1 %v1969_v29  ;;  %1347 = vmatprep.subr.bf16.mxu0 %v1974_v30  ;;  %v1448_v35 = vrot.slane %v1443_v28, %v1430_v23 }
  0x64   : > { %1388 = vmatprep.subr.bf16.mxu1 %v1977_v31  ;;  %v1431_v31 = vrot.slane %v1426_v24, %v1430_v23 }
  0x66   : > { %1348 = vmatpush1.bf16.msra.mxu0 %v1972_v36 }
  0x67   : > { %1389 = vmatpush1.bf16.msra.mxu1 %v1975_v37  ;;  %1349 = vmatprep.subr.bf16.mxu0 %v1980_v38  ;;  %v1435_v37 = vrot.slane %v1426_v24, %v1434_v25  ;;  %v1440_v38 = vld [vmem:[%s429_s22] sm:$0xff] }
  0x68   : > { %1390 = vmatprep.subr.bf16.mxu1 %v1983_v39 }
  0x6a   : > { %1350 = vmatpush1.bf16.msra.mxu0 %v1978_v40 }
  0x6b   : > { %1391 = vmatpush1.bf16.msra.mxu1 %v1981_v41  ;;  %1351 = vmatprep.subr.bf16.mxu0 %v1986_v42 }
  0x6c   : > { %1392 = vmatprep.subr.bf16.mxu1 %v1989_v43  ;;  %v1452_v43 = vrot.slane %v1443_v28, %v1434_v25 }
  0x6e   : > { %1352 = vmatpush2.bf16.msra.mxu0 %v1984_v44 }
  0x6f   : > { %1393 = vmatpush2.bf16.msra.mxu1 %v1987_v45  ;;  %1353 = vmatprep.subr.bf16.mxu0 %v1992_v46  ;;  %v1441_v46 = vunpack.c.l.bf16 %v1440_v38 }
  0x70   : > { %1394 = vmatprep.subr.bf16.mxu1 %v1995_v47 }
  0x72   : > { %1354 = vmatpush2.bf16.msra.mxu0 %v1990_v48 }
  0x73   : > { %1395 = vmatpush2.bf16.msra.mxu1 %v1993_v49  ;;  %1355 = vmatprep.subr.bf16.mxu0 %v1998_v50  ;;  %v1442_v49 = vunpack.c.h.bf16 %v1440_v38 }
  0x74   : > { %1396 = vmatprep.subr.bf16.mxu1 %v2001_v51 }
  0x76   : > { %1356 = vmatpush2.bf16.msra.mxu0 %v1996_v52 }
  0x77   : > { %1397 = vmatpush2.bf16.msra.mxu1 %v1999_v53  ;;  %1357 = vmatprep.subr.bf16.mxu0 %v2004_v54 }
  0x78   : > { %1398 = vmatprep.subr.bf16.mxu1 %v2007_v55 }
  0x7a   : > { %1358 = vmatpush2.bf16.msra.mxu0 %v2002_v56 }
  0x7b   : > { %1399 = vmatpush2.bf16.msra.mxu1 %v2005_v57  ;;  %1359 = vmatprep.subr.bf16.mxu0 %v2010_v58 }
  0x7c   : > { %1400 = vmatprep.subr.bf16.mxu1 %v2013_v59 }
  0x7e   : > { %1360 = vmatpush2.bf16.msra.mxu0 %v2008_v60 }
  0x7f   : > { %1401 = vmatpush2.bf16.msra.mxu1 %v2011_v61  ;;  %1361 = vmatprep.subr.bf16.mxu0 %v2016_v62 }
  0x80   : > { %1402 = vmatprep.subr.bf16.mxu1 %v2019_v63 }
  0x82   : > { %1362 = vmatpush2.bf16.msra.mxu0 %v2014_v0 }
  0x83   : > { %1403 = vmatpush2.bf16.msra.mxu1 %v2017_v1  ;;  %1363 = vmatprep.subr.bf16.mxu0 %v2022_v2 }
  0x84   : > { %1404 = vmatprep.subr.bf16.mxu1 %v2025_v3 }
  0x86   : > { %1364 = vmatpush2.bf16.msra.mxu0 %v2020_v4 }
  0x87   : > { %1405 = vmatpush2.bf16.msra.mxu1 %v2023_v5  ;;  %1365 = vmatprep.subr.bf16.mxu0 %v2028_v6 }
  0x88   : > { %1406 = vmatprep.subr.bf16.mxu1 %v2031_v7 }
  0x8a   : > { %1366 = vmatpush2.bf16.msra.mxu0 %v2026_v8 }
  0x8b   : > { %1407 = vmatpush2.bf16.msra.mxu1 %v2029_v9 }
  0x8d   : > { %1368 = vmatmul.mubr.bf16.vlgmr.msra.gmra.mxu0 %v1673_v10 }
  0x8e   : > { %1409 = vmatmul.mubr.bf16.vlgmr.msra.gmra.mxu1 %v1675_v11 }
 0x10d   : > { %v1287_v12 = vpop.f32.mrf.mxu0 }
 0x10e   : > { %v1328_v13 = vpop.f32.mrf.mxu1 }
 0x10f   : > { %v1329_v14 = vadd.f32 %v1328_v13, %v1287_v12  ;;  %v1289_v15 = vpop.f32.mrf.mxu0 }
 0x110   : > { %v1330_v16 = vpop.f32.mrf.mxu1 }
 0x111   : > { %v1291_v17 = vpop.f32.mrf.mxu0  ;;  %v1331_v29 = vadd.f32 %v1330_v16, %v1289_v15 }
 0x112   : > { %v1332_v18 = vpop.f32.mrf.mxu1 }
 0x113   : > { %v1292_v19 = vpop.f32.mrf.mxu0 }
 0x114   : > { %v1333_v20 = vpop.f32.mrf.mxu1 }
 0x14d   : > { %v1369_v26 = vpop.f32.mrf.mxu0 }
 0x14e   : > { %v1410_v27 = vpop.f32.mrf.mxu1  ;;  %v1370_v30 = vadd.f32 %v1369_v26, %v1329_v14 }
 0x14f   : > { %v1371_v32 = vpop.f32.mrf.mxu0 }
 0x150   : > { %v1412_v33 = vpop.f32.mrf.mxu1  ;;  %v1411_v34 = vadd.f32 %v1410_v27, %v1370_v30  ;;  %v1372_v36 = vadd.f32 %v1371_v32, %v1331_v29 }
 0x151   : > { %v1373_v39 = vpop.f32.mrf.mxu0 }
 0x152   : > { %v1414_v40 = vpop.f32.mrf.mxu1  ;;  %v1438_v41 = vadd.f32 %v1431_v31, %v1411_v34  ;;  %v1413_v42 = vadd.f32 %v1412_v33, %v1372_v36 }
 0x153   : > { %v1374_v44 = vpop.f32.mrf.mxu0 }
 0x154   : > { %v1415_v45 = vpop.f32.mrf.mxu1  ;;  %v1455_v47 = vmul.f32 %v1448_v35, %v1438_v41  ;;  %v1439_v48 = vadd.f32 %v1435_v37, %v1413_v42 }
 0x156   : > { %v1456_v50 = vmul.f32 %v1452_v43, %v1439_v48  ;;  %v1457_v51 = vadd.f32 %v1455_v47, %v1441_v46 }
 0x158   : > { %v1458_v52 = vadd.f32 %v1456_v50, %v1442_v49 }
 0x15a   : > { %v1811_v53 = vpack.c.bf16 %v1458_v52, %v1457_v51 }
 0x15c   : > { %1467 = vst [vmem:[%s443_s29] sm:$0xff] %v1811_v53 }
 0x15d PF: > { %s15_s20 = sadd.s32 1, %s2058_s20   ;;  %s2553_s18 = smov %s2054_s19 }
 0x15e   : > { %p12_p5 = scmp.ge.s32.totalorder %s15_s20, 4   ;;  %s2554_s19 = smov %s2556_s21 }
 0x160   :  { %14 = sbr.rel (!%p12_p5) target bundleno = 2 (0x2), region = 90 }

// kernel: flux_forward.68
= control target key start
LH: loop header
LB: loop body
LE: loop exit
PB: predicated region body
PF: predicated region fallthrough
CT: control target
= control target key end

     0   :  { %s579_s12 = smov 0   ;;  %s581_s13 = smov 0   ;;  %s626_s0 = inlined_call_operand.vmem [shape: bf16[2,24,256], index: 0, kind: input, shape index: {}]   ;;  %s627_s1 = inlined_call_operand.vmem [shape: f32[2,1,256], index: 1, kind: input, shape index: {}]   ;;  %s628_s2 = inlined_call_operand.vmem [shape: f32[2,1,256], index: 2, kind: input, shape index: {}]   ;;  %s629_s3 = inlined_call_operand.vmem [shape: bf16[2,24,256], index: 3, kind: output, shape index: {}]  }
   0x1   :  { %s583_s14 = smov 0  }
   0x2 LB: > { %s25_s15 = sadd.s32 1, %s553_s13  ;;  %p491_p0 = scmp.ge.s32.totalorder %s557_s14, 1  ;;  %s557_s14 = sphi %s583_s14, %s13_s14   ;;  %s553_s13 = sphi %s581_s13, %s631_s13   ;;  %s549_s12 = sphi %s579_s12, %s630_s12  }
   0x3   : > { %p27_p1 = scmp.ge.s32.totalorder %s25_s15, 2  ;;  %p177_p2 = scmp.lt.s32.totalorder %s557_s14, 3 }
   0x5   : > { %s633_s15 = smov (%p27_p1, %s25_s15), 0  ;;  %p178_p3 = pnand %p491_p0, %p177_p2 }
   0x6   : > { %p220_p4 = scmp.lt.s32.totalorder (!%p178_p3), %s549_s12, 1 }
   0x7   : > { %181 = sbr.rel (%p178_p3) target bundleno = 337 (0x151), region = 32 }
   0xc   : > { %s635_s12 = smov (!%p220_p4, %s549_s12), 1  ;;  %v310_v38 = vlaneseq }
   0xd   : > { %s504_s16 = smul.u32 24, %s635_s12  ;;  %s493_s20 = sshll.u32 %s635_s12, 1 }
   0xe   : > { %s233_s23 = scalar_lea.vmem %s627_s1, %s493_s20  ;;  %v311_v43 = vshrl.u32 %v310_v38, 7  ;;  %s237_s26 = scalar_lea.vmem %s628_s2, %s493_s20 }
   0xf   : > { %s228_s19 = scalar_lea.vmem %s626_s0, %s504_s16  ;;  %v307_v44 = vld [vmem:[%s233_s23] sm:$0x3]  ;;  %s247_s29 = scalar_lea.vmem %s629_s3, %s504_s16 }
  0x10   : > { %v249_v0 = vld [vmem:[%s228_s19] sm:$0xff]  ;;  %v251_v1 = vld [vmem:[%s228_s19 + $0x10] sm:$0xff]  ;;  %v250_v2 = vld [vmem:[%s228_s19 + $0x8] sm:$0xff]  ;;  %v308_v45 = vadd.f32 1.0, %v307_v44  ;;  %v312_v46 = vsub.s32 0, %v311_v43  ;;  %v316_v47 = vsub.s32 1, %v311_v43 }
  0x11   : > { %v252_v3 = vunpack.c.l.bf16 %v249_v0  ;;  %v253_v4 = vunpack.c.h.bf16 %v249_v0  ;;  %v256_v5 = vunpack.c.l.bf16 %v251_v1  ;;  %v257_v6 = vunpack.c.h.bf16 %v251_v1  ;;  %v326_v48 = vld [vmem:[%s237_s26] sm:$0x3] }
  0x12   : > { %v254_v7 = vunpack.c.l.bf16 %v250_v2  ;;  %v255_v8 = vunpack.c.h.bf16 %v250_v2  ;;  %v313_v49 = vrot.slane %v308_v45, %v312_v46  ;;  %v317_v50 = vrot.slane %v308_v45, %v316_v47 }
  0x13   : > { %v258_v9 = vadd.f32 %v253_v4, %v252_v3  ;;  %v264_v10 = vadd.f32 %v257_v6, %v256_v5  ;;  %v331_v52 = vrot.slane %v326_v48, %v312_v46  ;;  %v335_v53 = vrot.slane %v326_v48, %v316_v47 }
  0x14   : > { %v261_v11 = vadd.f32 %v255_v8, %v254_v7 }
  0x15   : > { %259 = vadd.xlane.f32.xlu0 %v258_v9  ;;  %265 = vadd.xlane.f32.xlu1 %v264_v10 }
  0x19   : > { %262 = vadd.xlane.f32.xlu0 %v261_v11 }
  0x9e   : > { %v260_v12 = vpop.xlane.xlu0 %259  ;;  %v266_v13 = vpop.xlane.xlu1 %265 }
  0x9f   : > { %v268_v14 = vmul.f32 0.00390625, %v260_v12  ;;  %v270_v15 = vmul.f32 0.00390625, %v266_v13 }
  0xa1   : > { %v271_v16 = vsub.f32 %v252_v3, %v268_v14  ;;  %v272_v17 = vsub.f32 %v253_v4, %v268_v14  ;;  %v275_v18 = vsub.f32 %v256_v5, %v270_v15  ;;  %v276_v19 = vsub.f32 %v257_v6, %v270_v15 }
  0xa2   : > { %v263_v20 = vpop.xlane.xlu0 %262 }
  0xa3   : > { %v269_v21 = vmul.f32 0.00390625, %v263_v20  ;;  %v277_v22 = vmul.f32 %v271_v16, %v271_v16  ;;  %v278_v23 = vmul.f32 %v272_v17, %v272_v17  ;;  %v281_v24 = vmul.f32 %v275_v18, %v275_v18 }
  0xa4   : > { %v282_v25 = vmul.f32 %v276_v19, %v276_v19 }
  0xa5   : > { %v273_v26 = vsub.f32 %v254_v7, %v269_v21  ;;  %v274_v27 = vsub.f32 %v255_v8, %v269_v21  ;;  %v283_v28 = vadd.f32 %v278_v23, %v277_v22 }
  0xa6   : > { %v289_v29 = vadd.f32 %v282_v25, %v281_v24 }
  0xa7   : > { %284 = vadd.xlane.f32.xlu1 %v283_v28  ;;  %v279_v30 = vmul.f32 %v273_v26, %v273_v26  ;;  %v280_v31 = vmul.f32 %v274_v27, %v274_v27 }
  0xa9   : > { %v286_v32 = vadd.f32 %v280_v31, %v279_v30 }
  0xab   : > { %290 = vadd.xlane.f32.xlu1 %v289_v29  ;;  %287 = vadd.xlane.f32.xlu0 %v286_v32 }
 0x130   : > { %v285_v33 = vpop.xlane.xlu1 %284 }
 0x131   : > { %v292_v34 = vmul.f32 0.00390625, %v285_v33 }
 0x133   : > { %v295_v35 = vadd.f32 1e-06, %v292_v34 }
 0x134   : > { %v291_v36 = vpop.xlane.xlu1 %290  ;;  %v288_v37 = vpop.xlane.xlu0 %287 }
 0x135   : > { %529 = vrsqrt.f32 %v295_v35  ;;  %v294_v39 = vmul.f32 0.00390625, %v291_v36  ;;  %v293_v40 = vmul.f32 0.00390625, %v288_v37 }
 0x137   : > { %v297_v41 = vadd.f32 1e-06, %v294_v39  ;;  %v296_v42 = vadd.f32 1e-06, %v293_v40 }
 0x139   : > { %531 = vrsqrt.f32 %v297_v41 }
 0x13a   : > { %533 = vrsqrt.f32 %v296_v42 }
 0x142   : > { %v530_v51 = vpop.eup %529 }
 0x143   : > { %v301_v54 = vmul.f32 %v530_v51, %v271_v16  ;;  %v302_v55 = vmul.f32 %v530_v51, %v272_v17 }
 0x145   : > { %v320_v56 = vmul.f32 %v313_v49, %v301_v54  ;;  %v321_v57 = vmul.f32 %v317_v50, %v302_v55 }
 0x146   : > { %v532_v58 = vpop.eup %531 }
 0x147   : > { %v534_v59 = vpop.eup %533  ;;  %v338_v60 = vadd.f32 %v331_v52, %v320_v56  ;;  %v339_v61 = vadd.f32 %v335_v53, %v321_v57  ;;  %v305_v62 = vmul.f32 %v532_v58, %v275_v18  ;;  %v306_v63 = vmul.f32 %v532_v58, %v276_v19 }
 0x148   : > { %v303_v0 = vmul.f32 %v534_v59, %v273_v26  ;;  %v304_v1 = vmul.f32 %v534_v59, %v274_v27 }
 0x149   : > { %v501_v2 = vpack.c.bf16 %v339_v61, %v338_v60  ;;  %v324_v3 = vmul.f32 %v313_v49, %v305_v62  ;;  %v325_v4 = vmul.f32 %v317_v50, %v306_v63 }
 0x14a   : > { %v322_v5 = vmul.f32 %v313_v49, %v303_v0  ;;  %v323_v6 = vmul.f32 %v317_v50, %v304_v1 }
 0x14b   : > { %364 = vst [vmem:[%s247_s29] sm:$0xff] %v501_v2  ;;  %v342_v7 = vadd.f32 %v331_v52, %v324_v3  ;;  %v343_v8 = vadd.f32 %v335_v53, %v325_v4 }
 0x14c   : > { %v340_v9 = vadd.f32 %v331_v52, %v322_v5  ;;  %v341_v10 = vadd.f32 %v335_v53, %v323_v6 }
 0x14d   : > { %v503_v11 = vpack.c.bf16 %v343_v8, %v342_v7 }
 0x14e   : > { %v502_v12 = vpack.c.bf16 %v341_v10, %v340_v9 }
 0x14f   : > { %366 = vst [vmem:[%s247_s29 + $0x10] sm:$0xff] %v503_v11 }
 0x150   : > { %365 = vst [vmem:[%s247_s29 + $0x8] sm:$0xff] %v502_v12 }
 0x151 PF: > { %s13_s14 = sadd.s32 1, %s557_s14   ;;  %s630_s12 = smov %s553_s13 }
 0x152   : > { %p10_p5 = scmp.ge.s32.totalorder %s13_s14, 4   ;;  %s631_s13 = smov %s633_s15 }
 0x154   :  { %12 = sbr.rel (!%p10_p5) target bundleno = 2 (0x2), region = 68 }

// kernel: flux_forward.69
= control target key start
LH: loop header
LB: loop body
LE: loop exit
PB: predicated region body
PF: predicated region fallthrough
CT: control target
= control target key end

     0   :  { %s1812_s12 = smov 0   ;;  %s1814_s13 = smov 0   ;;  %s2185_s0 = inlined_call_operand.vmem [shape: bf16[2,24,256], index: 0, kind: input, shape index: {}]   ;;  %s2186_s1 = inlined_call_operand.vmem [shape: bf16[256,768], index: 1, kind: input, shape index: {}]   ;;  %s2187_s2 = inlined_call_operand.vmem [shape: f32[1,768], index: 2, kind: input, shape index: {}]   ;;  %s2188_s3 = inlined_call_operand.vmem [shape: bf16[2,24,768], index: 3, kind: output, shape index: {}]  }
   0x1   :  { %s1816_s14 = smov 0  }
   0x2 LB: > { %s39_s15 = sadd.s32 1, %s1786_s13  ;;  %p1438_p0 = scmp.ge.s32.totalorder %s1790_s14, 1  ;;  %s1790_s14 = sphi %s1816_s14, %s13_s14   ;;  %s1786_s13 = sphi %s1814_s13, %s2190_s13   ;;  %s1782_s12 = sphi %s1812_s12, %s2189_s12  }
   0x3   : > { %p41_p1 = scmp.ge.s32.totalorder %s39_s15, 2  ;;  %p211_p2 = scmp.lt.s32.totalorder %s1790_s14, 3 }
   0x5   : > { %s2192_s15 = smov (%p41_p1, %s39_s15), 0  ;;  %p212_p3 = pnand %p1438_p0, %p211_p2 }
   0x6   : > { %p269_p4 = scmp.lt.s32.totalorder (!%p212_p3), %s1782_s12, 1 }
   0x7   : > { %215 = sbr.rel (%p212_p3) target bundleno = 345 (0x159), region = 32 }
   0xc   : > { %v1619_v0 = vld [vmem:[%s2186_s1 + $0x154] ss:$24 sps:$4 sm:$0xff]   ;;  %v1623_v2 = vld [vmem:[%s2186_s1 + $0x150] ss:$24 sps:$4 sm:$0xff]   ;;  %v1625_v4 = vld [vmem:[%s2186_s1 + $0x124] ss:$24 sps:$4 sm:$0xff]  }
   0xd   : > { %v1621_v1 = vld [vmem:[%s2186_s1 + $0x15c] ss:$24 sps:$4 sm:$0xff]   ;;  %952 = vmatprep.subr.bf16.mxu0 %v1619_v0  ;;  %v1624_v3 = vld [vmem:[%s2186_s1 + $0x158] ss:$24 sps:$4 sm:$0xff]   ;;  %v1627_v5 = vld [vmem:[%s2186_s1 + $0x12c] ss:$24 sps:$4 sm:$0xff]  }
   0xe   : > { %1003 = vmatprep.subr.bf16.mxu1 %v1621_v1  ;;  %953 = vmatpush1.bf16.msra.mxu0 %v1623_v2  ;;  %v1629_v6 = vld [vmem:[%s2186_s1 + $0x120] ss:$24 sps:$4 sm:$0xff]   ;;  %v1631_v8 = vld [vmem:[%s2186_s1 + $0xf4] ss:$24 sps:$4 sm:$0xff]   ;;  %v1635_v10 = vld [vmem:[%s2186_s1 + $0xf0] ss:$24 sps:$4 sm:$0xff]  }
   0xf   : > { %1004 = vmatpush1.bf16.msra.mxu1 %v1624_v3  ;;  %954 = vmatprep.subr.bf16.mxu0 %v1625_v4  ;;  %v1630_v7 = vld [vmem:[%s2186_s1 + $0x128] ss:$24 sps:$4 sm:$0xff]   ;;  %v1633_v9 = vld [vmem:[%s2186_s1 + $0xfc] ss:$24 sps:$4 sm:$0xff]   ;;  %v1636_v11 = vld [vmem:[%s2186_s1 + $0xf8] ss:$24 sps:$4 sm:$0xff]  }
  0x10   : > { %1005 = vmatprep.subr.bf16.mxu1 %v1627_v5  ;;  %v1637_v12 = vld [vmem:[%s2186_s1 + $0xc4] ss:$24 sps:$4 sm:$0xff]   ;;  %v1641_v14 = vld [vmem:[%s2186_s1 + $0xc0] ss:$24 sps:$4 sm:$0xff]   ;;  %v1643_v16 = vld [vmem:[%s2186_s1 + $0x94] ss:$24 sps:$4 sm:$0xff]  }
  0x11   : > { %v1639_v13 = vld [vmem:[%s2186_s1 + $0xcc] ss:$24 sps:$4 sm:$0xff]   ;;  %v1642_v15 = vld [vmem:[%s2186_s1 + $0xc8] ss:$24 sps:$4 sm:$0xff]   ;;  %v1645_v17 = vld [vmem:[%s2186_s1 + $0x9c] ss:$24 sps:$4 sm:$0xff]  }
  0x12   : > { %955 = vmatpush1.bf16.msra.mxu0 %v1629_v6  ;;  %v1647_v18 = vld [vmem:[%s2186_s1 + $0x90] ss:$24 sps:$4 sm:$0xff]   ;;  %v1649_v20 = vld [vmem:[%s2186_s1 + $0x64] ss:$24 sps:$4 sm:$0xff]   ;;  %v1653_v22 = vld [vmem:[%s2186_s1 + $0x60] ss:$24 sps:$4 sm:$0xff]  }
  0x13   : > { %1006 = vmatpush1.bf16.msra.mxu1 %v1630_v7  ;;  %956 = vmatprep.subr.bf16.mxu0 %v1631_v8  ;;  %v1648_v19 = vld [vmem:[%s2186_s1 + $0x98] ss:$24 sps:$4 sm:$0xff]   ;;  %v1651_v21 = vld [vmem:[%s2186_s1 + $0x6c] ss:$24 sps:$4 sm:$0xff]   ;;  %v1654_v23 = vld [vmem:[%s2186_s1 + $0x68] ss:$24 sps:$4 sm:$0xff]  }
  0x14   : > { %1007 = vmatprep.subr.bf16.mxu1 %v1633_v9  ;;  %v1655_v24 = vld [vmem:[%s2186_s1 + $0x34] ss:$24 sps:$4 sm:$0xff]   ;;  %v1659_v26 = vld [vmem:[%s2186_s1 + $0x30] ss:$24 sps:$4 sm:$0xff]   ;;  %v1661_v28 = vld [vmem:[%s2186_s1 + $0x4] ss:$24 sps:$4 sm:$0xff]  }
  0x15   : > { %v1657_v25 = vld [vmem:[%s2186_s1 + $0x3c] ss:$24 sps:$4 sm:$0xff]   ;;  %v1660_v27 = vld [vmem:[%s2186_s1 + $0x38] ss:$24 sps:$4 sm:$0xff]   ;;  %v1663_v29 = vld [vmem:[%s2186_s1 + $0xc] ss:$24 sps:$4 sm:$0xff]  }
  0x16   : > { %957 = vmatpush1.bf16.msra.mxu0 %v1635_v10  ;;  %v1665_v30 = vld [vmem:[%s2186_s1] ss:$24 sps:$4 sm:$0xff]   ;;  %v1667_v32 = vld [vmem:[%s2186_s1 + $0x2d4] ss:$24 sps:$4 sm:$0xff]   ;;  %v1671_v34 = vld [vmem:[%s2186_s1 + $0x2d0] ss:$24 sps:$4 sm:$0xff]  }
  0x17   : > { %1008 = vmatpush1.bf16.msra.mxu1 %v1636_v11  ;;  %958 = vmatprep.subr.bf16.mxu0 %v1637_v12  ;;  %v1666_v31 = vld [vmem:[%s2186_s1 + $0x8] ss:$24 sps:$4 sm:$0xff]   ;;  %v1669_v33 = vld [vmem:[%s2186_s1 + $0x2dc] ss:$24 sps:$4 sm:$0xff]   ;;  %v1672_v35 = vld [vmem:[%s2186_s1 + $0x2d8] ss:$24 sps:$4 sm:$0xff]  }
  0x18   : > { %1009 = vmatprep.subr.bf16.mxu1 %v1639_v13  ;;  %v1673_v36 = vld [vmem:[%s2186_s1 + $0x2a4] ss:$24 sps:$4 sm:$0xff]   ;;  %s2194_s12 = smov (!%p269_p4, %s1782_s12), 1  ;;  %v1677_v38 = vld [vmem:[%s2186_s1 + $0x2a0] ss:$24 sps:$4 sm:$0xff]  }
  0x19   : > { %v1675_v37 = vld [vmem:[%s2186_s1 + $0x2ac] ss:$24 sps:$4 sm:$0xff]   ;;  %v1678_v39 = vld [vmem:[%s2186_s1 + $0x2a8] ss:$24 sps:$4 sm:$0xff]   ;;  %s1593_s29 = smul.u32 24, %s2194_s12 }
  0x1a   : > { %959 = vmatpush1.bf16.msra.mxu0 %v1641_v14  ;;  %v1679_v40 = vld [vmem:[%s2186_s1 + $0x274] ss:$24 sps:$4 sm:$0xff]   ;;  %v1683_v42 = vld [vmem:[%s2186_s1 + $0x270] ss:$24 sps:$4 sm:$0xff]   ;;  %v1685_v44 = vld [vmem:[%s2186_s1 + $0x244] ss:$24 sps:$4 sm:$0xff]  }
  0x1b   : > { %1010 = vmatpush1.bf16.msra.mxu1 %v1642_v15  ;;  %960 = vmatprep.subr.bf16.mxu0 %v1643_v16  ;;  %v1681_v41 = vld [vmem:[%s2186_s1 + $0x27c] ss:$24 sps:$4 sm:$0xff]   ;;  %v1684_v43 = vld [vmem:[%s2186_s1 + $0x278] ss:$24 sps:$4 sm:$0xff]   ;;  %s1975_s17 = scalar_lea.vmem %s2185_s0, %s1593_s29  ;;  %v1687_v45 = vld [vmem:[%s2186_s1 + $0x24c] ss:$24 sps:$4 sm:$0xff]  }
  0x1c   : > { %1011 = vmatprep.subr.bf16.mxu1 %v1645_v17  ;;  %v1689_v46 = vld [vmem:[%s2186_s1 + $0x240] ss:$24 sps:$4 sm:$0xff]   ;;  %v1987_v48 = vld [vmem:[%s1975_s17 + $0x4] ss:$8 sps:$4 sm:$0xff]   ;;  %v1693_v50 = vld [vmem:[%s2186_s1 + $0x21c] ss:$24 sps:$4 sm:$0xff]  }
  0x1d   : > { %v1690_v47 = vld [vmem:[%s2186_s1 + $0x248] ss:$24 sps:$4 sm:$0xff]   ;;  %v1691_v49 = vld [vmem:[%s2186_s1 + $0x214] ss:$24 sps:$4 sm:$0xff]   ;;  %984 = vmatprep.mubr.bf16.mxu0 %v1987_v48  ;;  %1035 = vmatprep.mubr.bf16.mxu1 %v1987_v48  ;;  %v1696_v52 = vld [vmem:[%s2186_s1 + $0x218] ss:$24 sps:$4 sm:$0xff]  }
  0x1e   : > { %961 = vmatpush1.bf16.msra.mxu0 %v1647_v18  ;;  %v1695_v51 = vld [vmem:[%s2186_s1 + $0x210] ss:$24 sps:$4 sm:$0xff]   ;;  %v1697_v53 = vld [vmem:[%s2186_s1 + $0x1e4] ss:$24 sps:$4 sm:$0xff]   ;;  %v1701_v55 = vld [vmem:[%s2186_s1 + $0x1e0] ss:$24 sps:$4 sm:$0xff]  }
  0x1f   : > { %1012 = vmatpush1.bf16.msra.mxu1 %v1648_v19  ;;  %962 = vmatprep.subr.bf16.mxu0 %v1649_v20  ;;  %v1699_v54 = vld [vmem:[%s2186_s1 + $0x1ec] ss:$24 sps:$4 sm:$0xff]   ;;  %v1702_v56 = vld [vmem:[%s2186_s1 + $0x1e8] ss:$24 sps:$4 sm:$0xff]   ;;  %v1705_v58 = vld [vmem:[%s2186_s1 + $0x1bc] ss:$24 sps:$4 sm:$0xff]  }
  0x20   : > { %1013 = vmatprep.subr.bf16.mxu1 %v1651_v21  ;;  %v1703_v57 = vld [vmem:[%s2186_s1 + $0x1b4] ss:$24 sps:$4 sm:$0xff]   ;;  %v1707_v59 = vld [vmem:[%s2186_s1 + $0x1b0] ss:$24 sps:$4 sm:$0xff]   ;;  %v1709_v61 = vld [vmem:[%s2186_s1 + $0x184] ss:$24 sps:$4 sm:$0xff]  }
  0x21   : > { %v1708_v60 = vld [vmem:[%s2186_s1 + $0x1b8] ss:$24 sps:$4 sm:$0xff]   ;;  %v1711_v62 = vld [vmem:[%s2186_s1 + $0x18c] ss:$24 sps:$4 sm:$0xff]   ;;  %v1714_v0 = vld [vmem:[%s2186_s1 + $0x188] ss:$24 sps:$4 sm:$0xff]  }
  0x22   : > { %963 = vmatpush1.bf16.msra.mxu0 %v1653_v22  ;;  %v1713_v63 = vld [vmem:[%s2186_s1 + $0x180] ss:$24 sps:$4 sm:$0xff]   ;;  %v1720_v1 = vld [vmem:[%s2186_s1 + $0x164] ss:$24 sps:$4 sm:$0xff]   ;;  %v358_v3 = vld [vmem:[%s1975_s17 + $0x10] sm:$0xff]  ;;  %s1594_s4 = smul.u32 72, %s2194_s12 }
  0x23   : > { %1014 = vmatpush1.bf16.msra.mxu1 %v1654_v23  ;;  %964 = vmatprep.subr.bf16.mxu0 %v1655_v24  ;;  %v2043_v2 = vld [vmem:[%s1975_s17] ss:$8 sps:$4 sm:$0xff]   ;;  %v1723_v5 = vld [vmem:[%s2186_s1 + $0x134] ss:$24 sps:$4 sm:$0xff]   ;;  %v1444_v6 = vcombine.high %v358_v3, %v358_v3  ;;  %v1726_v8 = vld [vmem:[%s2186_s1 + $0x104] ss:$24 sps:$4 sm:$0xff]   ;;  %v2060_v9 = vcombine.low %v358_v3, %v358_v3 }
  0x24   : > { %1015 = vmatprep.subr.bf16.mxu1 %v1657_v25  ;;  %v1718_v4 = vld [vmem:[%s2186_s1 + $0x160] ss:$24 sps:$4 sm:$0xff]   ;;  %v1721_v7 = vld [vmem:[%s2186_s1 + $0x130] ss:$24 sps:$4 sm:$0xff]   ;;  %v1729_v11 = vld [vmem:[%s2186_s1 + $0xd4] ss:$24 sps:$4 sm:$0xff]   ;;  %s2159_s7 = scalar_lea.vmem %s2188_s3, %s1594_s4 }
  0x25   : > { %v1724_v10 = vld [vmem:[%s2186_s1 + $0x100] ss:$24 sps:$4 sm:$0xff]   ;;  %v1727_v12 = vld [vmem:[%s2186_s1 + $0xd0] ss:$24 sps:$4 sm:$0xff]   ;;  %v1732_v13 = vld [vmem:[%s2186_s1 + $0xa4] ss:$24 sps:$4 sm:$0xff]  }
  0x26   : > { %965 = vmatpush1.bf16.msra.mxu0 %v1659_v26  ;;  %v1730_v14 = vld [vmem:[%s2186_s1 + $0xa0] ss:$24 sps:$4 sm:$0xff]   ;;  %v1735_v15 = vld [vmem:[%s2186_s1 + $0x74] ss:$24 sps:$4 sm:$0xff]   ;;  %v1733_v16 = vld [vmem:[%s2186_s1 + $0x70] ss:$24 sps:$4 sm:$0xff]  }
  0x27   : > { %1016 = vmatpush1.bf16.msra.mxu1 %v1660_v27  ;;  %966 = vmatprep.subr.bf16.mxu0 %v1661_v28  ;;  %v1738_v17 = vld [vmem:[%s2186_s1 + $0x44] ss:$24 sps:$4 sm:$0xff]   ;;  %v1736_v18 = vld [vmem:[%s2186_s1 + $0x40] ss:$24 sps:$4 sm:$0xff]   ;;  %v1741_v19 = vld [vmem:[%s2186_s1 + $0x14] ss:$24 sps:$4 sm:$0xff]  }
  0x28   : > { %1017 = vmatprep.subr.bf16.mxu1 %v1663_v29  ;;  %v1739_v20 = vld [vmem:[%s2186_s1 + $0x10] ss:$24 sps:$4 sm:$0xff]   ;;  %v1744_v21 = vld [vmem:[%s2186_s1 + $0x2e4] ss:$24 sps:$4 sm:$0xff]   ;;  %v1742_v22 = vld [vmem:[%s2186_s1 + $0x2e0] ss:$24 sps:$4 sm:$0xff]  }
  0x29   : > { %v1747_v23 = vld [vmem:[%s2186_s1 + $0x2b4] ss:$24 sps:$4 sm:$0xff]   ;;  %v1745_v24 = vld [vmem:[%s2186_s1 + $0x2b0] ss:$24 sps:$4 sm:$0xff]   ;;  %v1750_v25 = vld [vmem:[%s2186_s1 + $0x284] ss:$24 sps:$4 sm:$0xff]  }
  0x2a   : > { %967 = vmatpush1.bf16.msra.mxu0 %v1665_v30  ;;  %v1748_v26 = vld [vmem:[%s2186_s1 + $0x280] ss:$24 sps:$4 sm:$0xff]   ;;  %v1753_v27 = vld [vmem:[%s2186_s1 + $0x254] ss:$24 sps:$4 sm:$0xff]   ;;  %v1751_v28 = vld [vmem:[%s2186_s1 + $0x250] ss:$24 sps:$4 sm:$0xff]  }
  0x2b   : > { %1018 = vmatpush1.bf16.msra.mxu1 %v1666_v31  ;;  %968 = vmatprep.subr.bf16.mxu0 %v1667_v32  ;;  %v1756_v29 = vld [vmem:[%s2186_s1 + $0x224] ss:$24 sps:$4 sm:$0xff]   ;;  %v1754_v30 = vld [vmem:[%s2186_s1 + $0x220] ss:$24 sps:$4 sm:$0xff]   ;;  %v1761_v31 = vld [vmem:[%s2186_s1 + $0x1f4] ss:$24 sps:$4 sm:$0xff]  }
  0x2c   : > { %1019 = vmatprep.subr.bf16.mxu1 %v1669_v33  ;;  %v1759_v32 = vld [vmem:[%s2186_s1 + $0x1f0] ss:$24 sps:$4 sm:$0xff]   ;;  %v1764_v33 = vld [vmem:[%s2186_s1 + $0x1c4] ss:$24 sps:$4 sm:$0xff]  }
  0x2e   : > { %969 = vmatpush2.bf16.msra.mxu0 %v1671_v34  ;;  %v1762_v34 = vld [vmem:[%s2186_s1 + $0x1c0] ss:$24 sps:$4 sm:$0xff]  }
  0x2f   : > { %1020 = vmatpush2.bf16.msra.mxu1 %v1672_v35  ;;  %970 = vmatprep.subr.bf16.mxu0 %v1673_v36  ;;  %v1767_v35 = vld [vmem:[%s2186_s1 + $0x194] ss:$24 sps:$4 sm:$0xff]   ;;  %v1765_v36 = vld [vmem:[%s2186_s1 + $0x190] ss:$24 sps:$4 sm:$0xff]  }
  0x30   : > { %1021 = vmatprep.subr.bf16.mxu1 %v1675_v37  ;;  %v1164_v37 = vlaneseq }
  0x32   : > { %971 = vmatpush2.bf16.msra.mxu0 %v1677_v38  ;;  %v1165_v38 = vshrl.u32 %v1164_v37, 7 }
  0x33   : > { %1022 = vmatpush2.bf16.msra.mxu1 %v1678_v39  ;;  %972 = vmatprep.subr.bf16.mxu0 %v1679_v40  ;;  %v1162_v40 = vld [vmem:[%s2187_s2] sm:$0x3f] }
  0x34   : > { %1023 = vmatprep.subr.bf16.mxu1 %v1681_v41  ;;  %v1182_v39 = vsub.s32 4, %v1165_v38 }
  0x36   : > { %973 = vmatpush2.bf16.msra.mxu0 %v1683_v42  ;;  %v2151_v41 = vrot.slane %v1162_v40, %v1182_v39  ;;  %v1186_v42 = vsub.s32 5, %v1165_v38 }
  0x37   : > { %1024 = vmatpush2.bf16.msra.mxu1 %v1684_v43  ;;  %974 = vmatprep.subr.bf16.mxu0 %v1685_v44  ;;  %v1166_v44 = vsub.s32 0, %v1165_v38 }
  0x38   : > { %1025 = vmatprep.subr.bf16.mxu1 %v1687_v45  ;;  %v2153_v43 = vrot.slane %v1162_v40, %v1186_v42  ;;  %v1174_v45 = vsub.s32 2, %v1165_v38 }
  0x3a   : > { %975 = vmatpush2.bf16.msra.mxu0 %v1689_v46  ;;  %v1170_v46 = vsub.s32 1, %v1165_v38 }
  0x3b   : > { %1026 = vmatpush2.bf16.msra.mxu1 %v1690_v47  ;;  %976 = vmatprep.subr.bf16.mxu0 %v1691_v49  ;;  %v1178_v47 = vsub.s32 3, %v1165_v38  ;;  %v1175_v49 = vrot.slane %v1162_v40, %v1174_v45 }
  0x3c   : > { %1027 = vmatprep.subr.bf16.mxu1 %v1693_v50  ;;  %v1171_v50 = vrot.slane %v1162_v40, %v1170_v46 }
  0x3e   : > { %977 = vmatpush2.bf16.msra.mxu0 %v1695_v51  ;;  %v1179_v51 = vrot.slane %v1162_v40, %v1178_v47 }
  0x3f   : > { %1028 = vmatpush2.bf16.msra.mxu1 %v1696_v52  ;;  %978 = vmatprep.subr.bf16.mxu0 %v1697_v53 }
  0x40   : > { %1029 = vmatprep.subr.bf16.mxu1 %v1699_v54 }
  0x42   : > { %979 = vmatpush2.bf16.msra.mxu0 %v1701_v55 }
  0x43   : > { %1030 = vmatpush2.bf16.msra.mxu1 %v1702_v56  ;;  %980 = vmatprep.subr.bf16.mxu0 %v1703_v57 }
  0x44   : > { %1031 = vmatprep.subr.bf16.mxu1 %v1705_v58 }
  0x46   : > { %981 = vmatpush2.bf16.msra.mxu0 %v1707_v59 }
  0x47   : > { %1032 = vmatpush2.bf16.msra.mxu1 %v1708_v60  ;;  %982 = vmatprep.subr.bf16.mxu0 %v1709_v61 }
  0x48   : > { %1033 = vmatprep.subr.bf16.mxu1 %v1711_v62 }
  0x4a   : > { %983 = vmatpush2.bf16.msra.mxu0 %v1713_v63 }
  0x4b   : > { %1034 = vmatpush2.bf16.msra.mxu1 %v1714_v0  ;;  %1054 = vmatprep.subr.bf16.mxu0 %v1720_v1 }
  0x4c   : > { %1561 = vmatprep.subr.bf16.mxu1 %v1720_v1 }
  0x4d   : > { %985 = vmatmul.mubr.bf16.vlgmr.msra.gmra.mxu0 %v2043_v2 }
  0x4e   : > { %1036 = vmatmul.mubr.bf16.vlgmr.msra.gmra.mxu1 %v2043_v2  ;;  %1055 = vmatpush1.bf16.msra.mxu0 %v1718_v4 }
  0x4f   : > { %1577 = vmatpush1.bf16.msra.mxu1 %v1718_v4  ;;  %1056 = vmatprep.subr.bf16.mxu0 %v1723_v5 }
  0x50   : > { %1562 = vmatprep.subr.bf16.mxu1 %v1723_v5  ;;  %994 = vmatprep.mubr.bf16.mxu0 %v1444_v6 }
  0x51   : > { %1045 = vmatprep.mubr.bf16.mxu1 %v1444_v6 }
  0x52   : > { %1057 = vmatpush1.bf16.msra.mxu0 %v1721_v7 }
  0x53   : > { %1578 = vmatpush1.bf16.msra.mxu1 %v1721_v7  ;;  %1058 = vmatprep.subr.bf16.mxu0 %v1726_v8 }
  0x54   : > { %1563 = vmatprep.subr.bf16.mxu1 %v1726_v8 }
  0x55   : > { %995 = vmatmul.mubr.bf16.gmra.mxu0 %v2060_v9 }
  0x56   : > { %1046 = vmatmul.mubr.bf16.gmra.mxu1 %v2060_v9  ;;  %1059 = vmatpush1.bf16.msra.mxu0 %v1724_v10 }
  0x57   : > { %1579 = vmatpush1.bf16.msra.mxu1 %v1724_v10  ;;  %1060 = vmatprep.subr.bf16.mxu0 %v1729_v11 }
  0x58   : > { %1564 = vmatprep.subr.bf16.mxu1 %v1729_v11  ;;  %1086 = vmatprep.mubr.bf16.mxu0 %v1987_v48  ;;  %v1167_v48 = vrot.slane %v1162_v40, %v1166_v44 }
  0x59   : > { %1096 = vmatprep.mubr.bf16.mxu1 %v1444_v6 }
  0x5a   : > { %1061 = vmatpush1.bf16.msra.mxu0 %v1727_v12 }
  0x5b   : > { %1580 = vmatpush1.bf16.msra.mxu1 %v1727_v12  ;;  %1062 = vmatprep.subr.bf16.mxu0 %v1732_v13 }
  0x5c   : > { %1565 = vmatprep.subr.bf16.mxu1 %v1732_v13 }
  0x5e   : > { %1063 = vmatpush1.bf16.msra.mxu0 %v1730_v14 }
  0x5f   : > { %1581 = vmatpush1.bf16.msra.mxu1 %v1730_v14  ;;  %1064 = vmatprep.subr.bf16.mxu0 %v1735_v15 }
  0x60   : > { %1566 = vmatprep.subr.bf16.mxu1 %v1735_v15 }
  0x62   : > { %1065 = vmatpush1.bf16.msra.mxu0 %v1733_v16 }
  0x63   : > { %1582 = vmatpush1.bf16.msra.mxu1 %v1733_v16  ;;  %1066 = vmatprep.subr.bf16.mxu0 %v1738_v17 }
  0x64   : > { %1567 = vmatprep.subr.bf16.mxu1 %v1738_v17 }
  0x66   : > { %1067 = vmatpush1.bf16.msra.mxu0 %v1736_v18 }
  0x67   : > { %1583 = vmatpush1.bf16.msra.mxu1 %v1736_v18  ;;  %1068 = vmatprep.subr.bf16.mxu0 %v1741_v19 }
  0x68   : > { %1568 = vmatprep.subr.bf16.mxu1 %v1741_v19 }
  0x6a   : > { %1069 = vmatpush1.bf16.msra.mxu0 %v1739_v20 }
  0x6b   : > { %1584 = vmatpush1.bf16.msra.mxu1 %v1739_v20  ;;  %1070 = vmatprep.subr.bf16.mxu0 %v1744_v21 }
  0x6c   : > { %1569 = vmatprep.subr.bf16.mxu1 %v1744_v21 }
  0x6e   : > { %1071 = vmatpush2.bf16.msra.mxu0 %v1742_v22 }
  0x6f   : > { %1585 = vmatpush2.bf16.msra.mxu1 %v1742_v22  ;;  %1072 = vmatprep.subr.bf16.mxu0 %v1747_v23 }
  0x70   : > { %1570 = vmatprep.subr.bf16.mxu1 %v1747_v23 }
  0x72   : > { %1073 = vmatpush2.bf16.msra.mxu0 %v1745_v24 }
  0x73   : > { %1586 = vmatpush2.bf16.msra.mxu1 %v1745_v24  ;;  %1074 = vmatprep.subr.bf16.mxu0 %v1750_v25 }
  0x74   : > { %1571 = vmatprep.subr.bf16.mxu1 %v1750_v25 }
  0x76   : > { %1075 = vmatpush2.bf16.msra.mxu0 %v1748_v26 }
  0x77   : > { %1587 = vmatpush2.bf16.msra.mxu1 %v1748_v26  ;;  %1076 = vmatprep.subr.bf16.mxu0 %v1753_v27 }
  0x78   : > { %1572 = vmatprep.subr.bf16.mxu1 %v1753_v27 }
  0x7a   : > { %1077 = vmatpush2.bf16.msra.mxu0 %v1751_v28 }
  0x7b   : > { %1588 = vmatpush2.bf16.msra.mxu1 %v1751_v28  ;;  %1078 = vmatprep.subr.bf16.mxu0 %v1756_v29 }
  0x7c   : > { %1573 = vmatprep.subr.bf16.mxu1 %v1756_v29 }
  0x7e   : > { %1079 = vmatpush2.bf16.msra.mxu0 %v1754_v30 }
  0x7f   : > { %1589 = vmatpush2.bf16.msra.mxu1 %v1754_v30  ;;  %1080 = vmatprep.subr.bf16.mxu0 %v1761_v31 }
  0x80   : > { %1574 = vmatprep.subr.bf16.mxu1 %v1761_v31 }
  0x82   : > { %1081 = vmatpush2.bf16.msra.mxu0 %v1759_v32 }
  0x83   : > { %1590 = vmatpush2.bf16.msra.mxu1 %v1759_v32  ;;  %1082 = vmatprep.subr.bf16.mxu0 %v1764_v33 }
  0x84   : > { %1575 = vmatprep.subr.bf16.mxu1 %v1764_v33 }
  0x86   : > { %1083 = vmatpush2.bf16.msra.mxu0 %v1762_v34 }
  0x87   : > { %1591 = vmatpush2.bf16.msra.mxu1 %v1762_v34  ;;  %1084 = vmatprep.subr.bf16.mxu0 %v1767_v35 }
  0x88   : > { %1576 = vmatprep.subr.bf16.mxu1 %v1767_v35 }
  0x8a   : > { %1085 = vmatpush2.bf16.msra.mxu0 %v1765_v36 }
  0x8b   : > { %1592 = vmatpush2.bf16.msra.mxu1 %v1765_v36 }
  0x8d   : > { %1087 = vmatmul.mubr.bf16.vlgmr.msra.gmra.mxu0 %v2043_v2 }
  0x8e   : > { %1097 = vmatmul.mubr.bf16.vlgmr.msra.gmra.mxu1 %v2060_v9 }
 0x10d   : > { %v986_v52 = vpop.f32.mrf.mxu0 }
 0x10e   : > { %v1037_v53 = vpop.f32.mrf.mxu1  ;;  %v1194_v54 = vadd.f32 %v1167_v48, %v986_v52 }
 0x10f   : > { %v1196_v55 = vadd.f32 %v1175_v49, %v1037_v53  ;;  %v988_v56 = vpop.f32.mrf.mxu0 }
 0x110   : > { %v1039_v57 = vpop.f32.mrf.mxu1  ;;  %v1195_v58 = vadd.f32 %v1171_v50, %v988_v56 }
 0x111   : > { %v1197_v59 = vadd.f32 %v1179_v51, %v1039_v57  ;;  %v990_v60 = vpop.f32.mrf.mxu0 }
 0x112   : > { %v1041_v61 = vpop.f32.mrf.mxu1  ;;  %v1552_v62 = vpack.c.bf16 %v1195_v58, %v1194_v54  ;;  %v1200_v3 = vadd.f32 %v1167_v48, %v990_v60 }
 0x113   : > { %v1553_v63 = vpack.c.bf16 %v1197_v59, %v1196_v55  ;;  %v1202_v0 = vadd.f32 %v1175_v49, %v1041_v61  ;;  %v992_v1 = vpop.f32.mrf.mxu0 }
 0x114   : > { %v1043_v2 = vpop.f32.mrf.mxu1  ;;  %1272 = vst [vmem:[%s2159_s7] sm:$0xff] %v1552_v62  ;;  %v1201_v4 = vadd.f32 %v1171_v50, %v992_v1 }
 0x115   : > { %1273 = vst [vmem:[%s2159_s7 + $0x8] sm:$0xff] %v1553_v63  ;;  %v1203_v5 = vadd.f32 %v1179_v51, %v1043_v2  ;;  %v996_v6 = vpop.f32.mrf.mxu0 }
 0x116   : > { %v1047_v7 = vpop.f32.mrf.mxu1  ;;  %v1555_v8 = vpack.c.bf16 %v1201_v4, %v1200_v3  ;;  %v1206_v10 = vadd.f32 %v1167_v48, %v996_v6 }
 0x117   : > { %v1556_v9 = vpack.c.bf16 %v1203_v5, %v1202_v0  ;;  %v1208_v11 = vadd.f32 %v1175_v49, %v1047_v7  ;;  %v998_v12 = vpop.f32.mrf.mxu0 }
 0x118   : > { %v1049_v13 = vpop.f32.mrf.mxu1  ;;  %1275 = vst [vmem:[%s2159_s7 + $0x18] sm:$0xff] %v1555_v8  ;;  %v1207_v14 = vadd.f32 %v1171_v50, %v998_v12 }
 0x119   : > { %1276 = vst [vmem:[%s2159_s7 + $0x20] sm:$0xff] %v1556_v9  ;;  %v1209_v15 = vadd.f32 %v1179_v51, %v1049_v13  ;;  %v1000_v16 = vpop.f32.mrf.mxu0 }
 0x11a   : > { %v1051_v17 = vpop.f32.mrf.mxu1  ;;  %v1558_v18 = vpack.c.bf16 %v1207_v14, %v1206_v10 }
 0x11b   : > { %v1559_v19 = vpack.c.bf16 %v1209_v15, %v1208_v11  ;;  %v1001_v20 = vpop.f32.mrf.mxu0 }
 0x11c   : > { %v1052_v21 = vpop.f32.mrf.mxu1  ;;  %1278 = vst [vmem:[%s2159_s7 + $0x30] sm:$0xff] %v1558_v18 }
 0x11d   : > { %1279 = vst [vmem:[%s2159_s7 + $0x38] sm:$0xff] %v1559_v19 }
 0x14d   : > { %v1088_v22 = vpop.f32.mrf.mxu0 }
 0x14e   : > { %v1098_v23 = vpop.f32.mrf.mxu1  ;;  %v1198_v27 = vadd.f32 %v2151_v41, %v1088_v22 }
 0x14f   : > { %v1210_v24 = vadd.f32 %v2151_v41, %v1098_v23  ;;  %v1090_v25 = vpop.f32.mrf.mxu0 }
 0x150   : > { %v1100_v26 = vpop.f32.mrf.mxu1  ;;  %v1199_v28 = vadd.f32 %v2153_v43, %v1090_v25 }
 0x151   : > { %v1211_v29 = vadd.f32 %v2153_v43, %v1100_v26  ;;  %v1092_v30 = vpop.f32.mrf.mxu0 }
 0x152   : > { %v1102_v31 = vpop.f32.mrf.mxu1  ;;  %v1554_v32 = vpack.c.bf16 %v1199_v28, %v1198_v27  ;;  %v1204_v36 = vadd.f32 %v2151_v41, %v1092_v30 }
 0x153   : > { %v1560_v33 = vpack.c.bf16 %v1211_v29, %v1210_v24  ;;  %v1094_v34 = vpop.f32.mrf.mxu0 }
 0x154   : > { %v1103_v35 = vpop.f32.mrf.mxu1  ;;  %1274 = vst [vmem:[%s2159_s7 + $0x10] sm:$0xff] %v1554_v32  ;;  %v1205_v37 = vadd.f32 %v2153_v43, %v1094_v34 }
 0x155   : > { %1280 = vst [vmem:[%s2159_s7 + $0x40] sm:$0xff] %v1560_v33 }
 0x156   : > { %v1557_v38 = vpack.c.bf16 %v1205_v37, %v1204_v36 }
 0x158   : > { %1277 = vst [vmem:[%s2159_s7 + $0x28] sm:$0xff] %v1557_v38 }
 0x159 PF: > { %s13_s14 = sadd.s32 1, %s1790_s14   ;;  %s2189_s12 = smov %s1786_s13 }
 0x15a   : > { %p10_p5 = scmp.ge.s32.totalorder %s13_s14, 4   ;;  %s2190_s13 = smov %s2192_s15 }
 0x15c   :  { %12 = sbr.rel (!%p10_p5) target bundleno = 2 (0x2), region = 76 }

// kernel: flux_forward.72
= control target key start
LH: loop header
LB: loop body
LE: loop exit
PB: predicated region body
PF: predicated region fallthrough
CT: control target
= control target key end

     0   :  { %s1336_s18 = smov 0   ;;  %s1338_s19 = smov 0   ;;  %s1498_s0 = inlined_call_operand.vmem [shape: bf16[2,24,1280], index: 0, kind: input, shape index: {}]   ;;  %s1499_s1 = inlined_call_operand.vmem [shape: bf16[1280,256], index: 1, kind: input, shape index: {}]   ;;  %s1500_s2 = inlined_call_operand.vmem [shape: f32[1,256], index: 2, kind: input, shape index: {}]   ;;  %s1501_s3 = inlined_call_operand.vmem [shape: f32[2,1,256], index: 3, kind: input, shape index: {}]   ;;  %s1502_s4 = inlined_call_operand.vmem [shape: bf16[2,24,256], index: 4, kind: input, shape index: {}]   ;;  %s1503_s5 = inlined_call_operand.vmem [shape: bf16[2,24,256], index: 5, kind: output, shape index: {}]  }
   0x1   :  { %s1340_s20 = smov 0   ;;  %s1342_s21 = smov 0  }
   0x2   :  { %s1344_s22 = smov 0   ;;  %s1346_s23 = smov 0  }
   0x3   :  { %s1348_s24 = smov 0  }
   0x4 LB: > { %s30_s25 = sadd.s32 1, %s1295_s22  ;;  %s41_s26 = sadd.s32 1, %s1299_s23  ;;  %s1303_s24 = sphi %s1348_s24, %s15_s24   ;;  %s1299_s23 = sphi %s1346_s23, %s1509_s23   ;;  %s1295_s22 = sphi %s1344_s22, %s1508_s22   ;;  %s1291_s21 = sphi %s1342_s21, %s1507_s21   ;;  %s1287_s20 = sphi %s1340_s20, %s1506_s20   ;;  %s1283_s19 = sphi %s1338_s19, %s1505_s19   ;;  %s1279_s18 = sphi %s1336_s18, %s1504_s18  }
   0x5   : > { %p31_p0 = scmp.ge.s32.totalorder %s30_s25, 5  ;;  %p59_p1 = scmp.ne.s32.totalorder %s1283_s19, %s1279_s18 }
   0x6   : > { %p60_p2 = scmp.eq.s32.totalorder %s1303_s24, 0  ;;  %s52_s30 = sadd.s32 1, %s1283_s19 }
   0x7   : > { %s1511_s25 = smov (%p31_p0, %s30_s25), 0  ;;  %s1513_s26 = smov (!%p31_p0, %s41_s26), %s1299_s23 }
   0x8   : > { %p61_p3 = por %p60_p2, %p59_p1  ;;  %p43_p4 = scmp.ge.s32.totalorder %s1513_s26, 2 }
   0x9   : > { %s48_s27 = ssub.s32 %s1295_s22, %s1511_s25  ;;  %p1046_p6 = scmp.ge.s32.totalorder %s1303_s24, 10 }
   0xa   : > { %s1515_s26 = smov (%p43_p4, %s1513_s26), 0 }
   0xb   : > { %s45_s28 = ssub.s32 %s1299_s23, %s1515_s26  ;;  %235 = sbr.rel (%p1046_p6) target bundleno = 26 (0x1a), region = 20 }
   0xc   : > { %s49_s29 = sor.u32 %s48_s27, %s45_s28 }
   0xd   : > { %p50_p5 = scmp.eq.s32.totalorder %s49_s29, 0 }
   0xf   : > { %s1387_s6 = scalar_select %p50_p5, %s1283_s19, %s52_s30  }
  0x10   : > { %238 = sbr.rel (!%p61_p3) target bundleno = 26 (0x1a), region = 24  ;;  %s240_s7 = sand.u32 (%p61_p3), 1, %s1283_s19  }
  0x11   : > { %s1135_s8 = smul.u32 (%p61_p3), 24, %s240_s7  ;;  %s1047_s9 = sshll.u32 (%p61_p3), %s1295_s22, 1 }
  0x12   : > { %s1136_s10 = smul.u32 (%p61_p3), 30, %s1299_s23 }
  0x13   : > { %s242_s16 = scalar_lea.vmem (%p61_p3), [#allocation3], %s1135_s8 }
  0x14   : > { %s248_s11 = sadd.s32 (%p61_p3), %s1136_s10, %s1047_s9 }
  0x15   : > { %s1048_s12 = sshll.u32 %s248_s11, 2 }
  0x16   : > { %s250_s15 = scalar_lea.vmem %s1498_s0, %s1048_s12 }
  0x17   : > { %v283_v0 = vld [vmem:[%s250_s15] sm:$0xff]  ;;  %v285_v1 = vld [vmem:[%s250_s15 + $0x28] sm:$0xff]  ;;  %v287_v2 = vld [vmem:[%s250_s15 + $0x50] sm:$0xff] }
  0x18   : > { %284 = vst [vmem:[%s242_s16] sm:$0xff] %v283_v0  ;;  %286 = vst [vmem:[%s242_s16 + $0x8] sm:$0xff] %v285_v1 }
  0x19   : > { %288 = vst [vmem:[%s242_s16 + $0x10] sm:$0xff] %v287_v2 }
  0x1a PF: > { %p1049_p7 = scmp.ge.s32.totalorder %s1303_s24, 1  ;;  %p339_p8 = scmp.lt.s32.totalorder %s1303_s24, 11 }
  0x1c   : > { %p340_p9 = pnand %p1049_p7, %p339_p8 }
  0x1d   : > { %s346_s17 = sand.u32 (!%p340_p9), 1, %s1279_s18   ;;  %s1050_s27 = sshll.u32 (!%p340_p9), %s1287_s20, 5 }
  0x1e   : > { %343 = sbr.rel (%p340_p9) target bundleno = 333 (0x14d), region = 74  ;;  %p422_p10 = scmp.lt.s32.totalorder (!%p340_p9), %s1050_s27, 159 }
  0x1f   : > { %s1137_s28 = smul.u32 (!%p340_p9), 24, %s346_s17  ;;  %p438_p11 = scmp.lt.s32.totalorder (!%p340_p9), %s1291_s21, 1 }
  0x20   : > { %p1056_p12 = scmp.ne.s32.totalorder (!%p340_p9), %s1287_s20, 0 }
  0x21   : > { %s1422_s30 = scalar_lea.vmem (!%p340_p9), [#allocation3], %s1137_s28 }
  0x23   : > { %s1517_s27 = smov (!%p422_p10, %s1050_s27), 159  ;;  %s1519_s21 = smov (!%p438_p11, %s1291_s21), 1 }
  0x24   : > { %s1099_s29 = sshll.u32 %s1517_s27, 3  ;;  %s1053_s9 = sshll.u32 %s1519_s21, 1 }
  0x25   : > { %s1405_s8 = scalar_lea.vmem %s1499_s1, %s1099_s29  ;;  %s1410_s12 = scalar_lea.vmem %s1501_s3, %s1053_s9 }
  0x26   : > { %s1138_s13 = smul.u32 24, %s1519_s21 }
  0x27   : > { %481 = sbr.rel (%p1056_p12) target bundleno = 48 (0x30), region = 82 }
  0x28   : > { %s1415_s15 = scalar_lea.vmem %s1502_s4, %s1138_s13  ;;  %s1420_s27 = scalar_lea.vmem %s1503_s5, %s1138_s13 }
  0x2c   : > { %v1305_v3 = vmov 0.0  }
  0x2d   : > { %482 = vst [vmem:[#allocation2 + $0x28] sm:$0xff] %v1305_v3  ;;  %483 = vst [vmem:[#allocation2 + $0x10] sm:$0xff] %v1305_v3 }
  0x2e   : > { %484 = vst [vmem:[#allocation2 + $0x8] sm:$0xff] %v1305_v3  ;;  %485 = vst [vmem:[#allocation2] sm:$0xff] %v1305_v3 }
  0x2f   : > { %486 = vst [vmem:[#allocation2 + $0x18] sm:$0xff] %v1305_v3  ;;  %487 = vst [vmem:[#allocation2 + $0x20] sm:$0xff] %v1305_v3 }
  0x30 PF: > { %v1196_v4 = vld [vmem:[%s1405_s8 + $0x74] ss:$8 sps:$4 sm:$0xff]   ;;  %v1198_v5 = vld [vmem:[%s1405_s8 + $0x70] ss:$8 sps:$4 sm:$0xff]   ;;  %v1199_v6 = vld [vmem:[%s1405_s8 + $0x64] ss:$8 sps:$4 sm:$0xff]  }
  0x31   : > { %706 = vmatprep.subr.bf16.mxu0 %v1196_v4  ;;  %1103 = vmatprep.subr.bf16.mxu1 %v1196_v4  ;;  %v1201_v7 = vld [vmem:[%s1405_s8 + $0x60] ss:$8 sps:$4 sm:$0xff]   ;;  %v1202_v8 = vld [vmem:[%s1405_s8 + $0x54] ss:$8 sps:$4 sm:$0xff]   ;;  %v1204_v9 = vld [vmem:[%s1405_s8 + $0x50] ss:$8 sps:$4 sm:$0xff]  }
  0x32   : > { %707 = vmatpush1.bf16.msra.mxu0 %v1198_v5  ;;  %1119 = vmatpush1.bf16.msra.mxu1 %v1198_v5  ;;  %v1205_v10 = vld [vmem:[%s1405_s8 + $0x44] ss:$8 sps:$4 sm:$0xff]   ;;  %v1207_v11 = vld [vmem:[%s1405_s8 + $0x40] ss:$8 sps:$4 sm:$0xff]   ;;  %v1208_v12 = vld [vmem:[%s1405_s8 + $0x34] ss:$8 sps:$4 sm:$0xff]  }
  0x33   : > { %708 = vmatprep.subr.bf16.mxu0 %v1199_v6  ;;  %1104 = vmatprep.subr.bf16.mxu1 %v1199_v6  ;;  %v1210_v13 = vld [vmem:[%s1405_s8 + $0x30] ss:$8 sps:$4 sm:$0xff]   ;;  %v1211_v14 = vld [vmem:[%s1405_s8 + $0x24] ss:$8 sps:$4 sm:$0xff]   ;;  %v1213_v15 = vld [vmem:[%s1405_s8 + $0x20] ss:$8 sps:$4 sm:$0xff]  }
  0x34   : > { %v1214_v16 = vld [vmem:[%s1405_s8 + $0x14] ss:$8 sps:$4 sm:$0xff]   ;;  %v1216_v19 = vld [vmem:[%s1405_s8 + $0x10] ss:$8 sps:$4 sm:$0xff]   ;;  %v1217_v21 = vld [vmem:[%s1405_s8 + $0x4] ss:$8 sps:$4 sm:$0xff]  }
  0x35   : > { %v1246_v17 = vld [vmem:[%s1422_s30 + $0x4] ss:$8 sps:$4 sm:$0xff]   ;;  %v1440_v18 = vld [vmem:[%s1422_s30 + $0x10] sm:$0xff]  ;;  %v1244_v39 = vld [vmem:[%s1422_s30] ss:$8 sps:$4 sm:$0xff]   ;;  %p1093_p13 = scmp.ne.s32.totalorder %s1287_s20, 4 }
  0x36   : > { %709 = vmatpush1.bf16.msra.mxu0 %v1201_v7  ;;  %1120 = vmatpush1.bf16.msra.mxu1 %v1201_v7  ;;  %v1060_v20 = vcombine.high %v1440_v18, %v1440_v18  ;;  %v1219_v22 = vld [vmem:[%s1405_s8] ss:$8 sps:$4 sm:$0xff]   ;;  %v1220_v23 = vld [vmem:[%s1405_s8 + $0xf4] ss:$8 sps:$4 sm:$0xff]   ;;  %v1222_v24 = vld [vmem:[%s1405_s8 + $0xf0] ss:$8 sps:$4 sm:$0xff]   ;;  %v1059_v40 = vcombine.low %v1440_v18, %v1440_v18 }
  0x37   : > { %710 = vmatprep.subr.bf16.mxu0 %v1202_v8  ;;  %1105 = vmatprep.subr.bf16.mxu1 %v1202_v8  ;;  %v1223_v25 = vld [vmem:[%s1405_s8 + $0xe4] ss:$8 sps:$4 sm:$0xff]   ;;  %v1225_v26 = vld [vmem:[%s1405_s8 + $0xe0] ss:$8 sps:$4 sm:$0xff]   ;;  %v1226_v27 = vld [vmem:[%s1405_s8 + $0xd4] ss:$8 sps:$4 sm:$0xff]  }
  0x38   : > { %738 = vmatprep.mubr.bf16.mxu0 %v1246_v17  ;;  %748 = vmatprep.mubr.bf16.mxu1 %v1060_v20  ;;  %v1228_v28 = vld [vmem:[%s1405_s8 + $0xd0] ss:$8 sps:$4 sm:$0xff]   ;;  %v1229_v29 = vld [vmem:[%s1405_s8 + $0xc4] ss:$8 sps:$4 sm:$0xff]   ;;  %v1231_v30 = vld [vmem:[%s1405_s8 + $0xc0] ss:$8 sps:$4 sm:$0xff]  }
  0x39   : > { %v1232_v31 = vld [vmem:[%s1405_s8 + $0xb4] ss:$8 sps:$4 sm:$0xff]   ;;  %v1234_v32 = vld [vmem:[%s1405_s8 + $0xb0] ss:$8 sps:$4 sm:$0xff]   ;;  %v1235_v33 = vld [vmem:[%s1405_s8 + $0xa4] ss:$8 sps:$4 sm:$0xff]  }
  0x3a   : > { %711 = vmatpush1.bf16.msra.mxu0 %v1204_v9  ;;  %1121 = vmatpush1.bf16.msra.mxu1 %v1204_v9  ;;  %v1237_v34 = vld [vmem:[%s1405_s8 + $0xa0] ss:$8 sps:$4 sm:$0xff]   ;;  %v1238_v35 = vld [vmem:[%s1405_s8 + $0x94] ss:$8 sps:$4 sm:$0xff]   ;;  %v1240_v36 = vld [vmem:[%s1405_s8 + $0x90] ss:$8 sps:$4 sm:$0xff]  }
  0x3b   : > { %712 = vmatprep.subr.bf16.mxu0 %v1205_v10  ;;  %1106 = vmatprep.subr.bf16.mxu1 %v1205_v10  ;;  %v1241_v37 = vld [vmem:[%s1405_s8 + $0x84] ss:$8 sps:$4 sm:$0xff]   ;;  %v1243_v38 = vld [vmem:[%s1405_s8 + $0x80] ss:$8 sps:$4 sm:$0xff]   ;;  %v492_v42 = vld [vmem:[#allocation2 + $0x18] sm:$0xff] }
  0x3c   : > { %v488_v41 = vld [vmem:[#allocation2 + $0x28] sm:$0xff]  ;;  %v489_v45 = vld [vmem:[#allocation2 + $0x10] sm:$0xff]  ;;  %v493_v46 = vld [vmem:[#allocation2 + $0x20] sm:$0xff] }
  0x3d   : > { %v490_v51 = vld [vmem:[#allocation2 + $0x8] sm:$0xff]  ;;  %v491_v56 = vld [vmem:[#allocation2] sm:$0xff] }
  0x3e   : > { %713 = vmatpush1.bf16.msra.mxu0 %v1207_v11  ;;  %1122 = vmatpush1.bf16.msra.mxu1 %v1207_v11 }
  0x3f   : > { %714 = vmatprep.subr.bf16.mxu0 %v1208_v12  ;;  %1107 = vmatprep.subr.bf16.mxu1 %v1208_v12 }
  0x42   : > { %715 = vmatpush1.bf16.msra.mxu0 %v1210_v13  ;;  %1123 = vmatpush1.bf16.msra.mxu1 %v1210_v13 }
  0x43   : > { %716 = vmatprep.subr.bf16.mxu0 %v1211_v14  ;;  %1108 = vmatprep.subr.bf16.mxu1 %v1211_v14 }
  0x46   : > { %717 = vmatpush1.bf16.msra.mxu0 %v1213_v15  ;;  %1124 = vmatpush1.bf16.msra.mxu1 %v1213_v15 }
  0x47   : > { %718 = vmatprep.subr.bf16.mxu0 %v1214_v16  ;;  %1109 = vmatprep.subr.bf16.mxu1 %v1214_v16 }
  0x4a   : > { %719 = vmatpush1.bf16.msra.mxu0 %v1216_v19  ;;  %1125 = vmatpush1.bf16.msra.mxu1 %v1216_v19 }
  0x4b   : > { %720 = vmatprep.subr.bf16.mxu0 %v1217_v21  ;;  %1110 = vmatprep.subr.bf16.mxu1 %v1217_v21 }
  0x4e   : > { %721 = vmatpush1.bf16.msra.mxu0 %v1219_v22  ;;  %1126 = vmatpush1.bf16.msra.mxu1 %v1219_v22 }
  0x4f   : > { %722 = vmatprep.subr.bf16.mxu0 %v1220_v23  ;;  %1111 = vmatprep.subr.bf16.mxu1 %v1220_v23 }
  0x52   : > { %723 = vmatpush2.bf16.msra.mxu0 %v1222_v24  ;;  %1127 = vmatpush2.bf16.msra.mxu1 %v1222_v24 }
  0x53   : > { %724 = vmatprep.subr.bf16.mxu0 %v1223_v25  ;;  %1112 = vmatprep.subr.bf16.mxu1 %v1223_v25 }
  0x56   : > { %725 = vmatpush2.bf16.msra.mxu0 %v1225_v26  ;;  %1128 = vmatpush2.bf16.msra.mxu1 %v1225_v26 }
  0x57   : > { %726 = vmatprep.subr.bf16.mxu0 %v1226_v27  ;;  %1113 = vmatprep.subr.bf16.mxu1 %v1226_v27 }
  0x5a   : > { %727 = vmatpush2.bf16.msra.mxu0 %v1228_v28  ;;  %1129 = vmatpush2.bf16.msra.mxu1 %v1228_v28 }
  0x5b   : > { %728 = vmatprep.subr.bf16.mxu0 %v1229_v29  ;;  %1114 = vmatprep.subr.bf16.mxu1 %v1229_v29 }
  0x5e   : > { %729 = vmatpush2.bf16.msra.mxu0 %v1231_v30  ;;  %1130 = vmatpush2.bf16.msra.mxu1 %v1231_v30 }
  0x5f   : > { %730 = vmatprep.subr.bf16.mxu0 %v1232_v31  ;;  %1115 = vmatprep.subr.bf16.mxu1 %v1232_v31 }
  0x62   : > { %731 = vmatpush2.bf16.msra.mxu0 %v1234_v32  ;;  %1131 = vmatpush2.bf16.msra.mxu1 %v1234_v32 }
  0x63   : > { %732 = vmatprep.subr.bf16.mxu0 %v1235_v33  ;;  %1116 = vmatprep.subr.bf16.mxu1 %v1235_v33 }
  0x66   : > { %733 = vmatpush2.bf16.msra.mxu0 %v1237_v34  ;;  %1132 = vmatpush2.bf16.msra.mxu1 %v1237_v34 }
  0x67   : > { %734 = vmatprep.subr.bf16.mxu0 %v1238_v35  ;;  %1117 = vmatprep.subr.bf16.mxu1 %v1238_v35 }
  0x6a   : > { %735 = vmatpush2.bf16.msra.mxu0 %v1240_v36  ;;  %1133 = vmatpush2.bf16.msra.mxu1 %v1240_v36 }
  0x6b   : > { %736 = vmatprep.subr.bf16.mxu0 %v1241_v37  ;;  %1118 = vmatprep.subr.bf16.mxu1 %v1241_v37 }
  0x6e   : > { %737 = vmatpush2.bf16.msra.mxu0 %v1243_v38  ;;  %1134 = vmatpush2.bf16.msra.mxu1 %v1243_v38 }
  0x71   : > { %739 = vmatmul.mubr.bf16.vlgmr.msra.gmra.mxu0 %v1244_v39  ;;  %749 = vmatmul.mubr.bf16.vlgmr.msra.gmra.mxu1 %v1059_v40 }
 0x131   : > { %v740_v43 = vpop.f32.mrf.mxu0  ;;  %v750_v44 = vpop.f32.mrf.mxu1 }
 0x132   : > { %v757_v47 = vadd.f32 %v740_v43, %v488_v41  ;;  %v761_v48 = vadd.f32 %v750_v44, %v492_v42 }
 0x133   : > { %v742_v49 = vpop.f32.mrf.mxu0  ;;  %v752_v50 = vpop.f32.mrf.mxu1 }
 0x134   : > { %763 = vst [vmem:[#allocation2 + $0x28] sm:$0xff] %v757_v47  ;;  %767 = vst [vmem:[#allocation2 + $0x18] sm:$0xff] %v761_v48  ;;  %v758_v52 = vadd.f32 %v742_v49, %v489_v45  ;;  %v762_v53 = vadd.f32 %v752_v50, %v493_v46 }
 0x135   : > { %v744_v54 = vpop.f32.mrf.mxu0  ;;  %v754_v55 = vpop.f32.mrf.mxu1 }
 0x136   : > { %764 = vst [vmem:[#allocation2 + $0x10] sm:$0xff] %v758_v52  ;;  %768 = vst [vmem:[#allocation2 + $0x20] sm:$0xff] %v762_v53  ;;  %v759_v57 = vadd.f32 %v744_v54, %v490_v51  ;;  %772 = sbr.rel (%p1093_p13) target bundleno = 333 (0x14d), region = 86 }
 0x137   : > { %v746_v58 = vpop.f32.mrf.mxu0  ;;  %v755_v59 = vpop.f32.mrf.mxu1 }
 0x138   : > { %765 = vst [vmem:[#allocation2 + $0x8] sm:$0xff] %v759_v57  ;;  %v760_v60 = vadd.f32 %v746_v58, %v491_v56 }
 0x13a   : > { %766 = vst [vmem:[#allocation2] sm:$0xff] %v760_v60 }
 0x13b   : > { %v781_v61 = vlaneseq  ;;  %v779_v63 = vld [vmem:[%s1500_s2] sm:$0x3]  ;;  %v773_v1 = vld [vmem:[#allocation2 + $0x28] sm:$0xff]  ;;  %v777_v13 = vld [vmem:[#allocation2 + $0x18] sm:$0xff] }
 0x13c   : > { %v806_v0 = vld [vmem:[%s1410_s12] sm:$0x3]  ;;  %v798_v5 = vld [vmem:[%s1415_s15 + $0x8] sm:$0xff]  ;;  %v799_v15 = vld [vmem:[%s1415_s15 + $0x10] sm:$0xff] }
 0x13d   : > { %v782_v62 = vshrl.u32 %v781_v61, 7  ;;  %v797_v4 = vld [vmem:[%s1415_s15] sm:$0xff]  ;;  %v774_v6 = vld [vmem:[#allocation2 + $0x10] sm:$0xff]  ;;  %v802_v18 = vunpack.c.l.bf16 %v798_v5  ;;  %v803_v19 = vunpack.c.h.bf16 %v798_v5  ;;  %v804_v26 = vunpack.c.l.bf16 %v799_v15 }
 0x13e   : > { %v778_v14 = vld [vmem:[#allocation2 + $0x20] sm:$0xff]  ;;  %v800_v16 = vunpack.c.l.bf16 %v797_v4  ;;  %v801_v17 = vunpack.c.h.bf16 %v797_v4  ;;  %v805_v27 = vunpack.c.h.bf16 %v799_v15 }
 0x13f   : > { %v783_v2 = vsub.s32 0, %v782_v62  ;;  %v787_v3 = vsub.s32 1, %v782_v62  ;;  %v775_v7 = vld [vmem:[#allocation2 + $0x8] sm:$0xff] }
 0x141   : > { %v776_v8 = vld [vmem:[#allocation2] sm:$0xff]  ;;  %v784_v9 = vrot.slane %v779_v63, %v783_v2  ;;  %v788_v10 = vrot.slane %v779_v63, %v787_v3  ;;  %v811_v11 = vrot.slane %v806_v0, %v783_v2  ;;  %v815_v12 = vrot.slane %v806_v0, %v787_v3 }
 0x143   : > { %v791_v20 = vadd.f32 %v784_v9, %v773_v1  ;;  %v792_v21 = vadd.f32 %v788_v10, %v774_v6  ;;  %v793_v22 = vadd.f32 %v784_v9, %v775_v7  ;;  %v794_v23 = vadd.f32 %v788_v10, %v776_v8 }
 0x144   : > { %v795_v24 = vadd.f32 %v784_v9, %v777_v13  ;;  %v796_v25 = vadd.f32 %v788_v10, %v778_v14 }
 0x145   : > { %v818_v28 = vmul.f32 %v811_v11, %v791_v20  ;;  %v819_v29 = vmul.f32 %v815_v12, %v792_v21  ;;  %v820_v30 = vmul.f32 %v811_v11, %v793_v22  ;;  %v821_v31 = vmul.f32 %v815_v12, %v794_v23 }
 0x146   : > { %v822_v32 = vmul.f32 %v811_v11, %v795_v24  ;;  %v823_v33 = vmul.f32 %v815_v12, %v796_v25 }
 0x147   : > { %v824_v34 = vadd.f32 %v818_v28, %v800_v16  ;;  %v825_v35 = vadd.f32 %v819_v29, %v801_v17  ;;  %v826_v36 = vadd.f32 %v820_v30, %v802_v18  ;;  %v827_v37 = vadd.f32 %v821_v31, %v803_v19 }
 0x148   : > { %v828_v38 = vadd.f32 %v822_v32, %v804_v26  ;;  %v829_v39 = vadd.f32 %v823_v33, %v805_v27 }
 0x149   : > { %v1100_v40 = vpack.c.bf16 %v825_v35, %v824_v34  ;;  %v1101_v41 = vpack.c.bf16 %v827_v37, %v826_v36 }
 0x14a   : > { %v1102_v42 = vpack.c.bf16 %v829_v39, %v828_v38 }
 0x14b   : > { %850 = vst [vmem:[%s1420_s27] sm:$0xff] %v1100_v40  ;;  %851 = vst [vmem:[%s1420_s27 + $0x8] sm:$0xff] %v1101_v41 }
 0x14c   : > { %852 = vst [vmem:[%s1420_s27 + $0x10] sm:$0xff] %v1102_v42 }
 0x14d PF: > { %s15_s24 = sadd.s32 1, %s1303_s24   ;;  %s1504_s18 = smov %s1283_s19 }
 0x14e   : > { %p12_p0 = scmp.ge.s32.totalorder %s15_s24, 12   ;;  %s1505_s19 = smov %s1387_s6 }
 0x14f   : > { %s1506_s20 = smov %s1295_s22  ;;  %s1507_s21 = smov %s1299_s23 }
 0x150   : > { %s1508_s22 = smov %s1511_s25  ;;  %s1509_s23 = smov %s1515_s26 }
 0x151   :  { %14 = sbr.rel (!%p12_p0) target bundleno = 4 (0x4), region = 133 }

// kernel: flux_forward.70
= control target key start
LH: loop header
LB: loop body
LE: loop exit
PB: predicated region body
PF: predicated region fallthrough
CT: control target
= control target key end

     0   :  { %s2250_s12 = smov 0   ;;  %s2252_s13 = smov 0   ;;  %s2939_s0 = inlined_call_operand.vmem [shape: bf16[2,24,256], index: 0, kind: input, shape index: {}]   ;;  %s2940_s1 = inlined_call_operand.vmem [shape: bf16[256,1024], index: 1, kind: input, shape index: {}]   ;;  %s2941_s2 = inlined_call_operand.vmem [shape: f32[1,1024], index: 2, kind: input, shape index: {}]   ;;  %s2942_s3 = inlined_call_operand.vmem [shape: bf16[2,24,1024], index: 3, kind: output, shape index: {}]  }
   0x1   :  { %s2254_s14 = smov 0  }
   0x2 LB: > { %s39_s15 = sadd.s32 1, %s2224_s13  ;;  %p1966_p0 = scmp.ge.s32.totalorder %s2228_s14, 1  ;;  %s2228_s14 = sphi %s2254_s14, %s13_s14   ;;  %s2224_s13 = sphi %s2252_s13, %s2944_s13   ;;  %s2220_s12 = sphi %s2250_s12, %s2943_s12  }
   0x3   : > { %p41_p1 = scmp.ge.s32.totalorder %s39_s15, 2  ;;  %p211_p2 = scmp.lt.s32.totalorder %s2228_s14, 3 }
   0x5   : > { %s2946_s15 = smov (%p41_p1, %s39_s15), 0  ;;  %p212_p3 = pnand %p1966_p0, %p211_p2 }
   0x6   : > { %p269_p4 = scmp.lt.s32.totalorder (!%p212_p3), %s2220_s12, 1 }
   0x7   : > { %215 = sbr.rel (%p212_p3) target bundleno = 387 (0x183), region = 32 }
   0xc   : > { %v427_v0 = vld [vmem:[%s2940_s1 + $0x1c0] sm:$0xff]  ;;  %v428_v2 = vld [vmem:[%s2940_s1 + $0x1c8] sm:$0xff]  ;;  %s2948_s12 = smov (!%p269_p4, %s2220_s12), 1 }
   0xd   : > { %v431_v1 = vld [vmem:[%s2940_s1 + $0x1e0] sm:$0xff]  ;;  %v432_v4 = vld [vmem:[%s2940_s1 + $0x1e8] sm:$0xff]  ;;  %s2127_s18 = smul.u32 24, %s2948_s12 }
   0xe   : > { %v2030_v3 = vcombine.high %v427_v0, %v431_v1  ;;  %v2029_v5 = vcombine.low %v427_v0, %v431_v1  ;;  %v419_v6 = vld [vmem:[%s2940_s1 + $0x180] sm:$0xff]  ;;  %v2032_v8 = vcombine.high %v428_v2, %v432_v4  ;;  %v2031_v9 = vcombine.low %v428_v2, %v432_v4  ;;  %v420_v11 = vld [vmem:[%s2940_s1 + $0x188] sm:$0xff]  ;;  %s2128_s28 = smul.u32 96, %s2948_s12 }
   0xf   : > { %v423_v7 = vld [vmem:[%s2940_s1 + $0x1a0] sm:$0xff]  ;;  %v424_v12 = vld [vmem:[%s2940_s1 + $0x1a8] sm:$0xff]  ;;  %s2362_s29 = scalar_lea.vmem %s2939_s0, %s2127_s18 }
  0x10   : > { %v2022_v10 = vcombine.high %v419_v6, %v423_v7  ;;  %v411_v13 = vld [vmem:[%s2940_s1 + $0x140] sm:$0xff]  ;;  %1156 = vmatprep.subr.bf16.mxu0 %v2030_v3  ;;  %v2024_v14 = vcombine.high %v420_v11, %v424_v12  ;;  %v412_v16 = vld [vmem:[%s2940_s1 + $0x148] sm:$0xff]  ;;  %1207 = vmatprep.subr.bf16.mxu1 %v2032_v8  ;;  %v2021_v18 = vcombine.low %v419_v6, %v423_v7  ;;  %s2801_s4 = scalar_lea.vmem %s2942_s3, %s2128_s28 }
  0x11   : > { %v415_v15 = vld [vmem:[%s2940_s1 + $0x160] sm:$0xff]  ;;  %v416_v17 = vld [vmem:[%s2940_s1 + $0x168] sm:$0xff]  ;;  %1157 = vmatpush1.bf16.msra.mxu0 %v2029_v5  ;;  %1208 = vmatpush1.bf16.msra.mxu1 %v2031_v9  ;;  %v2023_v19 = vcombine.low %v420_v11, %v424_v12 }
  0x12   : > { %1158 = vmatprep.subr.bf16.mxu0 %v2022_v10  ;;  %v2014_v20 = vcombine.high %v411_v13, %v415_v15  ;;  %1209 = vmatprep.subr.bf16.mxu1 %v2024_v14  ;;  %v2016_v21 = vcombine.high %v412_v16, %v416_v17  ;;  %v403_v22 = vld [vmem:[%s2940_s1 + $0x100] sm:$0xff]  ;;  %v404_v24 = vld [vmem:[%s2940_s1 + $0x108] sm:$0xff]  ;;  %v2013_v26 = vcombine.low %v411_v13, %v415_v15 }
  0x13   : > { %v407_v23 = vld [vmem:[%s2940_s1 + $0x120] sm:$0xff]  ;;  %v408_v25 = vld [vmem:[%s2940_s1 + $0x128] sm:$0xff]  ;;  %v2015_v27 = vcombine.low %v412_v16, %v416_v17 }
  0x14   : > { %v2006_v28 = vcombine.high %v403_v22, %v407_v23  ;;  %v2008_v29 = vcombine.high %v404_v24, %v408_v25  ;;  %v395_v30 = vld [vmem:[%s2940_s1 + $0xc0] sm:$0xff]  ;;  %v396_v32 = vld [vmem:[%s2940_s1 + $0xc8] sm:$0xff]  ;;  %v2005_v34 = vcombine.low %v403_v22, %v407_v23  ;;  %v2007_v35 = vcombine.low %v404_v24, %v408_v25 }
  0x15   : > { %1159 = vmatpush1.bf16.msra.mxu0 %v2021_v18  ;;  %1210 = vmatpush1.bf16.msra.mxu1 %v2023_v19  ;;  %v399_v31 = vld [vmem:[%s2940_s1 + $0xe0] sm:$0xff]  ;;  %v400_v33 = vld [vmem:[%s2940_s1 + $0xe8] sm:$0xff] }
  0x16   : > { %1160 = vmatprep.subr.bf16.mxu0 %v2014_v20  ;;  %1211 = vmatprep.subr.bf16.mxu1 %v2016_v21  ;;  %v1998_v36 = vcombine.high %v395_v30, %v399_v31  ;;  %v2000_v37 = vcombine.high %v396_v32, %v400_v33  ;;  %v387_v38 = vld [vmem:[%s2940_s1 + $0x80] sm:$0xff]  ;;  %v388_v40 = vld [vmem:[%s2940_s1 + $0x88] sm:$0xff]  ;;  %v1997_v42 = vcombine.low %v395_v30, %v399_v31 }
  0x17   : > { %v391_v39 = vld [vmem:[%s2940_s1 + $0xa0] sm:$0xff]  ;;  %v392_v41 = vld [vmem:[%s2940_s1 + $0xa8] sm:$0xff]  ;;  %v1999_v43 = vcombine.low %v396_v32, %v400_v33 }
  0x18   : > { %v1990_v44 = vcombine.high %v387_v38, %v391_v39  ;;  %v1992_v45 = vcombine.high %v388_v40, %v392_v41  ;;  %v379_v46 = vld [vmem:[%s2940_s1 + $0x40] sm:$0xff]  ;;  %v380_v48 = vld [vmem:[%s2940_s1 + $0x48] sm:$0xff]  ;;  %v1989_v50 = vcombine.low %v387_v38, %v391_v39  ;;  %v1991_v51 = vcombine.low %v388_v40, %v392_v41 }
  0x19   : > { %1161 = vmatpush1.bf16.msra.mxu0 %v2013_v26  ;;  %1212 = vmatpush1.bf16.msra.mxu1 %v2015_v27  ;;  %v383_v47 = vld [vmem:[%s2940_s1 + $0x60] sm:$0xff]  ;;  %v384_v49 = vld [vmem:[%s2940_s1 + $0x68] sm:$0xff] }
  0x1a   : > { %1162 = vmatprep.subr.bf16.mxu0 %v2006_v28  ;;  %1213 = vmatprep.subr.bf16.mxu1 %v2008_v29  ;;  %v1982_v52 = vcombine.high %v379_v46, %v383_v47  ;;  %v1984_v53 = vcombine.high %v380_v48, %v384_v49  ;;  %v371_v54 = vld [vmem:[%s2940_s1] sm:$0xff]  ;;  %v372_v57 = vld [vmem:[%s2940_s1 + $0x8] sm:$0xff]  ;;  %v1981_v59 = vcombine.low %v379_v46, %v383_v47 }
  0x1b   : > { %v375_v55 = vld [vmem:[%s2940_s1 + $0x20] sm:$0xff]  ;;  %v376_v58 = vld [vmem:[%s2940_s1 + $0x28] sm:$0xff]  ;;  %v1983_v60 = vcombine.low %v380_v48, %v384_v49 }
  0x1c   : > { %v2371_v56 = vld [vmem:[%s2362_s29 + $0x4] ss:$8 sps:$4 sm:$0xff]   ;;  %v1974_v61 = vcombine.high %v371_v54, %v375_v55  ;;  %v1976_v62 = vcombine.high %v372_v57, %v376_v58  ;;  %v1973_v3 = vcombine.low %v371_v54, %v375_v55  ;;  %v1975_v4 = vcombine.low %v372_v57, %v376_v58 }
  0x1d   : > { %1163 = vmatpush1.bf16.msra.mxu0 %v2005_v34  ;;  %1214 = vmatpush1.bf16.msra.mxu1 %v2007_v35  ;;  %v491_v63 = vld [vmem:[%s2940_s1 + $0x3c0] sm:$0xff]  ;;  %v492_v1 = vld [vmem:[%s2940_s1 + $0x3c8] sm:$0xff] }
  0x1e   : > { %1164 = vmatprep.subr.bf16.mxu0 %v1998_v36  ;;  %1215 = vmatprep.subr.bf16.mxu1 %v2000_v37  ;;  %v495_v0 = vld [vmem:[%s2940_s1 + $0x3e0] sm:$0xff]  ;;  %v496_v2 = vld [vmem:[%s2940_s1 + $0x3e8] sm:$0xff] }
  0x1f   : > { %1188 = vmatprep.mubr.bf16.mxu0 %v2371_v56  ;;  %1239 = vmatprep.mubr.bf16.mxu1 %v2371_v56  ;;  %v2094_v5 = vcombine.high %v491_v63, %v495_v0  ;;  %v2096_v6 = vcombine.high %v492_v1, %v496_v2  ;;  %v483_v7 = vld [vmem:[%s2940_s1 + $0x380] sm:$0xff]  ;;  %v484_v9 = vld [vmem:[%s2940_s1 + $0x388] sm:$0xff]  ;;  %v2093_v11 = vcombine.low %v491_v63, %v495_v0  ;;  %v429_v0 = vld [vmem:[%s2940_s1 + $0x1d0] sm:$0xff] }
  0x20   : > { %v487_v8 = vld [vmem:[%s2940_s1 + $0x3a0] sm:$0xff]  ;;  %v488_v10 = vld [vmem:[%s2940_s1 + $0x3a8] sm:$0xff]  ;;  %v2095_v12 = vcombine.low %v492_v1, %v496_v2  ;;  %v433_v1 = vld [vmem:[%s2940_s1 + $0x1f0] sm:$0xff] }
  0x21   : > { %1165 = vmatpush1.bf16.msra.mxu0 %v1997_v42  ;;  %1216 = vmatpush1.bf16.msra.mxu1 %v1999_v43  ;;  %v2086_v13 = vcombine.high %v483_v7, %v487_v8  ;;  %v2088_v14 = vcombine.high %v484_v9, %v488_v10  ;;  %v475_v15 = vld [vmem:[%s2940_s1 + $0x340] sm:$0xff]  ;;  %v476_v17 = vld [vmem:[%s2940_s1 + $0x348] sm:$0xff]  ;;  %v2085_v19 = vcombine.low %v483_v7, %v487_v8  ;;  %v430_v2 = vld [vmem:[%s2940_s1 + $0x1d8] sm:$0xff] }
  0x22   : > { %1166 = vmatprep.subr.bf16.mxu0 %v1990_v44  ;;  %1217 = vmatprep.subr.bf16.mxu1 %v1992_v45  ;;  %v479_v16 = vld [vmem:[%s2940_s1 + $0x360] sm:$0xff]  ;;  %v480_v18 = vld [vmem:[%s2940_s1 + $0x368] sm:$0xff]  ;;  %v2087_v20 = vcombine.low %v484_v9, %v488_v10  ;;  %v421_v9 = vld [vmem:[%s2940_s1 + $0x190] sm:$0xff] }
  0x23   : > { %v2078_v21 = vcombine.high %v475_v15, %v479_v16  ;;  %v2080_v22 = vcombine.high %v476_v17, %v480_v18  ;;  %v467_v23 = vld [vmem:[%s2940_s1 + $0x300] sm:$0xff]  ;;  %v468_v25 = vld [vmem:[%s2940_s1 + $0x308] sm:$0xff]  ;;  %v2077_v27 = vcombine.low %v475_v15, %v479_v16  ;;  %v2079_v28 = vcombine.low %v476_v17, %v480_v18  ;;  %v425_v10 = vld [vmem:[%s2940_s1 + $0x1b0] sm:$0xff] }
  0x24   : > { %v471_v24 = vld [vmem:[%s2940_s1 + $0x320] sm:$0xff]  ;;  %v472_v26 = vld [vmem:[%s2940_s1 + $0x328] sm:$0xff]  ;;  %v2026_v16 = vcombine.high %v421_v9, %v425_v10  ;;  %v413_v18 = vld [vmem:[%s2940_s1 + $0x150] sm:$0xff] }
  0x25   : > { %1167 = vmatpush1.bf16.msra.mxu0 %v1989_v50  ;;  %1218 = vmatpush1.bf16.msra.mxu1 %v1991_v51  ;;  %v2070_v29 = vcombine.high %v467_v23, %v471_v24  ;;  %v2072_v30 = vcombine.high %v468_v25, %v472_v26  ;;  %v459_v31 = vld [vmem:[%s2940_s1 + $0x2c0] sm:$0xff]  ;;  %v460_v33 = vld [vmem:[%s2940_s1 + $0x2c8] sm:$0xff]  ;;  %v2069_v35 = vcombine.low %v467_v23, %v471_v24 }
  0x26   : > { %1168 = vmatprep.subr.bf16.mxu0 %v1982_v52  ;;  %1219 = vmatprep.subr.bf16.mxu1 %v1984_v53  ;;  %v463_v32 = vld [vmem:[%s2940_s1 + $0x2e0] sm:$0xff]  ;;  %v464_v34 = vld [vmem:[%s2940_s1 + $0x2e8] sm:$0xff]  ;;  %v2071_v36 = vcombine.low %v468_v25, %v472_v26  ;;  %v2025_v23 = vcombine.low %v421_v9, %v425_v10 }
  0x27   : > { %v2062_v37 = vcombine.high %v459_v31, %v463_v32  ;;  %v2064_v38 = vcombine.high %v460_v33, %v464_v34  ;;  %v451_v39 = vld [vmem:[%s2940_s1 + $0x280] sm:$0xff]  ;;  %v452_v41 = vld [vmem:[%s2940_s1 + $0x288] sm:$0xff]  ;;  %v2061_v43 = vcombine.low %v459_v31, %v463_v32  ;;  %v2063_v44 = vcombine.low %v460_v33, %v464_v34 }
  0x28   : > { %v455_v40 = vld [vmem:[%s2940_s1 + $0x2a0] sm:$0xff]  ;;  %v456_v42 = vld [vmem:[%s2940_s1 + $0x2a8] sm:$0xff] }
  0x29   : > { %1169 = vmatpush1.bf16.msra.mxu0 %v1981_v59  ;;  %1220 = vmatpush1.bf16.msra.mxu1 %v1983_v60  ;;  %v2054_v45 = vcombine.high %v451_v39, %v455_v40  ;;  %v2056_v46 = vcombine.high %v452_v41, %v456_v42  ;;  %v443_v47 = vld [vmem:[%s2940_s1 + $0x240] sm:$0xff]  ;;  %v444_v49 = vld [vmem:[%s2940_s1 + $0x248] sm:$0xff]  ;;  %v2053_v51 = vcombine.low %v451_v39, %v455_v40  ;;  %v402_v39 = vld [vmem:[%s2940_s1 + $0xf8] sm:$0xff] }
  0x2a   : > { %1170 = vmatprep.subr.bf16.mxu0 %v1974_v61  ;;  %1221 = vmatprep.subr.bf16.mxu1 %v1976_v62  ;;  %v447_v48 = vld [vmem:[%s2940_s1 + $0x260] sm:$0xff]  ;;  %v448_v50 = vld [vmem:[%s2940_s1 + $0x268] sm:$0xff]  ;;  %v2055_v52 = vcombine.low %v452_v41, %v456_v42 }
  0x2b   : > { %v2046_v53 = vcombine.high %v443_v47, %v447_v48  ;;  %v2048_v54 = vcombine.high %v444_v49, %v448_v50  ;;  %v435_v55 = vld [vmem:[%s2940_s1 + $0x200] sm:$0xff]  ;;  %v436_v58 = vld [vmem:[%s2940_s1 + $0x208] sm:$0xff]  ;;  %v2045_v60 = vcombine.low %v443_v47, %v447_v48  ;;  %v2047_v61 = vcombine.low %v444_v49, %v448_v50  ;;  %v394_v47 = vld [vmem:[%s2940_s1 + $0xb8] sm:$0xff] }
  0x2c   : > { %v439_v57 = vld [vmem:[%s2940_s1 + $0x220] sm:$0xff]  ;;  %v440_v59 = vld [vmem:[%s2940_s1 + $0x228] sm:$0xff] }
  0x2d   : > { %1171 = vmatpush1.bf16.msra.mxu0 %v1973_v3  ;;  %1222 = vmatpush1.bf16.msra.mxu1 %v1975_v4  ;;  %v2038_v62 = vcombine.high %v435_v55, %v439_v57  ;;  %v2040_v63 = vcombine.high %v436_v58, %v440_v59  ;;  %v434_v3 = vld [vmem:[%s2940_s1 + $0x1f8] sm:$0xff]  ;;  %v2037_v4 = vcombine.low %v435_v55, %v439_v57  ;;  %v2490_v7 = vld [vmem:[%s2362_s29] ss:$8 sps:$4 sm:$0xff]  }
  0x2e   : > { %1172 = vmatprep.subr.bf16.mxu0 %v2094_v5  ;;  %1223 = vmatprep.subr.bf16.mxu1 %v2096_v6  ;;  %v2039_v5 = vcombine.low %v436_v58, %v440_v59  ;;  %v2034_v6 = vcombine.high %v429_v0, %v433_v1  ;;  %v2036_v8 = vcombine.high %v430_v2, %v434_v3 }
  0x2f   : > { %v2035_v15 = vcombine.low %v430_v2, %v434_v3 }
  0x31   : > { %1173 = vmatpush2.bf16.msra.mxu0 %v2093_v11  ;;  %1224 = vmatpush2.bf16.msra.mxu1 %v2095_v12  ;;  %v422_v11 = vld [vmem:[%s2940_s1 + $0x198] sm:$0xff] }
  0x32   : > { %1174 = vmatprep.subr.bf16.mxu0 %v2086_v13  ;;  %1225 = vmatprep.subr.bf16.mxu1 %v2088_v14  ;;  %v426_v12 = vld [vmem:[%s2940_s1 + $0x1b8] sm:$0xff]  ;;  %v370_v13 = vld [vmem:[%s2362_s29 + $0x10] sm:$0xff]  ;;  %v2033_v14 = vcombine.low %v429_v0, %v433_v1 }
  0x33   : > { %v2028_v17 = vcombine.high %v422_v11, %v426_v12  ;;  %v2027_v24 = vcombine.low %v422_v11, %v426_v12  ;;  %v2535_v31 = vcombine.low %v370_v13, %v370_v13 }
  0x35   : > { %1175 = vmatpush2.bf16.msra.mxu0 %v2085_v19  ;;  %1226 = vmatpush2.bf16.msra.mxu1 %v2087_v20  ;;  %v417_v19 = vld [vmem:[%s2940_s1 + $0x170] sm:$0xff]  ;;  %v2511_v20 = vcombine.high %v370_v13, %v370_v13 }
  0x36   : > { %1176 = vmatprep.subr.bf16.mxu0 %v2078_v21  ;;  %1227 = vmatprep.subr.bf16.mxu1 %v2080_v22  ;;  %v414_v21 = vld [vmem:[%s2940_s1 + $0x158] sm:$0xff]  ;;  %v2018_v25 = vcombine.high %v413_v18, %v417_v19  ;;  %v2017_v32 = vcombine.low %v413_v18, %v417_v19  ;;  %v485_v13 = vld [vmem:[%s2940_s1 + $0x390] sm:$0xff] }
  0x37   : > { %v418_v22 = vld [vmem:[%s2940_s1 + $0x178] sm:$0xff] }
  0x38   : > { %v2020_v26 = vcombine.high %v414_v21, %v418_v22  ;;  %v2019_v33 = vcombine.low %v414_v21, %v418_v22  ;;  %v477_v22 = vld [vmem:[%s2940_s1 + $0x350] sm:$0xff] }
  0x39   : > { %1177 = vmatpush2.bf16.msra.mxu0 %v2077_v27  ;;  %1228 = vmatpush2.bf16.msra.mxu1 %v2079_v28  ;;  %v405_v27 = vld [vmem:[%s2940_s1 + $0x110] sm:$0xff] }
  0x3a   : > { %1178 = vmatprep.subr.bf16.mxu0 %v2070_v29  ;;  %1229 = vmatprep.subr.bf16.mxu1 %v2072_v30  ;;  %v409_v28 = vld [vmem:[%s2940_s1 + $0x130] sm:$0xff]  ;;  %v406_v29 = vld [vmem:[%s2940_s1 + $0x118] sm:$0xff] }
  0x3b   : > { %v410_v30 = vld [vmem:[%s2940_s1 + $0x138] sm:$0xff]  ;;  %v2010_v34 = vcombine.high %v405_v27, %v409_v28  ;;  %v2009_v40 = vcombine.low %v405_v27, %v409_v28 }
  0x3c   : > { %v2011_v41 = vcombine.low %v406_v29, %v410_v30 }
  0x3d   : > { %1179 = vmatpush2.bf16.msra.mxu0 %v2069_v35  ;;  %1230 = vmatpush2.bf16.msra.mxu1 %v2071_v36  ;;  %v2012_v35 = vcombine.high %v406_v29, %v410_v30  ;;  %v397_v36 = vld [vmem:[%s2940_s1 + $0xd0] sm:$0xff] }
  0x3e   : > { %1180 = vmatprep.subr.bf16.mxu0 %v2062_v37  ;;  %1231 = vmatprep.subr.bf16.mxu1 %v2064_v38  ;;  %v401_v37 = vld [vmem:[%s2940_s1 + $0xf0] sm:$0xff]  ;;  %v398_v38 = vld [vmem:[%s2940_s1 + $0xd8] sm:$0xff] }
  0x3f   : > { %v2002_v42 = vcombine.high %v397_v36, %v401_v37  ;;  %v2001_v48 = vcombine.low %v397_v36, %v401_v37  ;;  %v2003_v49 = vcombine.low %v398_v38, %v402_v39  ;;  %v469_v30 = vld [vmem:[%s2940_s1 + $0x310] sm:$0xff] }
  0x41   : > { %1181 = vmatpush2.bf16.msra.mxu0 %v2061_v43  ;;  %1232 = vmatpush2.bf16.msra.mxu1 %v2063_v44  ;;  %v2004_v43 = vcombine.high %v398_v38, %v402_v39  ;;  %v389_v44 = vld [vmem:[%s2940_s1 + $0x90] sm:$0xff] }
  0x42   : > { %1182 = vmatprep.subr.bf16.mxu0 %v2054_v45  ;;  %1233 = vmatprep.subr.bf16.mxu1 %v2056_v46  ;;  %v393_v45 = vld [vmem:[%s2940_s1 + $0xb0] sm:$0xff]  ;;  %v390_v46 = vld [vmem:[%s2940_s1 + $0x98] sm:$0xff] }
  0x43   : > { %v1994_v50 = vcombine.high %v389_v44, %v393_v45  ;;  %v1993_v55 = vcombine.low %v389_v44, %v393_v45  ;;  %v1995_v57 = vcombine.low %v390_v46, %v394_v47  ;;  %v461_v39 = vld [vmem:[%s2940_s1 + $0x2d0] sm:$0xff] }
  0x45   : > { %1183 = vmatpush2.bf16.msra.mxu0 %v2053_v51  ;;  %1234 = vmatpush2.bf16.msra.mxu1 %v2055_v52  ;;  %v1996_v51 = vcombine.high %v390_v46, %v394_v47  ;;  %v381_v52 = vld [vmem:[%s2940_s1 + $0x50] sm:$0xff] }
  0x46   : > { %1184 = vmatprep.subr.bf16.mxu0 %v2046_v53  ;;  %1235 = vmatprep.subr.bf16.mxu1 %v2048_v54  ;;  %v385_v53 = vld [vmem:[%s2940_s1 + $0x70] sm:$0xff]  ;;  %v386_v54 = vld [vmem:[%s2940_s1 + $0x78] sm:$0xff] }
  0x47   : > { %v1986_v58 = vcombine.high %v381_v52, %v385_v53  ;;  %v1985_v0 = vcombine.low %v381_v52, %v385_v53  ;;  %v453_v47 = vld [vmem:[%s2940_s1 + $0x290] sm:$0xff] }
  0x49   : > { %1185 = vmatpush2.bf16.msra.mxu0 %v2045_v60  ;;  %1236 = vmatpush2.bf16.msra.mxu1 %v2047_v61  ;;  %v373_v60 = vld [vmem:[%s2940_s1 + $0x10] sm:$0xff] }
  0x4a   : > { %1186 = vmatprep.subr.bf16.mxu0 %v2038_v62  ;;  %1237 = vmatprep.subr.bf16.mxu1 %v2040_v63  ;;  %v377_v61 = vld [vmem:[%s2940_s1 + $0x30] sm:$0xff]  ;;  %v374_v62 = vld [vmem:[%s2940_s1 + $0x18] sm:$0xff] }
  0x4b   : > { %v378_v63 = vld [vmem:[%s2940_s1 + $0x38] sm:$0xff]  ;;  %v1978_v2 = vcombine.high %v373_v60, %v377_v61  ;;  %v1977_v9 = vcombine.low %v373_v60, %v377_v61 }
  0x4c   : > { %v1980_v3 = vcombine.high %v374_v62, %v378_v63  ;;  %v1979_v10 = vcombine.low %v374_v62, %v378_v63  ;;  %v437_v63 = vld [vmem:[%s2940_s1 + $0x210] sm:$0xff] }
  0x4d   : > { %1187 = vmatpush2.bf16.msra.mxu0 %v2037_v4  ;;  %1238 = vmatpush2.bf16.msra.mxu1 %v2039_v5  ;;  %v493_v4 = vld [vmem:[%s2940_s1 + $0x3d0] sm:$0xff] }
  0x4e   : > { %1258 = vmatprep.subr.bf16.mxu0 %v2034_v6  ;;  %1309 = vmatprep.subr.bf16.mxu1 %v2036_v8  ;;  %v497_v5 = vld [vmem:[%s2940_s1 + $0x3f0] sm:$0xff]  ;;  %v494_v6 = vld [vmem:[%s2940_s1 + $0x3d8] sm:$0xff] }
  0x4f   : > { %v498_v8 = vld [vmem:[%s2940_s1 + $0x3f8] sm:$0xff]  ;;  %v2098_v11 = vcombine.high %v493_v4, %v497_v5 }
  0x50   : > { %1189 = vmatmul.mubr.bf16.vlgmr.msra.gmra.mxu0 %v2490_v7  ;;  %1240 = vmatmul.mubr.bf16.vlgmr.msra.gmra.mxu1 %v2490_v7  ;;  %v2100_v12 = vcombine.high %v494_v6, %v498_v8  ;;  %v2099_v18 = vcombine.low %v494_v6, %v498_v8 }
  0x51   : > { %1259 = vmatpush1.bf16.msra.mxu0 %v2033_v14  ;;  %1310 = vmatpush1.bf16.msra.mxu1 %v2035_v15  ;;  %v489_v14 = vld [vmem:[%s2940_s1 + $0x3b0] sm:$0xff]  ;;  %v486_v15 = vld [vmem:[%s2940_s1 + $0x398] sm:$0xff] }
  0x52   : > { %1260 = vmatprep.subr.bf16.mxu0 %v2026_v16  ;;  %1311 = vmatprep.subr.bf16.mxu1 %v2028_v17  ;;  %v490_v16 = vld [vmem:[%s2940_s1 + $0x3b8] sm:$0xff]  ;;  %v2097_v17 = vcombine.low %v493_v4, %v497_v5  ;;  %v2090_v19 = vcombine.high %v485_v13, %v489_v14 }
  0x53   : > { %1198 = vmatprep.mubr.bf16.mxu0 %v2511_v20  ;;  %1249 = vmatprep.mubr.bf16.mxu1 %v2511_v20  ;;  %v2092_v21 = vcombine.high %v486_v15, %v490_v16  ;;  %v2091_v27 = vcombine.low %v486_v15, %v490_v16 }
  0x55   : > { %1261 = vmatpush1.bf16.msra.mxu0 %v2025_v23  ;;  %1312 = vmatpush1.bf16.msra.mxu1 %v2027_v24  ;;  %v481_v23 = vld [vmem:[%s2940_s1 + $0x370] sm:$0xff]  ;;  %v478_v24 = vld [vmem:[%s2940_s1 + $0x358] sm:$0xff] }
  0x56   : > { %1262 = vmatprep.subr.bf16.mxu0 %v2018_v25  ;;  %1313 = vmatprep.subr.bf16.mxu1 %v2020_v26  ;;  %v482_v25 = vld [vmem:[%s2940_s1 + $0x378] sm:$0xff]  ;;  %v2089_v26 = vcombine.low %v485_v13, %v489_v14  ;;  %v2082_v28 = vcombine.high %v477_v22, %v481_v23  ;;  %v2697_v13 = vld [vmem:[%s2941_s2] sm:$0xff] }
  0x57   : > { %v2084_v29 = vcombine.high %v478_v24, %v482_v25  ;;  %v2083_v36 = vcombine.low %v478_v24, %v482_v25 }
  0x58   : > { %1199 = vmatmul.mubr.bf16.gmra.mxu0 %v2535_v31  ;;  %1250 = vmatmul.mubr.bf16.gmra.mxu1 %v2535_v31 }
  0x59   : > { %1263 = vmatpush1.bf16.msra.mxu0 %v2017_v32  ;;  %1314 = vmatpush1.bf16.msra.mxu1 %v2019_v33  ;;  %v473_v32 = vld [vmem:[%s2940_s1 + $0x330] sm:$0xff]  ;;  %v470_v33 = vld [vmem:[%s2940_s1 + $0x318] sm:$0xff] }
  0x5a   : > { %1264 = vmatprep.subr.bf16.mxu0 %v2010_v34  ;;  %1315 = vmatprep.subr.bf16.mxu1 %v2012_v35  ;;  %v474_v34 = vld [vmem:[%s2940_s1 + $0x338] sm:$0xff]  ;;  %v2081_v35 = vcombine.low %v477_v22, %v481_v23  ;;  %v2074_v37 = vcombine.high %v469_v30, %v473_v32 }
  0x5b   : > { %1290 = vmatprep.mubr.bf16.mxu0 %v2371_v56  ;;  %1341 = vmatprep.mubr.bf16.mxu1 %v2371_v56  ;;  %v382_v56 = vld [vmem:[%s2940_s1 + $0x58] sm:$0xff]  ;;  %v2076_v38 = vcombine.high %v470_v33, %v474_v34  ;;  %v2075_v44 = vcombine.low %v470_v33, %v474_v34 }
  0x5c   : > { %v1988_v59 = vcombine.high %v382_v56, %v386_v54  ;;  %v1987_v1 = vcombine.low %v382_v56, %v386_v54  ;;  %v445_v54 = vld [vmem:[%s2940_s1 + $0x250] sm:$0xff] }
  0x5d   : > { %1265 = vmatpush1.bf16.msra.mxu0 %v2009_v40  ;;  %1316 = vmatpush1.bf16.msra.mxu1 %v2011_v41  ;;  %v465_v40 = vld [vmem:[%s2940_s1 + $0x2f0] sm:$0xff]  ;;  %v462_v41 = vld [vmem:[%s2940_s1 + $0x2d8] sm:$0xff] }
  0x5e   : > { %1266 = vmatprep.subr.bf16.mxu0 %v2002_v42  ;;  %1317 = vmatprep.subr.bf16.mxu1 %v2004_v43  ;;  %v466_v42 = vld [vmem:[%s2940_s1 + $0x2f8] sm:$0xff]  ;;  %v2073_v43 = vcombine.low %v469_v30, %v473_v32  ;;  %v2066_v45 = vcombine.high %v461_v39, %v465_v40 }
  0x5f   : > { %v2068_v46 = vcombine.high %v462_v41, %v466_v42  ;;  %v2067_v52 = vcombine.low %v462_v41, %v466_v42 }
  0x61   : > { %1267 = vmatpush1.bf16.msra.mxu0 %v2001_v48  ;;  %1318 = vmatpush1.bf16.msra.mxu1 %v2003_v49  ;;  %v457_v48 = vld [vmem:[%s2940_s1 + $0x2b0] sm:$0xff]  ;;  %v454_v49 = vld [vmem:[%s2940_s1 + $0x298] sm:$0xff] }
  0x62   : > { %1268 = vmatprep.subr.bf16.mxu0 %v1994_v50  ;;  %1319 = vmatprep.subr.bf16.mxu1 %v1996_v51  ;;  %v458_v50 = vld [vmem:[%s2940_s1 + $0x2b8] sm:$0xff]  ;;  %v2065_v51 = vcombine.low %v461_v39, %v465_v40  ;;  %v2058_v53 = vcombine.high %v453_v47, %v457_v48 }
  0x63   : > { %v2060_v56 = vcombine.high %v454_v49, %v458_v50  ;;  %v2059_v60 = vcombine.low %v454_v49, %v458_v50 }
  0x65   : > { %1269 = vmatpush1.bf16.msra.mxu0 %v1993_v55  ;;  %1320 = vmatpush1.bf16.msra.mxu1 %v1995_v57  ;;  %v449_v55 = vld [vmem:[%s2940_s1 + $0x270] sm:$0xff]  ;;  %v446_v57 = vld [vmem:[%s2940_s1 + $0x258] sm:$0xff] }
  0x66   : > { %1270 = vmatprep.subr.bf16.mxu0 %v1986_v58  ;;  %1321 = vmatprep.subr.bf16.mxu1 %v1988_v59  ;;  %v450_v58 = vld [vmem:[%s2940_s1 + $0x278] sm:$0xff]  ;;  %v2057_v59 = vcombine.low %v453_v47, %v457_v48  ;;  %v2050_v61 = vcombine.high %v445_v54, %v449_v55 }
  0x67   : > { %v2052_v62 = vcombine.high %v446_v57, %v450_v58  ;;  %v2051_v4 = vcombine.low %v446_v57, %v450_v58 }
  0x69   : > { %1271 = vmatpush1.bf16.msra.mxu0 %v1985_v0  ;;  %1322 = vmatpush1.bf16.msra.mxu1 %v1987_v1  ;;  %v441_v0 = vld [vmem:[%s2940_s1 + $0x230] sm:$0xff]  ;;  %v438_v1 = vld [vmem:[%s2940_s1 + $0x218] sm:$0xff] }
  0x6a   : > { %1272 = vmatprep.subr.bf16.mxu0 %v1978_v2  ;;  %1323 = vmatprep.subr.bf16.mxu1 %v1980_v3  ;;  %v442_v2 = vld [vmem:[%s2940_s1 + $0x238] sm:$0xff]  ;;  %v2049_v3 = vcombine.low %v445_v54, %v449_v55  ;;  %v2042_v5 = vcombine.high %v437_v63, %v441_v0  ;;  %v2041_v8 = vcombine.low %v437_v63, %v441_v0 }
  0x6b   : > { %v2044_v6 = vcombine.high %v438_v1, %v442_v2 }
  0x6d   : > { %1273 = vmatpush1.bf16.msra.mxu0 %v1977_v9  ;;  %1324 = vmatpush1.bf16.msra.mxu1 %v1979_v10  ;;  %v2043_v9 = vcombine.low %v438_v1, %v442_v2  ;;  %v1437_v10 = vlaneseq }
  0x6e   : > { %1274 = vmatprep.subr.bf16.mxu0 %v2098_v11  ;;  %1325 = vmatprep.subr.bf16.mxu1 %v2100_v12 }
  0x6f   : > { %v2691_v11 = vshrl.u32 %v1437_v10, 7 }
  0x71   : > { %1275 = vmatpush2.bf16.msra.mxu0 %v2097_v17  ;;  %1326 = vmatpush2.bf16.msra.mxu1 %v2099_v18  ;;  %v1439_v12 = vsub.s32 0, %v2691_v11  ;;  %v1443_v14 = vsub.s32 1, %v2691_v11 }
  0x72   : > { %1276 = vmatprep.subr.bf16.mxu0 %v2090_v19  ;;  %1327 = vmatprep.subr.bf16.mxu1 %v2092_v21 }
  0x73   : > { %v1440_v15 = vrot.slane %v2697_v13, %v1439_v12  ;;  %v2707_v16 = vrot.slane %v2697_v13, %v1443_v14 }
  0x75   : > { %1277 = vmatpush2.bf16.msra.mxu0 %v2089_v26  ;;  %1328 = vmatpush2.bf16.msra.mxu1 %v2091_v27 }
  0x76   : > { %1278 = vmatprep.subr.bf16.mxu0 %v2082_v28  ;;  %1329 = vmatprep.subr.bf16.mxu1 %v2084_v29 }
  0x79   : > { %1279 = vmatpush2.bf16.msra.mxu0 %v2081_v35  ;;  %1330 = vmatpush2.bf16.msra.mxu1 %v2083_v36 }
  0x7a   : > { %1280 = vmatprep.subr.bf16.mxu0 %v2074_v37  ;;  %1331 = vmatprep.subr.bf16.mxu1 %v2076_v38 }
  0x7d   : > { %1281 = vmatpush2.bf16.msra.mxu0 %v2073_v43  ;;  %1332 = vmatpush2.bf16.msra.mxu1 %v2075_v44 }
  0x7e   : > { %1282 = vmatprep.subr.bf16.mxu0 %v2066_v45  ;;  %1333 = vmatprep.subr.bf16.mxu1 %v2068_v46 }
  0x81   : > { %1283 = vmatpush2.bf16.msra.mxu0 %v2065_v51  ;;  %1334 = vmatpush2.bf16.msra.mxu1 %v2067_v52 }
  0x82   : > { %1284 = vmatprep.subr.bf16.mxu0 %v2058_v53  ;;  %1335 = vmatprep.subr.bf16.mxu1 %v2060_v56 }
  0x85   : > { %1285 = vmatpush2.bf16.msra.mxu0 %v2057_v59  ;;  %1336 = vmatpush2.bf16.msra.mxu1 %v2059_v60 }
  0x86   : > { %1286 = vmatprep.subr.bf16.mxu0 %v2050_v61  ;;  %1337 = vmatprep.subr.bf16.mxu1 %v2052_v62 }
  0x89   : > { %1287 = vmatpush2.bf16.msra.mxu0 %v2049_v3  ;;  %1338 = vmatpush2.bf16.msra.mxu1 %v2051_v4 }
  0x8a   : > { %1288 = vmatprep.subr.bf16.mxu0 %v2042_v5  ;;  %1339 = vmatprep.subr.bf16.mxu1 %v2044_v6 }
  0x8d   : > { %1289 = vmatpush2.bf16.msra.mxu0 %v2041_v8  ;;  %1340 = vmatpush2.bf16.msra.mxu1 %v2043_v9 }
  0x90   : > { %1291 = vmatmul.mubr.bf16.vlgmr.msra.gmra.mxu0 %v2490_v7  ;;  %1342 = vmatmul.mubr.bf16.vlgmr.msra.gmra.mxu1 %v2490_v7  ;;  %v1447_v7 = vsub.s32 2, %v2691_v11 }
  0x91   : > { %1300 = vmatprep.mubr.bf16.mxu0 %v2511_v20  ;;  %1351 = vmatprep.mubr.bf16.mxu1 %v2511_v20  ;;  %v1451_v20 = vsub.s32 3, %v2691_v11 }
  0x93   : > { %v2710_v18 = vrot.slane %v2697_v13, %v1451_v20 }
  0x98   : > { %1301 = vmatmul.mubr.bf16.gmra.mxu0 %v2535_v31  ;;  %1352 = vmatmul.mubr.bf16.gmra.mxu1 %v2535_v31  ;;  %v2704_v31 = vrot.slane %v2697_v13, %v1447_v7 }
 0x110   : > { %v1190_v17 = vpop.f32.mrf.mxu0  ;;  %v1241_v21 = vpop.f32.mrf.mxu1 }
 0x111   : > { %v2712_v19 = vadd.f32 %v1440_v15, %v1190_v17  ;;  %v2715_v22 = vadd.f32 %v2704_v31, %v1241_v21 }
 0x112   : > { %v1192_v23 = vpop.f32.mrf.mxu0  ;;  %v1243_v26 = vpop.f32.mrf.mxu1 }
 0x113   : > { %v1525_v24 = vmul.f32 0.044715, %v2712_v19  ;;  %v2719_v25 = vadd.f32 %v2707_v16, %v1192_v23  ;;  %v1527_v27 = vmul.f32 0.044715, %v2715_v22  ;;  %v2723_v28 = vadd.f32 %v2710_v18, %v1243_v26 }
 0x114   : > { %v1194_v29 = vpop.f32.mrf.mxu0  ;;  %v1245_v34 = vpop.f32.mrf.mxu1 }
 0x115   : > { %v1549_v30 = vmul.f32 %v1525_v24, %v2712_v19  ;;  %v1526_v32 = vmul.f32 0.044715, %v2719_v25  ;;  %v2727_v33 = vadd.f32 %v1440_v15, %v1194_v29  ;;  %v1551_v35 = vmul.f32 %v1527_v27, %v2715_v22 }
 0x116   : > { %v1528_v36 = vmul.f32 0.044715, %v2723_v28  ;;  %v2732_v37 = vadd.f32 %v2704_v31, %v1245_v34  ;;  %v1196_v38 = vpop.f32.mrf.mxu0  ;;  %v1247_v42 = vpop.f32.mrf.mxu1 }
 0x117   : > { %v1573_v39 = vmul.f32 %v1549_v30, %v2712_v19  ;;  %v1550_v40 = vmul.f32 %v1526_v32, %v2719_v25  ;;  %v1533_v41 = vmul.f32 0.044715, %v2727_v33  ;;  %v1575_v43 = vmul.f32 %v1551_v35, %v2715_v22 }
 0x118   : > { %v1552_v44 = vmul.f32 %v1528_v36, %v2723_v28  ;;  %v1535_v45 = vmul.f32 0.044715, %v2732_v37  ;;  %v1200_v46 = vpop.f32.mrf.mxu0  ;;  %v2744_v50 = vadd.f32 %v2707_v16, %v1196_v38  ;;  %v1251_v51 = vpop.f32.mrf.mxu1  ;;  %v2752_v59 = vadd.f32 %v2710_v18, %v1247_v42 }
 0x119   : > { %v1597_v47 = vadd.f32 %v1573_v39, %v2712_v19  ;;  %v1574_v48 = vmul.f32 %v1550_v40, %v2719_v25  ;;  %v1557_v49 = vmul.f32 %v1533_v41, %v2727_v33  ;;  %v1599_v52 = vadd.f32 %v1575_v43, %v2715_v22 }
 0x11a   : > { %v1576_v53 = vmul.f32 %v1552_v44, %v2723_v28  ;;  %v1559_v56 = vmul.f32 %v1535_v45, %v2732_v37  ;;  %v1202_v54 = vpop.f32.mrf.mxu0  ;;  %v1253_v60 = vpop.f32.mrf.mxu1  ;;  %v1534_v0 = vmul.f32 0.044715, %v2744_v50  ;;  %v1536_v12 = vmul.f32 0.044715, %v2752_v59 }
 0x11b   : > { %v1621_v55 = vmul.f32 0.7978846, %v1597_v47  ;;  %v1598_v57 = vadd.f32 %v1574_v48, %v2719_v25  ;;  %v1581_v58 = vmul.f32 %v1557_v49, %v2727_v33  ;;  %v1623_v61 = vmul.f32 0.7978846, %v1599_v52 }
 0x11c   : > { %v1600_v62 = vadd.f32 %v1576_v53, %v2723_v28  ;;  %v1583_v63 = vmul.f32 %v1559_v56, %v2732_v37  ;;  %v1204_v1 = vpop.f32.mrf.mxu0  ;;  %v1255_v4 = vpop.f32.mrf.mxu1  ;;  %v1558_v8 = vmul.f32 %v1534_v0, %v2744_v50  ;;  %v2761_v7 = vadd.f32 %v1440_v15, %v1200_v46 }
 0x11d   : > { %2158 = vtanh.f32 %v1621_v55  ;;  %v1622_v2 = vmul.f32 0.7978846, %v1598_v57  ;;  %v1605_v3 = vadd.f32 %v1581_v58, %v2727_v33  ;;  %v2765_v17 = vadd.f32 %v2704_v31, %v1251_v51 }
 0x11e   : > { %2160 = vtanh.f32 %v1623_v61  ;;  %v1624_v5 = vmul.f32 0.7978846, %v1600_v62  ;;  %v1607_v6 = vadd.f32 %v1583_v63, %v2732_v37  ;;  %v1205_v9 = vpop.f32.mrf.mxu0  ;;  %v1256_v14 = vpop.f32.mrf.mxu1  ;;  %v1582_v20 = vmul.f32 %v1558_v8, %v2744_v50 }
 0x11f   : > { %2162 = vtanh.f32 %v1622_v2  ;;  %v1629_v10 = vmul.f32 0.7978846, %v1605_v3  ;;  %v1560_v23 = vmul.f32 %v1536_v12, %v2752_v59  ;;  %v1541_v24 = vmul.f32 0.044715, %v2761_v7 }
 0x120   : > { %2164 = vtanh.f32 %v1624_v5  ;;  %v1631_v21 = vmul.f32 0.7978846, %v1607_v6  ;;  %v1606_v26 = vadd.f32 %v1582_v20, %v2744_v50  ;;  %v1543_v27 = vmul.f32 0.044715, %v2765_v17 }
 0x121   : > { %2166 = vtanh.f32 %v1629_v10  ;;  %v1584_v15 = vmul.f32 %v1560_v23, %v2752_v59  ;;  %v1565_v29 = vmul.f32 %v1541_v24, %v2761_v7  ;;  %v2774_v30 = vadd.f32 %v2707_v16, %v1202_v54 }
 0x122   : > { %v2777_v31 = vadd.f32 %v2710_v18, %v1253_v60  ;;  %v1630_v32 = vmul.f32 0.7978846, %v1606_v26  ;;  %v1567_v34 = vmul.f32 %v1543_v27, %v2765_v17  ;;  %2168 = vtanh.f32 %v1631_v21 }
 0x123   : > { %v1608_v35 = vadd.f32 %v1584_v15, %v2752_v59  ;;  %v1589_v36 = vmul.f32 %v1565_v29, %v2761_v7  ;;  %v1542_v38 = vmul.f32 0.044715, %v2774_v30  ;;  %v1501_v57 = vmul.f32 0.5, %v2712_v19 }
 0x124   : > { %2170 = vtanh.f32 %v1630_v32  ;;  %v1591_v39 = vmul.f32 %v1567_v34, %v2765_v17  ;;  %v1544_v40 = vmul.f32 0.044715, %v2777_v31  ;;  %v1502_v58 = vmul.f32 0.5, %v2719_v25 }
 0x125   : > { %v1632_v16 = vmul.f32 0.7978846, %v1608_v35  ;;  %v1613_v18 = vadd.f32 %v1589_v36, %v2761_v7  ;;  %v1566_v41 = vmul.f32 %v1542_v38, %v2774_v30  ;;  %v1503_v62 = vmul.f32 0.5, %v2715_v22 }
 0x126   : > { %v1615_v42 = vadd.f32 %v1591_v39, %v2765_v17  ;;  %v1568_v43 = vmul.f32 %v1544_v40, %v2777_v31  ;;  %v1504_v63 = vmul.f32 0.5, %v2723_v28  ;;  %v1509_v9 = vmul.f32 0.5, %v2727_v33 }
 0x127   : > { %2172 = vtanh.f32 %v1632_v16  ;;  %v1637_v44 = vmul.f32 0.7978846, %v1613_v18  ;;  %v1590_v45 = vmul.f32 %v1566_v41, %v2774_v30  ;;  %v1510_v10 = vmul.f32 0.5, %v2744_v50 }
 0x128   : > { %v1639_v47 = vmul.f32 0.7978846, %v1615_v42  ;;  %v1592_v48 = vmul.f32 %v1568_v43, %v2777_v31  ;;  %v1511_v24 = vmul.f32 0.5, %v2732_v37  ;;  %v1512_v26 = vmul.f32 0.5, %v2752_v59 }
 0x129   : > { %2174 = vtanh.f32 %v1637_v44  ;;  %v1614_v52 = vadd.f32 %v1590_v45, %v2774_v30  ;;  %v1517_v33 = vmul.f32 0.5, %v2761_v7  ;;  %v1519_v36 = vmul.f32 0.5, %v2765_v17 }
 0x12a   : > { %v2159_v46 = vpop.eup %2158  ;;  %2176 = vtanh.f32 %v1639_v47  ;;  %v1616_v54 = vadd.f32 %v1592_v48, %v2777_v31  ;;  %v1518_v37 = vmul.f32 0.5, %v2774_v30  ;;  %v1520_v40 = vmul.f32 0.5, %v2777_v31 }
 0x12b   : > { %v2161_v49 = vpop.eup %2160  ;;  %v1669_v51 = vadd.f32 1.0, %v2159_v46  ;;  %v1638_v61 = vmul.f32 0.7978846, %v1614_v52  ;;  %v1455_v17 = vsub.s32 4, %v2691_v11  ;;  %v1463_v47 = vsub.s32 6, %v2691_v11 }
 0x12c   : > { %v2163_v53 = vpop.eup %2162  ;;  %v1671_v56 = vadd.f32 1.0, %v2161_v49  ;;  %v1640_v1 = vmul.f32 0.7978846, %v1616_v54  ;;  %v1459_v30 = vsub.s32 5, %v2691_v11  ;;  %v1467_v31 = vsub.s32 7, %v2691_v11 }
 0x12d   : > { %v2165_v55 = vpop.eup %2164  ;;  %v1670_v60 = vadd.f32 1.0, %v2163_v53  ;;  %v1693_v3 = vmul.f32 %v1669_v51, %v1501_v57  ;;  %2178 = vtanh.f32 %v1638_v61  ;;  %v1456_v48 = vrot.slane %v2697_v13, %v1455_v17 }
 0x12e   : > { %v1672_v0 = vadd.f32 1.0, %v2165_v55  ;;  %v2167_v2 = vpop.eup %2166  ;;  %v1695_v19 = vmul.f32 %v1671_v56, %v1503_v62  ;;  %2180 = vtanh.f32 %v1640_v1  ;;  %v2823_v49 = vrot.slane %v2697_v13, %v1463_v47 }
 0x12f   : > { %v1694_v4 = vmul.f32 %v1670_v60, %v1502_v58  ;;  %v2169_v22 = vpop.eup %2168  ;;  %v1677_v28 = vadd.f32 1.0, %v2167_v2  ;;  %v2826_v51 = vrot.slane %v2697_v13, %v1459_v30  ;;  %v2829_v53 = vrot.slane %v2697_v13, %v1467_v31 }
 0x130   : > { %v1696_v25 = vmul.f32 %v1672_v0, %v1504_v63  ;;  %v1679_v14 = vadd.f32 1.0, %v2169_v22 }
 0x131   : > { %v2115_v5 = vpack.c.bf16 %v1694_v4, %v1693_v3  ;;  %v2171_v8 = vpop.eup %2170  ;;  %v1701_v21 = vmul.f32 %v1677_v28, %v1509_v9 }
 0x132   : > { %v2116_v6 = vpack.c.bf16 %v1696_v25, %v1695_v19  ;;  %v1678_v12 = vadd.f32 1.0, %v2171_v8  ;;  %v1703_v34 = vmul.f32 %v1679_v14, %v1511_v24 }
 0x133   : > { %1797 = vst [vmem:[%s2801_s4] sm:$0xff] %v2115_v5 }
 0x134   : > { %1798 = vst [vmem:[%s2801_s4 + $0x8] sm:$0xff] %v2116_v6  ;;  %v2173_v20 = vpop.eup %2172  ;;  %v1702_v23 = vmul.f32 %v1678_v12, %v1510_v10 }
 0x135   : > { %v1680_v27 = vadd.f32 1.0, %v2173_v20 }
 0x136   : > { %v2175_v15 = vpop.eup %2174  ;;  %v2119_v29 = vpack.c.bf16 %v1702_v23, %v1701_v21 }
 0x137   : > { %v2177_v32 = vpop.eup %2176  ;;  %v1704_v35 = vmul.f32 %v1680_v27, %v1512_v26  ;;  %v1685_v50 = vadd.f32 1.0, %v2175_v15 }
 0x138   : > { %1801 = vst [vmem:[%s2801_s4 + $0x20] sm:$0xff] %v2119_v29  ;;  %v1687_v38 = vadd.f32 1.0, %v2177_v32 }
 0x139   : > { %v2120_v39 = vpack.c.bf16 %v1704_v35, %v1703_v34  ;;  %v1709_v18 = vmul.f32 %v1685_v50, %v1517_v33 }
 0x13a   : > { %v2179_v59 = vpop.eup %2178  ;;  %v1711_v42 = vmul.f32 %v1687_v38, %v1519_v36 }
 0x13b   : > { %v2181_v16 = vpop.eup %2180  ;;  %1802 = vst [vmem:[%s2801_s4 + $0x28] sm:$0xff] %v2120_v39  ;;  %v1686_v41 = vadd.f32 1.0, %v2179_v59 }
 0x13c   : > { %v1688_v43 = vadd.f32 1.0, %v2181_v16 }
 0x13d   : > { %v1710_v7 = vmul.f32 %v1686_v41, %v1518_v37 }
 0x13e   : > { %v1712_v44 = vmul.f32 %v1688_v43, %v1520_v40 }
 0x13f   : > { %v2123_v45 = vpack.c.bf16 %v1710_v7, %v1709_v18 }
 0x140   : > { %v2124_v46 = vpack.c.bf16 %v1712_v44, %v1711_v42 }
 0x141   : > { %1805 = vst [vmem:[%s2801_s4 + $0x40] sm:$0xff] %v2123_v45 }
 0x142   : > { %1806 = vst [vmem:[%s2801_s4 + $0x48] sm:$0xff] %v2124_v46 }
 0x150   : > { %v1292_v52 = vpop.f32.mrf.mxu0  ;;  %v1343_v54 = vpop.f32.mrf.mxu1 }
 0x151   : > { %v2831_v56 = vadd.f32 %v1456_v48, %v1292_v52  ;;  %v2834_v55 = vadd.f32 %v2823_v49, %v1343_v54 }
 0x152   : > { %v1294_v57 = vpop.f32.mrf.mxu0  ;;  %v1345_v60 = vpop.f32.mrf.mxu1 }
 0x153   : > { %v1529_v11 = vmul.f32 0.044715, %v2831_v56  ;;  %v2838_v58 = vadd.f32 %v2826_v51, %v1294_v57  ;;  %v1531_v61 = vmul.f32 0.044715, %v2834_v55  ;;  %v2842_v62 = vadd.f32 %v2829_v53, %v1345_v60 }
 0x154   : > { %v1296_v13 = vpop.f32.mrf.mxu0  ;;  %v1347_v2 = vpop.f32.mrf.mxu1 }
 0x155   : > { %v1553_v63 = vmul.f32 %v1529_v11, %v2831_v56  ;;  %v1530_v0 = vmul.f32 0.044715, %v2838_v58  ;;  %v2846_v1 = vadd.f32 %v1456_v48, %v1296_v13  ;;  %v1555_v3 = vmul.f32 %v1531_v61, %v2834_v55 }
 0x156   : > { %v1532_v4 = vmul.f32 0.044715, %v2842_v62  ;;  %v2851_v19 = vadd.f32 %v2823_v49, %v1347_v2  ;;  %v1298_v25 = vpop.f32.mrf.mxu0  ;;  %v1349_v28 = vpop.f32.mrf.mxu1 }
 0x157   : > { %v1577_v5 = vmul.f32 %v1553_v63, %v2831_v56  ;;  %v1554_v22 = vmul.f32 %v1530_v0, %v2838_v58  ;;  %v1537_v6 = vmul.f32 0.044715, %v2846_v1  ;;  %v1579_v8 = vmul.f32 %v1555_v3, %v2834_v55 }
 0x158   : > { %v1556_v9 = vmul.f32 %v1532_v4, %v2842_v62  ;;  %v1539_v10 = vmul.f32 0.044715, %v2851_v19  ;;  %v1302_v12 = vpop.f32.mrf.mxu0  ;;  %v2863_v23 = vadd.f32 %v2826_v51, %v1298_v25  ;;  %v1353_v24 = vpop.f32.mrf.mxu1  ;;  %v2871_v33 = vadd.f32 %v2829_v53, %v1349_v28 }
 0x159   : > { %v1601_v14 = vadd.f32 %v1577_v5, %v2831_v56  ;;  %v1578_v20 = vmul.f32 %v1554_v22, %v2838_v58  ;;  %v1561_v21 = vmul.f32 %v1537_v6, %v2846_v1  ;;  %v1603_v26 = vadd.f32 %v1579_v8, %v2834_v55 }
 0x15a   : > { %v1580_v27 = vmul.f32 %v1556_v9, %v2842_v62  ;;  %v1563_v15 = vmul.f32 %v1539_v10, %v2851_v19  ;;  %v1304_v29 = vpop.f32.mrf.mxu0  ;;  %v1355_v50 = vpop.f32.mrf.mxu1  ;;  %v1538_v37 = vmul.f32 0.044715, %v2863_v23  ;;  %v1540_v45 = vmul.f32 0.044715, %v2871_v33 }
 0x15b   : > { %v1625_v32 = vmul.f32 0.7978846, %v1601_v14  ;;  %v1602_v34 = vadd.f32 %v1578_v20, %v2838_v58  ;;  %v1585_v35 = vmul.f32 %v1561_v21, %v2846_v1  ;;  %v1627_v36 = vmul.f32 0.7978846, %v1603_v26 }
 0x15c   : > { %v1604_v38 = vadd.f32 %v1580_v27, %v2842_v62  ;;  %v1587_v39 = vmul.f32 %v1563_v15, %v2851_v19  ;;  %v1306_v59 = vpop.f32.mrf.mxu0  ;;  %v1357_v18 = vpop.f32.mrf.mxu1  ;;  %v1562_v43 = vmul.f32 %v1538_v37, %v2863_v23  ;;  %v2880_v46 = vadd.f32 %v1456_v48, %v1302_v12 }
 0x15d   : > { %2182 = vtanh.f32 %v1625_v32  ;;  %v1626_v40 = vmul.f32 0.7978846, %v1602_v34  ;;  %v1609_v16 = vadd.f32 %v1585_v35, %v2846_v1  ;;  %v2884_v30 = vadd.f32 %v2823_v49, %v1353_v24 }
 0x15e   : > { %2184 = vtanh.f32 %v1627_v36  ;;  %v1628_v41 = vmul.f32 0.7978846, %v1604_v38  ;;  %v1611_v42 = vadd.f32 %v1587_v39, %v2851_v19  ;;  %v1307_v7 = vpop.f32.mrf.mxu0  ;;  %v1358_v17 = vpop.f32.mrf.mxu1  ;;  %v1586_v47 = vmul.f32 %v1562_v43, %v2863_v23 }
 0x15f   : > { %2186 = vtanh.f32 %v1626_v40  ;;  %v1633_v44 = vmul.f32 0.7978846, %v1609_v16  ;;  %v1564_v52 = vmul.f32 %v1540_v45, %v2871_v33  ;;  %v1545_v54 = vmul.f32 0.044715, %v2880_v46 }
 0x160   : > { %2188 = vtanh.f32 %v1628_v41  ;;  %v1635_v31 = vmul.f32 0.7978846, %v1611_v42  ;;  %v1610_v57 = vadd.f32 %v1586_v47, %v2863_v23  ;;  %v1547_v11 = vmul.f32 0.044715, %v2884_v30 }
 0x161   : > { %2190 = vtanh.f32 %v1633_v44  ;;  %v1588_v48 = vmul.f32 %v1564_v52, %v2871_v33  ;;  %v1569_v60 = vmul.f32 %v1545_v54, %v2880_v46  ;;  %v2893_v61 = vadd.f32 %v2826_v51, %v1304_v29 }
 0x162   : > { %v2896_v49 = vadd.f32 %v2829_v53, %v1355_v50  ;;  %v1634_v13 = vmul.f32 0.7978846, %v1610_v57  ;;  %v1571_v63 = vmul.f32 %v1547_v11, %v2884_v30  ;;  %2192 = vtanh.f32 %v1635_v31 }
 0x163   : > { %v1612_v0 = vadd.f32 %v1588_v48, %v2871_v33  ;;  %v1593_v2 = vmul.f32 %v1569_v60, %v2880_v46  ;;  %v1546_v3 = vmul.f32 0.044715, %v2893_v61  ;;  %v1505_v29 = vmul.f32 0.5, %v2831_v56 }
 0x164   : > { %2194 = vtanh.f32 %v1634_v13  ;;  %v1595_v4 = vmul.f32 %v1571_v63, %v2884_v30  ;;  %v1548_v25 = vmul.f32 0.044715, %v2896_v49  ;;  %v1506_v32 = vmul.f32 0.5, %v2838_v58 }
 0x165   : > { %v1636_v51 = vmul.f32 0.7978846, %v1612_v0  ;;  %v1617_v5 = vadd.f32 %v1593_v2, %v2880_v46  ;;  %v1570_v53 = vmul.f32 %v1546_v3, %v2893_v61  ;;  %v1507_v50 = vmul.f32 0.5, %v2834_v55 }
 0x166   : > { %v1619_v22 = vadd.f32 %v1595_v4, %v2884_v30  ;;  %v1572_v6 = vmul.f32 %v1548_v25, %v2896_v49  ;;  %v1508_v36 = vmul.f32 0.5, %v2842_v62  ;;  %v1513_v55 = vmul.f32 0.5, %v2846_v1 }
 0x167   : > { %2196 = vtanh.f32 %v1636_v51  ;;  %v1641_v28 = vmul.f32 0.7978846, %v1617_v5  ;;  %v1594_v8 = vmul.f32 %v1570_v53, %v2893_v61  ;;  %v1514_v62 = vmul.f32 0.5, %v2863_v23 }
 0x168   : > { %v1643_v10 = vmul.f32 0.7978846, %v1619_v22  ;;  %v1596_v12 = vmul.f32 %v1572_v6, %v2896_v49  ;;  %v1515_v31 = vmul.f32 0.5, %v2851_v19  ;;  %v1516_v52 = vmul.f32 0.5, %v2871_v33 }
 0x169   : > { %2198 = vtanh.f32 %v1641_v28  ;;  %v1618_v21 = vadd.f32 %v1594_v8, %v2893_v61  ;;  %v1521_v3 = vmul.f32 0.5, %v2880_v46  ;;  %v1522_v19 = vmul.f32 0.5, %v2893_v61 }
 0x16a   : > { %v2183_v9 = vpop.eup %2182  ;;  %2200 = vtanh.f32 %v1643_v10  ;;  %v1620_v27 = vadd.f32 %v1596_v12, %v2896_v49  ;;  %v1523_v4 = vmul.f32 0.5, %v2884_v30  ;;  %v1524_v25 = vmul.f32 0.5, %v2896_v49 }
 0x16b   : > { %v2185_v14 = vpop.eup %2184  ;;  %v1673_v20 = vadd.f32 1.0, %v2183_v9  ;;  %v1642_v35 = vmul.f32 0.7978846, %v1618_v21 }
 0x16c   : > { %v2187_v24 = vpop.eup %2186  ;;  %v1675_v26 = vadd.f32 1.0, %v2185_v14  ;;  %v1644_v39 = vmul.f32 0.7978846, %v1620_v27 }
 0x16d   : > { %v2189_v15 = vpop.eup %2188  ;;  %v1674_v34 = vadd.f32 1.0, %v2187_v24  ;;  %v1697_v59 = vmul.f32 %v1673_v20, %v1505_v29  ;;  %2202 = vtanh.f32 %v1642_v35 }
 0x16e   : > { %v1676_v38 = vadd.f32 1.0, %v2189_v15  ;;  %v2191_v37 = vpop.eup %2190  ;;  %v1699_v16 = vmul.f32 %v1675_v26, %v1507_v50  ;;  %2204 = vtanh.f32 %v1644_v39 }
 0x16f   : > { %v1698_v40 = vmul.f32 %v1674_v34, %v1506_v32  ;;  %v2193_v41 = vpop.eup %2192  ;;  %v1681_v42 = vadd.f32 1.0, %v2191_v37 }
 0x170   : > { %v1700_v18 = vmul.f32 %v1676_v38, %v1508_v36  ;;  %v1683_v44 = vadd.f32 1.0, %v2193_v41 }
 0x171   : > { %v2117_v56 = vpack.c.bf16 %v1698_v40, %v1697_v59  ;;  %v2195_v43 = vpop.eup %2194  ;;  %v1705_v17 = vmul.f32 %v1681_v42, %v1513_v55 }
 0x172   : > { %v2118_v58 = vpack.c.bf16 %v1700_v18, %v1699_v16  ;;  %v1682_v7 = vadd.f32 1.0, %v2195_v43  ;;  %v1707_v60 = vmul.f32 %v1683_v44, %v1515_v31 }
 0x173   : > { %1799 = vst [vmem:[%s2801_s4 + $0x10] sm:$0xff] %v2117_v56 }
 0x174   : > { %1800 = vst [vmem:[%s2801_s4 + $0x18] sm:$0xff] %v2118_v58  ;;  %v2197_v45 = vpop.eup %2196  ;;  %v1706_v47 = vmul.f32 %v1682_v7, %v1514_v62 }
 0x175   : > { %v1684_v54 = vadd.f32 1.0, %v2197_v45 }
 0x176   : > { %v2199_v57 = vpop.eup %2198  ;;  %v2121_v11 = vpack.c.bf16 %v1706_v47, %v1705_v17 }
 0x177   : > { %v2201_v48 = vpop.eup %2200  ;;  %v1708_v13 = vmul.f32 %v1684_v54, %v1516_v52  ;;  %v1689_v63 = vadd.f32 1.0, %v2199_v57 }
 0x178   : > { %1803 = vst [vmem:[%s2801_s4 + $0x30] sm:$0xff] %v2121_v11  ;;  %v1691_v0 = vadd.f32 1.0, %v2201_v48 }
 0x179   : > { %v2122_v1 = vpack.c.bf16 %v1708_v13, %v1707_v60  ;;  %v1713_v5 = vmul.f32 %v1689_v63, %v1521_v3 }
 0x17a   : > { %v2203_v23 = vpop.eup %2202  ;;  %v1715_v22 = vmul.f32 %v1691_v0, %v1523_v4 }
 0x17b   : > { %v2205_v2 = vpop.eup %2204  ;;  %1804 = vst [vmem:[%s2801_s4 + $0x38] sm:$0xff] %v2122_v1  ;;  %v1690_v33 = vadd.f32 1.0, %v2203_v23 }
 0x17c   : > { %v1692_v51 = vadd.f32 1.0, %v2205_v2 }
 0x17d   : > { %v1714_v53 = vmul.f32 %v1690_v33, %v1522_v19 }
 0x17e   : > { %v1716_v6 = vmul.f32 %v1692_v51, %v1524_v25 }
 0x17f   : > { %v2125_v28 = vpack.c.bf16 %v1714_v53, %v1713_v5 }
 0x180   : > { %v2126_v8 = vpack.c.bf16 %v1716_v6, %v1715_v22 }
 0x181   : > { %1807 = vst [vmem:[%s2801_s4 + $0x50] sm:$0xff] %v2125_v28 }
 0x182   : > { %1808 = vst [vmem:[%s2801_s4 + $0x58] sm:$0xff] %v2126_v8 }
 0x183 PF: > { %s13_s14 = sadd.s32 1, %s2228_s14   ;;  %s2943_s12 = smov %s2224_s13 }
 0x184   : > { %p10_p5 = scmp.ge.s32.totalorder %s13_s14, 4   ;;  %s2944_s13 = smov %s2946_s15 }
 0x186   :  { %12 = sbr.rel (!%p10_p5) target bundleno = 2 (0x2), region = 76 }

// kernel: flux_forward.79
= control target key start
LH: loop header
LB: loop body
LE: loop exit
PB: predicated region body
PF: predicated region fallthrough
CT: control target
= control target key end

     0   :  { %s807_s12 = smov 0   ;;  %s809_s13 = smov 0   ;;  %s895_s0 = inlined_call_operand.vmem [shape: bf16[2,16,256], index: 0, kind: input, shape index: {}]   ;;  %s896_s1 = inlined_call_operand.vmem [shape: bf16[256,16], index: 1, kind: input, shape index: {}]   ;;  %s897_s2 = inlined_call_operand.vmem [shape: f32[1,16], index: 2, kind: input, shape index: {}]   ;;  %s898_s3 = inlined_call_operand.vmem [shape: bf16[2,16,16], index: 3, kind: output, shape index: {}]  }
   0x1   :  { %s811_s14 = smov 0  }
   0x2 LB: > { %s39_s15 = sadd.s32 1, %s780_s13  ;;  %p664_p0 = scmp.ge.s32.totalorder %s784_s14, 1  ;;  %s784_s14 = sphi %s811_s14, %s13_s14   ;;  %s780_s13 = sphi %s809_s13, %s900_s13   ;;  %s776_s12 = sphi %s807_s12, %s899_s12  }
   0x3   : > { %p41_p1 = scmp.ge.s32.totalorder %s39_s15, 2  ;;  %p206_p2 = scmp.lt.s32.totalorder %s784_s14, 3 }
   0x5   : > { %s902_s15 = smov (%p41_p1, %s39_s15), 0  ;;  %p207_p3 = pnand %p664_p0, %p206_p2 }
   0x6   : > { %p259_p4 = scmp.lt.s32.totalorder (!%p207_p3), %s776_s12, 1 }
   0x7   : > { %210 = sbr.rel (%p207_p3) target bundleno = 261 (0x105), region = 32 }
   0xc   : > { %v743_v0 = vld [vmem:[%s896_s1 + $0x78] sm:$0xff]   ;;  %v745_v2 = vld [vmem:[%s896_s1 + $0x70] sm:$0xff]   ;;  %v747_v4 = vld [vmem:[%s896_s1 + $0x68] sm:$0xff]   ;;  %s904_s12 = smov (!%p259_p4, %s776_s12), 1  ;;  %vm303_vm0 = vcmask 130048   ;;  %v786_v18 = vmov 0.0  }
   0xd   : > { %v744_v1 = vld [vmem:[%s896_s1 + $0x38] sm:$0xff]   ;;  %696 = vmatprep.subr.bf16.mxu0 %v743_v0  ;;  %v746_v3 = vld [vmem:[%s896_s1 + $0x30] sm:$0xff]   ;;  %v748_v5 = vld [vmem:[%s896_s1 + $0x28] sm:$0xff]   ;;  %s692_s5 = sshll.u32 %s904_s12, 4  ;;  %304 = vst.msk [vmem:[#allocation2] sm:$0xff] %vm303_vm0, %v786_v18  ;;  %s693_s4 = sshll.u32 %s904_s12, 3 }
   0xe   : > { %697 = vmatpush3.bf16.msra.mxu0 %v744_v1  ;;  %v749_v6 = vld [vmem:[%s896_s1 + $0x60] sm:$0xff]   ;;  %v751_v8 = vld [vmem:[%s896_s1 + $0x58] sm:$0xff]   ;;  %s270_s10 = scalar_lea.vmem %s895_s0, %s692_s5  ;;  %v753_v10 = vld [vmem:[%s896_s1 + $0x50] sm:$0xff]   ;;  %305 = vst.msk [vmem:[#allocation2 + $0x8] sm:$0xff] %vm303_vm0, %v786_v18  ;;  %s296_s7 = scalar_lea.vmem %s898_s3, %s693_s4  ;;  %vm516_vm1 = vcmask 125952  }
   0xf   : > { %698 = vmatprep.subr.bf16.mxu0 %v745_v2  ;;  %v750_v7 = vld [vmem:[%s896_s1 + $0x20] sm:$0xff]   ;;  %v752_v9 = vld [vmem:[%s896_s1 + $0x18] sm:$0xff]   ;;  %v754_v12 = vld [vmem:[%s896_s1 + $0x10] sm:$0xff]  }
  0x10   : > { %v761_v11 = vld [vmem:[%s270_s10 + $0x4] ss:$8 sps:$4 sm:$0xff]   ;;  %v759_v17 = vld [vmem:[%s270_s10] ss:$8 sps:$4 sm:$0xff]  }
  0x11   : > { %480 = vmatprep.mubr.bf16.mxu0 %v761_v11  ;;  %v755_v13 = vld [vmem:[%s896_s1 + $0x48] sm:$0xff]   ;;  %v757_v15 = vld [vmem:[%s896_s1 + $0x40] sm:$0xff]  }
  0x12   : > { %699 = vmatpush3.bf16.msra.mxu0 %v746_v3  ;;  %v756_v14 = vld [vmem:[%s896_s1 + $0x8] sm:$0xff]   ;;  %v758_v16 = vld [vmem:[%s896_s1] sm:$0xff]  }
  0x13   : > { %700 = vmatprep.subr.bf16.mxu0 %v747_v4  ;;  %v687_v29 = vld [vmem:[%s897_s2] ss:$0 sm:$0xff] }
  0x14   : > { %v306_v20 = vld [vmem:[#allocation2] sm:$0xff] }
  0x15   : > { %v307_v25 = vld [vmem:[#allocation2 + $0x8] sm:$0xff] }
  0x16   : > { %701 = vmatpush3.bf16.msra.mxu0 %v748_v5 }
  0x17   : > { %702 = vmatprep.subr.bf16.mxu0 %v749_v6 }
  0x1a   : > { %703 = vmatpush3.bf16.msra.mxu0 %v750_v7 }
  0x1b   : > { %704 = vmatprep.subr.bf16.mxu0 %v751_v8 }
  0x1e   : > { %705 = vmatpush3.bf16.msra.mxu0 %v752_v9 }
  0x1f   : > { %706 = vmatprep.subr.bf16.mxu0 %v753_v10 }
  0x22   : > { %707 = vmatpush3.bf16.msra.mxu0 %v754_v12 }
  0x23   : > { %708 = vmatprep.subr.bf16.mxu0 %v755_v13 }
  0x26   : > { %709 = vmatpush3.bf16.msra.mxu0 %v756_v14 }
  0x27   : > { %710 = vmatprep.subr.bf16.mxu0 %v757_v15 }
  0x2a   : > { %711 = vmatpush3.bf16.msra.mxu0 %v758_v16 }
  0x2d   : > { %481 = vmatmul.mubr.bf16.vlgmr.msra.gmra.mxu0 %v759_v17 }
  0xed   : > { %v712_v19 = vpop.f32.mrf.mxu0 }
  0xef   : > { %v713_v21 = vpop.f32.mrf.mxu0 }
  0xf0   : > { %v714_v22 = vadd.f32 %v713_v21, %v712_v19 }
  0xf1   : > { %v715_v23 = vpop.f32.mrf.mxu0 }
  0xf2   : > { %v489_v24 = vadd.f32 %v714_v22, %v306_v20 }
  0xf3   : > { %v716_v26 = vpop.f32.mrf.mxu0 }
  0xf4   : > { %492 = vst.msk [vmem:[#allocation2] sm:$0xff] %vm303_vm0, %v489_v24  ;;  %v717_v27 = vadd.f32 %v716_v26, %v715_v23 }
  0xf6   : > { %v490_v28 = vadd.f32 %v717_v27, %v307_v25 }
  0xf8   : > { %493 = vst.msk [vmem:[#allocation2 + $0x8] sm:$0xff] %vm303_vm0, %v490_v28 }
  0xfb   : > { %v497_v30 = vld [vmem:[#allocation2] sm:$0xff] }
  0xfc   : > { %v506_v31 = vadd.f32 %v687_v29, %v497_v30 }
  0xfe   : > { %v694_v32 = vpack.c.bf16 %v506_v31, %v506_v31 }
  0xff   : > { %v498_v33 = vld [vmem:[#allocation2 + $0x8] sm:$0xff] }
 0x100   : > { %517 = vst.msk [vmem:[%s296_s7] sm:$0xf] %vm516_vm1, %v694_v32  ;;  %v507_v34 = vadd.f32 %v687_v29, %v498_v33 }
 0x102   : > { %v695_v35 = vpack.c.bf16 %v507_v34, %v507_v34 }
 0x104   : > { %518 = vst.msk [vmem:[%s296_s7 + $0x4] sm:$0xf] %vm516_vm1, %v695_v35 }
 0x105 PF: > { %s13_s14 = sadd.s32 1, %s784_s14   ;;  %s899_s12 = smov %s780_s13 }
 0x106   : > { %p10_p5 = scmp.ge.s32.totalorder %s13_s14, 4   ;;  %s900_s13 = smov %s902_s15 }
 0x108   :  { %12 = sbr.rel (!%p10_p5) target bundleno = 2 (0x2), region = 76 }

</bundles_post_ra>
